<compile_context>
chip_gen: v5e
topology: v5e:2x2
jax: 0.10.0
libtpu: 0.0.40
codegen_flags: <defaults>
</compile_context>

<pallas_src>
import functools

import jax
import jax.numpy as jnp
from jax import lax
from jax.experimental import pallas as pl
from jax.experimental.pallas import tpu as pltpu


# ----------------------------------------------------------------------------
# Pallas kernel: full residual stack, activation resident in VMEM
# ----------------------------------------------------------------------------
def _make_stack_kernel(H, W, C, SH, scale):
    K = 9 * C
    COL0 = 8                      # sublane-aligned interior column offset (halo at 7 / 8+W)
    n_strips = H // SH

    def conv3x3_strips(src_ref, w, emit):
        """3x3 'same' conv of the (H, W, C) interior of src_ref with w: (9C, C) bf16.

        Strip-tiled: per strip of SH output rows, build a (SH*W, 9C) bf16 im2col patch
        from ref-offset loads and run one deep-K MXU matmul; emit(r0, y_f32) stores the
        (SH, W, C) f32 result for rows [r0, r0+SH).
        """
        def body(s, carry):
            r0 = s * SH
            if SH % 8 == 0:
                r0 = pl.multiple_of(r0, 8)
            pieces = [
                src_ref[pl.ds(r0 + dy, SH), pl.ds(COL0 - 1 + dx, W), :]
                for dy in range(3)
                for dx in range(3)
            ]
            patch = jnp.concatenate(pieces, axis=-1).reshape(SH * W, K)   # bf16, no re-cast
            y = jnp.dot(patch, w, preferred_element_type=jnp.float32)
            emit(r0, y.reshape(SH, W, C))
            return carry

        lax.fori_loop(0, n_strips, body, 0, unroll=n_strips <= 8)

    def kernel(out_ref, wblk_ref, wlast_ref, o_ref, h_acc, h_bf, t_pad):
        # out_ref:   (H, W, C) f32        conv1 activation (resident per image)
        # wblk_ref:  (nb, 2, 9C, C) bf16  resident residual-block weights
        # wlast_ref: (9C, C) bf16         resident last_layer weight
        # o_ref:     (H, W, C) f32        stack output (single HBM writeback per image)
        # h_acc:     (H, W, C) f32        residual accumulator (no halo needed)
        # h_bf:      (H+2, W_pad, C) bf16 conv-input shadow of h, zero halo
        # t_pad:     (H+2, W_pad, C) bf16 relu(conv1_b(h)) temp, zero halo
        b = pl.program_id(1)
        b_last = pl.num_programs(1) - 1

        # --- first step for this image: initialize the resident activation ----
        @pl.when(b == 0)
        def _init():
            h_bf[...] = jnp.zeros_like(h_bf)
            t_pad[...] = jnp.zeros_like(t_pad)
            out0 = out_ref[...]
            h_acc[...] = out0
            h_bf[pl.ds(1, H), pl.ds(COL0, W), :] = out0.astype(jnp.bfloat16)

        # --- residual block: h = scale * conv2(relu(conv1(h))) + h ------------
        @pl.when(b < b_last)
        def _res_block():
            bb = jnp.minimum(b, wblk_ref.shape[0] - 1)   # guard (branch untaken at b_last)
            w1 = wblk_ref[bb, 0]
            w2 = wblk_ref[bb, 1]

            def emit_relu(r0, y):
                t_pad[pl.ds(1 + r0, SH), pl.ds(COL0, W), :] = (
                    jnp.maximum(y, 0.0).astype(jnp.bfloat16))

            conv3x3_strips(h_bf, w1, emit_relu)

            def emit_residual(r0, y):
                h_new = jnp.float32(scale) * y + h_acc[pl.ds(r0, SH), :, :]   # f32 accumulate
                h_acc[pl.ds(r0, SH), :, :] = h_new
                h_bf[pl.ds(1 + r0, SH), pl.ds(COL0, W), :] = h_new.astype(jnp.bfloat16)

            conv3x3_strips(t_pad, w2, emit_residual)

        # --- last step: h = last_layer(h) + out; write the single output ------
        @pl.when(b == b_last)
        def _last_layer():
            w_last = wlast_ref[...]

            def emit_out(r0, y):
                o_ref[pl.ds(r0, SH), :, :] = (
                    y + out_ref[pl.ds(r0, SH), :, :]).astype(o_ref.dtype)

            conv3x3_strips(h_bf, w_last, emit_out)

    return kernel


def _pick_strip_height(H, W, C, budget_bytes=2 << 20):
    """Largest divisor of H whose (SH*W, 9C) bf16 im2col patch stays under budget."""
    per_row = max(1, W * 9 * C * 2)
    sh = max(1, min(H, budget_bytes // per_row))
    while H % sh:
        sh -= 1
    return int(sh)


def _vmem_limit_bytes(H, W, C, W_pad, nb, SH):
    img_f32 = H * W * C * 4
    io_blocks = 2 * 2 * img_f32                           # in + out image blocks, double-buffered
    scratch = img_f32 + 2 * (H + 2) * W_pad * C * 2       # h_acc f32 + {h_bf, t_pad} bf16
    weights = 2 * (2 * nb + 1) * 9 * C * C * 2            # resident bf16 weights (x2 headroom)
    strips = 2 * (SH * W * 9 * C * 2 + SH * W * C * 4)    # im2col patch + f32 strip result
    est = io_blocks + scratch + weights + strips
    return int(min(100 << 20, max(32 << 20, int(est * 1.5) + (4 << 20))))


def resnet_stack(out_nhwc, w_blocks, w_last, *, scale):
    """All residual blocks + last_layer (+ skip with `out`) in one pallas_call.

    out_nhwc: (N, H, W, C) f32   — result of conv1 (also the skip input of last_layer).
    w_blocks: (nb, 2, 9C, C) bf16 — flattened (ky, kx, cin)-major residual-block weights.
    w_last:   (9C, C) bf16        — flattened last_layer weight.
    """
    N, H, W, C = out_nhwc.shape
    nb = int(w_blocks.shape[0])
    assert nb >= 1
    if W % 8 != 0:
        # TODO(synk): support W % 8 != 0 (needs a re-tiling im2col reshape, or column
        # padding plus per-block halo re-zeroing); common MRI recon widths are /8.
        raise NotImplementedError("resnet_stack requires W % 8 == 0")
    nsteps = nb + 1
    W_pad = ((W + 9 + 7) // 8) * 8          # interior at cols [8, 8+W), zero halo at 7 / 8+W
    SH = _pick_strip_height(H, W, C)

    kernel = _make_stack_kernel(H, W, C, SH, float(scale))

    return pl.pallas_call(
        kernel,
        out_shape=jax.ShapeDtypeStruct((N, H, W, C), out_nhwc.dtype),
        grid=(N, nsteps),
        in_specs=[
            # conv1 activation: constant block index across b -> DMA'd once per image.
            pl.BlockSpec((None, H, W, C), lambda n, b: (n, 0, 0, 0)),
            # all residual-block weights: constant index map -> fully resident.
            pl.BlockSpec((nb, 2, 9 * C, C), lambda n, b: (0, 0, 0, 0)),
            # last_layer weight: resident.
            pl.BlockSpec((9 * C, C), lambda n, b: (0, 0)),
        ],
        out_specs=pl.BlockSpec((None, H, W, C), lambda n, b: (n, 0, 0, 0)),
        scratch_shapes=[
            pltpu.VMEM((H, W, C), jnp.float32),             # h (f32 residual accumulator)
            pltpu.VMEM((H + 2, W_pad, C), jnp.bfloat16),    # bf16 conv-input shadow of h
            pltpu.VMEM((H + 2, W_pad, C), jnp.bfloat16),    # relu(conv1_b(h)) temp
        ],
        input_output_aliases={0: 0},                         # conv1 act. is dead after the stack
        compiler_params=pltpu.CompilerParams(
            dimension_semantics=("parallel", "arbitrary"),
            vmem_limit_bytes=_vmem_limit_bytes(H, W, C, W_pad, nb, SH),
        ),
        # TODO(synk): for N == 1 on v7x (2 TensorCores) add a spatially parallel leading
        # grid axis; with batch-only "parallel" one core idles.
    )(out_nhwc, w_blocks, w_last)


# ----------------------------------------------------------------------------
# Boundary convs (tiny channel counts) — left to XLA per perf review
# ----------------------------------------------------------------------------
def _conv_same(x_nhwc, w_hwio):
    return lax.conv_general_dilated(
        x_nhwc, w_hwio, window_strides=(1, 1), padding="SAME",
        dimension_numbers=("NHWC", "HWIO", "NHWC"),
    )


# ----------------------------------------------------------------------------
# Parameter init (xavier normal, matching nn.init.xavier_normal_ on Conv2d)
# ----------------------------------------------------------------------------
def _xavier_normal_conv(key, cin, cout, k=3):
    fan_in = cin * k * k
    fan_out = cout * k * k
    std = (2.0 / (fan_in + fan_out)) ** 0.5
    return std * jax.random.normal(key, (k, k, cin, cout), dtype=jnp.float32)  # HWIO


def init_params(key, nb_res_blocks=15, channels=64):
    keys = jax.random.split(key, 3 + 2 * nb_res_blocks)
    return {
        "conv1": _xavier_normal_conv(keys[0], 2, channels),
        "blocks": [
            (
                _xavier_normal_conv(keys[1 + 2 * i], channels, channels),
                _xavier_normal_conv(keys[2 + 2 * i], channels, channels),
            )
            for i in range(nb_res_blocks)
        ],
        "last": _xavier_normal_conv(keys[1 + 2 * nb_res_blocks], channels, channels),
        "final": _xavier_normal_conv(keys[2 + 2 * nb_res_blocks], channels, 2),
    }


# ----------------------------------------------------------------------------
# Full forward pass (NCHW boundary, like the PyTorch module)
# ----------------------------------------------------------------------------
@functools.partial(jax.jit, static_argnames=("regularization_factor",))
def residual_network(x_nchw, params, regularization_factor=0.1):
    x = jnp.transpose(x_nchw, (0, 2, 3, 1))                 # NCHW -> NHWC
    out = _conv_same(x, params["conv1"])                    # conv1 (2 -> C), XLA
    C = out.shape[-1]

    def flat(w):                                            # (3,3,Cin,Cout) -> (9*Cin, Cout)
        return w.reshape(9 * C, C)

    w_blocks = jnp.stack(
        [jnp.stack([flat(w1), flat(w2)]) for (w1, w2) in params["blocks"]]
    ).astype(jnp.bfloat16)                                  # (nb, 2, 9C, C), resident in-kernel
    w_last = flat(params["last"]).astype(jnp.bfloat16)      # (9C, C)

    h = resnet_stack(out, w_blocks, w_last, scale=regularization_factor)  # fused Pallas stack
    y = _conv_same(h, params["final"])                      # final_layer (C -> 2), XLA
    return jnp.transpose(y, (0, 3, 1, 2))                   # NHWC -> NCHW


# ----------------------------------------------------------------------------
# Pure-JAX reference (for correctness check)
# ----------------------------------------------------------------------------
def residual_network_ref(x_nchw, params, regularization_factor=0.1):
    x = jnp.transpose(x_nchw, (0, 2, 3, 1))
    out = _conv_same(x, params["conv1"])
    h = out
    for (w1, w2) in params["blocks"]:
        h = regularization_factor * _conv_same(jnp.maximum(_conv_same(h, w1), 0.0), w2) + h
    h = _conv_same(h, params["last"]) + out
    y = _conv_same(h, params["final"])
    return jnp.transpose(y, (0, 3, 1, 2))


if __name__ == "__main__":
    # small synthetic config: batch=2, 2 input channels (real/imag), 16x16 spatial,
    # 8 hidden channels, 3 residual blocks, scaling factor 0.1
    key = jax.random.PRNGKey(0)
    k_x, k_p = jax.random.split(key)

    N, H, W = 2, 16, 16
    channels = 8
    nb_res_blocks = 3

    x = jax.random.normal(k_x, (N, 2, H, W), dtype=jnp.float32)   # NCHW like PyTorch
    params = init_params(k_p, nb_res_blocks=nb_res_blocks, channels=channels)

    y = residual_network(x, params, regularization_factor=0.1)
    y = jax.block_until_ready(y)

    y_ref = residual_network_ref(x, params, regularization_factor=0.1)
    assert y.shape == (N, 2, H, W)

    # bf16 matmul operands / bf16 conv-input path (f32 residual accumulate) -> loosen
    # tolerance vs the f32 reference.
    max_err = float(jnp.max(jnp.abs(y - y_ref)))
    ref_mag = float(jnp.max(jnp.abs(y_ref)))
    assert max_err <= 3e-2 * ref_mag + 1e-5, f"mismatch vs JAX reference: {max_err} / {ref_mag}"

    print("KERNEL_OK")
</pallas_src>

<mosaic_0001>
module attributes {stable_mosaic.version = 11 : i64} {
  func.func @kernel(%arg0: i32, %arg1: i32, %arg2: memref<1x16x16x8xf32, #tpu.memory_space<vmem>>, %arg3: memref<3x2x72x8xbf16, #tpu.memory_space<vmem>>, %arg4: memref<72x8xbf16, #tpu.memory_space<vmem>>, %arg5: memref<1x16x16x8xf32, #tpu.memory_space<vmem>>, %arg6: memref<16x16x8xf32, #tpu.memory_space<vmem>>, %arg7: memref<18x32x8xbf16, #tpu.memory_space<vmem>>, %arg8: memref<18x32x8xbf16, #tpu.memory_space<vmem>>) attributes {dimension_semantics = [#tpu.dimension_semantics<parallel>, #tpu.dimension_semantics<arbitrary>], iteration_bounds = array<i64: 2, 4>, scalar_prefetch = 0 : i64, scratch_operands = 3 : i64, tpu.core_type = #tpu.core_type<tc>, window_params = [{transform_indices = @transform_0, window_bounds = array<i64: 1, 16, 16, 8>}, {pipeline_mode = #tpu.pipeline_mode<synchronous>, transform_indices = @transform_1, window_bounds = array<i64: 3, 2, 72, 8>}, {pipeline_mode = #tpu.pipeline_mode<synchronous>, transform_indices = @transform_2, window_bounds = array<i64: 72, 8>}, {transform_indices = @transform_3, window_bounds = array<i64: 1, 16, 16, 8>}]} {
    %c0_i32 = arith.constant 0 : i32
    %0 = arith.cmpi eq, %arg1, %c0_i32 : i32
    %1 = arith.extui %0 : i1 to i32
    %c0_i32_0 = arith.constant 0 : i32
    %2 = arith.cmpi ne, %1, %c0_i32_0 : i32
    scf.if %2 {
      %cst = arith.constant 0.000000e+00 : bf16
      %9 = vector.broadcast %cst : bf16 to vector<18x32x8xbf16>
      %c0 = arith.constant 0 : index
      %c0_4 = arith.constant 0 : index
      %c0_5 = arith.constant 0 : index
      %10 = vector.load %arg7[%c0, %c0_4, %c0_5] : memref<18x32x8xbf16, #tpu.memory_space<vmem>>, vector<18x32x8xbf16>
      tpu.vector_store %arg7[%c0, %c0_4, %c0_5], %9 {strides = array<i32>} : memref<18x32x8xbf16, #tpu.memory_space<vmem>>, vector<18x32x8xbf16>,
      %cst_6 = arith.constant 0.000000e+00 : bf16
      %11 = vector.broadcast %cst_6 : bf16 to vector<18x32x8xbf16>
      %c0_7 = arith.constant 0 : index
      %c0_8 = arith.constant 0 : index
      %c0_9 = arith.constant 0 : index
      %12 = vector.load %arg8[%c0_7, %c0_8, %c0_9] : memref<18x32x8xbf16, #tpu.memory_space<vmem>>, vector<18x32x8xbf16>
      tpu.vector_store %arg8[%c0_7, %c0_8, %c0_9], %11 {strides = array<i32>} : memref<18x32x8xbf16, #tpu.memory_space<vmem>>, vector<18x32x8xbf16>,
      %c0_10 = arith.constant 0 : index
      %c0_11 = arith.constant 0 : index
      %c0_12 = arith.constant 0 : index
      %c0_13 = arith.constant 0 : index
      %13 = vector.load %arg2[%c0_10, %c0_11, %c0_12, %c0_13] : memref<1x16x16x8xf32, #tpu.memory_space<vmem>>, vector<1x16x16x8xf32>
      %14 = vector.shape_cast %13 : vector<1x16x16x8xf32> to vector<16x16x8xf32>
      %c0_14 = arith.constant 0 : index
      %c0_15 = arith.constant 0 : index
      %c0_16 = arith.constant 0 : index
      %15 = vector.load %arg6[%c0_14, %c0_15, %c0_16] : memref<16x16x8xf32, #tpu.memory_space<vmem>>, vector<16x16x8xf32>
      tpu.vector_store %arg6[%c0_14, %c0_15, %c0_16], %14 {strides = array<i32>} : memref<16x16x8xf32, #tpu.memory_space<vmem>>, vector<16x16x8xf32>,
      %16 = arith.truncf %14 : vector<16x16x8xf32> to vector<16x16x8xbf16>
      %c1 = arith.constant 1 : index
      %c8 = arith.constant 8 : index
      %c0_17 = arith.constant 0 : index
      %17 = vector.load %arg7[%c1, %c8, %c0_17] : memref<18x32x8xbf16, #tpu.memory_space<vmem>>, vector<16x16x8xbf16>
      tpu.vector_store %arg7[%c1, %c8, %c0_17], %16 {strides = array<i32>} : memref<18x32x8xbf16, #tpu.memory_space<vmem>>, vector<16x16x8xbf16>,
    } else {
    }
    %c3_i32 = arith.constant 3 : i32
    %3 = arith.cmpi slt, %arg1, %c3_i32 : i32
    %4 = arith.extui %3 : i1 to i32
    %c0_i32_1 = arith.constant 0 : i32
    %5 = arith.cmpi ne, %4, %c0_i32_1 : i32
    scf.if %5 {
      %c2_i32 = arith.constant 2 : i32
      %9 = arith.minsi %arg1, %c2_i32 : i32
      %10 = arith.index_cast %9 : i32 to index
      %c0 = arith.constant 0 : index
      %c0_4 = arith.constant 0 : index
      %c0_5 = arith.constant 0 : index
      %11 = vector.load %arg3[%10, %c0, %c0_4, %c0_5] : memref<3x2x72x8xbf16, #tpu.memory_space<vmem>>, vector<1x1x72x8xbf16>
      %12 = vector.shape_cast %11 : vector<1x1x72x8xbf16> to vector<72x8xbf16>
      %13 = arith.index_cast %9 : i32 to index
      %c1 = arith.constant 1 : index
      %c0_6 = arith.constant 0 : index
      %c0_7 = arith.constant 0 : index
      %14 = vector.load %arg3[%13, %c1, %c0_6, %c0_7] : memref<3x2x72x8xbf16, #tpu.memory_space<vmem>>, vector<1x1x72x8xbf16>
      %15 = vector.shape_cast %14 : vector<1x1x72x8xbf16> to vector<72x8xbf16>
      %c0_i32_8 = arith.constant 0 : i32
      %c16_i32 = arith.constant 16 : i32
      %16 = arith.muli %c0_i32_8, %c16_i32 : i32
      %17 = tpu.assume_multiple %16, 8 : i32
      %c0_i32_9 = arith.constant 0 : i32
      %18 = arith.addi %17, %c0_i32_9 : i32
      %19 = arith.index_cast %18 : i32 to index
      %c7 = arith.constant 7 : index
      %c0_10 = arith.constant 0 : index
      %20 = vector.load %arg7[%19, %c7, %c0_10] : memref<18x32x8xbf16, #tpu.memory_space<vmem>>, vector<16x16x8xbf16>
      %c0_i32_11 = arith.constant 0 : i32
      %21 = arith.addi %17, %c0_i32_11 : i32
      %22 = arith.index_cast %21 : i32 to index
      %c8 = arith.constant 8 : index
      %c0_12 = arith.constant 0 : index
      %23 = vector.load %arg7[%22, %c8, %c0_12] : memref<18x32x8xbf16, #tpu.memory_space<vmem>>, vector<16x16x8xbf16>
      %c0_i32_13 = arith.constant 0 : i32
      %24 = arith.addi %17, %c0_i32_13 : i32
      %25 = arith.index_cast %24 : i32 to index
      %c9 = arith.constant 9 : index
      %c0_14 = arith.constant 0 : index
      %26 = vector.load %arg7[%25, %c9, %c0_14] : memref<18x32x8xbf16, #tpu.memory_space<vmem>>, vector<16x16x8xbf16>
      %c1_i32 = arith.constant 1 : i32
      %27 = arith.addi %17, %c1_i32 : i32
      %28 = arith.index_cast %27 : i32 to index
      %c7_15 = arith.constant 7 : index
      %c0_16 = arith.constant 0 : index
      %29 = vector.load %arg7[%28, %c7_15, %c0_16] : memref<18x32x8xbf16, #tpu.memory_space<vmem>>, vector<16x16x8xbf16>
      %c1_i32_17 = arith.constant 1 : i32
      %30 = arith.addi %17, %c1_i32_17 : i32
      %31 = arith.index_cast %30 : i32 to index
      %c8_18 = arith.constant 8 : index
      %c0_19 = arith.constant 0 : index
      %32 = vector.load %arg7[%31, %c8_18, %c0_19] : memref<18x32x8xbf16, #tpu.memory_space<vmem>>, vector<16x16x8xbf16>
      %c1_i32_20 = arith.constant 1 : i32
      %33 = arith.addi %17, %c1_i32_20 : i32
      %34 = arith.index_cast %33 : i32 to index
      %c9_21 = arith.constant 9 : index
      %c0_22 = arith.constant 0 : index
      %35 = vector.load %arg7[%34, %c9_21, %c0_22] : memref<18x32x8xbf16, #tpu.memory_space<vmem>>, vector<16x16x8xbf16>
      %c2_i32_23 = arith.constant 2 : i32
      %36 = arith.addi %17, %c2_i32_23 : i32
      %37 = arith.index_cast %36 : i32 to index
      %c7_24 = arith.constant 7 : index
      %c0_25 = arith.constant 0 : index
      %38 = vector.load %arg7[%37, %c7_24, %c0_25] : memref<18x32x8xbf16, #tpu.memory_space<vmem>>, vector<16x16x8xbf16>
      %c2_i32_26 = arith.constant 2 : i32
      %39 = arith.addi %17, %c2_i32_26 : i32
      %40 = arith.index_cast %39 : i32 to index
      %c8_27 = arith.constant 8 : index
      %c0_28 = arith.constant 0 : index
      %41 = vector.load %arg7[%40, %c8_27, %c0_28] : memref<18x32x8xbf16, #tpu.memory_space<vmem>>, vector<16x16x8xbf16>
      %c2_i32_29 = arith.constant 2 : i32
      %42 = arith.addi %17, %c2_i32_29 : i32
      %43 = arith.index_cast %42 : i32 to index
      %c9_30 = arith.constant 9 : index
      %c0_31 = arith.constant 0 : index
      %44 = vector.load %arg7[%43, %c9_30, %c0_31] : memref<18x32x8xbf16, #tpu.memory_space<vmem>>, vector<16x16x8xbf16>
      %45 = tpu.concatenate %20, %23, %26, %29, %32, %35, %38, %41, %44 in 2 : vector<16x16x8xbf16>, vector<16x16x8xbf16>, vector<16x16x8xbf16>, vector<16x16x8xbf16>, vector<16x16x8xbf16>, vector<16x16x8xbf16>, vector<16x16x8xbf16>, vector<16x16x8xbf16>, vector<16x16x8xbf16> -> vector<16x16x72xbf16>
      %46 = vector.shape_cast %45 : vector<16x16x72xbf16> to vector<256x72xbf16>
      %cst = arith.constant dense<0.000000e+00> : vector<256x8xf32>
      %47 = tpu.matmul %46, %12, %cst {dimension_numbers = #tpu.dot_dimension_numbers<[1], [0], [0], [1], [0, 0, 1, 1], [], []>} : vector<256x72xbf16>, vector<72x8xbf16>, vector<256x8xf32> -> vector<256x8xf32>
      %48 = vector.shape_cast %47 : vector<256x8xf32> to vector<16x16x8xf32>
      %cst_32 = arith.constant 0.000000e+00 : f32
      %49 = vector.broadcast %cst_32 : f32 to vector<16x16x8xf32>
      %50 = arith.maximumf %48, %49 : vector<16x16x8xf32>
      %51 = arith.truncf %50 : vector<16x16x8xf32> to vector<16x16x8xbf16>
      %c1_i32_33 = arith.constant 1 : i32
      %52 = arith.addi %c1_i32_33, %17 : i32
      %53 = arith.index_cast %52 : i32 to index
      %c8_34 = arith.constant 8 : index
      %c0_35 = arith.constant 0 : index
      %54 = vector.load %arg8[%53, %c8_34, %c0_35] : memref<18x32x8xbf16, #tpu.memory_space<vmem>>, vector<16x16x8xbf16>
      tpu.vector_store %arg8[%53, %c8_34, %c0_35], %51 {strides = array<i32>} : memref<18x32x8xbf16, #tpu.memory_space<vmem>>, vector<16x16x8xbf16>,
      %c1_i32_36 = arith.constant 1 : i32
      %c0_i32_37 = arith.constant 0 : i32
      %c16_i32_38 = arith.constant 16 : i32
      %55 = arith.muli %c0_i32_37, %c16_i32_38 : i32
      %56 = tpu.assume_multiple %55, 8 : i32
      %c0_i32_39 = arith.constant 0 : i32
      %57 = arith.addi %56, %c0_i32_39 : i32
      %58 = arith.index_cast %57 : i32 to index
      %c7_40 = arith.constant 7 : index
      %c0_41 = arith.constant 0 : index
      %59 = vector.load %arg8[%58, %c7_40, %c0_41] : memref<18x32x8xbf16, #tpu.memory_space<vmem>>, vector<16x16x8xbf16>
      %c0_i32_42 = arith.constant 0 : i32
      %60 = arith.addi %56, %c0_i32_42 : i32
      %61 = arith.index_cast %60 : i32 to index
      %c8_43 = arith.constant 8 : index
      %c0_44 = arith.constant 0 : index
      %62 = vector.load %arg8[%61, %c8_43, %c0_44] : memref<18x32x8xbf16, #tpu.memory_space<vmem>>, vector<16x16x8xbf16>
      %c0_i32_45 = arith.constant 0 : i32
      %63 = arith.addi %56, %c0_i32_45 : i32
      %64 = arith.index_cast %63 : i32 to index
      %c9_46 = arith.constant 9 : index
      %c0_47 = arith.constant 0 : index
      %65 = vector.load %arg8[%64, %c9_46, %c0_47] : memref<18x32x8xbf16, #tpu.memory_space<vmem>>, vector<16x16x8xbf16>
      %c1_i32_48 = arith.constant 1 : i32
      %66 = arith.addi %56, %c1_i32_48 : i32
      %67 = arith.index_cast %66 : i32 to index
      %c7_49 = arith.constant 7 : index
      %c0_50 = arith.constant 0 : index
      %68 = vector.load %arg8[%67, %c7_49, %c0_50] : memref<18x32x8xbf16, #tpu.memory_space<vmem>>, vector<16x16x8xbf16>
      %c1_i32_51 = arith.constant 1 : i32
      %69 = arith.addi %56, %c1_i32_51 : i32
      %70 = arith.index_cast %69 : i32 to index
      %c8_52 = arith.constant 8 : index
      %c0_53 = arith.constant 0 : index
      %71 = vector.load %arg8[%70, %c8_52, %c0_53] : memref<18x32x8xbf16, #tpu.memory_space<vmem>>, vector<16x16x8xbf16>
      %c1_i32_54 = arith.constant 1 : i32
      %72 = arith.addi %56, %c1_i32_54 : i32
      %73 = arith.index_cast %72 : i32 to index
      %c9_55 = arith.constant 9 : index
      %c0_56 = arith.constant 0 : index
      %74 = vector.load %arg8[%73, %c9_55, %c0_56] : memref<18x32x8xbf16, #tpu.memory_space<vmem>>, vector<16x16x8xbf16>
      %c2_i32_57 = arith.constant 2 : i32
      %75 = arith.addi %56, %c2_i32_57 : i32
      %76 = arith.index_cast %75 : i32 to index
      %c7_58 = arith.constant 7 : index
      %c0_59 = arith.constant 0 : index
      %77 = vector.load %arg8[%76, %c7_58, %c0_59] : memref<18x32x8xbf16, #tpu.memory_space<vmem>>, vector<16x16x8xbf16>
      %c2_i32_60 = arith.constant 2 : i32
      %78 = arith.addi %56, %c2_i32_60 : i32
      %79 = arith.index_cast %78 : i32 to index
      %c8_61 = arith.constant 8 : index
      %c0_62 = arith.constant 0 : index
      %80 = vector.load %arg8[%79, %c8_61, %c0_62] : memref<18x32x8xbf16, #tpu.memory_space<vmem>>, vector<16x16x8xbf16>
      %c2_i32_63 = arith.constant 2 : i32
      %81 = arith.addi %56, %c2_i32_63 : i32
      %82 = arith.index_cast %81 : i32 to index
      %c9_64 = arith.constant 9 : index
      %c0_65 = arith.constant 0 : index
      %83 = vector.load %arg8[%82, %c9_64, %c0_65] : memref<18x32x8xbf16, #tpu.memory_space<vmem>>, vector<16x16x8xbf16>
      %84 = tpu.concatenate %59, %62, %65, %68, %71, %74, %77, %80, %83 in 2 : vector<16x16x8xbf16>, vector<16x16x8xbf16>, vector<16x16x8xbf16>, vector<16x16x8xbf16>, vector<16x16x8xbf16>, vector<16x16x8xbf16>, vector<16x16x8xbf16>, vector<16x16x8xbf16>, vector<16x16x8xbf16> -> vector<16x16x72xbf16>
      %85 = vector.shape_cast %84 : vector<16x16x72xbf16> to vector<256x72xbf16>
      %cst_66 = arith.constant dense<0.000000e+00> : vector<256x8xf32>
      %86 = tpu.matmul %85, %15, %cst_66 {dimension_numbers = #tpu.dot_dimension_numbers<[1], [0], [0], [1], [0, 0, 1, 1], [], []>} : vector<256x72xbf16>, vector<72x8xbf16>, vector<256x8xf32> -> vector<256x8xf32>
      %87 = vector.shape_cast %86 : vector<256x8xf32> to vector<16x16x8xf32>
      %cst_67 = arith.constant 1.000000e-01 : f32
      %88 = vector.broadcast %cst_67 : f32 to vector<16x16x8xf32>
      %89 = arith.mulf %88, %87 : vector<16x16x8xf32>
      %90 = arith.index_cast %56 : i32 to index
      %c0_68 = arith.constant 0 : index
      %c0_69 = arith.constant 0 : index
      %91 = vector.load %arg6[%90, %c0_68, %c0_69] : memref<16x16x8xf32, #tpu.memory_space<vmem>>, vector<16x16x8xf32>
      %92 = arith.addf %89, %91 : vector<16x16x8xf32>
      %93 = arith.index_cast %56 : i32 to index
      %c0_70 = arith.constant 0 : index
      %c0_71 = arith.constant 0 : index
      %94 = vector.load %arg6[%93, %c0_70, %c0_71] : memref<16x16x8xf32, #tpu.memory_space<vmem>>, vector<16x16x8xf32>
      tpu.vector_store %arg6[%93, %c0_70, %c0_71], %92 {strides = array<i32>} : memref<16x16x8xf32, #tpu.memory_space<vmem>>, vector<16x16x8xf32>,
      %95 = arith.truncf %92 : vector<16x16x8xf32> to vector<16x16x8xbf16>
      %c1_i32_72 = arith.constant 1 : i32
      %96 = arith.addi %c1_i32_72, %56 : i32
      %97 = arith.index_cast %96 : i32 to index
      %c8_73 = arith.constant 8 : index
      %c0_74 = arith.constant 0 : index
      %98 = vector.load %arg7[%97, %c8_73, %c0_74] : memref<18x32x8xbf16, #tpu.memory_space<vmem>>, vector<16x16x8xbf16>
      tpu.vector_store %arg7[%97, %c8_73, %c0_74], %95 {strides = array<i32>} : memref<18x32x8xbf16, #tpu.memory_space<vmem>>, vector<16x16x8xbf16>,
      %c1_i32_75 = arith.constant 1 : i32
    } else {
    }
    %c3_i32_2 = arith.constant 3 : i32
    %6 = arith.cmpi eq, %arg1, %c3_i32_2 : i32
    %7 = arith.extui %6 : i1 to i32
    %c0_i32_3 = arith.constant 0 : i32
    %8 = arith.cmpi ne, %7, %c0_i32_3 : i32
    scf.if %8 {
      %c0 = arith.constant 0 : index
      %c0_4 = arith.constant 0 : index
      %9 = vector.load %arg4[%c0, %c0_4] : memref<72x8xbf16, #tpu.memory_space<vmem>>, vector<72x8xbf16>
      %c0_i32_5 = arith.constant 0 : i32
      %c16_i32 = arith.constant 16 : i32
      %10 = arith.muli %c0_i32_5, %c16_i32 : i32
      %11 = tpu.assume_multiple %10, 8 : i32
      %c0_i32_6 = arith.constant 0 : i32
      %12 = arith.addi %11, %c0_i32_6 : i32
      %13 = arith.index_cast %12 : i32 to index
      %c7 = arith.constant 7 : index
      %c0_7 = arith.constant 0 : index
      %14 = vector.load %arg7[%13, %c7, %c0_7] : memref<18x32x8xbf16, #tpu.memory_space<vmem>>, vector<16x16x8xbf16>
      %c0_i32_8 = arith.constant 0 : i32
      %15 = arith.addi %11, %c0_i32_8 : i32
      %16 = arith.index_cast %15 : i32 to index
      %c8 = arith.constant 8 : index
      %c0_9 = arith.constant 0 : index
      %17 = vector.load %arg7[%16, %c8, %c0_9] : memref<18x32x8xbf16, #tpu.memory_space<vmem>>, vector<16x16x8xbf16>
      %c0_i32_10 = arith.constant 0 : i32
      %18 = arith.addi %11, %c0_i32_10 : i32
      %19 = arith.index_cast %18 : i32 to index
      %c9 = arith.constant 9 : index
      %c0_11 = arith.constant 0 : index
      %20 = vector.load %arg7[%19, %c9, %c0_11] : memref<18x32x8xbf16, #tpu.memory_space<vmem>>, vector<16x16x8xbf16>
      %c1_i32 = arith.constant 1 : i32
      %21 = arith.addi %11, %c1_i32 : i32
      %22 = arith.index_cast %21 : i32 to index
      %c7_12 = arith.constant 7 : index
      %c0_13 = arith.constant 0 : index
      %23 = vector.load %arg7[%22, %c7_12, %c0_13] : memref<18x32x8xbf16, #tpu.memory_space<vmem>>, vector<16x16x8xbf16>
      %c1_i32_14 = arith.constant 1 : i32
      %24 = arith.addi %11, %c1_i32_14 : i32
      %25 = arith.index_cast %24 : i32 to index
      %c8_15 = arith.constant 8 : index
      %c0_16 = arith.constant 0 : index
      %26 = vector.load %arg7[%25, %c8_15, %c0_16] : memref<18x32x8xbf16, #tpu.memory_space<vmem>>, vector<16x16x8xbf16>
      %c1_i32_17 = arith.constant 1 : i32
      %27 = arith.addi %11, %c1_i32_17 : i32
      %28 = arith.index_cast %27 : i32 to index
      %c9_18 = arith.constant 9 : index
      %c0_19 = arith.constant 0 : index
      %29 = vector.load %arg7[%28, %c9_18, %c0_19] : memref<18x32x8xbf16, #tpu.memory_space<vmem>>, vector<16x16x8xbf16>
      %c2_i32 = arith.constant 2 : i32
      %30 = arith.addi %11, %c2_i32 : i32
      %31 = arith.index_cast %30 : i32 to index
      %c7_20 = arith.constant 7 : index
      %c0_21 = arith.constant 0 : index
      %32 = vector.load %arg7[%31, %c7_20, %c0_21] : memref<18x32x8xbf16, #tpu.memory_space<vmem>>, vector<16x16x8xbf16>
      %c2_i32_22 = arith.constant 2 : i32
      %33 = arith.addi %11, %c2_i32_22 : i32
      %34 = arith.index_cast %33 : i32 to index
      %c8_23 = arith.constant 8 : index
      %c0_24 = arith.constant 0 : index
      %35 = vector.load %arg7[%34, %c8_23, %c0_24] : memref<18x32x8xbf16, #tpu.memory_space<vmem>>, vector<16x16x8xbf16>
      %c2_i32_25 = arith.constant 2 : i32
      %36 = arith.addi %11, %c2_i32_25 : i32
      %37 = arith.index_cast %36 : i32 to index
      %c9_26 = arith.constant 9 : index
      %c0_27 = arith.constant 0 : index
      %38 = vector.load %arg7[%37, %c9_26, %c0_27] : memref<18x32x8xbf16, #tpu.memory_space<vmem>>, vector<16x16x8xbf16>
      %39 = tpu.concatenate %14, %17, %20, %23, %26, %29, %32, %35, %38 in 2 : vector<16x16x8xbf16>, vector<16x16x8xbf16>, vector<16x16x8xbf16>, vector<16x16x8xbf16>, vector<16x16x8xbf16>, vector<16x16x8xbf16>, vector<16x16x8xbf16>, vector<16x16x8xbf16>, vector<16x16x8xbf16> -> vector<16x16x72xbf16>
      %40 = vector.shape_cast %39 : vector<16x16x72xbf16> to vector<256x72xbf16>
      %cst = arith.constant dense<0.000000e+00> : vector<256x8xf32>
      %41 = tpu.matmul %40, %9, %cst {dimension_numbers = #tpu.dot_dimension_numbers<[1], [0], [0], [1], [0, 0, 1, 1], [], []>} : vector<256x72xbf16>, vector<72x8xbf16>, vector<256x8xf32> -> vector<256x8xf32>
      %42 = vector.shape_cast %41 : vector<256x8xf32> to vector<16x16x8xf32>
      %c0_28 = arith.constant 0 : index
      %43 = arith.index_cast %11 : i32 to index
      %c0_29 = arith.constant 0 : index
      %c0_30 = arith.constant 0 : index
      %44 = vector.load %arg2[%c0_28, %43, %c0_29, %c0_30] : memref<1x16x16x8xf32, #tpu.memory_space<vmem>>, vector<1x16x16x8xf32>
      %45 = vector.shape_cast %44 : vector<1x16x16x8xf32> to vector<16x16x8xf32>
      %46 = arith.addf %42, %45 : vector<16x16x8xf32>
      %c0_31 = arith.constant 0 : index
      %47 = arith.index_cast %11 : i32 to index
      %c0_32 = arith.constant 0 : index
      %c0_33 = arith.constant 0 : index
      %48 = vector.load %arg5[%c0_31, %47, %c0_32, %c0_33] : memref<1x16x16x8xf32, #tpu.memory_space<vmem>>, vector<1x16x16x8xf32>
      %49 = vector.shape_cast %48 : vector<1x16x16x8xf32> to vector<16x16x8xf32>
      %50 = vector.shape_cast %46 : vector<16x16x8xf32> to vector<1x16x16x8xf32>
      tpu.vector_store %arg5[%c0_31, %47, %c0_32, %c0_33], %50 {strides = array<i32>} : memref<1x16x16x8xf32, #tpu.memory_space<vmem>>, vector<1x16x16x8xf32>,
      %c1_i32_34 = arith.constant 1 : i32
    } else {
    }
    return
  }
  func.func @transform_0(%arg0: i32, %arg1: i32) -> (i32, i32, i32, i32) {
    %c0_i32 = arith.constant 0 : i32
    %c0_i32_0 = arith.constant 0 : i32
    %c0_i32_1 = arith.constant 0 : i32
    %c0_i32_2 = arith.constant 0 : i32
    return %arg0, %c0_i32, %c0_i32_0, %c0_i32_1 : i32, i32, i32, i32
  }
  func.func @transform_1(%arg0: i32, %arg1: i32) -> (i32, i32, i32, i32) {
    %c0_i32 = arith.constant 0 : i32
    %c0_i32_0 = arith.constant 0 : i32
    %c0_i32_1 = arith.constant 0 : i32
    %c0_i32_2 = arith.constant 0 : i32
    %c0_i32_3 = arith.constant 0 : i32
    return %c0_i32, %c0_i32_0, %c0_i32_1, %c0_i32_2 : i32, i32, i32, i32
  }
  func.func @transform_2(%arg0: i32, %arg1: i32) -> (i32, i32) {
    %c0_i32 = arith.constant 0 : i32
    %c0_i32_0 = arith.constant 0 : i32
    %c0_i32_1 = arith.constant 0 : i32
    return %c0_i32, %c0_i32_0 : i32, i32
  }
  func.func @transform_3(%arg0: i32, %arg1: i32) -> (i32, i32, i32, i32) {
    %c0_i32 = arith.constant 0 : i32
    %c0_i32_0 = arith.constant 0 : i32
    %c0_i32_1 = arith.constant 0 : i32
    %c0_i32_2 = arith.constant 0 : i32
    return %arg0, %c0_i32, %c0_i32_0, %c0_i32_1 : i32, i32, i32, i32
  }
}

</mosaic_0001>

<bundles_post_ra>
// kernel: residual_network.1
= control target key start
LH: loop header
LB: loop body
LE: loop exit
PB: predicated region body
PF: predicated region fallthrough
CT: control target
= control target key end

     0   :  { %s9886_s12 = smov 0   ;;  %s9888_s13 = smov 0   ;;  %s15201_s0 = inlined_call_operand.vmem [shape: f32[2,16,16,8], index: 0, kind: input, shape index: {}, may-alias: {0,3}]   ;;  %s15202_s1 = inlined_call_operand.vmem [shape: bf16[3,2,72,8], index: 1, kind: input, shape index: {}]   ;;  %s15203_s2 = inlined_call_operand.vmem [shape: bf16[72,8], index: 2, kind: input, shape index: {}]   ;;  %s15204_s3 = inlined_call_operand.vmem [shape: f32[2,16,16,8], index: 3, kind: output, shape index: {}, may-alias: {0,3}]  }
   0x1   :  { %s9890_s14 = smov 0   ;;  %s9892_s15 = smov 0  }
   0x2   :  { %s9894_s16 = smov 0  }
   0x3 LB: > { %s22_s17 = sadd.s32 1, %s9839_s14  ;;  %s25_s18 = sadd.s32 1, %s9843_s15  ;;  %s9847_s16 = sphi %s9894_s16, %s13_s16   ;;  %s9843_s15 = sphi %s9892_s15, %s15938_s15   ;;  %s9839_s14 = sphi %s9890_s14, %s15937_s14   ;;  %s9835_s13 = sphi %s9888_s13, %s15936_s13   ;;  %s9831_s12 = sphi %s9886_s12, %s15935_s12  }
   0x4   : > { %p23_p0 = scmp.ge.s32.totalorder %s22_s17, 4  ;;  %p8875_p1 = scmp.ge.s32.totalorder %s9847_s16, 1 }
   0x5   : > { %p149_p2 = scmp.lt.s32.totalorder %s9847_s16, 9 }
   0x6   : > { %s15940_s17 = smov (%p23_p0, %s22_s17), 0  ;;  %s15942_s18 = smov (!%p23_p0, %s25_s18), %s9843_s15 }
   0x7   : > { %p150_p3 = pnand %p8875_p1, %p149_p2  ;;  %p27_p4 = scmp.ge.s32.totalorder %s15942_s18, 2 }
   0x8   : > { %p173_p5 = scmp.lt.s32.totalorder (!%p150_p3), %s9835_s13, 1  ;;  %p8880_p6 = scmp.ne.s32.totalorder (!%p150_p3), %s9831_s12, 0 }
   0x9   : > { %s15944_s18 = smov (%p27_p4, %s15942_s18), 0  ;;  %153 = sbr.rel (%p150_p3) target bundleno = 2743 (0xab7), region = 32 }
   0xe   : > { %s15946_s13 = smov (!%p173_p5, %s9835_s13), 1  ;;  %187 = sbr.rel (%p8880_p6) target bundleno = 228 (0xe4), region = 36 }
   0xf   : > { %s8992_s19 = sshll.u32 %s15946_s13, 8 }
  0x10   : > { %s9921_s22 = scalar_lea.vmem %s15201_s0, %s8992_s19  ;;  %s9926_s25 = scalar_lea.vmem %s15204_s3, %s8992_s19 }
  0x13   : > { %vm188_vm0 = vcmask 60416   ;;  %v9849_v0 = vmov 0   ;;  %v333_v1 = vld [vmem:[%s9921_s22] sm:$0xff]  ;;  %v334_v2 = vld [vmem:[%s9921_s22 + $0x8] sm:$0xff]  ;;  %vm365_vm1 = vcmask 64512   ;;  %v335_v4 = vld [vmem:[%s9921_s22 + $0x10] sm:$0xff] }
  0x14   : > { %194 = vst.msk [vmem:[#allocation3 + $0x14] sm:$0xf] %vm188_vm0, %v9849_v0  ;;  %v398_v3 = vpack.c.bf16 %v333_v1, %v333_v1  ;;  %v399_v5 = vpack.c.bf16 %v334_v2, %v334_v2  ;;  %v336_v6 = vld [vmem:[%s9921_s22 + $0x18] sm:$0xff]  ;;  %v400_v7 = vpack.c.bf16 %v335_v4, %v335_v4  ;;  %v337_v8 = vld [vmem:[%s9921_s22 + $0x20] sm:$0xff]  ;;  %v338_v10 = vld [vmem:[%s9921_s22 + $0x28] sm:$0xff] }
  0x15   : > { %189 = vst.msk [vmem:[#allocation3] sm:$0xf] %vm188_vm0, %v9849_v0  ;;  %v401_v9 = vpack.c.bf16 %v336_v6, %v336_v6  ;;  %v402_v11 = vpack.c.bf16 %v337_v8, %v337_v8  ;;  %v339_v12 = vld [vmem:[%s9921_s22 + $0x30] sm:$0xff]  ;;  %v403_v13 = vpack.c.bf16 %v338_v10, %v338_v10  ;;  %v340_v14 = vld [vmem:[%s9921_s22 + $0x38] sm:$0xff]  ;;  %v341_v16 = vld [vmem:[%s9921_s22 + $0x40] sm:$0xff] }
  0x16   : > { %190 = vst.msk [vmem:[#allocation3 + $0x4] sm:$0xf] %vm188_vm0, %v9849_v0  ;;  %v404_v15 = vpack.c.bf16 %v339_v12, %v339_v12  ;;  %v405_v17 = vpack.c.bf16 %v340_v14, %v340_v14  ;;  %v342_v18 = vld [vmem:[%s9921_s22 + $0x48] sm:$0xff]  ;;  %v406_v19 = vpack.c.bf16 %v341_v16, %v341_v16  ;;  %v343_v20 = vld [vmem:[%s9921_s22 + $0x50] sm:$0xff]  ;;  %v344_v22 = vld [vmem:[%s9921_s22 + $0x58] sm:$0xff] }
  0x17   : > { %191 = vst.msk [vmem:[#allocation3 + $0x8] sm:$0xf] %vm188_vm0, %v9849_v0  ;;  %v407_v21 = vpack.c.bf16 %v342_v18, %v342_v18  ;;  %v408_v23 = vpack.c.bf16 %v343_v20, %v343_v20  ;;  %v345_v24 = vld [vmem:[%s9921_s22 + $0x60] sm:$0xff]  ;;  %v409_v25 = vpack.c.bf16 %v344_v22, %v344_v22  ;;  %v346_v26 = vld [vmem:[%s9921_s22 + $0x68] sm:$0xff]  ;;  %v347_v28 = vld [vmem:[%s9921_s22 + $0x70] sm:$0xff] }
  0x18   : > { %192 = vst.msk [vmem:[#allocation3 + $0xc] sm:$0xf] %vm188_vm0, %v9849_v0  ;;  %v410_v27 = vpack.c.bf16 %v345_v24, %v345_v24  ;;  %v411_v29 = vpack.c.bf16 %v346_v26, %v346_v26  ;;  %v348_v30 = vld [vmem:[%s9921_s22 + $0x78] sm:$0xff]  ;;  %v412_v31 = vpack.c.bf16 %v347_v28, %v347_v28  ;;  %v349_v32 = vld [vmem:[%s9921_s22 + $0x80] sm:$0xff]  ;;  %v350_v34 = vld [vmem:[%s9921_s22 + $0x88] sm:$0xff] }
  0x19   : > { %193 = vst.msk [vmem:[#allocation3 + $0x10] sm:$0xf] %vm188_vm0, %v9849_v0  ;;  %v413_v33 = vpack.c.bf16 %v348_v30, %v348_v30  ;;  %v414_v35 = vpack.c.bf16 %v349_v32, %v349_v32  ;;  %v351_v36 = vld [vmem:[%s9921_s22 + $0x90] sm:$0xff]  ;;  %v415_v37 = vpack.c.bf16 %v350_v34, %v350_v34  ;;  %v352_v38 = vld [vmem:[%s9921_s22 + $0x98] sm:$0xff]  ;;  %v353_v40 = vld [vmem:[%s9921_s22 + $0xa0] sm:$0xff] }
  0x1a   : > { %195 = vst.msk [vmem:[#allocation3 + $0x18] sm:$0xf] %vm188_vm0, %v9849_v0  ;;  %v416_v39 = vpack.c.bf16 %v351_v36, %v351_v36  ;;  %v417_v41 = vpack.c.bf16 %v352_v38, %v352_v38  ;;  %v354_v42 = vld [vmem:[%s9921_s22 + $0xa8] sm:$0xff]  ;;  %v418_v43 = vpack.c.bf16 %v353_v40, %v353_v40  ;;  %v355_v44 = vld [vmem:[%s9921_s22 + $0xb0] sm:$0xff]  ;;  %v356_v46 = vld [vmem:[%s9921_s22 + $0xb8] sm:$0xff] }
  0x1b   : > { %196 = vst.msk [vmem:[#allocation3 + $0x1c] sm:$0xf] %vm188_vm0, %v9849_v0  ;;  %v419_v45 = vpack.c.bf16 %v354_v42, %v354_v42  ;;  %v420_v47 = vpack.c.bf16 %v355_v44, %v355_v44  ;;  %v357_v48 = vld [vmem:[%s9921_s22 + $0xc0] sm:$0xff]  ;;  %v421_v49 = vpack.c.bf16 %v356_v46, %v356_v46  ;;  %v358_v50 = vld [vmem:[%s9921_s22 + $0xc8] sm:$0xff]  ;;  %v359_v52 = vld [vmem:[%s9921_s22 + $0xd0] sm:$0xff] }
  0x1c   : > { %197 = vst.msk [vmem:[#allocation3 + $0x20] sm:$0xf] %vm188_vm0, %v9849_v0  ;;  %v422_v51 = vpack.c.bf16 %v357_v48, %v357_v48  ;;  %v423_v53 = vpack.c.bf16 %v358_v50, %v358_v50  ;;  %v360_v54 = vld [vmem:[%s9921_s22 + $0xd8] sm:$0xff]  ;;  %v424_v55 = vpack.c.bf16 %v359_v52, %v359_v52  ;;  %v361_v56 = vld [vmem:[%s9921_s22 + $0xe0] sm:$0xff]  ;;  %v362_v58 = vld [vmem:[%s9921_s22 + $0xe8] sm:$0xff] }
  0x1d   : > { %198 = vst.msk [vmem:[#allocation3 + $0x24] sm:$0xf] %vm188_vm0, %v9849_v0  ;;  %v425_v57 = vpack.c.bf16 %v360_v54, %v360_v54  ;;  %v426_v59 = vpack.c.bf16 %v361_v56, %v361_v56  ;;  %v363_v60 = vld [vmem:[%s9921_s22 + $0xf0] sm:$0xff]  ;;  %v427_v61 = vpack.c.bf16 %v362_v58, %v362_v58  ;;  %v364_v62 = vld [vmem:[%s9921_s22 + $0xf8] sm:$0xff] }
  0x1e   : > { %199 = vst.msk [vmem:[#allocation3 + $0x28] sm:$0xf] %vm188_vm0, %v9849_v0  ;;  %v428_v63 = vpack.c.bf16 %v363_v60, %v363_v60 }
  0x1f   : > { %200 = vst.msk [vmem:[#allocation3 + $0x2c] sm:$0xf] %vm188_vm0, %v9849_v0 }
  0x20   : > { %201 = vst.msk [vmem:[#allocation3 + $0x30] sm:$0xf] %vm188_vm0, %v9849_v0 }
  0x21   : > { %202 = vst.msk [vmem:[#allocation3 + $0x34] sm:$0xf] %vm188_vm0, %v9849_v0 }
  0x22   : > { %203 = vst.msk [vmem:[#allocation3 + $0x38] sm:$0xf] %vm188_vm0, %v9849_v0 }
  0x23   : > { %204 = vst.msk [vmem:[#allocation3 + $0x3c] sm:$0xf] %vm188_vm0, %v9849_v0 }
  0x24   : > { %205 = vst.msk [vmem:[#allocation3 + $0x40] sm:$0xf] %vm188_vm0, %v9849_v0 }
  0x25   : > { %206 = vst.msk [vmem:[#allocation3 + $0x44] sm:$0xf] %vm188_vm0, %v9849_v0 }
  0x26   : > { %207 = vst.msk [vmem:[#allocation3 + $0x48] sm:$0xf] %vm188_vm0, %v9849_v0 }
  0x27   : > { %208 = vst.msk [vmem:[#allocation3 + $0x4c] sm:$0xf] %vm188_vm0, %v9849_v0 }
  0x28   : > { %209 = vst.msk [vmem:[#allocation3 + $0x50] sm:$0xf] %vm188_vm0, %v9849_v0 }
  0x29   : > { %210 = vst.msk [vmem:[#allocation3 + $0x54] sm:$0xf] %vm188_vm0, %v9849_v0 }
  0x2a   : > { %211 = vst.msk [vmem:[#allocation3 + $0x58] sm:$0xf] %vm188_vm0, %v9849_v0 }
  0x2b   : > { %212 = vst.msk [vmem:[#allocation3 + $0x5c] sm:$0xf] %vm188_vm0, %v9849_v0 }
  0x2c   : > { %213 = vst.msk [vmem:[#allocation3 + $0x60] sm:$0xf] %vm188_vm0, %v9849_v0 }
  0x2d   : > { %214 = vst.msk [vmem:[#allocation3 + $0x64] sm:$0xf] %vm188_vm0, %v9849_v0 }
  0x2e   : > { %215 = vst.msk [vmem:[#allocation3 + $0x68] sm:$0xf] %vm188_vm0, %v9849_v0 }
  0x2f   : > { %216 = vst.msk [vmem:[#allocation3 + $0x6c] sm:$0xf] %vm188_vm0, %v9849_v0 }
  0x30   : > { %217 = vst.msk [vmem:[#allocation3 + $0x70] sm:$0xf] %vm188_vm0, %v9849_v0 }
  0x31   : > { %218 = vst.msk [vmem:[#allocation3 + $0x74] sm:$0xf] %vm188_vm0, %v9849_v0 }
  0x32   : > { %219 = vst.msk [vmem:[#allocation3 + $0x78] sm:$0xf] %vm188_vm0, %v9849_v0 }
  0x33   : > { %220 = vst.msk [vmem:[#allocation3 + $0x7c] sm:$0xf] %vm188_vm0, %v9849_v0 }
  0x34   : > { %221 = vst.msk [vmem:[#allocation3 + $0x80] sm:$0xf] %vm188_vm0, %v9849_v0 }
  0x35   : > { %222 = vst.msk [vmem:[#allocation3 + $0x84] sm:$0xf] %vm188_vm0, %v9849_v0 }
  0x36   : > { %223 = vst.msk [vmem:[#allocation3 + $0x88] sm:$0xf] %vm188_vm0, %v9849_v0 }
  0x37   : > { %224 = vst.msk [vmem:[#allocation3 + $0x8c] sm:$0xf] %vm188_vm0, %v9849_v0 }
  0x38   : > { %225 = vst.msk [vmem:[#allocation3 + $0x90] sm:$0xf] %vm188_vm0, %v9849_v0 }
  0x39   : > { %226 = vst.msk [vmem:[#allocation3 + $0x94] sm:$0xf] %vm188_vm0, %v9849_v0 }
  0x3a   : > { %227 = vst.msk [vmem:[#allocation3 + $0x98] sm:$0xf] %vm188_vm0, %v9849_v0 }
  0x3b   : > { %228 = vst.msk [vmem:[#allocation3 + $0x9c] sm:$0xf] %vm188_vm0, %v9849_v0 }
  0x3c   : > { %229 = vst.msk [vmem:[#allocation3 + $0xa0] sm:$0xf] %vm188_vm0, %v9849_v0 }
  0x3d   : > { %230 = vst.msk [vmem:[#allocation3 + $0xa4] sm:$0xf] %vm188_vm0, %v9849_v0 }
  0x3e   : > { %231 = vst.msk [vmem:[#allocation3 + $0xa8] sm:$0xf] %vm188_vm0, %v9849_v0 }
  0x3f   : > { %232 = vst.msk [vmem:[#allocation3 + $0xac] sm:$0xf] %vm188_vm0, %v9849_v0 }
  0x40   : > { %233 = vst.msk [vmem:[#allocation3 + $0xb0] sm:$0xf] %vm188_vm0, %v9849_v0 }
  0x41   : > { %234 = vst.msk [vmem:[#allocation3 + $0xb4] sm:$0xf] %vm188_vm0, %v9849_v0 }
  0x42   : > { %235 = vst.msk [vmem:[#allocation3 + $0xb8] sm:$0xf] %vm188_vm0, %v9849_v0 }
  0x43   : > { %236 = vst.msk [vmem:[#allocation3 + $0xbc] sm:$0xf] %vm188_vm0, %v9849_v0 }
  0x44   : > { %237 = vst.msk [vmem:[#allocation3 + $0xc0] sm:$0xf] %vm188_vm0, %v9849_v0 }
  0x45   : > { %238 = vst.msk [vmem:[#allocation3 + $0xc4] sm:$0xf] %vm188_vm0, %v9849_v0 }
  0x46   : > { %239 = vst.msk [vmem:[#allocation3 + $0xc8] sm:$0xf] %vm188_vm0, %v9849_v0 }
  0x47   : > { %240 = vst.msk [vmem:[#allocation3 + $0xcc] sm:$0xf] %vm188_vm0, %v9849_v0 }
  0x48   : > { %241 = vst.msk [vmem:[#allocation3 + $0xd0] sm:$0xf] %vm188_vm0, %v9849_v0 }
  0x49   : > { %242 = vst.msk [vmem:[#allocation3 + $0xd4] sm:$0xf] %vm188_vm0, %v9849_v0 }
  0x4a   : > { %243 = vst.msk [vmem:[#allocation3 + $0xd8] sm:$0xf] %vm188_vm0, %v9849_v0 }
  0x4b   : > { %244 = vst.msk [vmem:[#allocation3 + $0xdc] sm:$0xf] %vm188_vm0, %v9849_v0 }
  0x4c   : > { %245 = vst.msk [vmem:[#allocation3 + $0xe0] sm:$0xf] %vm188_vm0, %v9849_v0 }
  0x4d   : > { %246 = vst.msk [vmem:[#allocation3 + $0xe4] sm:$0xf] %vm188_vm0, %v9849_v0 }
  0x4e   : > { %247 = vst.msk [vmem:[#allocation3 + $0xe8] sm:$0xf] %vm188_vm0, %v9849_v0 }
  0x4f   : > { %248 = vst.msk [vmem:[#allocation3 + $0xec] sm:$0xf] %vm188_vm0, %v9849_v0 }
  0x50   : > { %249 = vst.msk [vmem:[#allocation3 + $0xf0] sm:$0xf] %vm188_vm0, %v9849_v0 }
  0x51   : > { %250 = vst.msk [vmem:[#allocation3 + $0xf4] sm:$0xf] %vm188_vm0, %v9849_v0 }
  0x52   : > { %251 = vst.msk [vmem:[#allocation3 + $0xf8] sm:$0xf] %vm188_vm0, %v9849_v0 }
  0x53   : > { %252 = vst.msk [vmem:[#allocation3 + $0xfc] sm:$0xf] %vm188_vm0, %v9849_v0 }
  0x54   : > { %253 = vst.msk [vmem:[#allocation3 + $0x100] sm:$0xf] %vm188_vm0, %v9849_v0 }
  0x55   : > { %254 = vst.msk [vmem:[#allocation3 + $0x104] sm:$0xf] %vm188_vm0, %v9849_v0 }
  0x56   : > { %255 = vst.msk [vmem:[#allocation3 + $0x108] sm:$0xf] %vm188_vm0, %v9849_v0 }
  0x57   : > { %256 = vst.msk [vmem:[#allocation3 + $0x10c] sm:$0xf] %vm188_vm0, %v9849_v0 }
  0x58   : > { %257 = vst.msk [vmem:[#allocation3 + $0x110] sm:$0xf] %vm188_vm0, %v9849_v0 }
  0x59   : > { %258 = vst.msk [vmem:[#allocation3 + $0x114] sm:$0xf] %vm188_vm0, %v9849_v0 }
  0x5a   : > { %259 = vst.msk [vmem:[#allocation3 + $0x118] sm:$0xf] %vm188_vm0, %v9849_v0 }
  0x5b   : > { %260 = vst.msk [vmem:[#allocation3 + $0x11c] sm:$0xf] %vm188_vm0, %v9849_v0 }
  0x5c   : > { %261 = vst.msk [vmem:[#allocation4] sm:$0xf] %vm188_vm0, %v9849_v0 }
  0x5d   : > { %262 = vst.msk [vmem:[#allocation4 + $0x4] sm:$0xf] %vm188_vm0, %v9849_v0 }
  0x5e   : > { %263 = vst.msk [vmem:[#allocation4 + $0x8] sm:$0xf] %vm188_vm0, %v9849_v0 }
  0x5f   : > { %264 = vst.msk [vmem:[#allocation4 + $0xc] sm:$0xf] %vm188_vm0, %v9849_v0 }
  0x60   : > { %265 = vst.msk [vmem:[#allocation4 + $0x10] sm:$0xf] %vm188_vm0, %v9849_v0 }
  0x61   : > { %266 = vst.msk [vmem:[#allocation4 + $0x14] sm:$0xf] %vm188_vm0, %v9849_v0 }
  0x62   : > { %267 = vst.msk [vmem:[#allocation4 + $0x18] sm:$0xf] %vm188_vm0, %v9849_v0 }
  0x63   : > { %268 = vst.msk [vmem:[#allocation4 + $0x1c] sm:$0xf] %vm188_vm0, %v9849_v0 }
  0x64   : > { %269 = vst.msk [vmem:[#allocation4 + $0x20] sm:$0xf] %vm188_vm0, %v9849_v0 }
  0x65   : > { %270 = vst.msk [vmem:[#allocation4 + $0x24] sm:$0xf] %vm188_vm0, %v9849_v0 }
  0x66   : > { %271 = vst.msk [vmem:[#allocation4 + $0x28] sm:$0xf] %vm188_vm0, %v9849_v0 }
  0x67   : > { %272 = vst.msk [vmem:[#allocation4 + $0x2c] sm:$0xf] %vm188_vm0, %v9849_v0 }
  0x68   : > { %273 = vst.msk [vmem:[#allocation4 + $0x30] sm:$0xf] %vm188_vm0, %v9849_v0 }
  0x69   : > { %274 = vst.msk [vmem:[#allocation4 + $0x34] sm:$0xf] %vm188_vm0, %v9849_v0 }
  0x6a   : > { %275 = vst.msk [vmem:[#allocation4 + $0x38] sm:$0xf] %vm188_vm0, %v9849_v0 }
  0x6b   : > { %276 = vst.msk [vmem:[#allocation4 + $0x3c] sm:$0xf] %vm188_vm0, %v9849_v0 }
  0x6c   : > { %277 = vst.msk [vmem:[#allocation4 + $0x40] sm:$0xf] %vm188_vm0, %v9849_v0 }
  0x6d   : > { %278 = vst.msk [vmem:[#allocation4 + $0x44] sm:$0xf] %vm188_vm0, %v9849_v0 }
  0x6e   : > { %279 = vst.msk [vmem:[#allocation4 + $0x48] sm:$0xf] %vm188_vm0, %v9849_v0 }
  0x6f   : > { %280 = vst.msk [vmem:[#allocation4 + $0x4c] sm:$0xf] %vm188_vm0, %v9849_v0 }
  0x70   : > { %281 = vst.msk [vmem:[#allocation4 + $0x50] sm:$0xf] %vm188_vm0, %v9849_v0 }
  0x71   : > { %282 = vst.msk [vmem:[#allocation4 + $0x54] sm:$0xf] %vm188_vm0, %v9849_v0 }
  0x72   : > { %283 = vst.msk [vmem:[#allocation4 + $0x58] sm:$0xf] %vm188_vm0, %v9849_v0 }
  0x73   : > { %284 = vst.msk [vmem:[#allocation4 + $0x5c] sm:$0xf] %vm188_vm0, %v9849_v0 }
  0x74   : > { %285 = vst.msk [vmem:[#allocation4 + $0x60] sm:$0xf] %vm188_vm0, %v9849_v0 }
  0x75   : > { %286 = vst.msk [vmem:[#allocation4 + $0x64] sm:$0xf] %vm188_vm0, %v9849_v0 }
  0x76   : > { %287 = vst.msk [vmem:[#allocation4 + $0x68] sm:$0xf] %vm188_vm0, %v9849_v0 }
  0x77   : > { %288 = vst.msk [vmem:[#allocation4 + $0x6c] sm:$0xf] %vm188_vm0, %v9849_v0 }
  0x78   : > { %289 = vst.msk [vmem:[#allocation4 + $0x70] sm:$0xf] %vm188_vm0, %v9849_v0 }
  0x79   : > { %290 = vst.msk [vmem:[#allocation4 + $0x74] sm:$0xf] %vm188_vm0, %v9849_v0 }
  0x7a   : > { %291 = vst.msk [vmem:[#allocation4 + $0x78] sm:$0xf] %vm188_vm0, %v9849_v0 }
  0x7b   : > { %292 = vst.msk [vmem:[#allocation4 + $0x7c] sm:$0xf] %vm188_vm0, %v9849_v0 }
  0x7c   : > { %293 = vst.msk [vmem:[#allocation4 + $0x80] sm:$0xf] %vm188_vm0, %v9849_v0 }
  0x7d   : > { %294 = vst.msk [vmem:[#allocation4 + $0x84] sm:$0xf] %vm188_vm0, %v9849_v0 }
  0x7e   : > { %295 = vst.msk [vmem:[#allocation4 + $0x88] sm:$0xf] %vm188_vm0, %v9849_v0 }
  0x7f   : > { %296 = vst.msk [vmem:[#allocation4 + $0x8c] sm:$0xf] %vm188_vm0, %v9849_v0 }
  0x80   : > { %297 = vst.msk [vmem:[#allocation4 + $0x90] sm:$0xf] %vm188_vm0, %v9849_v0 }
  0x81   : > { %298 = vst.msk [vmem:[#allocation4 + $0x94] sm:$0xf] %vm188_vm0, %v9849_v0 }
  0x82   : > { %299 = vst.msk [vmem:[#allocation4 + $0x98] sm:$0xf] %vm188_vm0, %v9849_v0 }
  0x83   : > { %300 = vst.msk [vmem:[#allocation4 + $0x9c] sm:$0xf] %vm188_vm0, %v9849_v0 }
  0x84   : > { %301 = vst.msk [vmem:[#allocation4 + $0xa0] sm:$0xf] %vm188_vm0, %v9849_v0 }
  0x85   : > { %302 = vst.msk [vmem:[#allocation4 + $0xa4] sm:$0xf] %vm188_vm0, %v9849_v0 }
  0x86   : > { %303 = vst.msk [vmem:[#allocation4 + $0xa8] sm:$0xf] %vm188_vm0, %v9849_v0 }
  0x87   : > { %304 = vst.msk [vmem:[#allocation4 + $0xac] sm:$0xf] %vm188_vm0, %v9849_v0 }
  0x88   : > { %305 = vst.msk [vmem:[#allocation4 + $0xb0] sm:$0xf] %vm188_vm0, %v9849_v0 }
  0x89   : > { %306 = vst.msk [vmem:[#allocation4 + $0xb4] sm:$0xf] %vm188_vm0, %v9849_v0 }
  0x8a   : > { %307 = vst.msk [vmem:[#allocation4 + $0xb8] sm:$0xf] %vm188_vm0, %v9849_v0 }
  0x8b   : > { %308 = vst.msk [vmem:[#allocation4 + $0xbc] sm:$0xf] %vm188_vm0, %v9849_v0 }
  0x8c   : > { %309 = vst.msk [vmem:[#allocation4 + $0xc0] sm:$0xf] %vm188_vm0, %v9849_v0 }
  0x8d   : > { %310 = vst.msk [vmem:[#allocation4 + $0xc4] sm:$0xf] %vm188_vm0, %v9849_v0 }
  0x8e   : > { %311 = vst.msk [vmem:[#allocation4 + $0xc8] sm:$0xf] %vm188_vm0, %v9849_v0 }
  0x8f   : > { %312 = vst.msk [vmem:[#allocation4 + $0xcc] sm:$0xf] %vm188_vm0, %v9849_v0 }
  0x90   : > { %313 = vst.msk [vmem:[#allocation4 + $0xd0] sm:$0xf] %vm188_vm0, %v9849_v0 }
  0x91   : > { %314 = vst.msk [vmem:[#allocation4 + $0xd4] sm:$0xf] %vm188_vm0, %v9849_v0 }
  0x92   : > { %315 = vst.msk [vmem:[#allocation4 + $0xd8] sm:$0xf] %vm188_vm0, %v9849_v0 }
  0x93   : > { %316 = vst.msk [vmem:[#allocation4 + $0xdc] sm:$0xf] %vm188_vm0, %v9849_v0 }
  0x94   : > { %317 = vst.msk [vmem:[#allocation4 + $0xe0] sm:$0xf] %vm188_vm0, %v9849_v0 }
  0x95   : > { %318 = vst.msk [vmem:[#allocation4 + $0xe4] sm:$0xf] %vm188_vm0, %v9849_v0 }
  0x96   : > { %319 = vst.msk [vmem:[#allocation4 + $0xe8] sm:$0xf] %vm188_vm0, %v9849_v0 }
  0x97   : > { %320 = vst.msk [vmem:[#allocation4 + $0xec] sm:$0xf] %vm188_vm0, %v9849_v0 }
  0x98   : > { %321 = vst.msk [vmem:[#allocation4 + $0xf0] sm:$0xf] %vm188_vm0, %v9849_v0 }
  0x99   : > { %322 = vst.msk [vmem:[#allocation4 + $0xf4] sm:$0xf] %vm188_vm0, %v9849_v0 }
  0x9a   : > { %323 = vst.msk [vmem:[#allocation4 + $0xf8] sm:$0xf] %vm188_vm0, %v9849_v0 }
  0x9b   : > { %324 = vst.msk [vmem:[#allocation4 + $0xfc] sm:$0xf] %vm188_vm0, %v9849_v0 }
  0x9c   : > { %325 = vst.msk [vmem:[#allocation4 + $0x100] sm:$0xf] %vm188_vm0, %v9849_v0 }
  0x9d   : > { %326 = vst.msk [vmem:[#allocation4 + $0x104] sm:$0xf] %vm188_vm0, %v9849_v0 }
  0x9e   : > { %327 = vst.msk [vmem:[#allocation4 + $0x108] sm:$0xf] %vm188_vm0, %v9849_v0 }
  0x9f   : > { %328 = vst.msk [vmem:[#allocation4 + $0x10c] sm:$0xf] %vm188_vm0, %v9849_v0 }
  0xa0   : > { %329 = vst.msk [vmem:[#allocation4 + $0x110] sm:$0xf] %vm188_vm0, %v9849_v0 }
  0xa1   : > { %330 = vst.msk [vmem:[#allocation4 + $0x114] sm:$0xf] %vm188_vm0, %v9849_v0 }
  0xa2   : > { %331 = vst.msk [vmem:[#allocation4 + $0x118] sm:$0xf] %vm188_vm0, %v9849_v0 }
  0xa3   : > { %332 = vst.msk [vmem:[#allocation4 + $0x11c] sm:$0xf] %vm188_vm0, %v9849_v0  ;;  %v429_v0 = vpack.c.bf16 %v364_v62, %v364_v62 }
  0xa4   : > { %366 = vst.msk [vmem:[#allocation2] sm:$0xff] %vm365_vm1, %v333_v1 }
  0xa5   : > { %431 = vst.msk [vmem:[#allocation3 + $0x14] sm:$0xf] %vm188_vm0, %v398_v3 }
  0xa6   : > { %367 = vst.msk [vmem:[#allocation2 + $0x8] sm:$0xff] %vm365_vm1, %v334_v2 }
  0xa7   : > { %432 = vst.msk [vmem:[#allocation3 + $0x18] sm:$0xf] %vm188_vm0, %v399_v5 }
  0xa8   : > { %368 = vst.msk [vmem:[#allocation2 + $0x10] sm:$0xff] %vm365_vm1, %v335_v4 }
  0xa9   : > { %433 = vst.msk [vmem:[#allocation3 + $0x24] sm:$0xf] %vm188_vm0, %v400_v7 }
  0xaa   : > { %369 = vst.msk [vmem:[#allocation2 + $0x18] sm:$0xff] %vm365_vm1, %v336_v6 }
  0xab   : > { %434 = vst.msk [vmem:[#allocation3 + $0x28] sm:$0xf] %vm188_vm0, %v401_v9 }
  0xac   : > { %370 = vst.msk [vmem:[#allocation2 + $0x20] sm:$0xff] %vm365_vm1, %v337_v8 }
  0xad   : > { %435 = vst.msk [vmem:[#allocation3 + $0x34] sm:$0xf] %vm188_vm0, %v402_v11 }
  0xae   : > { %371 = vst.msk [vmem:[#allocation2 + $0x28] sm:$0xff] %vm365_vm1, %v338_v10 }
  0xaf   : > { %436 = vst.msk [vmem:[#allocation3 + $0x38] sm:$0xf] %vm188_vm0, %v403_v13 }
  0xb0   : > { %372 = vst.msk [vmem:[#allocation2 + $0x30] sm:$0xff] %vm365_vm1, %v339_v12 }
  0xb1   : > { %437 = vst.msk [vmem:[#allocation3 + $0x44] sm:$0xf] %vm188_vm0, %v404_v15 }
  0xb2   : > { %373 = vst.msk [vmem:[#allocation2 + $0x38] sm:$0xff] %vm365_vm1, %v340_v14 }
  0xb3   : > { %438 = vst.msk [vmem:[#allocation3 + $0x48] sm:$0xf] %vm188_vm0, %v405_v17 }
  0xb4   : > { %374 = vst.msk [vmem:[#allocation2 + $0x40] sm:$0xff] %vm365_vm1, %v341_v16 }
  0xb5   : > { %439 = vst.msk [vmem:[#allocation3 + $0x54] sm:$0xf] %vm188_vm0, %v406_v19 }
  0xb6   : > { %375 = vst.msk [vmem:[#allocation2 + $0x48] sm:$0xff] %vm365_vm1, %v342_v18 }
  0xb7   : > { %440 = vst.msk [vmem:[#allocation3 + $0x58] sm:$0xf] %vm188_vm0, %v407_v21 }
  0xb8   : > { %376 = vst.msk [vmem:[#allocation2 + $0x50] sm:$0xff] %vm365_vm1, %v343_v20 }
  0xb9   : > { %441 = vst.msk [vmem:[#allocation3 + $0x64] sm:$0xf] %vm188_vm0, %v408_v23 }
  0xba   : > { %377 = vst.msk [vmem:[#allocation2 + $0x58] sm:$0xff] %vm365_vm1, %v344_v22 }
  0xbb   : > { %442 = vst.msk [vmem:[#allocation3 + $0x68] sm:$0xf] %vm188_vm0, %v409_v25 }
  0xbc   : > { %378 = vst.msk [vmem:[#allocation2 + $0x60] sm:$0xff] %vm365_vm1, %v345_v24 }
  0xbd   : > { %443 = vst.msk [vmem:[#allocation3 + $0x74] sm:$0xf] %vm188_vm0, %v410_v27 }
  0xbe   : > { %379 = vst.msk [vmem:[#allocation2 + $0x68] sm:$0xff] %vm365_vm1, %v346_v26 }
  0xbf   : > { %444 = vst.msk [vmem:[#allocation3 + $0x78] sm:$0xf] %vm188_vm0, %v411_v29 }
  0xc0   : > { %380 = vst.msk [vmem:[#allocation2 + $0x70] sm:$0xff] %vm365_vm1, %v347_v28 }
  0xc1   : > { %445 = vst.msk [vmem:[#allocation3 + $0x84] sm:$0xf] %vm188_vm0, %v412_v31 }
  0xc2   : > { %381 = vst.msk [vmem:[#allocation2 + $0x78] sm:$0xff] %vm365_vm1, %v348_v30 }
  0xc3   : > { %446 = vst.msk [vmem:[#allocation3 + $0x88] sm:$0xf] %vm188_vm0, %v413_v33 }
  0xc4   : > { %382 = vst.msk [vmem:[#allocation2 + $0x80] sm:$0xff] %vm365_vm1, %v349_v32 }
  0xc5   : > { %447 = vst.msk [vmem:[#allocation3 + $0x94] sm:$0xf] %vm188_vm0, %v414_v35 }
  0xc6   : > { %383 = vst.msk [vmem:[#allocation2 + $0x88] sm:$0xff] %vm365_vm1, %v350_v34 }
  0xc7   : > { %448 = vst.msk [vmem:[#allocation3 + $0x98] sm:$0xf] %vm188_vm0, %v415_v37 }
  0xc8   : > { %384 = vst.msk [vmem:[#allocation2 + $0x90] sm:$0xff] %vm365_vm1, %v351_v36 }
  0xc9   : > { %449 = vst.msk [vmem:[#allocation3 + $0xa4] sm:$0xf] %vm188_vm0, %v416_v39 }
  0xca   : > { %385 = vst.msk [vmem:[#allocation2 + $0x98] sm:$0xff] %vm365_vm1, %v352_v38 }
  0xcb   : > { %450 = vst.msk [vmem:[#allocation3 + $0xa8] sm:$0xf] %vm188_vm0, %v417_v41 }
  0xcc   : > { %386 = vst.msk [vmem:[#allocation2 + $0xa0] sm:$0xff] %vm365_vm1, %v353_v40 }
  0xcd   : > { %451 = vst.msk [vmem:[#allocation3 + $0xb4] sm:$0xf] %vm188_vm0, %v418_v43 }
  0xce   : > { %387 = vst.msk [vmem:[#allocation2 + $0xa8] sm:$0xff] %vm365_vm1, %v354_v42 }
  0xcf   : > { %452 = vst.msk [vmem:[#allocation3 + $0xb8] sm:$0xf] %vm188_vm0, %v419_v45 }
  0xd0   : > { %388 = vst.msk [vmem:[#allocation2 + $0xb0] sm:$0xff] %vm365_vm1, %v355_v44 }
  0xd1   : > { %453 = vst.msk [vmem:[#allocation3 + $0xc4] sm:$0xf] %vm188_vm0, %v420_v47 }
  0xd2   : > { %389 = vst.msk [vmem:[#allocation2 + $0xb8] sm:$0xff] %vm365_vm1, %v356_v46 }
  0xd3   : > { %454 = vst.msk [vmem:[#allocation3 + $0xc8] sm:$0xf] %vm188_vm0, %v421_v49 }
  0xd4   : > { %390 = vst.msk [vmem:[#allocation2 + $0xc0] sm:$0xff] %vm365_vm1, %v357_v48 }
  0xd5   : > { %455 = vst.msk [vmem:[#allocation3 + $0xd4] sm:$0xf] %vm188_vm0, %v422_v51 }
  0xd6   : > { %391 = vst.msk [vmem:[#allocation2 + $0xc8] sm:$0xff] %vm365_vm1, %v358_v50 }
  0xd7   : > { %456 = vst.msk [vmem:[#allocation3 + $0xd8] sm:$0xf] %vm188_vm0, %v423_v53 }
  0xd8   : > { %392 = vst.msk [vmem:[#allocation2 + $0xd0] sm:$0xff] %vm365_vm1, %v359_v52 }
  0xd9   : > { %457 = vst.msk [vmem:[#allocation3 + $0xe4] sm:$0xf] %vm188_vm0, %v424_v55 }
  0xda   : > { %393 = vst.msk [vmem:[#allocation2 + $0xd8] sm:$0xff] %vm365_vm1, %v360_v54 }
  0xdb   : > { %458 = vst.msk [vmem:[#allocation3 + $0xe8] sm:$0xf] %vm188_vm0, %v425_v57 }
  0xdc   : > { %394 = vst.msk [vmem:[#allocation2 + $0xe0] sm:$0xff] %vm365_vm1, %v361_v56 }
  0xdd   : > { %459 = vst.msk [vmem:[#allocation3 + $0xf4] sm:$0xf] %vm188_vm0, %v426_v59 }
  0xde   : > { %395 = vst.msk [vmem:[#allocation2 + $0xe8] sm:$0xff] %vm365_vm1, %v362_v58 }
  0xdf   : > { %460 = vst.msk [vmem:[#allocation3 + $0xf8] sm:$0xf] %vm188_vm0, %v427_v61 }
  0xe0   : > { %396 = vst.msk [vmem:[#allocation2 + $0xf0] sm:$0xff] %vm365_vm1, %v363_v60 }
  0xe1   : > { %461 = vst.msk [vmem:[#allocation3 + $0x104] sm:$0xf] %vm188_vm0, %v428_v63 }
  0xe2   : > { %397 = vst.msk [vmem:[#allocation2 + $0xf8] sm:$0xff] %vm365_vm1, %v364_v62 }
  0xe3   : > { %462 = vst.msk [vmem:[#allocation3 + $0x108] sm:$0xf] %vm188_vm0, %v429_v0 }
  0xe4 PF: > { %p8881_p7 = scmp.ge.s32.totalorder %s9831_s12, 3 }
  0xe6   : > { %466 = sbr.rel (%p8881_p7) target bundleno = 1912 (0x778), region = 40 }
  0xeb   : > { %v10314_v1 = vld [vmem:[#allocation3 + $0x44] sm:$0xff]   ;;  %v10328_v9 = vld [vmem:[#allocation3 + $0x54] sm:$0xff]   ;;  %s9850_s26 = smov 8   ;;  %vm1048_vm2 = vcmask 1042432   ;;  %s9851_s27 = smov 16   ;;  %vm3038_vm3 = vcmask 1043456  }
  0xec   : > { %15301 = vst [vmem:[#allocation5_spill] sm:$0xff] %v10314_v1  ;;  %v10316_v2 = vld [vmem:[#allocation3 + $0x40] sm:$0xf0]   ;;  %v10330_v10 = vld [vmem:[#allocation3 + $0x50] sm:$0xf0]   ;;  %v873_v19 = vshrl.u32 %v10314_v1, 16 }
  0xed   : > { %15302 = vst [vmem:[#allocation6_spill] sm:$0xff] %v10316_v2  ;;  %v10318_v3 = vld [vmem:[#allocation3 + $0x24] sm:$0xff]   ;;  %v10332_v11 = vld [vmem:[#allocation3 + $0x34] sm:$0xff]   ;;  %v876_v20 = vshll.u32 %v10314_v1, 16  ;;  %v881_v25 = vshrl.u32 %v10328_v9, 16  ;;  %v884_v26 = vshll.u32 %v10328_v9, 16 }
  0xee   : > { %v10320_v4 = vld [vmem:[#allocation3 + $0x20] sm:$0xf0]   ;;  %15303 = vst [vmem:[#allocation7_spill] sm:$0xff] %v10328_v9  ;;  %v10334_v12 = vld [vmem:[#allocation3 + $0x30] sm:$0xf0]   ;;  %v857_v21 = vshrl.u32 %v10318_v3, 16 }
  0xef   : > { %v10322_v5 = vld [vmem:[#allocation3 + $0x4] sm:$0xff]   ;;  %15304 = vst [vmem:[#allocation8_spill] sm:$0xff] %v10330_v10  ;;  %v10336_v13 = vld [vmem:[#allocation3 + $0x14] sm:$0xff]   ;;  %v860_v22 = vshll.u32 %v10318_v3, 16  ;;  %v875_v27 = vrot.slane %v873_v19, 4  ;;  %v878_v28 = vrot.slane %v876_v20, 5 }
  0xf0   : > { %v10324_v6 = vld [vmem:[#allocation3] sm:$0xf0]   ;;  %15305 = vst [vmem:[#allocation9_spill] sm:$0xff] %v10332_v11  ;;  %v10338_v14 = vld [vmem:[#allocation3 + $0x10] sm:$0xf0]   ;;  %v841_v23 = vshrl.u32 %v10322_v5, 16 }
  0xf1   : > { %15306 = vst [vmem:[#allocation10_spill] sm:$0xff] %v10334_v12  ;;  %v844_v24 = vshll.u32 %v10322_v5, 16  ;;  %v859_v29 = vrot.slane %v857_v21, 4  ;;  %v862_v30 = vrot.slane %v860_v22, 5  ;;  %v10352_v31 = vld [vmem:[#allocation3 + $0x84] sm:$0xff]   ;;  %v883_v35 = vrot.slane %v881_v25, 4 }
  0xf2   : > { %15307 = vst [vmem:[#allocation11_spill] sm:$0xff] %v10352_v31  ;;  %v10354_v32 = vld [vmem:[#allocation3 + $0x80] sm:$0xf0]   ;;  %v843_v33 = vrot.slane %v841_v23, 4  ;;  %v879_v36 = vor.u32 %v878_v28, %v875_v27  ;;  %v10356_v38 = vld [vmem:[#allocation3 + $0x74] sm:$0xff]   ;;  %v886_v43 = vrot.slane %v884_v26, 5 }
  0xf3   : > { %15308 = vst [vmem:[#allocation12_spill] sm:$0xff] %v10354_v32  ;;  %v846_v34 = vrot.slane %v844_v24, 5  ;;  %v863_v37 = vor.u32 %v862_v30, %v859_v29  ;;  %v10358_v39 = vld [vmem:[#allocation3 + $0x70] sm:$0xf0]   ;;  %v10360_v40 = vld [vmem:[#allocation3 + $0x64] sm:$0xff]   ;;  %v865_v45 = vshrl.u32 %v10332_v11, 16 }
  0xf4   : > { %15309 = vst [vmem:[#allocation13_spill] sm:$0xff] %v10356_v38  ;;  %v10362_v41 = vld [vmem:[#allocation3 + $0x60] sm:$0xf0]   ;;  %976 = vrot.lane.b32.xlu2 %v879_v36, %s9850_s26  ;;  %v868_v46 = vshll.u32 %v10332_v11, 16  ;;  %v849_v47 = vshrl.u32 %v10336_v13, 16  ;;  %v852_v48 = vshll.u32 %v10336_v13, 16  ;;  %v887_v61 = vor.u32 %v886_v43, %v883_v35 }
  0xf5   : > { %15310 = vst [vmem:[#allocation14_spill] sm:$0xff] %v10358_v39  ;;  %v847_v42 = vor.u32 %v846_v34, %v843_v33  ;;  %972 = vrot.lane.b32.xlu1 %v863_v37, %s9850_s26  ;;  %v10373_v50 = vld [vmem:[#allocation3 + $0xb4] sm:$0xff]   ;;  %v867_v52 = vrot.slane %v865_v45, 4  ;;  %v905_v56 = vshrl.u32 %v10352_v31, 16  ;;  %v908_v57 = vshll.u32 %v10352_v31, 16  ;;  %v10380_v59 = vld [vmem:[#allocation3 + $0xa4] sm:$0xff]  }
  0xf6   : > { %15311 = vst [vmem:[#allocation15_spill] sm:$0xff] %v10360_v40  ;;  %v10375_v51 = vld [vmem:[#allocation3 + $0xb0] sm:$0xf0]   ;;  %v870_v53 = vrot.slane %v868_v46, 5  ;;  %v851_v54 = vrot.slane %v849_v47, 4  ;;  %v854_v55 = vrot.slane %v852_v48, 5 }
  0xf7   : > { %15312 = vst [vmem:[#allocation16_spill] sm:$0xff] %v10362_v41  ;;  %968 = vrot.lane.b32.xlu0 %v847_v42, %s9850_s26  ;;  %v10382_v60 = vld [vmem:[#allocation3 + $0xa0] sm:$0xf0]   ;;  %v10385_v0 = vld [vmem:[#allocation3 + $0x94] sm:$0xff]   ;;  %v897_v21 = vshrl.u32 %v10356_v38, 16  ;;  %v900_v22 = vshll.u32 %v10356_v38, 16 }
  0xf8   : > { %15313 = vst [vmem:[#allocation17_spill] sm:$0xff] %v10373_v50  ;;  %v871_v62 = vor.u32 %v870_v53, %v867_v52  ;;  %v10387_v19 = vld [vmem:[#allocation3 + $0x90] sm:$0xf0]   ;;  %v855_v20 = vor.u32 %v854_v55, %v851_v54  ;;  %v907_v24 = vrot.slane %v905_v56, 4  ;;  %v910_v25 = vrot.slane %v908_v57, 5  ;;  %v10392_v26 = vld [vmem:[#allocation3 + $0xe4] sm:$0xff]  }
  0xf9   : > { %15314 = vst [vmem:[#allocation18_spill] sm:$0xff] %v10375_v51  ;;  %v10394_v27 = vld [vmem:[#allocation3 + $0xe0] sm:$0xf0]   ;;  %v899_v28 = vrot.slane %v897_v21, 4  ;;  %v902_v29 = vrot.slane %v900_v22, 5  ;;  %v889_v30 = vshrl.u32 %v10360_v40, 16 }
  0xfa   : > { %15315 = vst [vmem:[#allocation19_spill] sm:$0xff] %v10380_v59  ;;  %v892_v33 = vshll.u32 %v10360_v40, 16  ;;  %v929_v34 = vshrl.u32 %v10373_v50, 16  ;;  %v10403_v36 = vld [vmem:[#allocation3 + $0xd4] sm:$0xff]   ;;  %v932_v45 = vshll.u32 %v10373_v50, 16  ;;  %v921_v46 = vshrl.u32 %v10380_v59, 16 }
  0xfb   : > { %15316 = vst [vmem:[#allocation20_spill] sm:$0xff] %v10382_v60  ;;  %v10405_v37 = vld [vmem:[#allocation3 + $0xd0] sm:$0xf0]   ;;  %v891_v42 = vrot.slane %v889_v30, 4  ;;  %v924_v47 = vshll.u32 %v10380_v59, 16  ;;  %v10411_v52 = vld [vmem:[#allocation3 + $0xc4] sm:$0xff]   ;;  %v911_v54 = vor.u32 %v910_v25, %v907_v24  ;;  %v903_v55 = vor.u32 %v902_v29, %v899_v28 }
  0xfc   : > { %15317 = vst [vmem:[#allocation21_spill] sm:$0xff] %v10385_v0  ;;  %978 = vrot.lane.b32.xlu2 %v887_v61, %s9850_s26  ;;  %v894_v43 = vrot.slane %v892_v33, 5  ;;  %v10413_v53 = vld [vmem:[#allocation3 + $0xc0] sm:$0xf0]   ;;  %v913_v61 = vshrl.u32 %v10385_v0, 16  ;;  %v934_v22 = vrot.slane %v932_v45, 5 }
  0xfd   : > { %15318 = vst [vmem:[#allocation22_spill] sm:$0xff] %v10387_v19  ;;  %974 = vrot.lane.b32.xlu1 %v871_v62, %s9850_s26  ;;  %v916_v62 = vshll.u32 %v10385_v0, 16  ;;  %v923_v30 = vrot.slane %v921_v46, 4  ;;  %v926_v33 = vrot.slane %v924_v47, 5  ;;  %v10422_v25 = vld [vmem:[#allocation3 + $0xf4] sm:$0xff]   ;;  %v956_v45 = vshll.u32 %v10392_v26, 16 }
  0xfe   : > { %15319 = vst [vmem:[#allocation23_spill] sm:$0xff] %v10392_v26  ;;  %v895_v57 = vor.u32 %v894_v43, %v891_v42  ;;  %v915_v48 = vrot.slane %v913_v61, 4  ;;  %v10424_v28 = vld [vmem:[#allocation3 + $0xf0] sm:$0xf0]   ;;  %v945_v46 = vshrl.u32 %v10403_v36, 16  ;;  %v948_v47 = vshll.u32 %v10403_v36, 16 }
  0xff   : > { %15320 = vst [vmem:[#allocation24_spill] sm:$0xff] %v10394_v27  ;;  %970 = vrot.lane.b32.xlu0 %v855_v20, %s9850_s26  ;;  %v931_v20 = vrot.slane %v929_v34, 4  ;;  %v918_v24 = vrot.slane %v916_v62, 5  ;;  %v927_v42 = vor.u32 %v926_v33, %v923_v30  ;;  %v953_v34 = vshrl.u32 %v10392_v26, 16  ;;  %v544_v61 = vld [vmem:[#allocation3 + $0xc] sm:$0x1] }
 0x100   : > { %15321 = vst [vmem:[#allocation25_spill] sm:$0xff] %v10403_v36  ;;  %v964_v63 = vshll.u32 %v10422_v25, 16  ;;  %v9091_v18 = vld [vmem:[#allocation3 + $0x20] sm:$0x8]  ;;  %v9095_v15 = vld [vmem:[#allocation3 + $0x10] sm:$0x8] }
 0x101   : > { %15322 = vst [vmem:[#allocation26_spill] sm:$0xff] %v10405_v37  ;;  %v935_v29 = vor.u32 %v934_v22, %v931_v20  ;;  %v919_v43 = vor.u32 %v918_v24, %v915_v48  ;;  %v955_v62 = vrot.slane %v953_v34, 4  ;;  %v958_v20 = vrot.slane %v956_v45, 5  ;;  %s9852_s28 = smov 24   ;;  %v9783_v39 = vld [vmem:[#allocation3 + $0x90] sm:$0xf0]  }
 0x102   : > { %15323 = vst [vmem:[#allocation27_spill] sm:$0xff] %v10411_v52  ;;  %v947_v48 = vrot.slane %v945_v46, 4  ;;  %v950_v22 = vrot.slane %v948_v47, 5  ;;  %v1016_v24 = vunpack.c.l.b16 %v544_v61  ;;  %v966_v45 = vrot.slane %v964_v63, 5  ;;  %v547_v61 = vld [vmem:[#allocation3 + $0x3c] sm:$0x1] }
 0x103   : > { %15324 = vst [vmem:[#allocation28_spill] sm:$0xff] %v10413_v53  ;;  %v959_v56 = vor.u32 %v958_v20, %v955_v62  ;;  %v546_v62 = vld [vmem:[#allocation3 + $0x2c] sm:$0x1]  ;;  %v9785_v53 = vld [vmem:[#allocation3 + $0xb0] sm:$0xf0]   ;;  %s9853_s29 = smov 32  }
 0x104   : > { %984 = vrot.lane.b32.xlu2 %v911_v54, %s9850_s26  ;;  %15325 = vst [vmem:[#allocation29_spill] sm:$0xff] %v10422_v25  ;;  %v937_v54 = vshrl.u32 %v10411_v52, 16  ;;  %v951_v49 = vor.u32 %v950_v22, %v947_v48  ;;  %v1032_v58 = vpack.c.b16 %v1016_v24, %v1016_v24  ;;  %v1018_v63 = vunpack.c.l.b16 %v546_v62  ;;  %v548_v22 = vld [vmem:[#allocation3 + $0x4c] sm:$0x1]  ;;  %v9537_v41 = vld [vmem:[#allocation3 + $0xc0] sm:$0x8] }
 0x105   : > { %982 = vrot.lane.b32.xlu1 %v903_v55, %s9850_s26  ;;  %15326 = vst [vmem:[#allocation30_spill] sm:$0xff] %v10424_v28  ;;  %v940_v55 = vshll.u32 %v10411_v52, 16  ;;  %v1020_v24 = vunpack.c.l.b16 %v548_v22  ;;  %v1064_v62 = vrot.slane %v10328_v9, 5  ;;  %v9545_v51 = vld [vmem:[#allocation3 + $0xd0] sm:$0x8]  ;;  %s9854_s30 = smov 40  }
 0x106   : > { %v939_v30 = vrot.slane %v937_v54, 4  ;;  %v1050_v34 = vrot.slane %v1032_v58, 5  ;;  %v1034_v48 = vpack.c.b16 %v1018_v63, %v1018_v63  ;;  %v551_v63 = vld [vmem:[#allocation3 + $0x7c] sm:$0x1]  ;;  %v9549_v10 = vld [vmem:[#allocation3 + $0xf0] sm:$0x8] }
 0x107   : > { %980 = vrot.lane.b32.xlu0 %v895_v57, %s9850_s26  ;;  %v942_v33 = vrot.slane %v940_v55, 5  ;;  %v961_v57 = vshrl.u32 %v10422_v25, 16  ;;  %v9789_v60 = vld [vmem:[#allocation3 + $0xf0] sm:$0xf0]   ;;  %s9855_s4 = smov 48   ;;  %s9856_s5 = smov 56  }
 0x108   : > { %v9798_v19 = vld [vmem:[#allocation3 + $0xf0] sm:$0xf0]   ;;  %v9599_v12 = vld [vmem:[#allocation3 + $0x100] sm:$0x8]  ;;  %s9857_s6 = smov 64   ;;  %p467_p8 = scmp.lt.s32.totalorder %s9831_s12, 2 }
 0x109   : > { %v943_v21 = vor.u32 %v942_v33, %v939_v30  ;;  %v1058_v30 = vrot.slane %v10332_v11, 5  ;;  %vm2217_vm4 = vcmask 64512   ;;  %vm2298_vm5 = vcmask 130048  }
 0x10a   : > { %s468_s7 = scalar_select %p467_p8, %s9831_s12, 2  ;;  %vm2428_vm6 = vcmask 261120   ;;  %vm2363_vm7 = vcmask 195584   ;;  %vm2542_vm8 = vcmask 392192   ;;  %vm2477_vm9 = vcmask 326656  }
 0x10b   : > { %vm2656_vm10 = vcmask 523264   ;;  %vm2607_vm11 = vcmask 457728   ;;  %vm2721_vm12 = vsmask.f32 4352  ;;  %vm2989_vm13 = vcmask 588800  }
 0x10c   : > { %990 = vrot.lane.b32.xlu2 %v935_v29, %s9850_s26  ;;  %v545_v29 = vld [vmem:[#allocation3 + $0x1c] sm:$0x1]  ;;  %s8994_s8 = smul.u32 72, %s468_s7  ;;  %vm3197_vm14 = vcmask 60416  }
 0x10d   : > { %988 = vrot.lane.b32.xlu1 %v927_v42, %s9850_s26  ;;  %v1049_v42 = vrot.slane %v10322_v5, 5  ;;  %v1017_v46 = vunpack.c.l.b16 %v545_v29  ;;  %v1056_v29 = vrot.slane %v1034_v48, 5 }
 0x10e   : > { %s11221_s11 = scalar_lea.vmem %s15202_s1, %s8994_s8 }
 0x10f   : > { %986 = vrot.lane.b32.xlu0 %v919_v43, %s9850_s26  ;;  %v963_v43 = vrot.slane %v961_v57, 4  ;;  %v1051_v47 = vsel %vm1048_vm2, %v1049_v42, %v1050_v34  ;;  %v1033_v55 = vpack.c.b16 %v1017_v46, %v1017_v46  ;;  %v1036_v34 = vpack.c.b16 %v1020_v24, %v1020_v24  ;;  %v549_v46 = vld [vmem:[#allocation3 + $0x5c] sm:$0x1] }
 0x110   : > { %v553_v24 = vld [vmem:[#allocation3 + $0x9c] sm:$0x1] }
 0x111   : > { %v967_v54 = vor.u32 %v966_v45, %v963_v43  ;;  %v1053_v58 = vrot.slane %v1033_v55, 5  ;;  %v550_v45 = vld [vmem:[#allocation3 + $0x6c] sm:$0x1] }
 0x112   : > { %v1022_v55 = vunpack.c.l.b16 %v550_v45 }
 0x114   : > { %996 = vrot.lane.b32.xlu2 %v959_v56, %s9850_s26  ;;  %v1019_v56 = vunpack.c.l.b16 %v547_v61  ;;  %v1021_v61 = vunpack.c.l.b16 %v549_v46  ;;  %v1073_v46 = vrot.slane %v10352_v31, 5 }
 0x115   : > { %994 = vrot.lane.b32.xlu1 %v951_v49, %s9850_s26  ;;  %v1052_v49 = vrot.slane %v10336_v13, 5 }
 0x116   : > { %v1035_v20 = vpack.c.b16 %v1019_v56, %v1019_v56  ;;  %v1037_v56 = vpack.c.b16 %v1021_v61, %v1021_v61  ;;  %v554_v61 = vld [vmem:[#allocation3 + $0xac] sm:$0x1] }
 0x117   : > { %992 = vrot.lane.b32.xlu0 %v943_v21, %s9850_s26  ;;  %v1055_v21 = vrot.slane %v10318_v3, 5  ;;  %v1054_v57 = vsel %vm1048_vm2, %v1052_v49, %v1053_v58  ;;  %v1038_v58 = vpack.c.b16 %v1022_v55, %v1022_v55 }
 0x118   : > { %v1059_v33 = vrot.slane %v1035_v20, 5  ;;  %v1023_v20 = vunpack.c.l.b16 %v551_v63  ;;  %v1065_v48 = vrot.slane %v1037_v56, 5 }
 0x119   : > { %v1057_v43 = vsel %vm1048_vm2, %v1055_v21, %v1056_v29  ;;  %v552_v29 = vld [vmem:[#allocation3 + $0x8c] sm:$0x1] }
 0x11a   : > { %v1024_v45 = vunpack.c.l.b16 %v552_v29 }
 0x11c   : > { %1099 = vrot.lane.b32.xlu2 %v1051_v47, %s9851_s27  ;;  %v1061_v47 = vrot.slane %v10314_v1, 5  ;;  %v1040_v55 = vpack.c.b16 %v1024_v45, %v1024_v45  ;;  %v10995_v1 = vld [vmem:[#allocation3 + $0xf4] sm:$0xff]  }
 0x11d   : > { %1097 = vrot.lane.b32.xlu1 %v1049_v42, %s9851_s27  ;;  %v1060_v42 = vsel %vm1048_vm2, %v1058_v30, %v1059_v33  ;;  %v1066_v33 = vsel %vm1048_vm2, %v1064_v62, %v1065_v48  ;;  %v555_v48 = vld [vmem:[#allocation3 + $0xbc] sm:$0x1] }
 0x11e   : > { %v1074_v56 = vrot.slane %v1040_v55, 5 }
 0x11f   : > { %998 = vrot.lane.b32.xlu0 %v967_v54, %s9850_s26  ;;  %v1062_v54 = vrot.slane %v1036_v34, 5 }
 0x124   : > { %1105 = vrot.lane.b32.xlu2 %v1055_v21, %s9851_s27  ;;  %v1067_v21 = vrot.slane %v10360_v40, 5  ;;  %v10616_v40 = vld [vmem:[#allocation3 + $0xc4] sm:$0xff]  }
 0x125   : > { %1103 = vrot.lane.b32.xlu1 %v1054_v57, %s9851_s27  ;;  %v1068_v57 = vrot.slane %v1038_v58, 5  ;;  %v1026_v58 = vunpack.c.l.b16 %v554_v61  ;;  %v1085_v61 = vrot.slane %v10411_v52, 5  ;;  %v9533_v52 = vld [vmem:[#allocation3 + $0xa0] sm:$0x8] }
 0x127   : > { %1101 = vrot.lane.b32.xlu0 %v1052_v49, %s9851_s27  ;;  %v1063_v49 = vsel %vm1048_vm2, %v1061_v47, %v1062_v54  ;;  %v1069_v22 = vsel %vm1048_vm2, %v1067_v21, %v1068_v57  ;;  %v1075_v57 = vsel %vm1048_vm2, %v1073_v46, %v1074_v56 }
 0x12c   : > { %1111 = vrot.lane.b32.xlu2 %v1060_v42, %s9851_s27  ;;  %v1070_v42 = vrot.slane %v10356_v38, 5  ;;  %v10589_v38 = vld [vmem:[#allocation3 + $0x94] sm:$0xff]  }
 0x12d   : > { %1109 = vrot.lane.b32.xlu1 %v1058_v30, %s9851_s27  ;;  %v1039_v30 = vpack.c.b16 %v1023_v20, %v1023_v20  ;;  %v556_v20 = vld [vmem:[#allocation3 + $0xcc] sm:$0x1] }
 0x12f   : > { %1107 = vrot.lane.b32.xlu0 %v1057_v43, %s9851_s27  ;;  %v1071_v34 = vrot.slane %v1039_v30, 5  ;;  %v1025_v43 = vunpack.c.l.b16 %v553_v24  ;;  %v1027_v24 = vunpack.c.l.b16 %v555_v48 }
 0x131   : > { %v1041_v54 = vpack.c.b16 %v1025_v43, %v1025_v43  ;;  %v10488_v43 = vld [vmem:[#allocation3 + $0x10] sm:$0xf0]  }
 0x134   : > { %1117 = vrot.lane.b32.xlu2 %v1064_v62, %s9851_s27  ;;  %v1076_v62 = vrot.slane %v10385_v0, 5  ;;  %v9797_v0 = vld [vmem:[#allocation3 + $0xe0] sm:$0xf0]  }
 0x135   : > { %1115 = vrot.lane.b32.xlu1 %v1063_v49, %s9851_s27  ;;  %v1077_v49 = vrot.slane %v1041_v54, 5  ;;  %v557_v54 = vld [vmem:[#allocation3 + $0xdc] sm:$0x1] }
 0x137   : > { %1113 = vrot.lane.b32.xlu0 %v1061_v47, %s9851_s27  ;;  %v1072_v47 = vsel %vm1048_vm2, %v1070_v42, %v1071_v34  ;;  %v1078_v63 = vsel %vm1048_vm2, %v1076_v62, %v1077_v49  ;;  %v10486_v34 = vld [vmem:[#allocation3 + $0x14] sm:$0xff]  }
 0x138   : > { %v1211_v55 = vunpack.c.h.b16 %v10486_v34 }
 0x13c   : > { %1123 = vrot.lane.b32.xlu2 %v1069_v22, %s9851_s27  ;;  %v1079_v22 = vrot.slane %v10380_v59, 5  ;;  %v10643_v59 = vld [vmem:[#allocation3 + $0xf4] sm:$0xff]  }
 0x13d   : > { %1121 = vrot.lane.b32.xlu1 %v1067_v21, %s9851_s27  ;;  %v1042_v21 = vpack.c.b16 %v1026_v58, %v1026_v58  ;;  %v1029_v58 = vunpack.c.l.b16 %v557_v54 }
 0x13f   : > { %1119 = vrot.lane.b32.xlu0 %v1066_v33, %s9851_s27  ;;  %v1080_v30 = vrot.slane %v1042_v21, 5  ;;  %v1028_v33 = vunpack.c.l.b16 %v556_v20  ;;  %v9510_v21 = vld [vmem:[#allocation3 + $0x20] sm:$0xf0]   ;;  %v10502_v20 = vld [vmem:[#allocation3 + $0x30] sm:$0xf0]  }
 0x141   : > { %v1081_v45 = vsel %vm1048_vm2, %v1079_v22, %v1080_v30 }
 0x144   : > { %1129 = vrot.lane.b32.xlu2 %v1073_v46, %s9851_s27  ;;  %v1044_v46 = vpack.c.b16 %v1028_v33, %v1028_v33  ;;  %v1045_v33 = vpack.c.b16 %v1029_v58, %v1029_v58  ;;  %v9512_v58 = vld [vmem:[#allocation3 + $0x40] sm:$0xf0]  }
 0x145   : > { %1127 = vrot.lane.b32.xlu1 %v1072_v47, %s9851_s27  ;;  %v1043_v47 = vpack.c.b16 %v1027_v24, %v1027_v24  ;;  %v558_v24 = vld [vmem:[#allocation3 + $0xec] sm:$0x1] }
 0x146   : > { %v1089_v54 = vrot.slane %v1045_v33, 5 }
 0x147   : > { %1125 = vrot.lane.b32.xlu0 %v1070_v42, %s9851_s27  ;;  %v1082_v42 = vrot.slane %v10373_v50, 5  ;;  %v1083_v49 = vrot.slane %v1043_v47, 5  ;;  %v1088_v47 = vrot.slane %v10403_v36, 5  ;;  %v9541_v50 = vld [vmem:[#allocation3 + $0xe0] sm:$0x8] }
 0x149   : > { %v1084_v30 = vsel %vm1048_vm2, %v1082_v42, %v1083_v49  ;;  %v10515_v49 = vld [vmem:[#allocation3 + $0x44] sm:$0xff]   ;;  %v1090_v35 = vsel %vm1048_vm2, %v1088_v47, %v1089_v54  ;;  %v9513_v54 = vld [vmem:[#allocation3 + $0x50] sm:$0xf0]  }
 0x14c   : > { %1135 = vrot.lane.b32.xlu2 %v1078_v63, %s9851_s27  ;;  %v10498_v63 = vld [vmem:[#allocation3 + $0x24] sm:$0xff]  }
 0x14d   : > { %1133 = vrot.lane.b32.xlu1 %v1076_v62, %s9851_s27  ;;  %v1086_v62 = vrot.slane %v1044_v46, 5  ;;  %v1214_v46 = vunpack.c.h.b16 %v10498_v63 }
 0x14e   : > { %v10483_v29 = vpop.permute.xlu2 %976 }
 0x14f   : > { %1131 = vrot.lane.b32.xlu0 %v1075_v57, %s9851_s27  ;;  %15327 = vst [vmem:[#allocation31_spill] sm:$0xff] %v10483_v29  ;;  %v10500_v57 = vld [vmem:[#allocation3 + $0x34] sm:$0xff]   ;;  %v1087_v48 = vsel %vm1048_vm2, %v1085_v61, %v1086_v62  ;;  %v1030_v62 = vunpack.c.l.b16 %v558_v24 }
 0x154   : > { %1141 = vrot.lane.b32.xlu2 %v1082_v42, %s9851_s27  ;;  %v1091_v42 = vrot.slane %v10392_v26, 5  ;;  %v9099_v26 = vld [vmem:[#allocation3 + $0x30] sm:$0x8] }
 0x155   : > { %1139 = vrot.lane.b32.xlu1 %v1081_v45, %s9851_s27  ;;  %v1217_v45 = vunpack.c.h.b16 %v10500_v57 }
 0x156   : > { %v10496_v56 = vpop.permute.xlu2 %978 }
 0x157   : > { %1137 = vrot.lane.b32.xlu0 %v1079_v22, %s9851_s27  ;;  %15328 = vst [vmem:[#allocation32_spill] sm:$0xff] %v10496_v56  ;;  %v559_v22 = vld [vmem:[#allocation3 + $0xfc] sm:$0x1]  ;;  %v9788_v56 = vld [vmem:[#allocation3 + $0xe0] sm:$0xf0]  }
 0x158   : > { %v1031_v16 = vunpack.c.l.b16 %v559_v22 }
 0x15a   : > { %v1047_v7 = vpack.c.b16 %v1031_v16, %v1031_v16  ;;  %v10529_v16 = vld [vmem:[#allocation3 + $0x54] sm:$0xff]  }
 0x15c   : > { %1147 = vrot.lane.b32.xlu2 %v1087_v48, %s9851_s27  ;;  %v1220_v48 = vunpack.c.h.b16 %v10515_v49  ;;  %v1095_v33 = vrot.slane %v1047_v7, 5 }
 0x15d   : > { %1145 = vrot.lane.b32.xlu1 %v1085_v61, %s9851_s27  ;;  %v1046_v61 = vpack.c.b16 %v1030_v62, %v1030_v62  ;;  %v10531_v62 = vld [vmem:[#allocation3 + $0x64] sm:$0xff]  }
 0x15e   : > { %v10512_v23 = vpop.permute.xlu2 %984  ;;  %v1226_v7 = vunpack.c.h.b16 %v10531_v62 }
 0x15f   : > { %1143 = vrot.lane.b32.xlu0 %v1084_v30, %s9851_s27  ;;  %15329 = vst [vmem:[#allocation33_spill] sm:$0xff] %v10512_v23  ;;  %v1094_v30 = vrot.slane %v10422_v25, 5  ;;  %v1092_v22 = vrot.slane %v1046_v61, 5  ;;  %v1223_v61 = vunpack.c.h.b16 %v10529_v16  ;;  %v9587_v23 = vld [vmem:[#allocation3 + $0xd0] sm:$0x8] }
 0x161   : > { %v1096_v8 = vsel %vm1048_vm2, %v1094_v30, %v1095_v33  ;;  %v1258_v33 = vpack.c.b16 %v1211_v55, %v1211_v55  ;;  %v1262_v55 = vpack.c.b16 %v1217_v45, %v1217_v45 }
 0x164   : > { %1153 = vrot.lane.b32.xlu2 %v1091_v42, %s9851_s27 }
 0x165   : > { %1151 = vrot.lane.b32.xlu1 %v1090_v35, %s9851_s27  ;;  %v9514_v35 = vld [vmem:[#allocation3 + $0x60] sm:$0xf0]  }
 0x166   : > { %v10523_v24 = vpop.permute.xlu2 %990 }
 0x167   : > { %1149 = vrot.lane.b32.xlu0 %v1088_v47, %s9851_s27  ;;  %15330 = vst [vmem:[#allocation34_spill] sm:$0xff] %v10523_v24  ;;  %v10525_v17 = vpop.permute.xlu1 %972  ;;  %v1093_v47 = vsel %vm1048_vm2, %v1091_v42, %v1092_v22  ;;  %v9092_v42 = vor.u32 %v9510_v21, %v9091_v18  ;;  %v9096_v22 = vor.u32 %v10488_v43, %v9095_v15  ;;  %v9103_v21 = vld [vmem:[#allocation3 + $0x50] sm:$0x8]  ;;  %v9107_v15 = vld [vmem:[#allocation3 + $0x40] sm:$0x8] }
 0x168   : > { %v1260_v18 = vpack.c.b16 %v1214_v46, %v1214_v46  ;;  %v9104_v36 = vor.u32 %v9513_v54, %v9103_v21  ;;  %v9108_v37 = vor.u32 %v9512_v58, %v9107_v15  ;;  %v9517_v58 = vld [vmem:[#allocation3 + $0x80] sm:$0x8]  ;;  %v10577_v54 = vld [vmem:[#allocation3 + $0x84] sm:$0xff]   ;;  %v9521_v15 = vld [vmem:[#allocation3 + $0x70] sm:$0x8] }
 0x169   : > { %v10527_v44 = vpop.permute.xlu0 %968  ;;  %v9782_v21 = vld [vmem:[#allocation3 + $0x80] sm:$0xf0]  }
 0x16a   : > { %v9786_v24 = vld [vmem:[#allocation3 + $0xc0] sm:$0xf0]  }
 0x16c   : > { %1159 = vrot.lane.b32.xlu2 %v1096_v8, %s9851_s27 }
 0x16d   : > { %1157 = vrot.lane.b32.xlu1 %v1094_v30, %s9851_s27 }
 0x16e   : > { %v10540_v28 = vpop.permute.xlu2 %996 }
 0x16f   : > { %1155 = vrot.lane.b32.xlu0 %v1093_v47, %s9851_s27  ;;  %15331 = vst [vmem:[#allocation35_spill] sm:$0xff] %v10540_v28  ;;  %v10542_v25 = vpop.permute.xlu1 %974  ;;  %v9100_v28 = vor.u32 %v10502_v20, %v9099_v26  ;;  %v9111_v26 = vld [vmem:[#allocation3 + $0x60] sm:$0x8] }
 0x170   : > { %15332 = vst [vmem:[#allocation36_spill] sm:$0xff] %v10542_v25  ;;  %v9112_v46 = vor.u32 %v9514_v35, %v9111_v26 }
 0x171   : > { %v10544_v27 = vpop.permute.xlu0 %970 }
 0x174   : > { %1293 = vrot.lane.b32.xlu2 %v9092_v42, %s9852_s28 }
 0x175   : > { %1291 = vrot.lane.b32.xlu1 %v1258_v33, %s9852_s28 }
 0x176   : > { %v10552_v30 = vpop.permute.xlu2 %1099 }
 0x177   : > { %1289 = vrot.lane.b32.xlu0 %v9096_v22, %s9852_s28  ;;  %v10550_v8 = vpop.permute.xlu1 %982  ;;  %v1264_v22 = vpack.c.b16 %v1220_v48, %v1220_v48  ;;  %v9781_v48 = vld [vmem:[#allocation3 + $0x70] sm:$0xf0]  }
 0x178   : > { %15333 = vst [vmem:[#allocation37_spill] sm:$0xff] %v10550_v8  ;;  %v10575_v8 = vld [vmem:[#allocation3 + $0x74] sm:$0xff]   ;;  %v9522_v26 = vor.u32 %v9781_v48, %v9521_v15 }
 0x179   : > { %v10554_v47 = vpop.permute.xlu0 %980 }
 0x17a   : > { %15334 = vst [vmem:[#allocation38_spill] sm:$0xff] %v10554_v47 }
 0x17c   : > { %1299 = vrot.lane.b32.xlu2 %v1262_v55, %s9852_s28  ;;  %v1268_v55 = vpack.c.b16 %v1226_v7, %v1226_v7 }
 0x17d   : > { %1297 = vrot.lane.b32.xlu1 %v9100_v28, %s9852_s28 }
 0x17e   : > { %v10562_v33 = vpop.permute.xlu2 %1105 }
 0x17f   : > { %1295 = vrot.lane.b32.xlu0 %v1260_v18, %s9852_s28  ;;  %v10560_v43 = vpop.permute.xlu1 %988  ;;  %v1266_v18 = vpack.c.b16 %v1223_v61, %v1223_v61 }
 0x180   : > { %15335 = vst [vmem:[#allocation39_spill] sm:$0xff] %v10560_v43 }
 0x181   : > { %v10564_v42 = vpop.permute.xlu0 %986 }
 0x182   : > { %15336 = vst [vmem:[#allocation40_spill] sm:$0xff] %v10564_v42 }
 0x184   : > { %1305 = vrot.lane.b32.xlu2 %v9104_v36, %s9852_s28  ;;  %v1229_v36 = vunpack.c.h.b16 %v10575_v8 }
 0x185   : > { %1303 = vrot.lane.b32.xlu1 %v1264_v22, %s9852_s28  ;;  %v9518_v22 = vor.u32 %v9782_v21, %v9517_v58 }
 0x186   : > { %v10571_v20 = vpop.permute.xlu2 %1111  ;;  %v1270_v61 = vpack.c.b16 %v1229_v36, %v1229_v36  ;;  %v10602_v36 = vld [vmem:[#allocation3 + $0xa4] sm:$0xff]  }
 0x187   : > { %1301 = vrot.lane.b32.xlu0 %v9108_v37, %s9852_s28  ;;  %v10569_v28 = vpop.permute.xlu1 %994  ;;  %15338 = vst [vmem:[#allocation42_spill] sm:$0xff] %v10571_v20 }
 0x188   : > { %15337 = vst [vmem:[#allocation41_spill] sm:$0xff] %v10569_v28  ;;  %v9525_v28 = vld [vmem:[#allocation3 + $0x90] sm:$0x8] }
 0x189   : > { %v10573_v45 = vpop.permute.xlu0 %992  ;;  %v9526_v48 = vor.u32 %v9783_v39, %v9525_v28 }
 0x18a   : > { %15339 = vst [vmem:[#allocation43_spill] sm:$0xff] %v10573_v45  ;;  %v9529_v45 = vld [vmem:[#allocation3 + $0xb0] sm:$0x8] }
 0x18c   : > { %1311 = vrot.lane.b32.xlu2 %v1268_v55, %s9852_s28  ;;  %v1232_v55 = vunpack.c.h.b16 %v10577_v54 }
 0x18d   : > { %1309 = vrot.lane.b32.xlu1 %v9112_v46, %s9852_s28  ;;  %v1235_v46 = vunpack.c.h.b16 %v10589_v38 }
 0x18e   : > { %v10585_v35 = vpop.permute.xlu2 %1117  ;;  %v1272_v15 = vpack.c.b16 %v1232_v55, %v1232_v55  ;;  %v9530_v55 = vor.u32 %v9785_v53, %v9529_v45 }
 0x18f   : > { %1307 = vrot.lane.b32.xlu0 %v1266_v18, %s9852_s28  ;;  %v10583_v37 = vpop.permute.xlu1 %1097  ;;  %15340 = vst [vmem:[#allocation44_spill] sm:$0xff] %v10585_v35  ;;  %v1274_v21 = vpack.c.b16 %v1235_v46, %v1235_v46 }
 0x191   : > { %v10587_v7 = vpop.permute.xlu0 %998 }
 0x192   : > { %15341 = vst [vmem:[#allocation45_spill] sm:$0xff] %v10587_v7 }
 0x194   : > { %1317 = vrot.lane.b32.xlu2 %v9518_v22, %s9852_s28  ;;  %v10604_v22 = vld [vmem:[#allocation3 + $0xb4] sm:$0xff]  }
 0x195   : > { %1315 = vrot.lane.b32.xlu1 %v1270_v61, %s9852_s28  ;;  %v9784_v61 = vld [vmem:[#allocation3 + $0xa0] sm:$0xf0]  }
 0x196   : > { %v10598_v7 = vpop.permute.xlu2 %1123  ;;  %v9534_v47 = vor.u32 %v9784_v61, %v9533_v52  ;;  %v9538_v52 = vor.u32 %v9786_v24, %v9537_v41 }
 0x197   : > { %1313 = vrot.lane.b32.xlu0 %v9522_v26, %s9852_s28  ;;  %v10596_v18 = vpop.permute.xlu1 %1103  ;;  %15342 = vst [vmem:[#allocation46_spill] sm:$0xff] %v10598_v7  ;;  %v1238_v26 = vunpack.c.h.b16 %v10602_v36 }
 0x199   : > { %v10600_v58 = vpop.permute.xlu0 %1101  ;;  %v1276_v46 = vpack.c.b16 %v1238_v26, %v1238_v26  ;;  %v10629_v26 = vld [vmem:[#allocation3 + $0xd4] sm:$0xff]  }
 0x19c   : > { %1323 = vrot.lane.b32.xlu2 %v1274_v21, %s9852_s28  ;;  %v1241_v21 = vunpack.c.h.b16 %v10604_v22 }
 0x19d   : > { %1321 = vrot.lane.b32.xlu1 %v9526_v48, %s9852_s28  ;;  %v1244_v48 = vunpack.c.h.b16 %v10616_v40 }
 0x19e   : > { %v10612_v39 = vpop.permute.xlu2 %1129  ;;  %v1278_v61 = vpack.c.b16 %v1241_v21, %v1241_v21  ;;  %v9542_v21 = vor.u32 %v9788_v56, %v9541_v50  ;;  %v1373_v56 = vshll.u32 %v10486_v34, 16 }
 0x19f   : > { %1319 = vrot.lane.b32.xlu0 %v1272_v15, %s9852_s28  ;;  %v10610_v7 = vpop.permute.xlu1 %1109  ;;  %15344 = vst [vmem:[#allocation48_spill] sm:$0xff] %v10612_v39  ;;  %v1280_v45 = vpack.c.b16 %v1244_v48, %v1244_v48 }
 0x1a0   : > { %15343 = vst [vmem:[#allocation47_spill] sm:$0xff] %v10610_v7  ;;  %v1410_v7 = vshrl.u32 %v10531_v62, 16 }
 0x1a1   : > { %v10614_v28 = vpop.permute.xlu0 %1107 }
 0x1a2   : > { %15345 = vst [vmem:[#allocation49_spill] sm:$0xff] %v10614_v28 }
 0x1a4   : > { %1329 = vrot.lane.b32.xlu2 %v9530_v55, %s9852_s28  ;;  %v10631_v55 = vld [vmem:[#allocation3 + $0xe4] sm:$0xff]  }
 0x1a5   : > { %1327 = vrot.lane.b32.xlu1 %v1276_v46, %s9852_s28  ;;  %v9787_v46 = vld [vmem:[#allocation3 + $0xd0] sm:$0xf0]  }
 0x1a6   : > { %v10625_v35 = vpop.permute.xlu2 %1135  ;;  %v9546_v43 = vor.u32 %v9787_v46, %v9545_v51  ;;  %v1370_v51 = vshrl.u32 %v10486_v34, 16  ;;  %v9550_v46 = vor.u32 %v9789_v60, %v9549_v10 }
 0x1a7   : > { %1325 = vrot.lane.b32.xlu0 %v9534_v47, %s9852_s28  ;;  %v10623_v15 = vpop.permute.xlu1 %1115  ;;  %15347 = vst [vmem:[#allocation51_spill] sm:$0xff] %v10625_v35  ;;  %v1247_v47 = vunpack.c.h.b16 %v10629_v26 }
 0x1a8   : > { %15346 = vst [vmem:[#allocation50_spill] sm:$0xff] %v10623_v15  ;;  %v1375_v15 = vrot.slane %v1373_v56, 5  ;;  %v1397_v56 = vshll.u32 %v10515_v49, 16 }
 0x1a9   : > { %v10627_v53 = vpop.permute.xlu0 %1113  ;;  %v1282_v48 = vpack.c.b16 %v1247_v47, %v1247_v47 }
 0x1aa   : > { %15348 = vst [vmem:[#allocation52_spill] sm:$0xff] %v10627_v53  ;;  %v1372_v53 = vrot.slane %v1370_v51, 4  ;;  %v1394_v51 = vshrl.u32 %v10515_v49, 16 }
 0x1ac   : > { %1335 = vrot.lane.b32.xlu2 %v1280_v45, %s9852_s28  ;;  %v1250_v45 = vunpack.c.h.b16 %v10631_v55 }
 0x1ad   : > { %1333 = vrot.lane.b32.xlu1 %v9538_v52, %s9852_s28  ;;  %v1253_v52 = vunpack.c.h.b16 %v10643_v59 }
 0x1ae   : > { %v10639_v41 = vpop.permute.xlu2 %1141 }
 0x1af   : > { %1331 = vrot.lane.b32.xlu0 %v1278_v61, %s9852_s28  ;;  %v10637_v9 = vpop.permute.xlu1 %1121  ;;  %15350 = vst [vmem:[#allocation54_spill] sm:$0xff] %v10639_v41  ;;  %v1286_v47 = vpack.c.b16 %v1253_v52, %v1253_v52  ;;  %v1284_v41 = vpack.c.b16 %v1250_v45, %v1250_v45  ;;  %v1376_v52 = vor.u32 %v1375_v15, %v1372_v53  ;;  %v1386_v45 = vshrl.u32 %v10500_v57, 16 }
 0x1b0   : > { %15349 = vst [vmem:[#allocation53_spill] sm:$0xff] %v10637_v9  ;;  %v1396_v53 = vrot.slane %v1394_v51, 4 }
 0x1b1   : > { %v10641_v24 = vpop.permute.xlu0 %1119 }
 0x1b2   : > { %15351 = vst [vmem:[#allocation55_spill] sm:$0xff] %v10641_v24  ;;  %v9553_v24 = vld [vmem:[#allocation3 + $0x100] sm:$0x8] }
 0x1b4   : > { %1341 = vrot.lane.b32.xlu2 %v9542_v21, %s9852_s28  ;;  %v9790_v21 = vld [vmem:[#allocation3 + $0x100] sm:$0xf0]  }
 0x1b5   : > { %1339 = vrot.lane.b32.xlu1 %v1282_v48, %s9852_s28  ;;  %v10658_v48 = vld [vmem:[#allocation3 + $0x104] sm:$0xff]  }
 0x1b6   : > { %v10652_v9 = vpop.permute.xlu2 %1147 }
 0x1b7   : > { %1337 = vrot.lane.b32.xlu0 %v9546_v43, %s9852_s28  ;;  %v10650_v61 = vpop.permute.xlu1 %1127  ;;  %15353 = vst [vmem:[#allocation57_spill] sm:$0xff] %v10652_v9  ;;  %v1256_v43 = vunpack.c.h.b16 %v10658_v48  ;;  %v1389_v9 = vshll.u32 %v10500_v57, 16 }
 0x1b8   : > { %15352 = vst [vmem:[#allocation56_spill] sm:$0xff] %v10650_v61 }
 0x1b9   : > { %v10654_v50 = vpop.permute.xlu0 %1125  ;;  %v1288_v60 = vpack.c.b16 %v1256_v43, %v1256_v43  ;;  %v1388_v43 = vrot.slane %v1386_v45, 4  ;;  %v1391_v15 = vrot.slane %v1389_v9, 5  ;;  %v1421_v9 = vshll.u32 %v10575_v8, 16 }
 0x1ba   : > { %15354 = vst [vmem:[#allocation58_spill] sm:$0xff] %v10654_v50 }
 0x1bb   : > { %v1392_v45 = vor.u32 %v1391_v15, %v1388_v43  ;;  %v1423_v39 = vrot.slane %v1421_v9, 5  ;;  %v1437_v15 = vshll.u32 %v10589_v38, 16  ;;  %v1426_v9 = vshrl.u32 %v10577_v54, 16 }
 0x1bc   : > { %1347 = vrot.lane.b32.xlu2 %v1286_v47, %s9852_s28  ;;  %v1378_v47 = vshrl.u32 %v10498_v63, 16 }
 0x1bd   : > { %1345 = vrot.lane.b32.xlu1 %v9550_v46, %s9852_s28  ;;  %v9554_v46 = vor.u32 %v9790_v21, %v9553_v24 }
 0x1be   : > { %v10666_v50 = vpop.permute.xlu2 %1153  ;;  %v1380_v29 = vrot.slane %v1378_v47, 4  ;;  %v1405_v47 = vshll.u32 %v10529_v16, 16 }
 0x1bf   : > { %1343 = vrot.lane.b32.xlu0 %v1284_v41, %s9852_s28  ;;  %v10664_v61 = vpop.permute.xlu1 %1133  ;;  %15356 = vst [vmem:[#allocation60_spill] sm:$0xff] %v10666_v50  ;;  %v1381_v41 = vshll.u32 %v10498_v63, 16  ;;  %v1399_v50 = vrot.slane %v1397_v56, 5 }
 0x1c0   : > { %15355 = vst [vmem:[#allocation59_spill] sm:$0xff] %v10664_v61  ;;  %v1407_v20 = vrot.slane %v1405_v47, 5 }
 0x1c1   : > { %v10668_v10 = vpop.permute.xlu0 %1131  ;;  %v1383_v61 = vrot.slane %v1381_v41, 5  ;;  %v1400_v51 = vor.u32 %v1399_v50, %v1396_v53  ;;  %v1412_v41 = vrot.slane %v1410_v7, 4  ;;  %v1434_v7 = vshrl.u32 %v10589_v38, 16 }
 0x1c2   : > { %15357 = vst [vmem:[#allocation61_spill] sm:$0xff] %v10668_v10  ;;  %v1442_v53 = vshrl.u32 %v10602_v36, 16 }
 0x1c3   : > { %v1384_v56 = vor.u32 %v1383_v61, %v1380_v29 }
 0x1c4   : > { %1497 = vrot.lane.b32.xlu2 %v1376_v52, %s9853_s29  ;;  %v1418_v52 = vshrl.u32 %v10575_v8, 16 }
 0x1c5   : > { %1351 = vrot.lane.b32.xlu1 %v1288_v60, %s9852_s28  ;;  %v1413_v60 = vshll.u32 %v10531_v62, 16 }
 0x1c6   : > { %v10681_v24 = vpop.permute.xlu2 %1159 }
 0x1c7   : > { %1349 = vrot.lane.b32.xlu0 %v9554_v46, %s9852_s28  ;;  %v10679_v35 = vpop.permute.xlu1 %1139  ;;  %15359 = vst [vmem:[#allocation63_spill] sm:$0xff] %v10681_v24  ;;  %v1402_v46 = vshrl.u32 %v10529_v16, 16  ;;  %v1420_v24 = vrot.slane %v1418_v52, 4 }
 0x1c8   : > { %15358 = vst [vmem:[#allocation62_spill] sm:$0xff] %v10679_v35  ;;  %v1415_v35 = vrot.slane %v1413_v60, 5  ;;  %v1445_v60 = vshll.u32 %v10602_v36, 16 }
 0x1c9   : > { %v10683_v21 = vpop.permute.xlu0 %1137  ;;  %v1424_v43 = vor.u32 %v1423_v39, %v1420_v24  ;;  %v1444_v39 = vrot.slane %v1442_v53, 4 }
 0x1ca   : > { %15360 = vst [vmem:[#allocation64_spill] sm:$0xff] %v10683_v21  ;;  %v1404_v21 = vrot.slane %v1402_v46, 4  ;;  %v1416_v61 = vor.u32 %v1415_v35, %v1412_v41  ;;  %v1439_v35 = vrot.slane %v1437_v15, 5  ;;  %v1447_v24 = vrot.slane %v1445_v60, 5 }
 0x1cc   : > { %1503 = vrot.lane.b32.xlu2 %v1400_v51, %s9853_s29  ;;  %v1408_v52 = vor.u32 %v1407_v20, %v1404_v21  ;;  %v1436_v51 = vrot.slane %v1434_v7, 4  ;;  %v1458_v21 = vshrl.u32 %v10616_v40, 16  ;;  %v1469_v7 = vshll.u32 %v10629_v26, 16 }
 0x1cd   : > { %1501 = vrot.lane.b32.xlu1 %v1392_v45, %s9853_s29  ;;  %v1429_v45 = vshll.u32 %v10577_v54, 16  ;;  %v1448_v53 = vor.u32 %v1447_v24, %v1444_v39 }
 0x1ce   : > { %v10696_v50 = vpop.permute.xlu2 %1293  ;;  %v1440_v15 = vor.u32 %v1439_v35, %v1436_v51 }
 0x1cf   : > { %1499 = vrot.lane.b32.xlu0 %v1384_v56, %s9853_s29  ;;  %v10694_v42 = vpop.permute.xlu1 %1145  ;;  %v1428_v56 = vrot.slane %v1426_v9, 4  ;;  %v1431_v46 = vrot.slane %v1429_v45, 5  ;;  %v1453_v9 = vshll.u32 %v10604_v22, 16  ;;  %v1460_v45 = vrot.slane %v1458_v21, 4 }
 0x1d0   : > { %15361 = vst [vmem:[#allocation65_spill] sm:$0xff] %v10694_v42  ;;  %v1490_v21 = vshrl.u32 %v10658_v48, 16 }
 0x1d1   : > { %v10698_v29 = vpop.permute.xlu0 %1143  ;;  %v1432_v60 = vor.u32 %v1431_v46, %v1428_v56  ;;  %v1455_v10 = vrot.slane %v1453_v9, 5  ;;  %v1482_v56 = vshrl.u32 %v10643_v59, 16  ;;  %v1485_v46 = vshll.u32 %v10643_v59, 16 }
 0x1d2   : > { %15362 = vst [vmem:[#allocation66_spill] sm:$0xff] %v10698_v29  ;;  %v1471_v29 = vrot.slane %v1469_v7, 5  ;;  %v1474_v7 = vshrl.u32 %v10631_v55, 16 }
 0x1d4   : > { %1509 = vrot.lane.b32.xlu2 %v1424_v43, %s9853_s29  ;;  %v1466_v43 = vshrl.u32 %v10629_v26, 16 }
 0x1d5   : > { %1507 = vrot.lane.b32.xlu1 %v1416_v61, %s9853_s29  ;;  %v1461_v61 = vshll.u32 %v10616_v40, 16 }
 0x1d6   : > { %v10711_v41 = vpop.permute.xlu2 %1299  ;;  %v1468_v42 = vrot.slane %v1466_v43, 4 }
 0x1d7   : > { %1505 = vrot.lane.b32.xlu0 %v1408_v52, %s9853_s29  ;;  %v10709_v47 = vpop.permute.xlu1 %1151  ;;  %15364 = vst [vmem:[#allocation68_spill] sm:$0xff] %v10711_v41  ;;  %v1450_v52 = vshrl.u32 %v10604_v22, 16 }
 0x1d8   : > { %15363 = vst [vmem:[#allocation67_spill] sm:$0xff] %v10709_v47  ;;  %v1463_v47 = vrot.slane %v1461_v61, 5  ;;  %v1472_v24 = vor.u32 %v1471_v29, %v1468_v42  ;;  %v1493_v61 = vshll.u32 %v10658_v48, 16  ;;  %v1487_v42 = vrot.slane %v1485_v46, 5 }
 0x1d9   : > { %v10713_v20 = vpop.permute.xlu0 %1149  ;;  %v1492_v29 = vrot.slane %v1490_v21, 4  ;;  %v1577_v46 = vrot.slane %v10486_v34, 5 }
 0x1da   : > { %15365 = vst [vmem:[#allocation69_spill] sm:$0xff] %v10713_v20  ;;  %v1452_v20 = vrot.slane %v1450_v52, 4  ;;  %v1464_v39 = vor.u32 %v1463_v47, %v1460_v45  ;;  %v1484_v47 = vrot.slane %v1482_v56, 4  ;;  %v1476_v52 = vrot.slane %v1474_v7, 4  ;;  %v613_v56 = vld [vmem:[#allocation3 + $0x2c] sm:$0x1] }
 0x1dc   : > { %1515 = vrot.lane.b32.xlu2 %v1448_v53, %s9853_s29  ;;  %v1456_v43 = vor.u32 %v1455_v10, %v1452_v20  ;;  %v612_v53 = vld [vmem:[#allocation3 + $0x1c] sm:$0x1] }
 0x1dd   : > { %1513 = vrot.lane.b32.xlu1 %v1440_v15, %s9853_s29  ;;  %v1477_v15 = vshll.u32 %v10631_v55, 16  ;;  %v1545_v45 = vunpack.c.l.b16 %v612_v53 }
 0x1de   : > { %v10726_v51 = vpop.permute.xlu2 %1305 }
 0x1df   : > { %1511 = vrot.lane.b32.xlu0 %v1432_v60, %s9853_s29  ;;  %v10724_v25 = vpop.permute.xlu1 %1157  ;;  %15367 = vst [vmem:[#allocation71_spill] sm:$0xff] %v10726_v51  ;;  %v1495_v60 = vrot.slane %v1493_v61, 5  ;;  %v1479_v9 = vrot.slane %v1477_v15, 5  ;;  %v1561_v2 = vpack.c.b16 %v1545_v45, %v1545_v45  ;;  %v1546_v15 = vunpack.c.l.b16 %v613_v56 }
 0x1e0   : > { %15366 = vst [vmem:[#allocation70_spill] sm:$0xff] %v10724_v25 }
 0x1e1   : > { %v10728_v35 = vpop.permute.xlu0 %1155  ;;  %v1496_v51 = vor.u32 %v1495_v60, %v1492_v29  ;;  %v1578_v21 = vrot.slane %v1561_v2, 5  ;;  %v1562_v29 = vpack.c.b16 %v1546_v15, %v1546_v15  ;;  %v1583_v2 = vrot.slane %v10500_v57, 5 }
 0x1e2   : > { %15368 = vst [vmem:[#allocation72_spill] sm:$0xff] %v10728_v35  ;;  %v1488_v35 = vor.u32 %v1487_v42, %v1484_v47  ;;  %v1580_v47 = vrot.slane %v10498_v63, 5  ;;  %v1586_v57 = vrot.slane %v10515_v49, 5  ;;  %v1592_v49 = vrot.slane %v10531_v62, 5 }
 0x1e3   : > { %v1579_v42 = vsel %vm1048_vm2, %v1577_v46, %v1578_v21  ;;  %v1581_v63 = vrot.slane %v1562_v29, 5  ;;  %v617_v21 = vld [vmem:[#allocation3 + $0x6c] sm:$0x1]  ;;  %v1595_v62 = vrot.slane %v10575_v8, 5  ;;  %v1601_v8 = vrot.slane %v10589_v38, 5 }
 0x1e4   : > { %1521 = vrot.lane.b32.xlu2 %v1472_v24, %s9853_s29  ;;  %v614_v24 = vld [vmem:[#allocation3 + $0x3c] sm:$0x1]  ;;  %v1550_v15 = vunpack.c.l.b16 %v617_v21  ;;  %v1604_v38 = vrot.slane %v10602_v36, 5  ;;  %v1610_v36 = vrot.slane %v10616_v40, 5 }
 0x1e5   : > { %1519 = vrot.lane.b32.xlu1 %v1464_v39, %s9853_s29  ;;  %v1480_v39 = vor.u32 %v1479_v9, %v1476_v52  ;;  %v1547_v61 = vunpack.c.l.b16 %v614_v24  ;;  %v1582_v56 = vsel %vm1048_vm2, %v1580_v47, %v1581_v63  ;;  %v618_v63 = vld [vmem:[#allocation3 + $0x7c] sm:$0x1] }
 0x1e6   : > { %v10741_v10 = vpop.permute.xlu2 %1311 }
 0x1e7   : > { %1517 = vrot.lane.b32.xlu0 %v1456_v43, %s9853_s29  ;;  %v10739_v25 = vpop.permute.xlu1 %1291  ;;  %15369 = vst [vmem:[#allocation73_spill] sm:$0xff] %v10741_v10 }
 0x1e9   : > { %v10743_v20 = vpop.permute.xlu0 %1289 }
 0x1ec   : > { %1527 = vrot.lane.b32.xlu2 %v1496_v51, %s9853_s29  ;;  %v615_v51 = vld [vmem:[#allocation3 + $0x4c] sm:$0x1] }
 0x1ed   : > { %1525 = vrot.lane.b32.xlu1 %v1488_v35, %s9853_s29  ;;  %v1563_v35 = vpack.c.b16 %v1547_v61, %v1547_v61  ;;  %v1548_v60 = vunpack.c.l.b16 %v615_v51  ;;  %v616_v61 = vld [vmem:[#allocation3 + $0x5c] sm:$0x1] }
 0x1ee   : > { %v10751_v7 = vpop.permute.xlu2 %1317  ;;  %v1549_v29 = vunpack.c.l.b16 %v616_v61 }
 0x1ef   : > { %1523 = vrot.lane.b32.xlu0 %v1480_v39, %s9853_s29  ;;  %v10749_v43 = vpop.permute.xlu1 %1297  ;;  %15371 = vst [vmem:[#allocation75_spill] sm:$0xff] %v10751_v7  ;;  %v1584_v34 = vrot.slane %v1563_v35, 5  ;;  %v1564_v24 = vpack.c.b16 %v1548_v60, %v1548_v60  ;;  %v619_v7 = vld [vmem:[#allocation3 + $0x8c] sm:$0x1] }
 0x1f0   : > { %15370 = vst [vmem:[#allocation74_spill] sm:$0xff] %v10749_v43  ;;  %v1565_v60 = vpack.c.b16 %v1549_v29, %v1549_v29 }
 0x1f1   : > { %v10753_v53 = vpop.permute.xlu0 %1295  ;;  %v1585_v39 = vsel %vm1048_vm2, %v1583_v2, %v1584_v34 }
 0x1f4   : > { %1629 = vrot.lane.b32.xlu2 %v1580_v47, %s9854_s30  ;;  %v1589_v47 = vrot.slane %v10529_v16, 5  ;;  %v1590_v16 = vrot.slane %v1565_v60, 5 }
 0x1f5   : > { %1627 = vrot.lane.b32.xlu1 %v1579_v42, %s9854_s30 }
 0x1f6   : > { %v10763_v9 = vpop.permute.xlu2 %1323  ;;  %v1591_v29 = vsel %vm1048_vm2, %v1589_v47, %v1590_v16 }
 0x1f7   : > { %1625 = vrot.lane.b32.xlu0 %v1577_v46, %s9854_s30  ;;  %v10761_v52 = vpop.permute.xlu1 %1303  ;;  %15373 = vst [vmem:[#allocation77_spill] sm:$0xff] %v10763_v9  ;;  %v1587_v46 = vrot.slane %v1564_v24, 5  ;;  %v1551_v24 = vunpack.c.l.b16 %v618_v63  ;;  %v9583_v9 = vld [vmem:[#allocation3 + $0xe0] sm:$0x8] }
 0x1f8   : > { %15372 = vst [vmem:[#allocation76_spill] sm:$0xff] %v10761_v52  ;;  %v9795_v52 = vld [vmem:[#allocation3 + $0xc0] sm:$0xf0]  }
 0x1f9   : > { %v10765_v45 = vpop.permute.xlu0 %1301  ;;  %v1588_v34 = vsel %vm1048_vm2, %v1586_v57, %v1587_v46 }
 0x1fa   : > { %15374 = vst [vmem:[#allocation78_spill] sm:$0xff] %v10765_v45  ;;  %v9119_v45 = vld [vmem:[#allocation3 + $0x30] sm:$0x8] }
 0x1fc   : > { %1635 = vrot.lane.b32.xlu2 %v1585_v39, %s9854_s30 }
 0x1fd   : > { %1633 = vrot.lane.b32.xlu1 %v1583_v2, %s9854_s30  ;;  %v1566_v2 = vpack.c.b16 %v1550_v15, %v1550_v15  ;;  %v1567_v15 = vpack.c.b16 %v1551_v24, %v1551_v24 }
 0x1fe   : > { %v10775_v35 = vpop.permute.xlu2 %1329 }
 0x1ff   : > { %1631 = vrot.lane.b32.xlu0 %v1582_v56, %s9854_s30  ;;  %v10773_v42 = vpop.permute.xlu1 %1309  ;;  %15376 = vst [vmem:[#allocation80_spill] sm:$0xff] %v10775_v35  ;;  %v1593_v39 = vrot.slane %v1566_v2, 5 }
 0x200   : > { %15375 = vst [vmem:[#allocation79_spill] sm:$0xff] %v10773_v42 }
 0x201   : > { %v10777_v51 = vpop.permute.xlu0 %1307  ;;  %v1594_v46 = vsel %vm1048_vm2, %v1592_v49, %v1593_v39  ;;  %v1552_v39 = vunpack.c.l.b16 %v619_v7 }
 0x202   : > { %15377 = vst [vmem:[#allocation81_spill] sm:$0xff] %v10777_v51  ;;  %v10880_v51 = vld [vmem:[#allocation3 + $0x64] sm:$0xff]  }
 0x204   : > { %1641 = vrot.lane.b32.xlu2 %v1589_v47, %s9854_s30  ;;  %v1598_v47 = vrot.slane %v10577_v54, 5 }
 0x205   : > { %1639 = vrot.lane.b32.xlu1 %v1588_v34, %s9854_s30  ;;  %v620_v34 = vld [vmem:[#allocation3 + $0x9c] sm:$0x1] }
 0x206   : > { %v10787_v21 = vpop.permute.xlu2 %1335  ;;  %v1553_v2 = vunpack.c.l.b16 %v620_v34 }
 0x207   : > { %1637 = vrot.lane.b32.xlu0 %v1586_v57, %s9854_s30  ;;  %v10785_v56 = vpop.permute.xlu1 %1315  ;;  %15379 = vst [vmem:[#allocation83_spill] sm:$0xff] %v10787_v21  ;;  %v1596_v57 = vrot.slane %v1567_v15, 5 }
 0x208   : > { %15378 = vst [vmem:[#allocation82_spill] sm:$0xff] %v10785_v56 }
 0x209   : > { %v10789_v61 = vpop.permute.xlu0 %1313  ;;  %v1597_v16 = vsel %vm1048_vm2, %v1595_v62, %v1596_v57 }
 0x20a   : > { %15380 = vst [vmem:[#allocation84_spill] sm:$0xff] %v10789_v61  ;;  %v1568_v61 = vpack.c.b16 %v1552_v39, %v1552_v39 }
 0x20c   : > { %1647 = vrot.lane.b32.xlu2 %v1594_v46, %s9854_s30  ;;  %v621_v46 = vld [vmem:[#allocation3 + $0xac] sm:$0x1]  ;;  %v1599_v54 = vrot.slane %v1568_v61, 5 }
 0x20d   : > { %1645 = vrot.lane.b32.xlu1 %v1592_v49, %s9854_s30  ;;  %v1569_v49 = vpack.c.b16 %v1553_v2, %v1553_v2 }
 0x20e   : > { %v10799_v63 = vpop.permute.xlu2 %1341  ;;  %v1600_v39 = vsel %vm1048_vm2, %v1598_v47, %v1599_v54 }
 0x20f   : > { %1643 = vrot.lane.b32.xlu0 %v1591_v29, %s9854_s30  ;;  %v10797_v60 = vpop.permute.xlu1 %1321  ;;  %15382 = vst [vmem:[#allocation86_spill] sm:$0xff] %v10799_v63  ;;  %v1602_v15 = vrot.slane %v1569_v49, 5  ;;  %v1554_v29 = vunpack.c.l.b16 %v621_v46 }
 0x210   : > { %15381 = vst [vmem:[#allocation85_spill] sm:$0xff] %v10797_v60  ;;  %v9579_v60 = vld [vmem:[#allocation3 + $0xc0] sm:$0x8] }
 0x211   : > { %v10801_v24 = vpop.permute.xlu0 %1319  ;;  %v1603_v57 = vsel %vm1048_vm2, %v1601_v8, %v1602_v15  ;;  %v1570_v2 = vpack.c.b16 %v1554_v29, %v1554_v29 }
 0x212   : > { %15383 = vst [vmem:[#allocation87_spill] sm:$0xff] %v10801_v24  ;;  %v622_v24 = vld [vmem:[#allocation3 + $0xbc] sm:$0x1] }
 0x213   : > { %v1555_v61 = vunpack.c.l.b16 %v622_v24 }
 0x214   : > { %1653 = vrot.lane.b32.xlu2 %v1598_v47, %s9854_s30  ;;  %v1607_v47 = vrot.slane %v10604_v22, 5 }
 0x215   : > { %1651 = vrot.lane.b32.xlu1 %v1597_v16, %s9854_s30  ;;  %v623_v16 = vld [vmem:[#allocation3 + $0xcc] sm:$0x1]  ;;  %v1571_v54 = vpack.c.b16 %v1555_v61, %v1555_v61  ;;  %v10843_v61 = vld [vmem:[#allocation3 + $0x34] sm:$0xff]  }
 0x216   : > { %v10811_v34 = vpop.permute.xlu2 %1347  ;;  %v1556_v49 = vunpack.c.l.b16 %v623_v16  ;;  %v1906_v11 = vshrl.u32 %v10843_v61, 16 }
 0x217   : > { %1649 = vrot.lane.b32.xlu0 %v1595_v62, %s9854_s30  ;;  %v10809_v7 = vpop.permute.xlu1 %1327  ;;  %15385 = vst [vmem:[#allocation89_spill] sm:$0xff] %v10811_v34  ;;  %v1605_v62 = vrot.slane %v1570_v2, 5  ;;  %v1608_v2 = vrot.slane %v1571_v54, 5  ;;  %v626_v54 = vld [vmem:[#allocation3 + $0xfc] sm:$0x1] }
 0x218   : > { %15384 = vst [vmem:[#allocation88_spill] sm:$0xff] %v10809_v7  ;;  %v1559_v42 = vunpack.c.l.b16 %v626_v54  ;;  %v1619_v54 = vrot.slane %v10643_v59, 5  ;;  %v9560_v7 = vld [vmem:[#allocation3 + $0x70] sm:$0xf0]  }
 0x219   : > { %v10813_v63 = vpop.permute.xlu0 %1325  ;;  %v1606_v29 = vsel %vm1048_vm2, %v1604_v38, %v1605_v62  ;;  %v10839_v62 = vld [vmem:[#allocation3 + $0x24] sm:$0xff]   ;;  %v1609_v40 = vsel %vm1048_vm2, %v1607_v47, %v1608_v2 }
 0x21a   : > { %15386 = vst [vmem:[#allocation90_spill] sm:$0xff] %v10813_v63 }
 0x21c   : > { %1659 = vrot.lane.b32.xlu2 %v1603_v57, %s9854_s30  ;;  %v624_v57 = vld [vmem:[#allocation3 + $0xdc] sm:$0x1] }
 0x21d   : > { %1657 = vrot.lane.b32.xlu1 %v1601_v8, %s9854_s30  ;;  %v1572_v8 = vpack.c.b16 %v1556_v49, %v1556_v49  ;;  %v10841_v49 = vld [vmem:[#allocation3 + $0x20] sm:$0xf0]  }
 0x21e   : > { %v10823_v34 = vpop.permute.xlu2 %1497 }
 0x21f   : > { %1655 = vrot.lane.b32.xlu0 %v1600_v39, %s9854_s30  ;;  %v10821_v46 = vpop.permute.xlu1 %1333  ;;  %v1611_v24 = vrot.slane %v1572_v8, 5  ;;  %v1557_v39 = vunpack.c.l.b16 %v624_v57  ;;  %v625_v57 = vld [vmem:[#allocation3 + $0xec] sm:$0x1] }
 0x220   : > { %15387 = vst [vmem:[#allocation91_spill] sm:$0xff] %v10821_v46  ;;  %v1739_v46 = vunpack.c.h.b16 %v10839_v62 }
 0x221   : > { %v10825_v15 = vpop.permute.xlu0 %1331  ;;  %v1573_v8 = vpack.c.b16 %v1557_v39, %v1557_v39  ;;  %v1616_v39 = vrot.slane %v10631_v55, 5 }
 0x222   : > { %15388 = vst [vmem:[#allocation92_spill] sm:$0xff] %v10825_v15  ;;  %v10862_v15 = vld [vmem:[#allocation3 + $0x44] sm:$0xff]  }
 0x223   : > { %v1614_v21 = vrot.slane %v1573_v8, 5  ;;  %v1745_v8 = vunpack.c.h.b16 %v10862_v15 }
 0x224   : > { %1665 = vrot.lane.b32.xlu2 %v1607_v47, %s9854_s30 }
 0x225   : > { %1663 = vrot.lane.b32.xlu1 %v1606_v29, %s9854_s30  ;;  %v10845_v29 = vld [vmem:[#allocation3 + $0x30] sm:$0xf0]  }
 0x226   : > { %v10835_v56 = vpop.permute.xlu2 %1503 }
 0x227   : > { %1661 = vrot.lane.b32.xlu0 %v1604_v38, %s9854_s30  ;;  %v10833_v16 = vpop.permute.xlu1 %1339  ;;  %15390 = vst [vmem:[#allocation94_spill] sm:$0xff] %v10835_v56  ;;  %v1612_v38 = vsel %vm1048_vm2, %v1610_v36, %v1611_v24  ;;  %v1558_v24 = vunpack.c.l.b16 %v625_v57  ;;  %v9127_v56 = vld [vmem:[#allocation3 + $0x40] sm:$0x8] }
 0x228   : > { %15389 = vst [vmem:[#allocation93_spill] sm:$0xff] %v10833_v16  ;;  %v1742_v16 = vunpack.c.h.b16 %v10843_v61 }
 0x229   : > { %v10837_v22 = vpop.permute.xlu0 %1337  ;;  %v1574_v35 = vpack.c.b16 %v1558_v24, %v1558_v24  ;;  %v9558_v24 = vld [vmem:[#allocation3 + $0x50] sm:$0xf0]  }
 0x22a   : > { %15391 = vst [vmem:[#allocation95_spill] sm:$0xff] %v10837_v22  ;;  %v1613_v22 = vrot.slane %v10629_v26, 5  ;;  %v627_v26 = vld [vmem:[#allocation3 + $0x10c] sm:$0x1] }
 0x22b   : > { %v1617_v57 = vrot.slane %v1574_v35, 5  ;;  %v1751_v35 = vunpack.c.h.b16 %v10880_v51 }
 0x22c   : > { %1671 = vrot.lane.b32.xlu2 %v1612_v38, %s9854_s30  ;;  %v1615_v38 = vsel %vm1048_vm2, %v1613_v22, %v1614_v21  ;;  %v10878_v21 = vld [vmem:[#allocation3 + $0x54] sm:$0xff]  }
 0x22d   : > { %1669 = vrot.lane.b32.xlu1 %v1610_v36, %s9854_s30  ;;  %v10864_v36 = vld [vmem:[#allocation3 + $0x40] sm:$0xf0]  }
 0x22e   : > { %v10857_v47 = vpop.permute.xlu2 %1509 }
 0x22f   : > { %1667 = vrot.lane.b32.xlu0 %v1609_v40, %s9854_s30  ;;  %v10855_v10 = vpop.permute.xlu1 %1345  ;;  %15393 = vst [vmem:[#allocation97_spill] sm:$0xff] %v10857_v47  ;;  %v1575_v40 = vpack.c.b16 %v1559_v42, %v1559_v42 }
 0x230   : > { %15392 = vst [vmem:[#allocation96_spill] sm:$0xff] %v10855_v10  ;;  %v1560_v10 = vunpack.c.l.b16 %v627_v26  ;;  %v1748_v26 = vunpack.c.h.b16 %v10878_v21 }
 0x231   : > { %v10859_v2 = vpop.permute.xlu0 %1343  ;;  %v1620_v55 = vrot.slane %v1575_v40, 5  ;;  %v9115_v40 = vld [vmem:[#allocation3 + $0x20] sm:$0x8] }
 0x232   : > { %15394 = vst [vmem:[#allocation98_spill] sm:$0xff] %v10859_v2  ;;  %v1576_v59 = vpack.c.b16 %v1560_v10, %v1560_v10  ;;  %v9116_v10 = vor.u32 %v10841_v49, %v9115_v40  ;;  %v1788_v40 = vpack.c.b16 %v1742_v16, %v1742_v16  ;;  %v9131_v16 = vld [vmem:[#allocation3 + $0x60] sm:$0x8] }
 0x233   : > { %v1621_v63 = vsel %vm1048_vm2, %v1619_v54, %v1620_v55 }
 0x234   : > { %1677 = vrot.lane.b32.xlu2 %v1616_v39, %s9854_s30 }
 0x235   : > { %1675 = vrot.lane.b32.xlu1 %v1615_v38, %s9854_s30  ;;  %v9559_v38 = vld [vmem:[#allocation3 + $0x60] sm:$0xf0]  }
 0x236   : > { %v10874_v47 = vpop.permute.xlu2 %1515 }
 0x237   : > { %1673 = vrot.lane.b32.xlu0 %v1613_v22, %s9854_s30  ;;  %v10872_v2 = vpop.permute.xlu1 %1351  ;;  %15396 = vst [vmem:[#allocation100_spill] sm:$0xff] %v10874_v47  ;;  %v1618_v22 = vsel %vm1048_vm2, %v1616_v39, %v1617_v57  ;;  %v10897_v57 = vld [vmem:[#allocation3 + $0x74] sm:$0xff]  }
 0x238   : > { %15395 = vst [vmem:[#allocation99_spill] sm:$0xff] %v10872_v2  ;;  %v1623_v2 = vrot.slane %v1576_v59, 5  ;;  %v9120_v59 = vor.u32 %v10845_v29, %v9119_v45  ;;  %v9128_v45 = vor.u32 %v10864_v36, %v9127_v56  ;;  %v9791_v56 = vld [vmem:[#allocation3 + $0x80] sm:$0xf0]   ;;  %v9135_v36 = vld [vmem:[#allocation3 + $0x70] sm:$0x8] }
 0x239   : > { %v10876_v42 = vpop.permute.xlu0 %1349 }
 0x23a   : > { %15397 = vst [vmem:[#allocation101_spill] sm:$0xff] %v10876_v42  ;;  %v1622_v42 = vrot.slane %v10658_v48, 5 }
 0x23c   : > { %1683 = vrot.lane.b32.xlu2 %v1621_v63, %s9854_s30  ;;  %v1754_v63 = vunpack.c.h.b16 %v10897_v57 }
 0x23d   : > { %1681 = vrot.lane.b32.xlu1 %v1619_v54, %s9854_s30  ;;  %v1624_v54 = vsel %vm1048_vm2, %v1622_v42, %v1623_v2  ;;  %v1786_v2 = vpack.c.b16 %v1739_v46, %v1739_v46 }
 0x23e   : > { %v10892_v55 = vpop.permute.xlu2 %1521 }
 0x23f   : > { %1679 = vrot.lane.b32.xlu0 %v1618_v22, %s9854_s30  ;;  %v10890_v47 = vpop.permute.xlu1 %1501  ;;  %15399 = vst [vmem:[#allocation103_spill] sm:$0xff] %v10892_v55  ;;  %v9123_v55 = vld [vmem:[#allocation3 + $0x50] sm:$0x8] }
 0x240   : > { %15398 = vst [vmem:[#allocation102_spill] sm:$0xff] %v10890_v47 }
 0x241   : > { %v10894_v39 = vpop.permute.xlu0 %1499 }
 0x244   : > { %1817 = vrot.lane.b32.xlu2 %v9116_v10, %s9855_s4 }
 0x245   : > { %1687 = vrot.lane.b32.xlu1 %v1624_v54, %s9854_s30 }
 0x246   : > { %v10906_v22 = vpop.permute.xlu2 %1527 }
 0x247   : > { %1685 = vrot.lane.b32.xlu0 %v1622_v42, %s9854_s30  ;;  %v10904_v48 = vpop.permute.xlu1 %1507  ;;  %15401 = vst [vmem:[#allocation105_spill] sm:$0xff] %v10906_v22  ;;  %v1790_v22 = vpack.c.b16 %v1745_v8, %v1745_v8  ;;  %v9563_v8 = vld [vmem:[#allocation3 + $0x80] sm:$0x8] }
 0x248   : > { %15400 = vst [vmem:[#allocation104_spill] sm:$0xff] %v10904_v48  ;;  %v9124_v48 = vor.u32 %v9558_v24, %v9123_v55  ;;  %v10930_v24 = vld [vmem:[#allocation3 + $0x84] sm:$0xff]  }
 0x249   : > { %v10908_v49 = vpop.permute.xlu0 %1505 }
 0x24a   : > { %15402 = vst [vmem:[#allocation106_spill] sm:$0xff] %v10908_v49 }
 0x24c   : > { %1823 = vrot.lane.b32.xlu2 %v1788_v40, %s9855_s4  ;;  %v9132_v40 = vor.u32 %v9559_v38, %v9131_v16  ;;  %v1796_v38 = vpack.c.b16 %v1754_v63, %v1754_v63  ;;  %v10941_v16 = vld [vmem:[#allocation3 + $0x94] sm:$0xff]  }
 0x24d   : > { %1821 = vrot.lane.b32.xlu1 %v9120_v59, %s9855_s4 }
 0x24e   : > { %v10916_v42 = vpop.permute.xlu2 %1629 }
 0x24f   : > { %1819 = vrot.lane.b32.xlu0 %v1786_v2, %s9855_s4  ;;  %v10914_v10 = vpop.permute.xlu1 %1513  ;;  %v1794_v2 = vpack.c.b16 %v1751_v35, %v1751_v35  ;;  %v9564_v35 = vor.u32 %v9791_v56, %v9563_v8 }
 0x250   : > { %15403 = vst [vmem:[#allocation107_spill] sm:$0xff] %v10914_v10  ;;  %v10968_v10 = vld [vmem:[#allocation3 + $0xc4] sm:$0xff]  }
 0x251   : > { %v10918_v54 = vpop.permute.xlu0 %1511 }
 0x252   : > { %15404 = vst [vmem:[#allocation108_spill] sm:$0xff] %v10918_v54  ;;  %v1792_v54 = vpack.c.b16 %v1748_v26, %v1748_v26  ;;  %v9136_v26 = vor.u32 %v9560_v7, %v9135_v36  ;;  %v10954_v36 = vld [vmem:[#allocation3 + $0xa4] sm:$0xff]  }
 0x254   : > { %1829 = vrot.lane.b32.xlu2 %v9124_v48, %s9855_s4 }
 0x255   : > { %1827 = vrot.lane.b32.xlu1 %v1790_v22, %s9855_s4 }
 0x256   : > { %v10926_v29 = vpop.permute.xlu2 %1635 }
 0x257   : > { %1825 = vrot.lane.b32.xlu0 %v9128_v45, %s9855_s4  ;;  %v10924_v46 = vpop.permute.xlu1 %1519  ;;  %15406 = vst [vmem:[#allocation110_spill] sm:$0xff] %v10926_v29  ;;  %v9567_v45 = vld [vmem:[#allocation3 + $0x90] sm:$0x8] }
 0x258   : > { %15405 = vst [vmem:[#allocation109_spill] sm:$0xff] %v10924_v46  ;;  %v9792_v46 = vld [vmem:[#allocation3 + $0x90] sm:$0xf0]  }
 0x259   : > { %v10928_v59 = vpop.permute.xlu0 %1517  ;;  %v9568_v7 = vor.u32 %v9792_v46, %v9567_v45 }
 0x25a   : > { %15407 = vst [vmem:[#allocation111_spill] sm:$0xff] %v10928_v59  ;;  %v9794_v59 = vld [vmem:[#allocation3 + $0xb0] sm:$0xf0]  }
 0x25c   : > { %1835 = vrot.lane.b32.xlu2 %v1794_v2, %s9855_s4 }
 0x25d   : > { %1833 = vrot.lane.b32.xlu1 %v9132_v40, %s9855_s4  ;;  %v1760_v40 = vunpack.c.h.b16 %v10941_v16 }
 0x25e   : > { %v10937_v48 = vpop.permute.xlu2 %1641 }
 0x25f   : > { %1831 = vrot.lane.b32.xlu0 %v1792_v54, %s9855_s4  ;;  %v10935_v55 = vpop.permute.xlu1 %1525  ;;  %15409 = vst [vmem:[#allocation113_spill] sm:$0xff] %v10937_v48  ;;  %v1757_v54 = vunpack.c.h.b16 %v10930_v24  ;;  %v1800_v8 = vpack.c.b16 %v1760_v40, %v1760_v40  ;;  %v9575_v48 = vld [vmem:[#allocation3 + $0xa0] sm:$0x8] }
 0x260   : > { %15408 = vst [vmem:[#allocation112_spill] sm:$0xff] %v10935_v55 }
 0x261   : > { %v10939_v22 = vpop.permute.xlu0 %1523  ;;  %v1798_v56 = vpack.c.b16 %v1757_v54, %v1757_v54 }
 0x262   : > { %15410 = vst [vmem:[#allocation114_spill] sm:$0xff] %v10939_v22  ;;  %v9571_v22 = vld [vmem:[#allocation3 + $0xb0] sm:$0x8] }
 0x263   : > { %v9572_v54 = vor.u32 %v9794_v59, %v9571_v22 }
 0x264   : > { %1841 = vrot.lane.b32.xlu2 %v9564_v35, %s9855_s4  ;;  %v10956_v35 = vld [vmem:[#allocation3 + $0xb4] sm:$0xff]  }
 0x265   : > { %1839 = vrot.lane.b32.xlu1 %v1796_v38, %s9855_s4  ;;  %v9793_v38 = vld [vmem:[#allocation3 + $0xa0] sm:$0xf0]  }
 0x266   : > { %v10950_v55 = vpop.permute.xlu2 %1647  ;;  %v9576_v49 = vor.u32 %v9793_v38, %v9575_v48  ;;  %v9580_v48 = vor.u32 %v9795_v52, %v9579_v60 }
 0x267   : > { %1837 = vrot.lane.b32.xlu0 %v9136_v26, %s9855_s4  ;;  %v10948_v2 = vpop.permute.xlu1 %1627  ;;  %15411 = vst [vmem:[#allocation115_spill] sm:$0xff] %v10950_v55  ;;  %v1763_v26 = vunpack.c.h.b16 %v10954_v36 }
 0x269   : > { %v10952_v63 = vpop.permute.xlu0 %1625  ;;  %v1802_v40 = vpack.c.b16 %v1763_v26, %v1763_v26  ;;  %v10981_v26 = vld [vmem:[#allocation3 + $0xd4] sm:$0xff]  }
 0x26c   : > { %1847 = vrot.lane.b32.xlu2 %v1800_v8, %s9855_s4  ;;  %v1766_v8 = vunpack.c.h.b16 %v10956_v35 }
 0x26d   : > { %1845 = vrot.lane.b32.xlu1 %v9568_v7, %s9855_s4  ;;  %v1769_v7 = vunpack.c.h.b16 %v10968_v10 }
 0x26e   : > { %v10964_v46 = vpop.permute.xlu2 %1653  ;;  %v1804_v38 = vpack.c.b16 %v1766_v8, %v1766_v8  ;;  %v9584_v8 = vor.u32 %v9797_v0, %v9583_v9 }
 0x26f   : > { %1843 = vrot.lane.b32.xlu0 %v1798_v56, %s9855_s4  ;;  %v10962_v55 = vpop.permute.xlu1 %1633  ;;  %15413 = vst [vmem:[#allocation117_spill] sm:$0xff] %v10964_v46  ;;  %v1806_v22 = vpack.c.b16 %v1769_v7, %v1769_v7 }
 0x270   : > { %15412 = vst [vmem:[#allocation116_spill] sm:$0xff] %v10962_v55 }
 0x271   : > { %v10966_v45 = vpop.permute.xlu0 %1631 }
 0x274   : > { %1853 = vrot.lane.b32.xlu2 %v9572_v54, %s9855_s4  ;;  %v10983_v54 = vld [vmem:[#allocation3 + $0xe4] sm:$0xff]  }
 0x275   : > { %1851 = vrot.lane.b32.xlu1 %v1802_v40, %s9855_s4  ;;  %v9796_v40 = vld [vmem:[#allocation3 + $0xd0] sm:$0xf0]  }
 0x276   : > { %v10977_v46 = vpop.permute.xlu2 %1659 }
 0x277   : > { %1849 = vrot.lane.b32.xlu0 %v9576_v49, %s9855_s4  ;;  %v10975_v56 = vpop.permute.xlu1 %1639  ;;  %15415 = vst [vmem:[#allocation119_spill] sm:$0xff] %v10977_v46  ;;  %v1772_v49 = vunpack.c.h.b16 %v10981_v26  ;;  %v9591_v46 = vld [vmem:[#allocation3 + $0xf0] sm:$0x8] }
 0x278   : > { %15414 = vst [vmem:[#allocation118_spill] sm:$0xff] %v10975_v56  ;;  %v9588_v56 = vor.u32 %v9796_v40, %v9587_v23  ;;  %v9592_v23 = vor.u32 %v9798_v19, %v9591_v46  ;;  %v11008_v40 = vld [vmem:[#allocation3 + $0x104] sm:$0xff]  }
 0x279   : > { %v10979_v59 = vpop.permute.xlu0 %1637  ;;  %v1808_v7 = vpack.c.b16 %v1772_v49, %v1772_v49  ;;  %v9799_v49 = vld [vmem:[#allocation3 + $0x100] sm:$0xf0]  }
 0x27a   : > { %15416 = vst [vmem:[#allocation120_spill] sm:$0xff] %v10979_v59  ;;  %v9600_v32 = vor.u32 %v9799_v49, %v9599_v12  ;;  %v1922_v12 = vshrl.u32 %v10878_v21, 16  ;;  %v1925_v49 = vshll.u32 %v10878_v21, 16 }
 0x27c   : > { %1859 = vrot.lane.b32.xlu2 %v1806_v22, %s9855_s4  ;;  %v1775_v22 = vunpack.c.h.b16 %v10983_v54  ;;  %v1927_v31 = vrot.slane %v1925_v49, 5  ;;  %v1949_v49 = vshll.u32 %v10930_v24, 16 }
 0x27d   : > { %1857 = vrot.lane.b32.xlu1 %v9580_v48, %s9855_s4  ;;  %v1778_v48 = vunpack.c.h.b16 %v10995_v1 }
 0x27e   : > { %v10991_v52 = vpop.permute.xlu2 %1665 }
 0x27f   : > { %1855 = vrot.lane.b32.xlu0 %v1804_v38, %s9855_s4  ;;  %v10989_v59 = vpop.permute.xlu1 %1645  ;;  %15418 = vst [vmem:[#allocation122_spill] sm:$0xff] %v10991_v52  ;;  %v1812_v9 = vpack.c.b16 %v1778_v48, %v1778_v48  ;;  %v11010_v52 = vld [vmem:[#allocation3 + $0x114] sm:$0xff]  }
 0x280   : > { %15417 = vst [vmem:[#allocation121_spill] sm:$0xff] %v10989_v59 }
 0x281   : > { %v10993_v60 = vpop.permute.xlu0 %1643 }
 0x282   : > { %15419 = vst [vmem:[#allocation123_spill] sm:$0xff] %v10993_v60  ;;  %v1810_v60 = vpack.c.b16 %v1775_v22, %v1775_v22  ;;  %v1901_v22 = vshll.u32 %v10839_v62, 16 }
 0x284   : > { %1865 = vrot.lane.b32.xlu2 %v9584_v8, %s9855_s4  ;;  %v9800_v8 = vld [vmem:[#allocation3 + $0x110] sm:$0xf0]  }
 0x285   : > { %1863 = vrot.lane.b32.xlu1 %v1808_v7, %s9855_s4  ;;  %v9595_v7 = vld [vmem:[#allocation3 + $0x110] sm:$0x8] }
 0x286   : > { %v11004_v59 = vpop.permute.xlu2 %1671 }
 0x287   : > { %1861 = vrot.lane.b32.xlu0 %v9588_v56, %s9855_s4  ;;  %v11002_v38 = vpop.permute.xlu1 %1651  ;;  %15421 = vst [vmem:[#allocation125_spill] sm:$0xff] %v11004_v59  ;;  %v1781_v56 = vunpack.c.h.b16 %v11008_v40  ;;  %v1898_v59 = vshrl.u32 %v10839_v62, 16 }
 0x288   : > { %15420 = vst [vmem:[#allocation124_spill] sm:$0xff] %v11002_v38  ;;  %v9596_v38 = vor.u32 %v9800_v8, %v9595_v7  ;;  %v1784_v7 = vunpack.c.h.b16 %v11010_v52 }
 0x289   : > { %v11006_v0 = vpop.permute.xlu0 %1649  ;;  %v1814_v48 = vpack.c.b16 %v1781_v56, %v1781_v56 }
 0x28a   : > { %15422 = vst [vmem:[#allocation126_spill] sm:$0xff] %v11006_v0 }
 0x28c   : > { %1871 = vrot.lane.b32.xlu2 %v1812_v9, %s9855_s4  ;;  %v1903_v9 = vrot.slane %v1901_v22, 5  ;;  %v1816_v22 = vpack.c.b16 %v1784_v7, %v1784_v7 }
 0x28d   : > { %1869 = vrot.lane.b32.xlu1 %v9592_v23, %s9855_s4  ;;  %v1909_v23 = vshll.u32 %v10843_v61, 16 }
 0x28e   : > { %v11018_v19 = vpop.permute.xlu2 %1677 }
 0x28f   : > { %1867 = vrot.lane.b32.xlu0 %v1810_v60, %s9855_s4  ;;  %v11016_v0 = vpop.permute.xlu1 %1657  ;;  %15424 = vst [vmem:[#allocation128_spill] sm:$0xff] %v11018_v19  ;;  %v1900_v60 = vrot.slane %v1898_v59, 4  ;;  %v1908_v19 = vrot.slane %v1906_v11, 4  ;;  %v1933_v59 = vshll.u32 %v10880_v51, 16 }
 0x290   : > { %15423 = vst [vmem:[#allocation127_spill] sm:$0xff] %v11016_v0  ;;  %v1911_v0 = vrot.slane %v1909_v23, 5  ;;  %v1917_v23 = vshll.u32 %v10862_v15, 16 }
 0x291   : > { %v11020_v46 = vpop.permute.xlu0 %1655  ;;  %v1904_v11 = vor.u32 %v1903_v9, %v1900_v60  ;;  %v1935_v55 = vrot.slane %v1933_v59, 5  ;;  %v1957_v59 = vshll.u32 %v10941_v16, 16 }
 0x292   : > { %15425 = vst [vmem:[#allocation129_spill] sm:$0xff] %v11020_v46  ;;  %v1919_v29 = vrot.slane %v1917_v23, 5 }
 0x294   : > { %1877 = vrot.lane.b32.xlu2 %v9596_v38, %s9855_s4  ;;  %v1930_v38 = vshrl.u32 %v10880_v51, 16 }
 0x295   : > { %1875 = vrot.lane.b32.xlu1 %v1814_v48, %s9855_s4  ;;  %v1912_v48 = vor.u32 %v1911_v0, %v1908_v19 }
 0x296   : > { %v11032_v56 = vpop.permute.xlu2 %1683 }
 0x297   : > { %1873 = vrot.lane.b32.xlu0 %v9600_v32, %s9855_s4  ;;  %v11030_v8 = vpop.permute.xlu1 %1663  ;;  %15427 = vst [vmem:[#allocation131_spill] sm:$0xff] %v11032_v56  ;;  %v1914_v32 = vshrl.u32 %v10862_v15, 16  ;;  %v1932_v56 = vrot.slane %v1930_v38, 4  ;;  %v1954_v38 = vshrl.u32 %v10941_v16, 16 }
 0x298   : > { %15426 = vst [vmem:[#allocation130_spill] sm:$0xff] %v11030_v8  ;;  %v1924_v8 = vrot.slane %v1922_v12, 4  ;;  %v1946_v12 = vshrl.u32 %v10930_v24, 16 }
 0x299   : > { %v11034_v46 = vpop.permute.xlu0 %1661  ;;  %v1936_v7 = vor.u32 %v1935_v55, %v1932_v56  ;;  %v1956_v55 = vrot.slane %v1954_v38, 4 }
 0x29a   : > { %15428 = vst [vmem:[#allocation132_spill] sm:$0xff] %v11034_v46  ;;  %v1916_v46 = vrot.slane %v1914_v32, 4  ;;  %v1928_v9 = vor.u32 %v1927_v31, %v1924_v8  ;;  %v1948_v32 = vrot.slane %v1946_v12, 4  ;;  %v1951_v31 = vrot.slane %v1949_v49, 5 }
 0x29b   : > { %v1959_v8 = vrot.slane %v1957_v59, 5  ;;  %v1981_v12 = vshll.u32 %v10968_v10, 16 }
 0x29c   : > { %2027 = vrot.lane.b32.xlu2 %v1912_v48, %s9856_s5  ;;  %v1938_v48 = vshrl.u32 %v10897_v57, 16  ;;  %v1952_v49 = vor.u32 %v1951_v31, %v1948_v32 }
 0x29d   : > { %2025 = vrot.lane.b32.xlu1 %v1904_v11, %s9856_s5  ;;  %v1920_v11 = vor.u32 %v1919_v29, %v1916_v46  ;;  %v1970_v46 = vshrl.u32 %v10956_v35, 16  ;;  %v1960_v38 = vor.u32 %v1959_v8, %v1956_v55  ;;  %v1983_v43 = vrot.slane %v1981_v12, 5 }
 0x29e   : > { %v11047_v0 = vpop.permute.xlu2 %1817  ;;  %v1940_v56 = vrot.slane %v1938_v48, 4  ;;  %v1965_v48 = vshll.u32 %v10954_v36, 16  ;;  %v1986_v12 = vshrl.u32 %v10981_v26, 16 }
 0x29f   : > { %1879 = vrot.lane.b32.xlu0 %v1816_v22, %s9855_s4  ;;  %v11045_v60 = vpop.permute.xlu1 %1669  ;;  %v1941_v22 = vshll.u32 %v10897_v57, 16 }
 0x2a0   : > { %15429 = vst [vmem:[#allocation133_spill] sm:$0xff] %v11045_v60  ;;  %v1967_v41 = vrot.slane %v1965_v48, 5 }
 0x2a1   : > { %v11049_v19 = vpop.permute.xlu0 %1667  ;;  %v1943_v23 = vrot.slane %v1941_v22, 5  ;;  %v1972_v22 = vrot.slane %v1970_v46, 4  ;;  %v2002_v46 = vshrl.u32 %v10995_v1, 16 }
 0x2a2   : > { %15430 = vst [vmem:[#allocation134_spill] sm:$0xff] %v11049_v19 }
 0x2a3   : > { %v1944_v59 = vor.u32 %v1943_v23, %v1940_v56  ;;  %v1994_v56 = vshrl.u32 %v10983_v54, 16  ;;  %v1997_v23 = vshll.u32 %v10983_v54, 16 }
 0x2a4   : > { %2033 = vrot.lane.b32.xlu2 %v1936_v7, %s9856_s5  ;;  %v1978_v7 = vshrl.u32 %v10968_v10, 16 }
 0x2a5   : > { %2031 = vrot.lane.b32.xlu1 %v1928_v9, %s9856_s5  ;;  %v1973_v9 = vshll.u32 %v10956_v35, 16 }
 0x2a6   : > { %v11062_v19 = vpop.permute.xlu2 %1823  ;;  %v1980_v47 = vrot.slane %v1978_v7, 4 }
 0x2a7   : > { %2029 = vrot.lane.b32.xlu0 %v1920_v11, %s9856_s5  ;;  %v11060_v60 = vpop.permute.xlu1 %1675  ;;  %v1962_v11 = vshrl.u32 %v10954_v36, 16 }
 0x2a8   : > { %15431 = vst [vmem:[#allocation135_spill] sm:$0xff] %v11060_v60  ;;  %v1975_v60 = vrot.slane %v1973_v9, 5  ;;  %v1984_v8 = vor.u32 %v1983_v43, %v1980_v47  ;;  %v2005_v9 = vshll.u32 %v10995_v1, 16  ;;  %v2004_v43 = vrot.slane %v2002_v46, 4 }
 0x2a9   : > { %v11064_v29 = vpop.permute.xlu0 %1673  ;;  %v2013_v46 = vshll.u32 %v11008_v40, 16 }
 0x2aa   : > { %15432 = vst [vmem:[#allocation136_spill] sm:$0xff] %v11064_v29  ;;  %v1964_v29 = vrot.slane %v1962_v11, 4  ;;  %v1976_v55 = vor.u32 %v1975_v60, %v1972_v22  ;;  %v1999_v60 = vrot.slane %v1997_v23, 5  ;;  %v2007_v47 = vrot.slane %v2005_v9, 5  ;;  %v681_v9 = vld [vmem:[#allocation3 + $0x3c] sm:$0x1] }
 0x2ab   : > { %v2010_v23 = vshrl.u32 %v11008_v40, 16 }
 0x2ac   : > { %2039 = vrot.lane.b32.xlu2 %v1960_v38, %s9856_s5  ;;  %v1968_v7 = vor.u32 %v1967_v41, %v1964_v29  ;;  %v1996_v38 = vrot.slane %v1994_v56, 4 }
 0x2ad   : > { %2037 = vrot.lane.b32.xlu1 %v1952_v49, %s9856_s5  ;;  %v1989_v49 = vshll.u32 %v10981_v26, 16 }
 0x2ae   : > { %v11077_v32 = vpop.permute.xlu2 %1829  ;;  %v2000_v29 = vor.u32 %v1999_v60, %v1996_v38  ;;  %v2012_v38 = vrot.slane %v2010_v23, 4  ;;  %v2015_v60 = vrot.slane %v2013_v46, 5 }
 0x2af   : > { %2035 = vrot.lane.b32.xlu0 %v1944_v59, %s9856_s5  ;;  %v11075_v28 = vpop.permute.xlu1 %1681  ;;  %v1988_v59 = vrot.slane %v1986_v12, 4  ;;  %v1991_v11 = vrot.slane %v1989_v49, 5 }
 0x2b0   : > { %15433 = vst [vmem:[#allocation137_spill] sm:$0xff] %v11075_v28  ;;  %v2008_v28 = vor.u32 %v2007_v47, %v2004_v43  ;;  %v2074_v43 = vunpack.c.l.b16 %v681_v9 }
 0x2b1   : > { %v11079_v31 = vpop.permute.xlu0 %1679  ;;  %v1992_v56 = vor.u32 %v1991_v11, %v1988_v59 }
 0x2b2   : > { %15434 = vst [vmem:[#allocation138_spill] sm:$0xff] %v11079_v31  ;;  %v2105_v31 = vrot.slane %v10839_v62, 5 }
 0x2b4   : > { %2045 = vrot.lane.b32.xlu2 %v1984_v8, %s9856_s5  ;;  %v2021_v8 = vshll.u32 %v11010_v52, 16 }
 0x2b5   : > { %2043 = vrot.lane.b32.xlu1 %v1976_v55, %s9856_s5  ;;  %v2018_v55 = vshrl.u32 %v11010_v52, 16 }
 0x2b6   : > { %v11092_v22 = vpop.permute.xlu2 %1835  ;;  %v2023_v49 = vrot.slane %v2021_v8, 5  ;;  %v2108_v8 = vrot.slane %v10843_v61, 5  ;;  %v2111_v61 = vrot.slane %v10862_v15, 5  ;;  %v2117_v15 = vrot.slane %v10880_v51, 5 }
 0x2b7   : > { %2041 = vrot.lane.b32.xlu0 %v1968_v7, %s9856_s5  ;;  %v11090_v48 = vpop.permute.xlu1 %1687  ;;  %15436 = vst [vmem:[#allocation140_spill] sm:$0xff] %v11092_v22  ;;  %v680_v7 = vld [vmem:[#allocation3 + $0x2c] sm:$0x1]  ;;  %v2020_v12 = vrot.slane %v2018_v55, 4  ;;  %v2090_v22 = vpack.c.b16 %v2074_v43, %v2074_v43  ;;  %v2120_v51 = vrot.slane %v10897_v57, 5  ;;  %v2126_v57 = vrot.slane %v10941_v16, 5 }
 0x2b8   : > { %15435 = vst [vmem:[#allocation139_spill] sm:$0xff] %v11090_v48  ;;  %v2073_v11 = vunpack.c.l.b16 %v680_v7  ;;  %v682_v55 = vld [vmem:[#allocation3 + $0x4c] sm:$0x1]  ;;  %v2129_v16 = vrot.slane %v10954_v36, 5  ;;  %v2135_v36 = vrot.slane %v10968_v10, 5  ;;  %v2138_v10 = vrot.slane %v10981_v26, 5 }
 0x2b9   : > { %v11094_v41 = vpop.permute.xlu0 %1685  ;;  %v2024_v48 = vor.u32 %v2023_v49, %v2020_v12  ;;  %v2075_v23 = vunpack.c.l.b16 %v682_v55  ;;  %v2114_v55 = vrot.slane %v10878_v21, 5  ;;  %v2144_v26 = vrot.slane %v10995_v1, 5 }
 0x2ba   : > { %15437 = vst [vmem:[#allocation141_spill] sm:$0xff] %v11094_v41 }
 0x2bb   : > { %v2091_v49 = vpack.c.b16 %v2075_v23, %v2075_v23 }
 0x2bc   : > { %2051 = vrot.lane.b32.xlu2 %v2008_v28, %s9856_s5  ;;  %v2089_v28 = vpack.c.b16 %v2073_v11, %v2073_v11 }
 0x2bd   : > { %2049 = vrot.lane.b32.xlu1 %v2000_v29, %s9856_s5  ;;  %v2016_v29 = vor.u32 %v2015_v60, %v2012_v38  ;;  %v684_v38 = vld [vmem:[#allocation3 + $0x6c] sm:$0x1]  ;;  %v683_v60 = vld [vmem:[#allocation3 + $0x5c] sm:$0x1] }
 0x2be   : > { %v11105_v59 = vpop.permute.xlu2 %1841  ;;  %v2106_v9 = vrot.slane %v2089_v28, 5  ;;  %v2077_v43 = vunpack.c.l.b16 %v684_v38 }
 0x2bf   : > { %2047 = vrot.lane.b32.xlu0 %v1992_v56, %s9856_s5  ;;  %v11103_v47 = vpop.permute.xlu1 %1821  ;;  %15438 = vst [vmem:[#allocation142_spill] sm:$0xff] %v11105_v59  ;;  %v2109_v56 = vrot.slane %v2090_v22, 5  ;;  %v2112_v22 = vrot.slane %v2091_v49, 5 }
 0x2c1   : > { %v11107_v41 = vpop.permute.xlu0 %1819  ;;  %v2110_v12 = vsel %vm1048_vm2, %v2108_v8, %v2109_v56  ;;  %v2113_v56 = vsel %vm1048_vm2, %v2111_v61, %v2112_v22 }
 0x2c4   : > { %2153 = vrot.lane.b32.xlu2 %v2105_v31, %s9857_s6 }
 0x2c5   : > { %2055 = vrot.lane.b32.xlu1 %v2024_v48, %s9856_s5  ;;  %v2107_v48 = vsel %vm1048_vm2, %v2105_v31, %v2106_v9  ;;  %v685_v9 = vld [vmem:[#allocation3 + $0x7c] sm:$0x1] }
 0x2c6   : > { %v11116_v7 = vpop.permute.xlu2 %1847  ;;  %v2078_v49 = vunpack.c.l.b16 %v685_v9 }
 0x2c7   : > { %2053 = vrot.lane.b32.xlu0 %v2016_v29, %s9856_s5  ;;  %v11114_v46 = vpop.permute.xlu1 %1827  ;;  %15439 = vst [vmem:[#allocation143_spill] sm:$0xff] %v11116_v7  ;;  %v2076_v29 = vunpack.c.l.b16 %v683_v60  ;;  %v686_v7 = vld [vmem:[#allocation3 + $0x8c] sm:$0x1] }
 0x2c8   : > { %v2094_v22 = vpack.c.b16 %v2078_v49, %v2078_v49  ;;  %v2079_v9 = vunpack.c.l.b16 %v686_v7 }
 0x2c9   : > { %v11118_v62 = vpop.permute.xlu0 %1825  ;;  %v2092_v23 = vpack.c.b16 %v2076_v29, %v2076_v29  ;;  %v687_v29 = vld [vmem:[#allocation3 + $0x9c] sm:$0x1] }
 0x2ca   : > { %v2095_v59 = vpack.c.b16 %v2079_v9, %v2079_v9 }
 0x2cb   : > { %v2115_v21 = vrot.slane %v2092_v23, 5 }
 0x2cc   : > { %2159 = vrot.lane.b32.xlu2 %v2110_v12, %s9857_s6 }
 0x2cd   : > { %2157 = vrot.lane.b32.xlu1 %v2108_v8, %s9857_s6  ;;  %v2093_v8 = vpack.c.b16 %v2077_v43, %v2077_v43  ;;  %v2116_v43 = vsel %vm1048_vm2, %v2114_v55, %v2115_v21 }
 0x2ce   : > { %v11131_v31 = vpop.permute.xlu2 %1853 }
 0x2cf   : > { %2155 = vrot.lane.b32.xlu0 %v2107_v48, %s9857_s6  ;;  %v11126_v11 = vpop.permute.xlu1 %1833  ;;  %v2118_v12 = vrot.slane %v2093_v8, 5  ;;  %v2080_v8 = vunpack.c.l.b16 %v687_v29 }
 0x2d1   : > { %v11128_v28 = vpop.permute.xlu0 %1831  ;;  %v2119_v60 = vsel %vm1048_vm2, %v2117_v15, %v2118_v12  ;;  %v2096_v21 = vpack.c.b16 %v2080_v8, %v2080_v8 }
 0x2d3   : > { %v2127_v7 = vrot.slane %v2096_v21, 5 }
 0x2d4   : > { %2165 = vrot.lane.b32.xlu2 %v2114_v55, %s9857_s6  ;;  %v2123_v55 = vrot.slane %v10930_v24, 5  ;;  %v2124_v24 = vrot.slane %v2095_v59, 5 }
 0x2d5   : > { %2163 = vrot.lane.b32.xlu1 %v2113_v56, %s9857_s6 }
 0x2d6   : > { %v11144_v56 = vpop.permute.xlu2 %1859  ;;  %v2125_v9 = vsel %vm1048_vm2, %v2123_v55, %v2124_v24 }
 0x2d7   : > { %2161 = vrot.lane.b32.xlu0 %v2111_v61, %s9857_s6  ;;  %v11138_v48 = vpop.permute.xlu1 %1839  ;;  %v2121_v61 = vrot.slane %v2094_v22, 5 }
 0x2d9   : > { %v11140_v38 = vpop.permute.xlu0 %1837  ;;  %v2122_v49 = vsel %vm1048_vm2, %v2120_v51, %v2121_v61  ;;  %v2128_v61 = vsel %vm1048_vm2, %v2126_v57, %v2127_v7 }
 0x2dc   : > { %2171 = vrot.lane.b32.xlu2 %v2119_v60, %s9857_s6 }
 0x2dd   : > { %2169 = vrot.lane.b32.xlu1 %v2117_v15, %s9857_s6  ;;  %v688_v15 = vld [vmem:[#allocation3 + $0xac] sm:$0x1] }
 0x2de   : > { %v11158_v60 = vpop.permute.xlu2 %1865  ;;  %v2081_v22 = vunpack.c.l.b16 %v688_v15 }
 0x2df   : > { %2167 = vrot.lane.b32.xlu0 %v2116_v43, %s9857_s6  ;;  %v11150_v23 = vpop.permute.xlu1 %1845  ;;  %15442 = vst [vmem:[#allocation146_spill] sm:$0xff] %v11158_v60 }
 0x2e0   : > { %15440 = vst [vmem:[#allocation144_spill] sm:$0xff] %v11150_v23  ;;  %v2097_v8 = vpack.c.b16 %v2081_v22, %v2081_v22  ;;  %v689_v23 = vld [vmem:[#allocation3 + $0xbc] sm:$0x1] }
 0x2e1   : > { %v11152_v12 = vpop.permute.xlu0 %1843  ;;  %v2082_v15 = vunpack.c.l.b16 %v689_v23 }
 0x2e2   : > { %15441 = vst [vmem:[#allocation145_spill] sm:$0xff] %v11152_v12  ;;  %v692_v12 = vld [vmem:[#allocation3 + $0xec] sm:$0x1] }
 0x2e3   : > { %v2098_v24 = vpack.c.b16 %v2082_v15, %v2082_v15 }
 0x2e4   : > { %2177 = vrot.lane.b32.xlu2 %v2123_v55, %s9857_s6  ;;  %v2132_v55 = vrot.slane %v10956_v35, 5 }
 0x2e5   : > { %2175 = vrot.lane.b32.xlu1 %v2122_v49, %s9857_s6  ;;  %v690_v49 = vld [vmem:[#allocation3 + $0xcc] sm:$0x1] }
 0x2e6   : > { %v2083_v21 = vunpack.c.l.b16 %v690_v49  ;;  %v11174_v60 = vpop.permute.xlu2 %1871  ;;  %v2133_v49 = vrot.slane %v2098_v24, 5 }
 0x2e7   : > { %2173 = vrot.lane.b32.xlu0 %v2120_v51, %s9857_s6  ;;  %v11162_v43 = vpop.permute.xlu1 %1851  ;;  %v2130_v51 = vrot.slane %v2097_v8, 5  ;;  %15443 = vst [vmem:[#allocation147_spill] sm:$0xff] %v11174_v60 }
 0x2e8   : > { %v2134_v15 = vsel %vm1048_vm2, %v2132_v55, %v2133_v49 }
 0x2e9   : > { %v11164_v29 = vpop.permute.xlu0 %1849  ;;  %v2131_v22 = vsel %vm1048_vm2, %v2129_v16, %v2130_v51 }
 0x2ec   : > { %2183 = vrot.lane.b32.xlu2 %v2128_v61, %s9857_s6  ;;  %v691_v61 = vld [vmem:[#allocation3 + $0xdc] sm:$0x1] }
 0x2ed   : > { %2181 = vrot.lane.b32.xlu1 %v2126_v57, %s9857_s6  ;;  %v2099_v57 = vpack.c.b16 %v2083_v21, %v2083_v21  ;;  %v2084_v8 = vunpack.c.l.b16 %v691_v61  ;;  %v2085_v61 = vunpack.c.l.b16 %v692_v12 }
 0x2ee   : > { %v11188_v35 = vpop.permute.xlu2 %1877 }
 0x2ef   : > { %2179 = vrot.lane.b32.xlu0 %v2125_v9, %s9857_s6  ;;  %v11172_v59 = vpop.permute.xlu1 %1857  ;;  %v2136_v23 = vrot.slane %v2099_v57, 5  ;;  %15444 = vst [vmem:[#allocation148_spill] sm:$0xff] %v11188_v35  ;;  %v2100_v21 = vpack.c.b16 %v2084_v8, %v2084_v8  ;;  %v2101_v49 = vpack.c.b16 %v2085_v61, %v2085_v61 }
 0x2f1   : > { %v11176_v7 = vpop.permute.xlu0 %1855  ;;  %v2137_v51 = vsel %vm1048_vm2, %v2135_v36, %v2136_v23 }
 0x2f4   : > { %2189 = vrot.lane.b32.xlu2 %v2132_v55, %s9857_s6  ;;  %v2141_v55 = vrot.slane %v10983_v54, 5 }
 0x2f5   : > { %2187 = vrot.lane.b32.xlu1 %v2131_v22, %s9857_s6  ;;  %v693_v22 = vld [vmem:[#allocation3 + $0xfc] sm:$0x1] }
 0x2f6   : > { %v2086_v57 = vunpack.c.l.b16 %v693_v22  ;;  %v11203_v35 = vpop.permute.xlu2 %2027 }
 0x2f7   : > { %2185 = vrot.lane.b32.xlu0 %v2129_v16, %s9857_s6  ;;  %v11184_v9 = vpop.permute.xlu1 %1863  ;;  %v2139_v16 = vrot.slane %v2100_v21, 5 }
 0x2f9   : > { %v11186_v60 = vpop.permute.xlu0 %1861  ;;  %v2140_v8 = vsel %vm1048_vm2, %v2138_v10, %v2139_v16 }
 0x2fc   : > { %2195 = vrot.lane.b32.xlu2 %v2137_v51, %s9857_s6  ;;  %v694_v51 = vld [vmem:[#allocation3 + $0x10c] sm:$0x1] }
 0x2fd   : > { %2193 = vrot.lane.b32.xlu1 %v2135_v36, %s9857_s6  ;;  %v2102_v36 = vpack.c.b16 %v2086_v57, %v2086_v57  ;;  %v2087_v21 = vunpack.c.l.b16 %v694_v51 }
 0x2fe   : > { %v11223_v1 = vpop.permute.xlu2 %2033 }
 0x2ff   : > { %2191 = vrot.lane.b32.xlu0 %v2134_v15, %s9857_s6  ;;  %v11196_v24 = vpop.permute.xlu1 %1869  ;;  %v2145_v12 = vrot.slane %v2102_v36, 5  ;;  %v2142_v15 = vrot.slane %v2101_v49, 5  ;;  %v2103_v57 = vpack.c.b16 %v2087_v21, %v2087_v21 }
 0x300   : > { %15445 = vst [vmem:[#allocation149_spill] sm:$0xff] %v11196_v24  ;;  %v15452_v24 = vunpack.c.h.b16 %v10322_v5 }
 0x301   : > { %v11198_v23 = vpop.permute.xlu0 %1867  ;;  %v2146_v16 = vsel %vm1048_vm2, %v2144_v26, %v2145_v12  ;;  %v2143_v61 = vsel %vm1048_vm2, %v2141_v55, %v2142_v15  ;;  %v2148_v36 = vrot.slane %v2103_v57, 5  ;;  %v2150_v12 = vrot.slane %v11010_v52, 5 }
 0x304   : > { %2201 = vrot.lane.b32.xlu2 %v2141_v55, %s9857_s6 }
 0x305   : > { %2199 = vrot.lane.b32.xlu1 %v2140_v8, %s9857_s6  ;;  %v695_v8 = vld [vmem:[#allocation3 + $0x11c] sm:$0x1] }
 0x306   : > { %v2088_v55 = vunpack.c.l.b16 %v695_v8 }
 0x307   : > { %2197 = vrot.lane.b32.xlu0 %v2138_v10, %s9857_s6  ;;  %v11210_v54 = vpop.permute.xlu1 %1875  ;;  %v2147_v10 = vrot.slane %v11008_v40, 5 }
 0x308   : > { %15446 = vst [vmem:[#allocation150_spill] sm:$0xff] %v11210_v54 }
 0x309   : > { %v11212_v22 = vpop.permute.xlu0 %1873  ;;  %v2149_v15 = vsel %vm1048_vm2, %v2147_v10, %v2148_v36  ;;  %v8998_v36 = vld [vmem:[%s11221_s11 + $0x18] sm:$0xff] }
 0x30a   : > { %15447 = vst [vmem:[#allocation151_spill] sm:$0xff] %v11212_v22 }
 0x30c   : > { %2207 = vrot.lane.b32.xlu2 %v2146_v16, %s9857_s6  ;;  %v2104_v16 = vpack.c.b16 %v2088_v55, %v2088_v55 }
 0x30d   : > { %2205 = vrot.lane.b32.xlu1 %v2144_v26, %s9857_s6  ;;  %v480_v26 = vld [vmem:[%s11221_s11 + $0x20] sm:$0xf] }
 0x30e   : > { %v2979_v21 = vunpack.c.l.b16 %v480_v26  ;;  %v2151_v52 = vrot.slane %v2104_v16, 5  ;;  %v8997_v26 = vld [vmem:[%s11221_s11 + $0x10] sm:$0xff]  ;;  %v8995_v16 = vld [vmem:[%s11221_s11] sm:$0xff] }
 0x30f   : > { %2203 = vrot.lane.b32.xlu0 %v2143_v61, %s9857_s6  ;;  %v11227_v49 = vpop.permute.xlu1 %2025  ;;  %v11240_v61 = vpop.permute.xlu2 %2039 }
 0x310   : > { %v2984_v22 = vpack.c.b16 %v2979_v21, %v2979_v21  ;;  %15449 = vst [vmem:[#allocation153_spill] sm:$0xff] %v11240_v61  ;;  %v2152_v55 = vsel %vm1048_vm2, %v2150_v12, %v2151_v52 }
 0x311   : > { %v11229_v51 = vpop.permute.xlu0 %1879 }
 0x312   : > { %15448 = vst [vmem:[#allocation152_spill] sm:$0xff] %v11229_v51  ;;  %v3040_v40 = vsel %vm3038_vm3, %v2984_v22, 0 }
 0x313   : > { %3045 = vmatpush.bf16.msra.mxu0 %v3040_v40  ;;  %9007 = vmatpush.bf16.msra.mxu2 %v3040_v40 }
 0x314   : > { %2213 = vrot.lane.b32.xlu2 %v2150_v12, %s9857_s6  ;;  %v9139_v12 = vld [vmem:[#allocation3] sm:$0x8] }
 0x315   : > { %2211 = vrot.lane.b32.xlu1 %v2149_v15, %s9857_s6  ;;  %v8996_v15 = vld [vmem:[%s11221_s11 + $0x8] sm:$0xff] }
 0x317   : > { %2209 = vrot.lane.b32.xlu0 %v2147_v10, %s9857_s6  ;;  %v11238_v57 = vpop.permute.xlu1 %2031  ;;  %3046 = vmatpush.bf16.msra.mxu0 %v8998_v36  ;;  %v11252_v21 = vpop.permute.xlu2 %2045 }
 0x318   : > { %9008 = vmatpush.bf16.msra.mxu2 %v8998_v36 }
 0x319   : > { %v11242_v8 = vpop.permute.xlu0 %2029 }
 0x31b   : > { %3047 = vmatpush.bf16.msra.mxu0 %v8997_v26 }
 0x31c   : > { %9009 = vmatpush.bf16.msra.mxu2 %v8997_v26  ;;  %v9140_v26 = vor.u32 %v10324_v6, %v9139_v12 }
 0x31f   : > { %2215 = vrot.lane.b32.xlu0 %v2152_v55, %s9857_s6  ;;  %v11248_v22 = vpop.permute.xlu1 %2037  ;;  %3048 = vmatpush.bf16.msra.mxu0 %v8996_v15  ;;  %v11260_v52 = vpop.permute.xlu2 %2051 }
 0x320   : > { %9010 = vmatpush.bf16.msra.mxu2 %v8996_v15  ;;  %15450 = vst [vmem:[#allocation154_spill] sm:$0xff] %v11260_v52  ;;  %v2220_v15 = vsel %vm2217_vm4, %v9140_v26, %v10527_v44 }
 0x321   : > { %v11250_v10 = vpop.permute.xlu0 %2035  ;;  %v2300_v52 = vsel %vm2298_vm5, %v2220_v15, %v10583_v37 }
 0x322   : > { %v2365_v6 = vsel %vm2363_vm7, %v2300_v52, %v10743_v20 }
 0x323   : > { %3049 = vmatpush.bf16.msra.mxu0 %v8995_v16  ;;  %v2430_v26 = vsel %vm2428_vm6, %v2365_v6, %v10823_v34 }
 0x324   : > { %9011 = vmatpush.bf16.msra.mxu2 %v8995_v16  ;;  %v793_v16 = vpack.c.b16 %v15452_v24, %v15452_v24  ;;  %v2479_v5 = vsel %vm2477_vm9, %v2430_v26, %v10952_v63 }
 0x325   : > { %v2544_v24 = vsel %vm2542_vm8, %v2479_v5, %v11047_v0 }
 0x326   : > { %v2222_v37 = vsel %vm2217_vm4, %v793_v16, %v10527_v44  ;;  %v2609_v52 = vsel %vm2607_vm11, %v2544_v24, %v11227_v49 }
 0x327   : > { %v11256_v40 = vpop.permute.xlu1 %2043  ;;  %v2154_v54 = vpop.permute.xlu2 %2153  ;;  %v2302_v20 = vsel %vm2298_vm5, %v2222_v37, %v10552_v30 }
 0x328   : > { %v2367_v15 = vsel %vm2363_vm7, %v2302_v20, %v10739_v25  ;;  %v2658_v6 = vsel %vm2656_vm10, %v2609_v52, %v2154_v54  ;;  %v15453_v25 = vunpack.c.h.b16 %v10336_v13 }
 0x329   : > { %v11258_v51 = vpop.permute.xlu0 %2041  ;;  %v2431_v63 = vsel %vm2428_vm6, %v2367_v15, %v10823_v34  ;;  %v2722_v26 = vshrl.u32 %v2658_v6, 16  ;;  %v2725_v5 = vshll.u32 %v2658_v6, 16 }
 0x32a   : > { %v2481_v0 = vsel %vm2477_vm9, %v2431_v63, %v10948_v2  ;;  %v795_v54 = vpack.c.b16 %v15453_v25, %v15453_v25 }
 0x32b   : > { %v2546_v30 = vsel %vm2542_vm8, %v2481_v0, %v11107_v41  ;;  %v2727_v20 = vrot.slane %v2725_v5, 4 }
 0x32c   : > { %v2610_v34 = vsel %vm2607_vm11, %v2546_v30, %v11227_v49  ;;  %v2227_v15 = vsel %vm2217_vm4, %v795_v54, %v10544_v27 }
 0x32d   : > { %v2306_v6 = vsel %vm2298_vm5, %v2227_v15, %v10596_v18  ;;  %v9147_v18 = vld [vmem:[#allocation3 + $0x20] sm:$0x8] }
 0x32e   : > { %v9148_v15 = vor.u32 %v10320_v4, %v9147_v18  ;;  %v15455_v4 = vld [vmem:[#allocation49_spill] sm:$0xff]  ;;  %v15457_v18 = vld [vmem:[#allocation74_spill] sm:$0xff] }
 0x32f   : > { %v11262_v36 = vpop.permute.xlu1 %2049  ;;  %v2160_v37 = vpop.permute.xlu2 %2159 }
 0x330   : > { %15451 = vst [vmem:[#allocation155_spill] sm:$0xff] %v11262_v36  ;;  %v9143_v36 = vld [vmem:[#allocation3 + $0x10] sm:$0x8] }
 0x331   : > { %v11264_v55 = vpop.permute.xlu0 %2047  ;;  %v9144_v44 = vor.u32 %v10338_v14, %v9143_v36  ;;  %v2724_v36 = vrot.slane %v2722_v26, 3 }
 0x333   : > { %v2225_v2 = vsel %vm2217_vm4, %v9144_v44, %v10544_v27  ;;  %v2371_v44 = vsel %vm2363_vm7, %v2306_v6, %v10753_v53 }
 0x334   : > { %v2304_v13 = vsel %vm2298_vm5, %v2225_v2, %v10600_v58  ;;  %v2728_v58 = vor.u32 %v2727_v20, %v2724_v36 }
 0x335   : > { %v2369_v49 = vsel %vm2363_vm7, %v2304_v13, %v10696_v50  ;;  %v2434_v50 = vsel %vm2428_vm6, %v2371_v44, %v10894_v39 }
 0x336   : > { %v2433_v30 = vsel %vm2428_vm6, %v2369_v49, %v10894_v39  ;;  %v2485_v53 = vsel %vm2477_vm9, %v2434_v50, %v10966_v45 }
 0x337   : > { %v11274_v61 = vpop.permute.xlu1 %2055  ;;  %v2483_v27 = vsel %vm2477_vm9, %v2433_v30, %v10916_v42 }
 0x338   : > { %v2548_v25 = vsel %vm2542_vm8, %v2483_v27, %v11103_v47  ;;  %v9151_v27 = vld [vmem:[#allocation3 + $0x80] sm:$0x8] }
 0x339   : > { %v11278_v12 = vpop.permute.xlu0 %2053  ;;  %v2612_v54 = vsel %vm2607_vm11, %v2548_v25, %v11203_v35 }
 0x33f   : > { %v2158_v16 = vpop.permute.xlu1 %2157 }
 0x340   : > { %v2662_v2 = vsel %vm2656_vm10, %v2612_v54, %v2158_v16 }
 0x341   : > { %v2156_v24 = vpop.permute.xlu0 %2155  ;;  %v2737_v45 = vshrl.u32 %v2662_v2, 16  ;;  %v2740_v36 = vshll.u32 %v2662_v2, 16  ;;  %v15459_v2 = vld [vmem:[#allocation110_spill] sm:$0xff] }
 0x342   : > { %v2660_v14 = vsel %vm2656_vm10, %v2610_v34, %v2156_v24  ;;  %v11332_v34 = vpop.permute.xlu2 %2165 }
 0x343   : > { %v2729_v52 = vshrl.u32 %v2660_v14, 16  ;;  %v2732_v41 = vshll.u32 %v2660_v14, 16  ;;  %v2550_v14 = vsel %vm2542_vm8, %v2485_v53, %v11062_v19  ;;  %v2739_v6 = vrot.slane %v2737_v45, 3  ;;  %v15458_v53 = vld [vmem:[#allocation102_spill] sm:$0xff] }
 0x344   : > { %v2613_v39 = vsel %vm2607_vm11, %v2550_v14, %v11203_v35  ;;  %v2742_v49 = vrot.slane %v2740_v36, 4  ;;  %v2230_v35 = vsel %vm2217_vm4, %v9148_v15, %v10525_v17  ;;  %v9159_v14 = vld [vmem:[#allocation3 + $0x90] sm:$0x8] }
 0x345   : > { %v2731_v63 = vrot.slane %v2729_v52, 3  ;;  %v2734_v0 = vrot.slane %v2732_v41, 4  ;;  %v2664_v47 = vsel %vm2656_vm10, %v2613_v39, %v2160_v37  ;;  %v15454_v52 = vunpack.c.h.b16 %v10318_v3 }
 0x346   : > { %v2744_v19 = vshrl.u32 %v2664_v47, 16  ;;  %v2747_v13 = vshll.u32 %v2664_v47, 16  ;;  %v2308_v3 = vsel %vm2298_vm5, %v2230_v35, %v10562_v33  ;;  %v2743_v25 = vor.u32 %v2742_v49, %v2739_v6  ;;  %v9155_v33 = vld [vmem:[#allocation3 + $0x30] sm:$0x8]  ;;  %v15460_v47 = vld [vmem:[#allocation116_spill] sm:$0xff] }
 0x347   : > { %v2164_v26 = vpop.permute.xlu1 %2163  ;;  %v2735_v5 = vor.u32 %v2734_v0, %v2731_v63  ;;  %v797_v41 = vpack.c.b16 %v15454_v52, %v15454_v52  ;;  %v2373_v50 = vsel %vm2363_vm7, %v2308_v3, %v15457_v18 }
 0x348   : > { %v2746_v63 = vrot.slane %v2744_v19, 3  ;;  %v2749_v0 = vrot.slane %v2747_v13, 4  ;;  %v11380_v19 = vld [vmem:[#allocation3 + $0x40] sm:$0x8] }
 0x349   : > { %v2162_v24 = vpop.permute.xlu0 %2161  ;;  %v2736_v42 = vsel %vm2721_vm12, %v2728_v58, %v2735_v5  ;;  %v2232_v37 = vsel %vm2217_vm4, %v797_v41, %v10525_v17  ;;  %v15456_v58 = vld [vmem:[#allocation68_spill] sm:$0xff]  ;;  %v2436_v17 = vsel %vm2428_vm6, %v2373_v50, %v15458_v53 }
 0x34a   : > { %8909 = vmatmul.msk.bf16.vlgmr.msra.gmra.mxu0 %vm2989_vm13, %v2736_v42  ;;  %v11354_v44 = vpop.permute.xlu2 %2171  ;;  %v2310_v30 = vsel %vm2298_vm5, %v2232_v37, %v15455_v4  ;;  %v2487_v45 = vsel %vm2477_vm9, %v2436_v17, %v15460_v47  ;;  %v2750_v36 = vor.u32 %v2749_v0, %v2746_v63  ;;  %v15463_v0 = vld [vmem:[#allocation12_spill] sm:$0xff]  ;;  %v15464_v4 = vld [vmem:[#allocation9_spill] sm:$0xff] }
 0x34b   : > { %v2375_v5 = vsel %vm2363_vm7, %v2310_v30, %v15456_v58  ;;  %v2552_v15 = vsel %vm2542_vm8, %v2487_v45, %v11118_v62  ;;  %v9152_v3 = vor.u32 %v15463_v0, %v9151_v27  ;;  %v15465_v30 = vunpack.c.h.b16 %v15464_v4  ;;  %v15470_v47 = vld [vmem:[#allocation33_spill] sm:$0xff] }
 0x34c   : > { %v2437_v54 = vsel %vm2428_vm6, %v2375_v5, %v15458_v53  ;;  %v2615_v13 = vsel %vm2607_vm11, %v2552_v15, %v11242_v8  ;;  %v2751_v49 = vsel %vm2721_vm12, %v2743_v25, %v2750_v36  ;;  %v15466_v25 = vld [vmem:[#allocation10_spill] sm:$0xff]  ;;  %v15471_v36 = vld [vmem:[#allocation21_spill] sm:$0xff] }
 0x34d   : > { %v2489_v39 = vsel %vm2477_vm9, %v2437_v54, %v15459_v2  ;;  %v2666_v37 = vsel %vm2656_vm10, %v2615_v13, %v2162_v24  ;;  %v799_v58 = vpack.c.b16 %v15465_v30, %v15465_v30  ;;  %v9156_v24 = vor.u32 %v15466_v25, %v9155_v33  ;;  %v15467_v53 = vld [vmem:[#allocation22_spill] sm:$0xff]  ;;  %v15468_v2 = vld [vmem:[#allocation5_spill] sm:$0xff]  ;;  %v15476_v25 = vld [vmem:[#allocation40_spill] sm:$0xff] }
 0x34e   : > { %v2554_v41 = vsel %vm2542_vm8, %v2489_v39, %v11114_v46  ;;  %v15461_v46 = vld [vmem:[#allocation11_spill] sm:$0xff]  ;;  %v2752_v50 = vshrl.u32 %v2666_v37, 16  ;;  %v9160_v17 = vor.u32 %v15467_v53, %v9159_v14  ;;  %v15469_v39 = vunpack.c.h.b16 %v15468_v2  ;;  %v15473_v33 = vld [vmem:[#allocation6_spill] sm:$0xff] }
 0x34f   : > { %v11342_v20 = vpop.permute.xlu1 %2169  ;;  %v2616_v6 = vsel %vm2607_vm11, %v2554_v41, %v11242_v8  ;;  %v15462_v63 = vunpack.c.h.b16 %v15461_v46  ;;  %v15472_v41 = vunpack.c.h.b16 %v15471_v36  ;;  %v2260_v14 = vsel %vm2217_vm4, %v9152_v3, %v15470_v47  ;;  %v15478_v3 = vld [vmem:[#allocation77_spill] sm:$0xff] }
 0x350   : > { %v2668_v35 = vsel %vm2656_vm10, %v2616_v6, %v2164_v26  ;;  %v2755_v26 = vshll.u32 %v2666_v37, 16  ;;  %v11406_v27 = vpack.c.b16 %v15469_v39, %v15469_v39  ;;  %v9164_v6 = vor.u32 %v15473_v33, %v11380_v19  ;;  %v15475_v37 = vld [vmem:[#allocation61_spill] sm:$0xff]  ;;  %v15477_v19 = vld [vmem:[#allocation42_spill] sm:$0xff] }
 0x351   : > { %v11348_v16 = vpop.permute.xlu0 %2167  ;;  %v809_v62 = vpack.c.b16 %v15462_v63, %v15462_v63  ;;  %v2759_v8 = vshrl.u32 %v2668_v35, 16  ;;  %v2762_v18 = vshll.u32 %v2668_v35, 16  ;;  %v811_v15 = vpack.c.b16 %v15472_v41, %v15472_v41  ;;  %v15483_v36 = vld [vmem:[#allocation85_spill] sm:$0xff]  ;;  %v15484_v33 = vld [vmem:[#allocation94_spill] sm:$0xff] }
 0x352   : > { %v11397_v5 = vpop.permute.xlu2 %2177  ;;  %v2754_v0 = vrot.slane %v2752_v50, 3  ;;  %v2757_v4 = vrot.slane %v2755_v26, 4  ;;  %v2265_v53 = vsel %vm2217_vm4, %v9160_v17, %v15476_v25  ;;  %v15481_v26 = vld [vmem:[#allocation107_spill] sm:$0xff] }
 0x353   : > { %v2262_v45 = vsel %vm2217_vm4, %v809_v62, %v15470_v47  ;;  %v2761_v63 = vrot.slane %v2759_v8, 3  ;;  %v2764_v62 = vrot.slane %v2762_v18, 4  ;;  %v15479_v47 = vld [vmem:[#allocation48_spill] sm:$0xff] }
 0x354   : > { %v2334_v46 = vsel %vm2298_vm5, %v2262_v45, %v15475_v37  ;;  %v2332_v8 = vsel %vm2298_vm5, %v2260_v14, %v15479_v47  ;;  %v15480_v18 = vld [vmem:[#allocation76_spill] sm:$0xff]  ;;  %v15482_v45 = vld [vmem:[#allocation47_spill] sm:$0xff] }
 0x355   : > { %v2399_v39 = vsel %vm2363_vm7, %v2334_v46, %v15478_v3  ;;  %v2397_v41 = vsel %vm2363_vm7, %v2332_v8, %v15483_v36  ;;  %v2765_v46 = vor.u32 %v2764_v62, %v2761_v63  ;;  %v15489_v36 = vld [vmem:[#allocation120_spill] sm:$0xff] }
 0x356   : > { %v2454_v14 = vsel %vm2428_vm6, %v2397_v41, %v15481_v26 }
 0x357   : > { %v11368_v42 = vpop.permute.xlu1 %2175 }
 0x359   : > { %v11374_v52 = vpop.permute.xlu0 %2173 }
 0x35a   : > { %8910 = vmatmul.msk.bf16.gmra.mxu0 %vm2989_vm13, %v2751_v49  ;;  %v15474_v49 = vld [vmem:[#allocation36_spill] sm:$0xff]  ;;  %v11465_v62 = vpop.permute.xlu2 %2183 }
 0x35b   : > { %v2237_v35 = vsel %vm2217_vm4, %v799_v58, %v15474_v49  ;;  %v2235_v30 = vsel %vm2217_vm4, %v9156_v24, %v15474_v49  ;;  %v2267_v58 = vsel %vm2217_vm4, %v811_v15, %v15476_v25  ;;  %v2455_v24 = vsel %vm2428_vm6, %v2399_v39, %v15481_v26  ;;  %v15488_v39 = vld [vmem:[#allocation127_spill] sm:$0xff] }
 0x35c   : > { %v2314_v2 = vsel %vm2298_vm5, %v2237_v35, %v15477_v19  ;;  %v2312_v17 = vsel %vm2298_vm5, %v2235_v30, %v15482_v45  ;;  %v15485_v35 = vld [vmem:[#allocation119_spill] sm:$0xff]  ;;  %v2758_v25 = vor.u32 %v2757_v4, %v2754_v0  ;;  %v15486_v19 = vld [vmem:[#allocation78_spill] sm:$0xff]  ;;  %v2511_v47 = vsel %vm2477_vm9, %v2454_v14, %v15488_v39 }
 0x35d   : > { %v2379_v50 = vsel %vm2363_vm7, %v2314_v2, %v15480_v18  ;;  %v2513_v15 = vsel %vm2477_vm9, %v2455_v24, %v15485_v35  ;;  %v2377_v30 = vsel %vm2363_vm7, %v2312_v17, %v15486_v19  ;;  %v15487_v2 = vld [vmem:[#allocation118_spill] sm:$0xff]  ;;  %v2576_v63 = vsel %vm2542_vm8, %v2511_v47, %v11164_v29  ;;  %v9167_v47 = vld [vmem:[#allocation3 + $0xa0] sm:$0x8] }
 0x35e   : > { %v2440_v49 = vsel %vm2428_vm6, %v2379_v50, %v15484_v33  ;;  %v2578_v37 = vsel %vm2542_vm8, %v2513_v15, %v11162_v43  ;;  %v2439_v50 = vsel %vm2428_vm6, %v2377_v30, %v15484_v33  ;;  %v2633_v24 = vsel %vm2607_vm11, %v2576_v63, %v11258_v51  ;;  %v15495_v63 = vld [vmem:[#allocation100_spill] sm:$0xff] }
 0x35f   : > { %v11401_v54 = vpop.permute.xlu1 %2181  ;;  %v2493_v3 = vsel %vm2477_vm9, %v2440_v49, %v15487_v2  ;;  %v2634_v8 = vsel %vm2607_vm11, %v2578_v37, %v11258_v51  ;;  %v2491_v41 = vsel %vm2477_vm9, %v2439_v50, %v15489_v36  ;;  %v2766_v33 = vsel %vm2721_vm12, %v2758_v25, %v2765_v46  ;;  %v15490_v49 = vld [vmem:[#allocation51_spill] sm:$0xff]  ;;  %v15493_v25 = vld [vmem:[#allocation90_spill] sm:$0xff] }
 0x360   : > { %v2558_v43 = vsel %vm2542_vm8, %v2493_v3, %v11128_v28  ;;  %v2338_v35 = vsel %vm2298_vm5, %v2267_v58, %v15490_v49  ;;  %v2556_v15 = vsel %vm2542_vm8, %v2491_v41, %v11077_v32  ;;  %v15491_v37 = vld [vmem:[#allocation59_spill] sm:$0xff]  ;;  %v15492_v3 = vld [vmem:[#allocation88_spill] sm:$0xff] }
 0x361   : > { %v11413_v13 = vpop.permute.xlu0 %2179  ;;  %v2619_v26 = vsel %vm2607_vm11, %v2558_v43, %v11238_v57  ;;  %v2336_v19 = vsel %vm2298_vm5, %v2265_v53, %v15491_v37  ;;  %v2403_v46 = vsel %vm2363_vm7, %v2338_v35, %v15492_v3  ;;  %v15494_v43 = vld [vmem:[#allocation31_spill] sm:$0xff] }
 0x362   : > { %v2672_v28 = vsel %vm2656_vm10, %v2619_v26, %v11348_v16  ;;  %v2618_v16 = vsel %vm2607_vm11, %v2556_v15, %v11238_v57  ;;  %v2401_v58 = vsel %vm2363_vm7, %v2336_v19, %v15493_v25  ;;  %v2240_v57 = vsel %vm2217_vm4, %v9164_v6, %v15494_v43  ;;  %v15496_v26 = vld [vmem:[#allocation130_spill] sm:$0xff]  ;;  %v2190_v49 = vpop.permute.xlu2 %2189  ;;  %v15499_v19 = vld [vmem:[#allocation52_spill] sm:$0xff] }
 0x363   : > { %v2670_v32 = vsel %vm2656_vm10, %v2618_v16, %v11332_v34  ;;  %v2774_v39 = vshrl.u32 %v2672_v28, 16  ;;  %v2242_v41 = vsel %vm2217_vm4, %v11406_v27, %v15494_v43  ;;  %v2316_v27 = vsel %vm2298_vm5, %v2240_v57, %v15499_v19 }
 0x364   : > { %v2770_v34 = vshll.u32 %v2670_v32, 16 }
 0x365   : > { %v2776_v35 = vrot.slane %v2774_v39, 3 }
 0x367   : > { %v2188_v18 = vpop.permute.xlu1 %2187 }
 0x368   : > { %v2692_v0 = vsel %vm2656_vm10, %v2634_v8, %v2188_v18  ;;  %v2777_v8 = vshll.u32 %v2672_v28, 16  ;;  %v15497_v28 = vld [vmem:[#allocation132_spill] sm:$0xff] }
 0x369   : > { %v2186_v4 = vpop.permute.xlu0 %2185  ;;  %v2849_v45 = vshrl.u32 %v2692_v0, 16  ;;  %v2852_v17 = vshll.u32 %v2692_v0, 16  ;;  %v2457_v0 = vsel %vm2428_vm6, %v2401_v58, %v15495_v63  ;;  %v2772_v58 = vrot.slane %v2770_v34, 4 }
 0x36a   : > { %v2690_v29 = vsel %vm2656_vm10, %v2633_v24, %v2186_v4  ;;  %8911 = vmatmul.msk.bf16.gmra.mxu0 %vm2989_vm13, %v2766_v33  ;;  %v2458_v4 = vsel %vm2428_vm6, %v2403_v46, %v15495_v63  ;;  %v2515_v6 = vsel %vm2477_vm9, %v2457_v0, %v15497_v28  ;;  %v2779_v15 = vrot.slane %v2777_v8, 4  ;;  %v15502_v8 = vld [vmem:[#allocation106_spill] sm:$0xff]  ;;  %v15503_v0 = vld [vmem:[#allocation20_spill] sm:$0xff]  ;;  %v15506_v28 = vld [vmem:[#allocation19_spill] sm:$0xff] }
 0x36b   : > { %v2851_v14 = vrot.slane %v2849_v45, 3  ;;  %v2854_v51 = vrot.slane %v2852_v17, 4  ;;  %v2842_v30 = vshrl.u32 %v2690_v29, 16  ;;  %v2845_v2 = vshll.u32 %v2690_v29, 16 }
 0x36c   : > { %v2517_v24 = vsel %vm2477_vm9, %v2458_v4, %v15496_v26  ;;  %v2767_v45 = vshrl.u32 %v2670_v32, 16  ;;  %v2580_v16 = vsel %vm2542_vm8, %v2515_v6, %v11131_v31  ;;  %v15501_v32 = vld [vmem:[#allocation81_spill] sm:$0xff]  ;;  %v2780_v43 = vor.u32 %v2779_v15, %v2776_v35 }
 0x36d   : > { %v2855_v18 = vor.u32 %v2854_v51, %v2851_v14  ;;  %v2844_v50 = vrot.slane %v2842_v30, 3  ;;  %v2847_v53 = vrot.slane %v2845_v2, 4  ;;  %v2582_v29 = vsel %vm2542_vm8, %v2517_v24, %v11176_v7  ;;  %v15498_v51 = vld [vmem:[#allocation50_spill] sm:$0xff]  ;;  %v9171_v7 = vld [vmem:[#allocation3 + $0x50] sm:$0x8]  ;;  %v15504_v4 = vld [vmem:[#allocation113_spill] sm:$0xff] }
 0x36e   : > { %v2637_v33 = vsel %vm2607_vm11, %v2582_v29, %v11256_v40  ;;  %v2318_v37 = vsel %vm2298_vm5, %v2242_v41, %v15498_v51  ;;  %v15500_v2 = vld [vmem:[#allocation71_spill] sm:$0xff]  ;;  %v2636_v46 = vsel %vm2607_vm11, %v2580_v16, %v11256_v40  ;;  %v2769_v25 = vrot.slane %v2767_v45, 3  ;;  %v15509_v51 = vld [vmem:[#allocation8_spill] sm:$0xff] }
 0x36f   : > { %v2848_v17 = vor.u32 %v2847_v53, %v2844_v50  ;;  %v2381_v3 = vsel %vm2363_vm7, %v2316_v27, %v15500_v2  ;;  %v2383_v39 = vsel %vm2363_vm7, %v2318_v37, %v15501_v32  ;;  %v2694_v31 = vsel %vm2656_vm10, %v2636_v46, %v2190_v49  ;;  %v11528_v50 = vld [vmem:[#allocation3 + $0xb0] sm:$0x8] }
 0x370   : > { %v2443_v53 = vsel %vm2428_vm6, %v2383_v39, %v15502_v8  ;;  %v9168_v40 = vor.u32 %v15503_v0, %v9167_v47  ;;  %v15505_v24 = vld [vmem:[#allocation123_spill] sm:$0xff]  ;;  %v2860_v41 = vshll.u32 %v2694_v31, 16  ;;  %v15507_v6 = vunpack.c.h.b16 %v15506_v28 }
 0x371   : > { %v2192_v36 = vpop.permute.xlu0 %2191  ;;  %v2856_v14 = vsel %vm2721_vm12, %v2848_v17, %v2855_v18  ;;  %v2442_v18 = vsel %vm2428_vm6, %v2381_v3, %v15502_v8  ;;  %v2497_v45 = vsel %vm2477_vm9, %v2443_v53, %v15505_v24  ;;  %v2773_v17 = vor.u32 %v2772_v58, %v2769_v25  ;;  %v15510_v27 = vld [vmem:[#allocation39_spill] sm:$0xff]  ;;  %v15513_v58 = vld [vmem:[#allocation64_spill] sm:$0xff] }
 0x372   : > { %v2696_v30 = vsel %vm2656_vm10, %v2637_v33, %v2192_v36  ;;  %8917 = vmatmul.msk.bf16.vlgmr.msra.gmra.mxu2 %vm2989_vm13, %v2856_v14  ;;  %v2495_v26 = vsel %vm2477_vm9, %v2442_v18, %v15504_v4  ;;  %v2857_v36 = vshrl.u32 %v2694_v31, 16  ;;  %v813_v29 = vpack.c.b16 %v15507_v6, %v15507_v6  ;;  %v15508_v33 = vld [vmem:[#allocation140_spill] sm:$0xff] }
 0x373   : > { %v2864_v57 = vshrl.u32 %v2696_v30, 16  ;;  %v2867_v63 = vshll.u32 %v2696_v30, 16  ;;  %v2560_v34 = vsel %vm2542_vm8, %v2495_v26, %v11126_v11  ;;  %v2562_v49 = vsel %vm2542_vm8, %v2497_v45, %v15508_v33  ;;  %v15515_v31 = vld [vmem:[#allocation80_spill] sm:$0xff] }
 0x374   : > { %v2621_v47 = vsel %vm2607_vm11, %v2560_v34, %v11223_v1  ;;  %v2781_v11 = vsel %vm2721_vm12, %v2773_v17, %v2780_v43  ;;  %v9172_v37 = vor.u32 %v15509_v51, %v9171_v7  ;;  %v2622_v19 = vsel %vm2607_vm11, %v2562_v49, %v11223_v1  ;;  %v15514_v1 = vld [vmem:[#allocation18_spill] sm:$0xff]  ;;  %v15518_v26 = vld [vmem:[#allocation32_spill] sm:$0xff] }
 0x375   : > { %v2674_v35 = vsel %vm2656_vm10, %v2621_v47, %v11342_v20  ;;  %v2866_v15 = vrot.slane %v2864_v57, 3  ;;  %v2869_v14 = vrot.slane %v2867_v63, 4  ;;  %v2270_v16 = vsel %vm2217_vm4, %v9168_v40, %v15510_v27  ;;  %v15511_v20 = vld [vmem:[#allocation7_spill] sm:$0xff]  ;;  %v15516_v43 = vld [vmem:[#allocation62_spill] sm:$0xff]  ;;  %v15519_v45 = vld [vmem:[#allocation92_spill] sm:$0xff] }
 0x376   : > { %v2676_v30 = vsel %vm2656_vm10, %v2622_v19, %v11354_v44  ;;  %v2859_v2 = vrot.slane %v2857_v36, 3  ;;  %v2862_v3 = vrot.slane %v2860_v41, 4  ;;  %v15512_v46 = vunpack.c.h.b16 %v15511_v20  ;;  %v15517_v63 = vld [vmem:[#allocation111_spill] sm:$0xff]  ;;  %v15520_v34 = vld [vmem:[#allocation122_spill] sm:$0xff]  ;;  %v2194_v41 = vpop.permute.xlu1 %2193 }
 0x377   : > { %v2340_v7 = vsel %vm2298_vm5, %v2270_v16, %v15513_v58  ;;  %v2782_v32 = vshrl.u32 %v2674_v35, 16  ;;  %v2785_v39 = vshll.u32 %v2674_v35, 16  ;;  %v9176_v8 = vor.u32 %v15514_v1, %v11528_v50  ;;  %v15521_v47 = vld [vmem:[#allocation134_spill] sm:$0xff]  ;;  %v15525_v20 = vld [vmem:[#allocation55_spill] sm:$0xff] }
 0x378   : > { %v803_v25 = vpack.c.b16 %v15512_v46, %v15512_v46  ;;  %v2272_v18 = vsel %vm2217_vm4, %v813_v29, %v15510_v27  ;;  %v2405_v44 = vsel %vm2363_vm7, %v2340_v7, %v15515_v31  ;;  %v2870_v53 = vor.u32 %v2869_v14, %v2866_v15  ;;  %v2196_v14 = vpop.permute.xlu2 %2195  ;;  %v15522_v27 = vld [vmem:[#allocation17_spill] sm:$0xff]  ;;  %v15527_v7 = vld [vmem:[#allocation79_spill] sm:$0xff] }
 0x379   : > { %v2342_v57 = vsel %vm2298_vm5, %v2272_v18, %v15516_v43  ;;  %v2460_v0 = vsel %vm2428_vm6, %v2405_v44, %v15517_v63  ;;  %v2789_v40 = vshrl.u32 %v2676_v30, 16  ;;  %v2792_v4 = vshll.u32 %v2676_v30, 16  ;;  %v15528_v18 = vld [vmem:[#allocation104_spill] sm:$0xff] }
 0x37a   : > { %8912 = vmatmul.msk.bf16.gmra.mxu0 %vm2989_vm13, %v2781_v11  ;;  %v2245_v24 = vsel %vm2217_vm4, %v9172_v37, %v15518_v26  ;;  %v2407_v50 = vsel %vm2363_vm7, %v2342_v57, %v15519_v45  ;;  %v2519_v17 = vsel %vm2477_vm9, %v2460_v0, %v15520_v34  ;;  %v2863_v36 = vor.u32 %v2862_v3, %v2859_v2  ;;  %v15524_v2 = vld [vmem:[#allocation44_spill] sm:$0xff]  ;;  %v15529_v57 = vld [vmem:[#allocation34_spill] sm:$0xff] }
 0x37b   : > { %v2461_v28 = vsel %vm2428_vm6, %v2407_v50, %v15517_v63  ;;  %v2584_v6 = vsel %vm2542_vm8, %v2519_v17, %v11172_v59  ;;  %v2784_v29 = vrot.slane %v2782_v32, 3  ;;  %v2787_v33 = vrot.slane %v2785_v39, 4  ;;  %v15530_v63 = vld [vmem:[#allocation115_spill] sm:$0xff] }
 0x37c   : > { %v2247_v49 = vsel %vm2217_vm4, %v803_v25, %v15518_v26  ;;  %v2521_v35 = vsel %vm2477_vm9, %v2461_v28, %v15521_v47  ;;  %v2639_v15 = vsel %vm2607_vm11, %v2584_v6, %v11252_v21  ;;  %v2871_v11 = vsel %vm2721_vm12, %v2863_v36, %v2870_v53  ;;  %v15533_v47 = vld [vmem:[#allocation66_spill] sm:$0xff] }
 0x37d   : > { %v2586_v51 = vsel %vm2542_vm8, %v2521_v35, %v11144_v56  ;;  %v2791_v37 = vrot.slane %v2789_v40, 3  ;;  %v2794_v19 = vrot.slane %v2792_v4, 4  ;;  %v2698_v59 = vsel %vm2656_vm10, %v2639_v15, %v2194_v41  ;;  %v15526_v56 = vld [vmem:[#allocation73_spill] sm:$0xff]  ;;  %v15534_v15 = vld [vmem:[#allocation83_spill] sm:$0xff] }
 0x37e   : > { %v15523_v16 = vunpack.c.h.b16 %v15522_v27  ;;  %v2320_v3 = vsel %vm2298_vm5, %v2245_v24, %v15524_v2  ;;  %v2322_v46 = vsel %vm2298_vm5, %v2247_v49, %v15525_v20  ;;  %v2640_v25 = vsel %vm2607_vm11, %v2586_v51, %v11252_v21  ;;  %v15531_v40 = vld [vmem:[#allocation121_spill] sm:$0xff]  ;;  %v15536_v27 = vld [vmem:[#allocation15_spill] sm:$0xff] }
 0x37f   : > { %v2387_v58 = vsel %vm2363_vm7, %v2322_v46, %v15526_v56  ;;  %v2385_v32 = vsel %vm2363_vm7, %v2320_v3, %v15527_v7  ;;  %v2788_v39 = vor.u32 %v2787_v33, %v2784_v29  ;;  %v2700_v1 = vsel %vm2656_vm10, %v2640_v25, %v2196_v14  ;;  %v9179_v24 = vld [vmem:[#allocation3 + $0x60] sm:$0x8]  ;;  %v15532_v33 = vld [vmem:[#allocation54_spill] sm:$0xff]  ;;  %v15535_v14 = vld [vmem:[#allocation91_spill] sm:$0xff] }
 0x380   : > { %v815_v30 = vpack.c.b16 %v15523_v16, %v15523_v16  ;;  %v2445_v31 = vsel %vm2428_vm6, %v2385_v32, %v15528_v18  ;;  %v2446_v44 = vsel %vm2428_vm6, %v2387_v58, %v15528_v18  ;;  %v2872_v53 = vshrl.u32 %v2698_v59, 16  ;;  %v15538_v2 = vld [vmem:[#allocation109_spill] sm:$0xff]  ;;  %v15541_v32 = vld [vmem:[#allocation16_spill] sm:$0xff] }
 0x381   : > { %v2875_v43 = vshll.u32 %v2698_v59, 16  ;;  %v2275_v21 = vsel %vm2217_vm4, %v9176_v8, %v15529_v57  ;;  %v2501_v0 = vsel %vm2477_vm9, %v2446_v44, %v15530_v63  ;;  %v2499_v4 = vsel %vm2477_vm9, %v2445_v31, %v15531_v40  ;;  %v15539_v25 = vld [vmem:[#allocation125_spill] sm:$0xff]  ;;  %v2200_v44 = vpop.permute.xlu1 %2199  ;;  %v15542_v40 = vld [vmem:[#allocation38_spill] sm:$0xff] }
 0x382   : > { %8918 = vmatmul.msk.bf16.gmra.mxu2 %vm2989_vm13, %v2871_v11  ;;  %v2795_v26 = vor.u32 %v2794_v19, %v2791_v37  ;;  %v2566_v45 = vsel %vm2542_vm8, %v2501_v0, %v11138_v48  ;;  %v2564_v50 = vsel %vm2542_vm8, %v2499_v4, %v11140_v38  ;;  %v2879_v34 = vshrl.u32 %v2700_v1, 16  ;;  %v15540_v58 = vld [vmem:[#allocation133_spill] sm:$0xff] }
 0x383   : > { %v2882_v17 = vshll.u32 %v2700_v1, 16  ;;  %v2277_v36 = vsel %vm2217_vm4, %v815_v30, %v15529_v57  ;;  %v2624_v8 = vsel %vm2607_vm11, %v2564_v50, %v11250_v10  ;;  %v2625_v41 = vsel %vm2607_vm11, %v2566_v45, %v11250_v10 }
 0x384   : > { %v2796_v28 = vsel %vm2721_vm12, %v2788_v39, %v2795_v26  ;;  %v2680_v6 = vsel %vm2656_vm10, %v2625_v41, %v11368_v42  ;;  %v2678_v48 = vsel %vm2656_vm10, %v2624_v8, %v11374_v52  ;;  %v2874_v38 = vrot.slane %v2872_v53, 3  ;;  %v2198_v53 = vpop.permute.xlu0 %2197  ;;  %v15545_v41 = vld [vmem:[#allocation53_spill] sm:$0xff] }
 0x385   : > { %v2877_v29 = vrot.slane %v2875_v43, 4  ;;  %v2344_v49 = vsel %vm2298_vm5, %v2275_v21, %v15532_v33  ;;  %v2346_v35 = vsel %vm2298_vm5, %v2277_v36, %v15533_v47  ;;  %v2881_v42 = vrot.slane %v2879_v34, 3  ;;  %v9183_v43 = vld [vmem:[#allocation3 + $0xc0] sm:$0x8]  ;;  %v15544_v36 = vld [vmem:[#allocation82_spill] sm:$0xff] }
 0x386   : > { %v2411_v10 = vsel %vm2363_vm7, %v2346_v35, %v15534_v15  ;;  %v2409_v11 = vsel %vm2363_vm7, %v2344_v49, %v15535_v14  ;;  %v2884_v51 = vrot.slane %v2882_v17, 4  ;;  %v2804_v37 = vshrl.u32 %v2680_v6, 16  ;;  %v15547_v35 = vld [vmem:[#allocation27_spill] sm:$0xff]  ;;  %v15549_v14 = vld [vmem:[#allocation84_spill] sm:$0xff] }
 0x387   : > { %v2807_v52 = vshll.u32 %v2680_v6, 16  ;;  %v2797_v19 = vshrl.u32 %v2678_v48, 16  ;;  %v2800_v59 = vshll.u32 %v2678_v48, 16  ;;  %v15537_v16 = vunpack.c.h.b16 %v15536_v27  ;;  %v15552_v27 = vld [vmem:[#allocation145_spill] sm:$0xff] }
 0x388   : > { %v2463_v3 = vsel %vm2428_vm6, %v2409_v11, %v15538_v2  ;;  %v2464_v20 = vsel %vm2428_vm6, %v2411_v10, %v15538_v2  ;;  %v2878_v46 = vor.u32 %v2877_v29, %v2874_v38  ;;  %v9180_v39 = vor.u32 %v15541_v32, %v9179_v24 }
 0x389   : > { %v805_v30 = vpack.c.b16 %v15537_v16, %v15537_v16  ;;  %v2525_v56 = vsel %vm2477_vm9, %v2464_v20, %v15539_v25  ;;  %v2523_v7 = vsel %vm2477_vm9, %v2463_v3, %v15540_v58  ;;  %v2885_v31 = vor.u32 %v2884_v51, %v2881_v42  ;;  %v15550_v42 = vld [vmem:[#allocation124_spill] sm:$0xff] }
 0x38a   : > { %8913 = vmatmul.msk.bf16.gmra.mxu0 %vm2989_vm13, %v2796_v28  ;;  %v2590_v1 = vsel %vm2542_vm8, %v2525_v56, %v11184_v9  ;;  %v2588_v18 = vsel %vm2542_vm8, %v2523_v7, %v11186_v60  ;;  %v2806_v57 = vrot.slane %v2804_v37, 3  ;;  %v2809_v21 = vrot.slane %v2807_v52, 4  ;;  %v15543_v60 = vld [vmem:[#allocation46_spill] sm:$0xff]  ;;  %v15546_v28 = vld [vmem:[#allocation97_spill] sm:$0xff]  ;;  %v9187_v37 = vld [vmem:[#allocation3 + $0x70] sm:$0x8] }
 0x38b   : > { %v2799_v63 = vrot.slane %v2797_v19, 3  ;;  %v2802_v0 = vrot.slane %v2800_v59, 4  ;;  %v2252_v4 = vsel %vm2217_vm4, %v805_v30, %v15542_v40  ;;  %v2642_v26 = vsel %vm2607_vm11, %v2588_v18, %v11264_v55  ;;  %v15551_v52 = vld [vmem:[#allocation28_spill] sm:$0xff]  ;;  %v15553_v30 = vld [vmem:[#allocation126_spill] sm:$0xff]  ;;  %v15554_v7 = vld [vmem:[#allocation43_spill] sm:$0xff] }
 0x38c   : > { %v2643_v9 = vsel %vm2607_vm11, %v2590_v1, %v11264_v55  ;;  %v2886_v24 = vsel %vm2721_vm12, %v2878_v46, %v2885_v31  ;;  %v2326_v45 = vsel %vm2298_vm5, %v2252_v4, %v15543_v60  ;;  %v2702_v34 = vsel %vm2656_vm10, %v2642_v26, %v2198_v53  ;;  %v15559_v60 = vld [vmem:[#allocation14_spill] sm:$0xff] }
 0x38d   : > { %v2704_v50 = vsel %vm2656_vm10, %v2643_v9, %v2200_v44  ;;  %v2250_v17 = vsel %vm2217_vm4, %v9180_v39, %v15542_v40  ;;  %v2391_v8 = vsel %vm2363_vm7, %v2326_v45, %v15544_v36  ;;  %v2810_v48 = vor.u32 %v2809_v21, %v2806_v57  ;;  %v15555_v39 = vld [vmem:[#allocation142_spill] sm:$0xff]  ;;  %v15556_v44 = vld [vmem:[#allocation57_spill] sm:$0xff]  ;;  %v9191_v40 = vld [vmem:[#allocation3 + $0xd0] sm:$0x8] }
 0x38e   : > { %v2324_v55 = vsel %vm2298_vm5, %v2250_v17, %v15545_v41  ;;  %v2449_v6 = vsel %vm2428_vm6, %v2391_v8, %v15546_v28  ;;  %v2803_v38 = vor.u32 %v2802_v0, %v2799_v63  ;;  %v2894_v29 = vshrl.u32 %v2704_v50, 16  ;;  %v15557_v57 = vld [vmem:[#allocation65_spill] sm:$0xff]  ;;  %v15562_v17 = vld [vmem:[#allocation95_spill] sm:$0xff] }
 0x38f   : > { %v2897_v33 = vshll.u32 %v2704_v50, 16  ;;  %v2887_v49 = vshrl.u32 %v2702_v34, 16  ;;  %v2890_v47 = vshll.u32 %v2702_v34, 16  ;;  %v15548_v15 = vunpack.c.h.b16 %v15547_v35  ;;  %v15558_v63 = vld [vmem:[#allocation93_spill] sm:$0xff]  ;;  %v15563_v8 = vld [vmem:[#allocation103_spill] sm:$0xff] }
 0x390   : > { %v2389_v11 = vsel %vm2363_vm7, %v2324_v55, %v15549_v14  ;;  %v2505_v51 = vsel %vm2477_vm9, %v2449_v6, %v15550_v42  ;;  %v9184_v19 = vor.u32 %v15551_v52, %v9183_v43  ;;  %v2811_v20 = vsel %vm2721_vm12, %v2803_v38, %v2810_v48  ;;  %v15560_v50 = vld [vmem:[#allocation13_spill] sm:$0xff]  ;;  %v15564_v55 = vld [vmem:[#allocation135_spill] sm:$0xff]  ;;  %v2204_v38 = vpop.permute.xlu0 %2203  ;;  %v15568_v52 = vld [vmem:[#allocation146_spill] sm:$0xff] }
 0x391   : > { %v817_v10 = vpack.c.b16 %v15548_v15, %v15548_v15  ;;  %v2448_v59 = vsel %vm2428_vm6, %v2389_v11, %v15546_v28  ;;  %v2570_v16 = vsel %vm2542_vm8, %v2505_v51, %v15552_v27  ;;  %v2896_v46 = vrot.slane %v2894_v29, 3  ;;  %v15565_v29 = vld [vmem:[#allocation136_spill] sm:$0xff]  ;;  %v2202_v15 = vpop.permute.xlu2 %2201  ;;  %v15567_v42 = vld [vmem:[#allocation37_spill] sm:$0xff] }
 0x392   : > { %8919 = vmatmul.msk.bf16.gmra.mxu2 %vm2989_vm13, %v2886_v24  ;;  %v2503_v2 = vsel %vm2477_vm9, %v2448_v59, %v15553_v30  ;;  %v2628_v3 = vsel %vm2607_vm11, %v2570_v16, %v11248_v22  ;;  %v2899_v25 = vrot.slane %v2897_v33, 4  ;;  %v2889_v56 = vrot.slane %v2887_v49, 3 }
 0x393   : > { %v2892_v58 = vrot.slane %v2890_v47, 4  ;;  %v2282_v32 = vsel %vm2217_vm4, %v817_v10, %v15554_v7  ;;  %v2568_v1 = vsel %vm2542_vm8, %v2503_v2, %v15555_v39  ;;  %v2684_v18 = vsel %vm2656_vm10, %v2628_v3, %v11413_v13  ;;  %v15566_v47 = vld [vmem:[#allocation155_spill] sm:$0xff]  ;;  %v15570_v3 = vld [vmem:[#allocation56_spill] sm:$0xff] }
 0x394   : > { %v2280_v31 = vsel %vm2217_vm4, %v9184_v19, %v15554_v7  ;;  %v2350_v53 = vsel %vm2298_vm5, %v2282_v32, %v15556_v44  ;;  %v2627_v43 = vsel %vm2607_vm11, %v2568_v1, %v11248_v22  ;;  %v2819_v4 = vshrl.u32 %v2684_v18, 16  ;;  %v15574_v44 = vld [vmem:[#allocation25_spill] sm:$0xff] }
 0x395   : > { %v2348_v21 = vsel %vm2298_vm5, %v2280_v31, %v15557_v57  ;;  %v2415_v0 = vsel %vm2363_vm7, %v2350_v53, %v15558_v63  ;;  %v2682_v13 = vsel %vm2656_vm10, %v2627_v43, %v11397_v5  ;;  %v2822_v26 = vshll.u32 %v2684_v18, 16  ;;  %v15573_v18 = vld [vmem:[#allocation26_spill] sm:$0xff]  ;;  %v15576_v57 = vld [vmem:[#allocation108_spill] sm:$0xff] }
 0x396   : > { %v2900_v9 = vor.u32 %v2899_v25, %v2896_v46  ;;  %v2893_v24 = vor.u32 %v2892_v58, %v2889_v56  ;;  %v9188_v45 = vor.u32 %v15559_v60, %v9187_v37  ;;  %v15561_v34 = vunpack.c.h.b16 %v15560_v50  ;;  %v15571_v46 = vld [vmem:[#allocation75_spill] sm:$0xff]  ;;  %v15580_v50 = vld [vmem:[#allocation153_spill] sm:$0xff] }
 0x397   : > { %v2413_v36 = vsel %vm2363_vm7, %v2348_v21, %v15562_v17  ;;  %v2467_v41 = vsel %vm2428_vm6, %v2415_v0, %v15563_v8  ;;  %v2812_v6 = vshrl.u32 %v2682_v13, 16  ;;  %v2815_v48 = vshll.u32 %v2682_v13, 16  ;;  %v15572_v58 = vld [vmem:[#allocation87_spill] sm:$0xff]  ;;  %v15577_v0 = vld [vmem:[#allocation117_spill] sm:$0xff] }
 0x398   : > { %v807_v22 = vpack.c.b16 %v15561_v34, %v15561_v34  ;;  %v2466_v5 = vsel %vm2428_vm6, %v2413_v36, %v15563_v8  ;;  %v2529_v28 = vsel %vm2477_vm9, %v2467_v41, %v15564_v55  ;;  %v2821_v10 = vrot.slane %v2819_v4, 3  ;;  %v15581_v8 = vld [vmem:[#allocation41_spill] sm:$0xff]  ;;  %v15582_v55 = vld [vmem:[#allocation143_spill] sm:$0xff] }
 0x399   : > { %v2527_v33 = vsel %vm2477_vm9, %v2466_v5, %v15565_v29  ;;  %v2594_v49 = vsel %vm2542_vm8, %v2529_v28, %v11198_v23  ;;  %v2824_v14 = vrot.slane %v2822_v26, 4  ;;  %v2901_v11 = vsel %vm2721_vm12, %v2893_v24, %v2900_v9  ;;  %v15569_v23 = vld [vmem:[#allocation58_spill] sm:$0xff]  ;;  %v15578_v24 = vld [vmem:[#allocation129_spill] sm:$0xff] }
 0x39a   : > { %8914 = vmatmul.msk.bf16.gmra.mxu0 %vm2989_vm13, %v2811_v20  ;;  %v2646_v35 = vsel %vm2607_vm11, %v2594_v49, %v15566_v47  ;;  %v2255_v51 = vsel %vm2217_vm4, %v9188_v45, %v15567_v42  ;;  %v2257_v37 = vsel %vm2217_vm4, %v807_v22, %v15567_v42  ;;  %v2592_v19 = vsel %vm2542_vm8, %v2527_v33, %v15568_v52  ;;  %v15587_v52 = vld [vmem:[#allocation114_spill] sm:$0xff] }
 0x39b   : > { %v2708_v59 = vsel %vm2656_vm10, %v2646_v35, %v2204_v38  ;;  %v2328_v27 = vsel %vm2298_vm5, %v2255_v51, %v15569_v23  ;;  %v2645_v16 = vsel %vm2607_vm11, %v2592_v19, %v15566_v47  ;;  %v2814_v30 = vrot.slane %v2812_v6, 3  ;;  %v15584_v47 = vld [vmem:[#allocation67_spill] sm:$0xff]  ;;  %v15588_v23 = vld [vmem:[#allocation128_spill] sm:$0xff] }
 0x39c   : > { %v2817_v2 = vrot.slane %v2815_v48, 4  ;;  %v2330_v20 = vsel %vm2298_vm5, %v2257_v37, %v15570_v3  ;;  %v2393_v25 = vsel %vm2363_vm7, %v2328_v27, %v15571_v46  ;;  %v2706_v56 = vsel %vm2656_vm10, %v2645_v16, %v2202_v15  ;;  %v15583_v48 = vld [vmem:[#allocation69_spill] sm:$0xff]  ;;  %v15585_v15 = vld [vmem:[#allocation86_spill] sm:$0xff]  ;;  %v2206_v3 = vpop.permute.xlu1 %2205 }
 0x39d   : > { %v2395_v7 = vsel %vm2363_vm7, %v2330_v20, %v15572_v58  ;;  %v2825_v32 = vor.u32 %v2824_v14, %v2821_v10  ;;  %v2909_v39 = vshrl.u32 %v2708_v59, 16  ;;  %v2912_v1 = vshll.u32 %v2708_v59, 16  ;;  %v15589_v20 = vld [vmem:[#allocation138_spill] sm:$0xff] }
 0x39e   : > { %v9192_v31 = vor.u32 %v15573_v18, %v9191_v40  ;;  %v15575_v53 = vunpack.c.h.b16 %v15574_v44  ;;  %v2451_v21 = vsel %vm2428_vm6, %v2393_v25, %v15576_v57  ;;  %v2452_v63 = vsel %vm2428_vm6, %v2395_v7, %v15576_v57  ;;  %v15579_v40 = vld [vmem:[#allocation144_spill] sm:$0xff]  ;;  %v15590_v25 = vld [vmem:[#allocation149_spill] sm:$0xff]  ;;  %v15591_v58 = vld [vmem:[#allocation154_spill] sm:$0xff] }
 0x39f   : > { %v2507_v13 = vsel %vm2477_vm9, %v2451_v21, %v15577_v0  ;;  %v2818_v4 = vor.u32 %v2817_v2, %v2814_v30  ;;  %v2902_v26 = vshrl.u32 %v2706_v56, 16  ;;  %v2905_v9 = vshll.u32 %v2706_v56, 16 }
 0x3a0   : > { %v819_v43 = vpack.c.b16 %v15575_v53, %v15575_v53  ;;  %v2509_v60 = vsel %vm2477_vm9, %v2452_v63, %v15578_v24  ;;  %v2572_v45 = vsel %vm2542_vm8, %v2507_v13, %v15579_v40  ;;  %v2911_v22 = vrot.slane %v2909_v39, 3 }
 0x3a1   : > { %v2630_v34 = vsel %vm2607_vm11, %v2572_v45, %v15580_v50  ;;  %v2914_v17 = vrot.slane %v2912_v1, 4  ;;  %v2826_v36 = vsel %vm2721_vm12, %v2818_v4, %v2825_v32  ;;  %v2285_v41 = vsel %vm2217_vm4, %v9192_v31, %v15581_v8  ;;  %v2208_v1 = vpop.permute.xlu2 %2207  ;;  %v15592_v31 = vld [vmem:[#allocation147_spill] sm:$0xff] }
 0x3a2   : > { %8920 = vmatmul.msk.bf16.gmra.mxu2 %vm2989_vm13, %v2901_v11  ;;  %v2287_v5 = vsel %vm2217_vm4, %v819_v43, %v15581_v8  ;;  %v2574_v28 = vsel %vm2542_vm8, %v2509_v60, %v15582_v55  ;;  %v2686_v6 = vsel %vm2656_vm10, %v2630_v34, %v11401_v54  ;;  %v2352_v38 = vsel %vm2298_vm5, %v2285_v41, %v15583_v48  ;;  %v15586_v54 = vld [vmem:[#allocation98_spill] sm:$0xff]  ;;  %v15595_v60 = vld [vmem:[#allocation24_spill] sm:$0xff]  ;;  %v15596_v8 = vld [vmem:[#allocation35_spill] sm:$0xff] }
 0x3a3   : > { %v2631_v29 = vsel %vm2607_vm11, %v2574_v28, %v15580_v50  ;;  %v2904_v33 = vrot.slane %v2902_v26, 3  ;;  %v2907_v49 = vrot.slane %v2905_v9, 4  ;;  %v2354_v35 = vsel %vm2298_vm5, %v2287_v5, %v15584_v47  ;;  %v15593_v26 = vld [vmem:[#allocation23_spill] sm:$0xff]  ;;  %v15597_v55 = vld [vmem:[#allocation72_spill] sm:$0xff] }
 0x3a4   : > { %v2417_v10 = vsel %vm2363_vm7, %v2352_v38, %v15585_v15  ;;  %v2688_v14 = vsel %vm2656_vm10, %v2631_v29, %v11465_v62  ;;  %v2419_v11 = vsel %vm2363_vm7, %v2354_v35, %v15586_v54  ;;  %v2827_v42 = vshrl.u32 %v2686_v6, 16  ;;  %v9195_v62 = vld [vmem:[#allocation3 + $0xe0] sm:$0x8]  ;;  %v15598_v38 = vld [vmem:[#allocation60_spill] sm:$0xff] }
 0x3a5   : > { %v2830_v51 = vshll.u32 %v2686_v6, 16  ;;  %v2915_v37 = vor.u32 %v2914_v17, %v2911_v22  ;;  %v2469_v19 = vsel %vm2428_vm6, %v2417_v10, %v15587_v52  ;;  %v2470_v59 = vsel %vm2428_vm6, %v2419_v11, %v15587_v52  ;;  %v15600_v47 = vld [vmem:[#allocation96_spill] sm:$0xff]  ;;  %v15602_v11 = vld [vmem:[#allocation131_spill] sm:$0xff] }
 0x3a6   : > { %v2531_v27 = vsel %vm2477_vm9, %v2469_v19, %v15588_v23  ;;  %v2834_v16 = vshrl.u32 %v2688_v14, 16  ;;  %v2837_v30 = vshll.u32 %v2688_v14, 16  ;;  %v2908_v2 = vor.u32 %v2907_v49, %v2904_v33  ;;  %v15599_v33 = vld [vmem:[#allocation89_spill] sm:$0xff]  ;;  %v15601_v15 = vld [vmem:[#allocation112_spill] sm:$0xff]  ;;  %v15604_v19 = vld [vmem:[#allocation150_spill] sm:$0xff] }
 0x3a7   : > { %v2533_v46 = vsel %vm2477_vm9, %v2470_v59, %v15589_v20  ;;  %v2596_v56 = vsel %vm2542_vm8, %v2531_v27, %v15590_v25  ;;  %v2829_v32 = vrot.slane %v2827_v42, 3  ;;  %v2832_v39 = vrot.slane %v2830_v51, 4  ;;  %v2212_v51 = vpop.permute.xlu1 %2211  ;;  %v2210_v27 = vpop.permute.xlu0 %2209 }
 0x3a8   : > { %v2648_v7 = vsel %vm2607_vm11, %v2596_v56, %v15591_v58  ;;  %v2916_v18 = vsel %vm2721_vm12, %v2908_v2, %v2915_v37  ;;  %v2598_v44 = vsel %vm2542_vm8, %v2533_v46, %v15592_v31  ;;  %v2836_v57 = vrot.slane %v2834_v16, 3  ;;  %v15603_v37 = vld [vmem:[#allocation137_spill] sm:$0xff]  ;;  %v15605_v16 = vld [vmem:[#allocation151_spill] sm:$0xff] }
 0x3a9   : > { %v2710_v53 = vsel %vm2656_vm10, %v2648_v7, %v2206_v3  ;;  %v2649_v43 = vsel %vm2607_vm11, %v2598_v44, %v15591_v58  ;;  %v2839_v21 = vrot.slane %v2837_v30, 4  ;;  %v2833_v0 = vor.u32 %v2832_v39, %v2829_v32  ;;  %v9199_v3 = vld [vmem:[#allocation3 + $0xf0] sm:$0x8]  ;;  %v15606_v39 = vld [vmem:[#allocation29_spill] sm:$0xff]  ;;  %v15608_v44 = vld [vmem:[#allocation30_spill] sm:$0xff] }
 0x3aa   : > { %8915 = vmatmul.msk.bf16.gmra.mxu0 %vm2989_vm13, %v2826_v36  ;;  %v2712_v63 = vsel %vm2656_vm10, %v2649_v43, %v2208_v1  ;;  %v2917_v13 = vshrl.u32 %v2710_v53, 16  ;;  %v2920_v4 = vshll.u32 %v2710_v53, 16  ;;  %v15594_v9 = vunpack.c.h.b16 %v15593_v26  ;;  %v15610_v26 = vld [vmem:[#allocation63_spill] sm:$0xff] }
 0x3ab   : > { %v9196_v40 = vor.u32 %v15595_v60, %v9195_v62  ;;  %v2840_v45 = vor.u32 %v2839_v21, %v2836_v57  ;;  %v2924_v50 = vshrl.u32 %v2712_v63, 16  ;;  %v2927_v34 = vshll.u32 %v2712_v63, 16  ;;  %v15611_v60 = vld [vmem:[#allocation99_spill] sm:$0xff] }
 0x3ac   : > { %v821_v24 = vpack.c.b16 %v15594_v9, %v15594_v9  ;;  %v2919_v22 = vrot.slane %v2917_v13, 3  ;;  %v2922_v17 = vrot.slane %v2920_v4, 4  ;;  %v15607_v1 = vunpack.c.h.b16 %v15606_v39  ;;  %v15609_v13 = vld [vmem:[#allocation45_spill] sm:$0xff] }
 0x3ad   : > { %v2841_v36 = vsel %vm2721_vm12, %v2833_v0, %v2840_v45  ;;  %v2290_v5 = vsel %vm2217_vm4, %v9196_v40, %v15596_v8  ;;  %v2926_v6 = vrot.slane %v2924_v50, 3  ;;  %v2929_v48 = vrot.slane %v2927_v34, 4  ;;  %v15612_v34 = vld [vmem:[#allocation70_spill] sm:$0xff] }
 0x3ae   : > { %v2292_v41 = vsel %vm2217_vm4, %v821_v24, %v15596_v8  ;;  %v2356_v29 = vsel %vm2298_vm5, %v2290_v5, %v15598_v38  ;;  %v2923_v14 = vor.u32 %v2922_v17, %v2919_v22  ;;  %v9200_v53 = vor.u32 %v15608_v44, %v9199_v3  ;;  %v15613_v17 = vld [vmem:[#allocation105_spill] sm:$0xff]  ;;  %v15615_v5 = vld [vmem:[#allocation139_spill] sm:$0xff]  ;;  %v15616_v38 = vld [vmem:[#allocation152_spill] sm:$0xff] }
 0x3af   : > { %v2358_v28 = vsel %vm2298_vm5, %v2292_v41, %v15597_v55  ;;  %v2421_v35 = vsel %vm2363_vm7, %v2356_v29, %v15600_v47  ;;  %v2930_v23 = vor.u32 %v2929_v48, %v2926_v6  ;;  %v15614_v8 = vld [vmem:[#allocation101_spill] sm:$0xff] }
 0x3b0   : > { %v2423_v49 = vsel %vm2363_vm7, %v2358_v28, %v15599_v33  ;;  %v2472_v54 = vsel %vm2428_vm6, %v2421_v35, %v15601_v15  ;;  %v2295_v24 = vsel %vm2217_vm4, %v9200_v53, %v15609_v13  ;;  %v2216_v28 = vpop.permute.xlu0 %2215 }
 0x3b1   : > { %v2473_v10 = vsel %vm2428_vm6, %v2423_v49, %v15601_v15  ;;  %v2535_v52 = vsel %vm2477_vm9, %v2472_v54, %v15603_v37  ;;  %v2931_v46 = vsel %vm2721_vm12, %v2923_v14, %v2930_v23  ;;  %v2360_v22 = vsel %vm2298_vm5, %v2295_v24, %v15612_v34  ;;  %v15617_v49 = vld [vmem:[#allocation141_spill] sm:$0xff]  ;;  %v2214_v15 = vpop.permute.xlu2 %2213  ;;  %v15618_v14 = vld [vmem:[#allocation148_spill] sm:$0xff] }
 0x3b2   : > { %8921 = vmatmul.msk.bf16.gmra.mxu2 %vm2989_vm13, %v2916_v18  ;;  %v2537_v42 = vsel %vm2477_vm9, %v2473_v10, %v15602_v11  ;;  %v2600_v30 = vsel %vm2542_vm8, %v2535_v52, %v15605_v16  ;;  %v823_v18 = vpack.c.b16 %v15607_v1, %v15607_v1  ;;  %v2425_v41 = vsel %vm2363_vm7, %v2360_v22, %v15614_v8  ;;  %v11883_v37 = vld [vmem:[#allocation4 + $0x4] sm:$0xff]   ;;  %v3282_v8 = vld [vmem:[#allocation4 + $0x2c] sm:$0x1] }
 0x3b3   : > { %v2602_v59 = vsel %vm2542_vm8, %v2537_v42, %v15604_v19  ;;  %v2651_v62 = vsel %vm2607_vm11, %v2600_v30, %v11278_v12  ;;  %v2475_v48 = vsel %vm2428_vm6, %v2425_v41, %v15613_v17  ;;  %15619 = vst [vmem:[#allocation49_spill] sm:$0xff] %v11883_v37  ;;  %v11885_v52 = vld [vmem:[#allocation4] sm:$0xf0]  }
 0x3b4   : > { %v2652_v2 = vsel %vm2607_vm11, %v2602_v59, %v11278_v12  ;;  %v2714_v25 = vsel %vm2656_vm10, %v2651_v62, %v2210_v27  ;;  %v2297_v4 = vsel %vm2217_vm4, %v823_v18, %v15609_v13  ;;  %v2539_v47 = vsel %vm2477_vm9, %v2475_v48, %v15617_v49  ;;  %15620 = vst [vmem:[#allocation68_spill] sm:$0xff] %v11885_v52 }
 0x3b5   : > { %v2716_v20 = vsel %vm2656_vm10, %v2652_v2, %v2212_v51  ;;  %v2932_v7 = vshrl.u32 %v2714_v25, 16  ;;  %v2935_v32 = vshll.u32 %v2714_v25, 16  ;;  %v2362_v9 = vsel %vm2298_vm5, %v2297_v4, %v15610_v26 }
 0x3b6   : > { %v2939_v56 = vshrl.u32 %v2716_v20, 16  ;;  %v2942_v58 = vshll.u32 %v2716_v20, 16  ;;  %v2427_v40 = vsel %vm2363_vm7, %v2362_v9, %v15611_v60  ;;  %v2604_v54 = vsel %vm2542_vm8, %v2539_v47, %v15618_v14 }
 0x3b7   : > { %v2934_v21 = vrot.slane %v2932_v7, 3  ;;  %v2937_v63 = vrot.slane %v2935_v32, 4  ;;  %v2654_v51 = vsel %vm2607_vm11, %v2604_v54, %v11274_v61  ;;  %v3571_v62 = vshrl.u32 %v11883_v37, 16 }
 0x3b8   : > { %v2941_v12 = vrot.slane %v2939_v56, 3  ;;  %v2944_v57 = vrot.slane %v2942_v58, 4  ;;  %v2718_v19 = vsel %vm2656_vm10, %v2654_v51, %v2214_v15 }
 0x3b9   : > { %v2938_v50 = vor.u32 %v2937_v63, %v2934_v21  ;;  %v2947_v16 = vshrl.u32 %v2718_v19, 16  ;;  %v2950_v30 = vshll.u32 %v2718_v19, 16  ;;  %v3573_v56 = vrot.slane %v3571_v62, 4 }
 0x3ba   : > { %8916 = vmatmul.msk.bf16.gmra.mxu0 %vm2989_vm13, %v2841_v36  ;;  %v2945_v45 = vor.u32 %v2944_v57, %v2941_v12  ;;  %v2476_v36 = vsel %vm2428_vm6, %v2427_v40, %v15613_v17 }
 0x3bb   : > { %v2541_v55 = vsel %vm2477_vm9, %v2476_v36, %v15615_v5  ;;  %v2949_v7 = vrot.slane %v2947_v16, 3  ;;  %v2952_v32 = vrot.slane %v2950_v30, 4 }
 0x3bc   : > { %v2606_v29 = vsel %vm2542_vm8, %v2541_v55, %v15616_v38  ;;  %v2946_v10 = vsel %vm2721_vm12, %v2938_v50, %v2945_v45 }
 0x3bd   : > { %v2655_v35 = vsel %vm2607_vm11, %v2606_v29, %v11274_v61  ;;  %v3574_v61 = vshll.u32 %v11883_v37, 16  ;;  %v2953_v57 = vor.u32 %v2952_v32, %v2949_v7 }
 0x3be   : > { %v2720_v11 = vsel %vm2656_vm10, %v2655_v35, %v2216_v28 }
 0x3bf   : > { %v2954_v23 = vshrl.u32 %v2720_v11, 16  ;;  %v2957_v27 = vshll.u32 %v2720_v11, 16  ;;  %v3576_v58 = vrot.slane %v3574_v61, 5 }
 0x3c1   : > { %v2956_v20 = vrot.slane %v2954_v23, 3  ;;  %v3577_v53 = vor.u32 %v3576_v58, %v3573_v56 }
 0x3c2   : > { %8922 = vmatmul.msk.bf16.gmra.mxu2 %vm2989_vm13, %v2931_v46  ;;  %v2959_v46 = vrot.slane %v2957_v27, 4 }
 0x3c3   : > { %3698 = vrot.lane.b32.xlu1 %v3577_v53, %s9850_s26 }
 0x3c7   : > { %v3051_v31 = vpop.f32.mrf.mxu0 }
 0x3c8   : > { %v3131_v43 = vmax.f32 %v3051_v31, 0.0 }
 0x3ca   : > { %v3163_v0 = vpack.c.bf16 %v3131_v43, %v3131_v43  ;;  %v2960_v43 = vor.u32 %v2959_v46, %v2956_v20 }
 0x3cc   : > { %3198 = vst.msk [vmem:[#allocation4 + $0x14] sm:$0xf] %vm3197_vm14, %v3163_v0  ;;  %v2961_v4 = vsel %vm2721_vm12, %v2953_v57, %v2960_v43 }
 0x3cf   : > { %v3053_v6 = vpop.f32.mrf.mxu0 }
 0x3d0   : > { %v3132_v33 = vmax.f32 %v3053_v6, 0.0 }
 0x3d2   : > { %v3164_v42 = vpack.c.bf16 %v3132_v33, %v3132_v33  ;;  %8923 = vmatmul.msk.bf16.gmra.mxu2 %vm2989_vm13, %v2946_v10 }
 0x3d3   : > { %v11894_v1 = vld [vmem:[#allocation4 + $0x10] sm:$0xf0]  }
 0x3d4   : > { %3199 = vst.msk [vmem:[#allocation4 + $0x18] sm:$0xf] %vm3197_vm14, %v3164_v42  ;;  %v11898_v31 = vld [vmem:[#allocation4 + $0x10] sm:$0xf0]  }
 0x3d5   : > { %15622 = vst [vmem:[#allocation102_spill] sm:$0xff] %v11894_v1 }
 0x3d7   : > { %v3056_v2 = vpop.f32.mrf.mxu0 }
 0x3d8   : > { %v3133_v3 = vmax.f32 %v3056_v2, 0.0 }
 0x3da   : > { %v3165_v25 = vpack.c.bf16 %v3133_v3, %v3133_v3 }
 0x3db   : > { %v11892_v39 = vld [vmem:[#allocation4 + $0x14] sm:$0xff]  }
 0x3dc   : > { %15621 = vst [vmem:[#allocation74_spill] sm:$0xff] %v11892_v39  ;;  %v11896_v18 = vld [vmem:[#allocation4 + $0x14] sm:$0xff]   ;;  %v3579_v0 = vshrl.u32 %v11892_v39, 16  ;;  %v3582_v13 = vshll.u32 %v11892_v39, 16 }
 0x3dd   : > { %3200 = vst.msk [vmem:[#allocation4 + $0x24] sm:$0xf] %vm3197_vm14, %v3165_v25  ;;  %v3940_v12 = vunpack.c.h.b16 %v11896_v18 }
 0x3de   : > { %v3581_v9 = vrot.slane %v3579_v0, 4  ;;  %v3584_v24 = vrot.slane %v3582_v13, 5 }
 0x3df   : > { %v3058_v21 = vpop.f32.mrf.mxu0 }
 0x3e0   : > { %v3134_v63 = vmax.f32 %v3058_v21, 0.0  ;;  %v3585_v60 = vor.u32 %v3584_v24, %v3581_v9 }
 0x3e2   : > { %v3166_v26 = vpack.c.bf16 %v3134_v63, %v3134_v63  ;;  %8924 = vmatmul.msk.bf16.gmra.mxu2 %vm2989_vm13, %v2961_v4  ;;  %3700 = vrot.lane.b32.xlu2 %v3585_v60, %s9850_s26 }
 0x3e4   : > { %3201 = vst.msk [vmem:[#allocation4 + $0x28] sm:$0xf] %vm3197_vm14, %v3166_v26  ;;  %v11912_v22 = vld [vmem:[#allocation4 + $0x20] sm:$0xf0]  }
 0x3e5   : > { %v11916_v36 = vld [vmem:[#allocation4 + $0x20] sm:$0xf0]  }
 0x3e7   : > { %v3061_v40 = vpop.f32.mrf.mxu0 }
 0x3e8   : > { %v3135_v45 = vmax.f32 %v3061_v40, 0.0 }
 0x3ea   : > { %v3167_v50 = vpack.c.bf16 %v3135_v45, %v3135_v45 }
 0x3eb   : > { %v11910_v34 = vld [vmem:[#allocation4 + $0x24] sm:$0xff]  }
 0x3ec   : > { %v11914_v17 = vld [vmem:[#allocation4 + $0x24] sm:$0xff]   ;;  %3202 = vst.msk [vmem:[#allocation4 + $0x34] sm:$0xf] %vm3197_vm14, %v3167_v50  ;;  %v3587_v28 = vshrl.u32 %v11910_v34, 16  ;;  %v3590_v6 = vshll.u32 %v11910_v34, 16 }
 0x3ee   : > { %v3589_v38 = vrot.slane %v3587_v28, 4  ;;  %v3592_v29 = vrot.slane %v3590_v6, 5 }
 0x3ef   : > { %v3063_v5 = vpop.f32.mrf.mxu0 }
 0x3f0   : > { %v3136_v55 = vmax.f32 %v3063_v5, 0.0  ;;  %v3593_v33 = vor.u32 %v3592_v29, %v3589_v38 }
 0x3f2   : > { %v3168_v48 = vpack.c.bf16 %v3136_v55, %v3136_v55  ;;  %3702 = vrot.lane.b32.xlu0 %v3593_v33, %s9850_s26 }
 0x3f3   : > { %v11928_v11 = vld [vmem:[#allocation4 + $0x30] sm:$0xf0]  }
 0x3f4   : > { %3203 = vst.msk [vmem:[#allocation4 + $0x38] sm:$0xf] %vm3197_vm14, %v3168_v48 }
 0x3f5   : > { %v3091_v49 = vpop.f32.mrf.mxu2  ;;  %15624 = vst [vmem:[#allocation116_spill] sm:$0xff] %v11928_v11  ;;  %v9650_v11 = vld [vmem:[#allocation4 + $0xb0] sm:$0x8] }
 0x3f6   : > { %v3147_v47 = vmax.f32 %v3091_v49, 0.0 }
 0x3f7   : > { %v3066_v35 = vpop.f32.mrf.mxu0 }
 0x3f8   : > { %v3179_v15 = vpack.c.bf16 %v3147_v47, %v3147_v47  ;;  %v3137_v10 = vmax.f32 %v3066_v35, 0.0 }
 0x3fa   : > { %3214 = vst.msk [vmem:[#allocation4 + $0x94] sm:$0xf] %vm3197_vm14, %v3179_v15  ;;  %v3169_v14 = vpack.c.bf16 %v3137_v10, %v3137_v10 }
 0x3fb   : > { %v11926_v54 = vld [vmem:[#allocation4 + $0x34] sm:$0xff]  }
 0x3fc   : > { %15623 = vst [vmem:[#allocation110_spill] sm:$0xff] %v11926_v54  ;;  %v3595_v30 = vshrl.u32 %v11926_v54, 16  ;;  %v3598_v2 = vshll.u32 %v11926_v54, 16 }
 0x3fd   : > { %3204 = vst.msk [vmem:[#allocation4 + $0x44] sm:$0xf] %vm3197_vm14, %v3169_v14  ;;  %v3093_v51 = vpop.f32.mrf.mxu2 }
 0x3fe   : > { %v3148_v19 = vmax.f32 %v3093_v51, 0.0  ;;  %v3597_v62 = vrot.slane %v3595_v30, 4  ;;  %v3600_v61 = vrot.slane %v3598_v2, 5 }
 0x3ff   : > { %v3068_v23 = vpop.f32.mrf.mxu0 }
 0x400   : > { %v3180_v27 = vpack.c.bf16 %v3148_v19, %v3148_v19  ;;  %v3138_v16 = vmax.f32 %v3068_v23, 0.0  ;;  %v3601_v20 = vor.u32 %v3600_v61, %v3597_v62 }
 0x402   : > { %3215 = vst.msk [vmem:[#allocation4 + $0x98] sm:$0xf] %vm3197_vm14, %v3180_v27  ;;  %v3170_v3 = vpack.c.bf16 %v3138_v16, %v3138_v16  ;;  %3704 = vrot.lane.b32.xlu1 %v3601_v20, %s9850_s26 }
 0x404   : > { %3205 = vst.msk [vmem:[#allocation4 + $0x48] sm:$0xf] %vm3197_vm14, %v3170_v3  ;;  %v11940_v43 = vld [vmem:[#allocation4 + $0x40] sm:$0xf0]  }
 0x405   : > { %v3096_v46 = vpop.f32.mrf.mxu2  ;;  %15626 = vst [vmem:[#allocation12_spill] sm:$0xff] %v11940_v43 }
 0x406   : > { %v3149_v25 = vmax.f32 %v3096_v46, 0.0 }
 0x407   : > { %v3071_v56 = vpop.f32.mrf.mxu0 }
 0x408   : > { %v3181_v58 = vpack.c.bf16 %v3149_v25, %v3149_v25  ;;  %v3139_v7 = vmax.f32 %v3071_v56, 0.0 }
 0x409   : > { %v11966_v56 = vld [vmem:[#allocation4 + $0x94] sm:$0xff]  }
 0x40a   : > { %3216 = vst.msk [vmem:[#allocation4 + $0xa4] sm:$0xf] %vm3197_vm14, %v3181_v58  ;;  %v3171_v32 = vpack.c.bf16 %v3139_v7, %v3139_v7  ;;  %v11968_v58 = vld [vmem:[#allocation4 + $0x90] sm:$0xf0]  }
 0x40b   : > { %v11938_v53 = vld [vmem:[#allocation4 + $0x44] sm:$0xff]   ;;  %15629 = vst [vmem:[#allocation22_spill] sm:$0xff] %v11968_v58 }
 0x40c   : > { %15625 = vst [vmem:[#allocation11_spill] sm:$0xff] %v11938_v53  ;;  %v3603_v26 = vshrl.u32 %v11938_v53, 16  ;;  %v3606_v9 = vshll.u32 %v11938_v53, 16 }
 0x40d   : > { %3206 = vst.msk [vmem:[#allocation4 + $0x54] sm:$0xf] %vm3197_vm14, %v3171_v32  ;;  %v3098_v21 = vpop.f32.mrf.mxu2 }
 0x40e   : > { %v3150_v63 = vmax.f32 %v3098_v21, 0.0  ;;  %v3605_v60 = vrot.slane %v3603_v26, 4  ;;  %v3608_v40 = vrot.slane %v3606_v9, 5 }
 0x40f   : > { %v3073_v0 = vpop.f32.mrf.mxu0 }
 0x410   : > { %v3182_v13 = vpack.c.bf16 %v3150_v63, %v3150_v63  ;;  %v3140_v4 = vmax.f32 %v3073_v0, 0.0  ;;  %v3609_v45 = vor.u32 %v3608_v40, %v3605_v60  ;;  %v12143_v0 = vld [vmem:[#allocation4 + $0x44] sm:$0xff]  }
 0x412   : > { %3217 = vst.msk [vmem:[#allocation4 + $0xa8] sm:$0xf] %vm3197_vm14, %v3182_v13  ;;  %v3172_v24 = vpack.c.bf16 %v3140_v4, %v3140_v4  ;;  %3706 = vrot.lane.b32.xlu2 %v3609_v45, %s9850_s26 }
 0x414   : > { %3207 = vst.msk [vmem:[#allocation4 + $0x58] sm:$0xf] %vm3197_vm14, %v3172_v24  ;;  %v11952_v29 = vld [vmem:[#allocation4 + $0x50] sm:$0xf0]  }
 0x415   : > { %v3101_v50 = vpop.f32.mrf.mxu2  ;;  %15628 = vst [vmem:[#allocation10_spill] sm:$0xff] %v11952_v29  ;;  %v11958_v15 = vld [vmem:[#allocation4 + $0x50] sm:$0xf0]  }
 0x416   : > { %v3151_v5 = vmax.f32 %v3101_v50, 0.0 }
 0x417   : > { %v3076_v55 = vpop.f32.mrf.mxu0 }
 0x418   : > { %v3183_v28 = vpack.c.bf16 %v3151_v5, %v3151_v5  ;;  %v3141_v6 = vmax.f32 %v3076_v55, 0.0 }
 0x41a   : > { %3218 = vst.msk [vmem:[#allocation4 + $0xb4] sm:$0xf] %vm3197_vm14, %v3183_v28  ;;  %v3173_v48 = vpack.c.bf16 %v3141_v6, %v3141_v6  ;;  %v3643_v28 = vshrl.u32 %v11966_v56, 16  ;;  %v3646_v6 = vshll.u32 %v11966_v56, 16 }
 0x41b   : > { %v11950_v38 = vld [vmem:[#allocation4 + $0x54] sm:$0xff]  }
 0x41c   : > { %15627 = vst [vmem:[#allocation9_spill] sm:$0xff] %v11950_v38  ;;  %v11956_v35 = vld [vmem:[#allocation4 + $0x54] sm:$0xff]   ;;  %v3611_v19 = vshrl.u32 %v11950_v38, 16  ;;  %v3614_v23 = vshll.u32 %v11950_v38, 16 }
 0x41d   : > { %3208 = vst.msk [vmem:[#allocation4 + $0x64] sm:$0xf] %vm3197_vm14, %v3173_v48  ;;  %v3103_v49 = vpop.f32.mrf.mxu2 }
 0x41e   : > { %v3152_v47 = vmax.f32 %v3103_v49, 0.0  ;;  %v3613_v30 = vrot.slane %v3611_v19, 4  ;;  %v3616_v2 = vrot.slane %v3614_v23, 5  ;;  %v3648_v19 = vrot.slane %v3646_v6, 5 }
 0x41f   : > { %v3078_v10 = vpop.f32.mrf.mxu0 }
 0x420   : > { %v3184_v14 = vpack.c.bf16 %v3152_v47, %v3152_v47  ;;  %v3142_v51 = vmax.f32 %v3078_v10, 0.0  ;;  %v3617_v3 = vor.u32 %v3616_v2, %v3613_v30 }
 0x422   : > { %3219 = vst.msk [vmem:[#allocation4 + $0xb8] sm:$0xf] %vm3197_vm14, %v3184_v14  ;;  %v3174_v16 = vpack.c.bf16 %v3142_v51, %v3142_v51  ;;  %3708 = vrot.lane.b32.xlu0 %v3617_v3, %s9850_s26  ;;  %v3645_v51 = vrot.slane %v3643_v28, 4  ;;  %v11991_v3 = vld [vmem:[#allocation4 + $0xa4] sm:$0xff]  }
 0x423   : > { %15632 = vst [vmem:[#allocation21_spill] sm:$0xff] %v11991_v3 }
 0x424   : > { %3209 = vst.msk [vmem:[#allocation4 + $0x68] sm:$0xf] %vm3197_vm14, %v3174_v16  ;;  %v11973_v21 = vld [vmem:[#allocation4 + $0x60] sm:$0xf0]  }
 0x425   : > { %v3106_v62 = vpop.f32.mrf.mxu2  ;;  %15630 = vst [vmem:[#allocation5_spill] sm:$0xff] %v11973_v21  ;;  %v9638_v21 = vld [vmem:[#allocation4 + $0x80] sm:$0x8] }
 0x426   : > { %v3153_v61 = vmax.f32 %v3106_v62, 0.0  ;;  %v11993_v62 = vld [vmem:[#allocation4 + $0xa0] sm:$0xf0]  }
 0x427   : > { %v3081_v20 = vpop.f32.mrf.mxu0 }
 0x428   : > { %v3185_v46 = vpack.c.bf16 %v3153_v61, %v3153_v61  ;;  %v3143_v25 = vmax.f32 %v3081_v20, 0.0 }
 0x42a   : > { %3220 = vst.msk [vmem:[#allocation4 + $0xc4] sm:$0xf] %vm3197_vm14, %v3185_v46  ;;  %v3175_v7 = vpack.c.bf16 %v3143_v25, %v3143_v25  ;;  %v3649_v46 = vor.u32 %v3648_v19, %v3645_v51  ;;  %v3654_v51 = vshll.u32 %v11991_v3, 16 }
 0x42b   : > { %v11971_v32 = vld [vmem:[#allocation4 + $0x64] sm:$0xff]  }
 0x42c   : > { %3210 = vst.msk [vmem:[#allocation4 + $0x74] sm:$0xf] %vm3197_vm14, %v3175_v7  ;;  %v3619_v60 = vshrl.u32 %v11971_v32, 16  ;;  %v3622_v40 = vshll.u32 %v11971_v32, 16 }
 0x42d   : > { %v3108_v13 = vpop.f32.mrf.mxu2 }
 0x42e   : > { %v3154_v4 = vmax.f32 %v3108_v13, 0.0  ;;  %v3621_v50 = vrot.slane %v3619_v60, 4  ;;  %v3624_v5 = vrot.slane %v3622_v40, 5 }
 0x42f   : > { %v3083_v26 = vpop.f32.mrf.mxu0 }
 0x430   : > { %v3186_v9 = vpack.c.bf16 %v3154_v4, %v3154_v4  ;;  %v3144_v24 = vmax.f32 %v3083_v26, 0.0  ;;  %v3625_v55 = vor.u32 %v3624_v5, %v3621_v50 }
 0x431   : > { %v11987_v16 = vld [vmem:[#allocation4 + $0xc0] sm:$0xf0]  }
 0x432   : > { %3221 = vst.msk [vmem:[#allocation4 + $0xc8] sm:$0xf] %vm3197_vm14, %v3186_v9  ;;  %v3176_v45 = vpack.c.bf16 %v3144_v24, %v3144_v24  ;;  %3710 = vrot.lane.b32.xlu1 %v3625_v55, %s9850_s26 }
 0x433   : > { %15631 = vst [vmem:[#allocation33_spill] sm:$0xff] %v11987_v16  ;;  %v11997_v20 = vld [vmem:[#allocation4 + $0x70] sm:$0xf0]  }
 0x434   : > { %3211 = vst.msk [vmem:[#allocation4 + $0x78] sm:$0xf] %vm3197_vm14, %v3176_v45 }
 0x435   : > { %v3111_v48 = vpop.f32.mrf.mxu2 }
 0x436   : > { %v3155_v49 = vmax.f32 %v3111_v48, 0.0 }
 0x437   : > { %v3086_v47 = vpop.f32.mrf.mxu0 }
 0x438   : > { %v3187_v10 = vpack.c.bf16 %v3155_v49, %v3155_v49  ;;  %v3145_v14 = vmax.f32 %v3086_v47, 0.0 }
 0x439   : > { %v11985_v23 = vld [vmem:[#allocation4 + $0xc4] sm:$0xff]  }
 0x43a   : > { %3222 = vst.msk [vmem:[#allocation4 + $0xd4] sm:$0xf] %vm3197_vm14, %v3187_v10  ;;  %v3177_v30 = vpack.c.bf16 %v3145_v14, %v3145_v14  ;;  %3716 = vrot.lane.b32.xlu1 %v3649_v46, %s9850_s26  ;;  %v3667_v26 = vshrl.u32 %v11985_v23, 16  ;;  %v3670_v9 = vshll.u32 %v11985_v23, 16  ;;  %v3651_v14 = vshrl.u32 %v11991_v3, 16 }
 0x43b   : > { %v11995_v61 = vld [vmem:[#allocation4 + $0x74] sm:$0xff]  }
 0x43c   : > { %3212 = vst.msk [vmem:[#allocation4 + $0x84] sm:$0xf] %vm3197_vm14, %v3177_v30  ;;  %v3669_v45 = vrot.slane %v3667_v26, 4  ;;  %v3672_v50 = vrot.slane %v3670_v9, 5  ;;  %v3627_v5 = vshrl.u32 %v11995_v61, 16  ;;  %v3630_v55 = vshll.u32 %v11995_v61, 16 }
 0x43d   : > { %v3113_v7 = vpop.f32.mrf.mxu2  ;;  %v3653_v46 = vrot.slane %v3651_v14, 4 }
 0x43e   : > { %v3156_v4 = vmax.f32 %v3113_v7, 0.0  ;;  %v3629_v6 = vrot.slane %v3627_v5, 4  ;;  %v3632_v48 = vrot.slane %v3630_v55, 5  ;;  %v3673_v49 = vor.u32 %v3672_v50, %v3669_v45 }
 0x43f   : > { %v3088_v24 = vpop.f32.mrf.mxu0  ;;  %v3656_v7 = vrot.slane %v3654_v51, 5 }
 0x440   : > { %v3188_v60 = vpack.c.bf16 %v3156_v4, %v3156_v4  ;;  %v3146_v40 = vmax.f32 %v3088_v24, 0.0  ;;  %v3633_v10 = vor.u32 %v3632_v48, %v3629_v6  ;;  %v12019_v24 = vld [vmem:[#allocation4 + $0xb4] sm:$0xff]  }
 0x441   : > { %v12015_v26 = vld [vmem:[#allocation4 + $0xd0] sm:$0xf0]   ;;  %15635 = vst [vmem:[#allocation61_spill] sm:$0xff] %v12019_v24  ;;  %v3657_v55 = vor.u32 %v3656_v7, %v3653_v46  ;;  %v3659_v57 = vshrl.u32 %v12019_v24, 16  ;;  %v3662_v44 = vshll.u32 %v12019_v24, 16 }
 0x442   : > { %3223 = vst.msk [vmem:[#allocation4 + $0xd8] sm:$0xf] %vm3197_vm14, %v3188_v60  ;;  %v3178_v28 = vpack.c.bf16 %v3146_v40, %v3146_v40  ;;  %3722 = vrot.lane.b32.xlu1 %v3673_v49, %s9850_s26  ;;  %3712 = vrot.lane.b32.xlu2 %v3633_v10, %s9850_s26  ;;  %v12021_v60 = vld [vmem:[#allocation4 + $0xb0] sm:$0xf0]  }
 0x443   : > { %15634 = vst [vmem:[#allocation36_spill] sm:$0xff] %v12015_v26  ;;  %v12025_v45 = vld [vmem:[#allocation4 + $0x80] sm:$0xf0]  }
 0x444   : > { %3213 = vst.msk [vmem:[#allocation4 + $0x88] sm:$0xf] %vm3197_vm14, %v3178_v28 }
 0x445   : > { %v3116_v47 = vpop.f32.mrf.mxu2 }
 0x446   : > { %v3157_v19 = vmax.f32 %v3116_v47, 0.0 }
 0x448   : > { %v3189_v30 = vpack.c.bf16 %v3157_v19, %v3157_v19 }
 0x449   : > { %v12013_v4 = vld [vmem:[#allocation4 + $0xd4] sm:$0xff]  }
 0x44a   : > { %15633 = vst [vmem:[#allocation6_spill] sm:$0xff] %v12013_v4  ;;  %v3675_v48 = vshrl.u32 %v12013_v4, 16  ;;  %v3678_v49 = vshll.u32 %v12013_v4, 16  ;;  %3718 = vrot.lane.b32.xlu2 %v3657_v55, %s9850_s26  ;;  %v3281_v55 = vld [vmem:[#allocation4 + $0x1c] sm:$0x1] }
 0x44b   : > { %3224 = vst.msk [vmem:[#allocation4 + $0xe4] sm:$0xf] %vm3197_vm14, %v3189_v30  ;;  %v12023_v40 = vld [vmem:[#allocation4 + $0x84] sm:$0xff]  }
 0x44c   : > { %v3635_v10 = vshrl.u32 %v12023_v40, 16  ;;  %v3677_v14 = vrot.slane %v3675_v48, 4  ;;  %v3680_v51 = vrot.slane %v3678_v49, 5  ;;  %v3638_v19 = vshll.u32 %v12023_v40, 16 }
 0x44d   : > { %v3118_v5 = vpop.f32.mrf.mxu2  ;;  %v3661_v48 = vrot.slane %v3659_v57, 4  ;;  %v3664_v49 = vrot.slane %v3662_v44, 5 }
 0x44e   : > { %v3158_v6 = vmax.f32 %v3118_v5, 0.0  ;;  %v3637_v30 = vrot.slane %v3635_v10, 4  ;;  %v3640_v46 = vrot.slane %v3638_v19, 5  ;;  %v3681_v59 = vor.u32 %v3680_v51, %v3677_v14 }
 0x44f   : > { %v3747_v10 = vunpack.c.l.b16 %v3281_v55  ;;  %v3778_v51 = vrot.slane %v11883_v37, 5  ;;  %v3781_v14 = vrot.slane %v11892_v39, 5  ;;  %v9804_v37 = vld [vmem:[#allocation4 + $0x70] sm:$0xf0]   ;;  %v12215_v39 = vld [vmem:[#allocation4 + $0xc4] sm:$0xff]  }
 0x450   : > { %v3190_v47 = vpack.c.bf16 %v3158_v6, %v3158_v6  ;;  %v3641_v5 = vor.u32 %v3640_v46, %v3637_v30  ;;  %v3665_v30 = vor.u32 %v3664_v49, %v3661_v48  ;;  %15656 = vst [vmem:[#allocation31_spill] sm:$0xff] %v12215_v39 }
 0x452   : > { %3225 = vst.msk [vmem:[#allocation4 + $0xe8] sm:$0xf] %vm3197_vm14, %v3190_v47  ;;  %3724 = vrot.lane.b32.xlu2 %v3681_v59, %s9850_s26  ;;  %3714 = vrot.lane.b32.xlu0 %v3641_v5, %s9850_s26  ;;  %v12041_v47 = vld [vmem:[#allocation4 + $0xe0] sm:$0xf0]   ;;  %v3280_v59 = vld [vmem:[#allocation4 + $0xc] sm:$0x1] }
 0x453   : > { %v3746_v5 = vunpack.c.l.b16 %v3280_v59 }
 0x455   : > { %v3121_v7 = vpop.f32.mrf.mxu2  ;;  %v3762_v49 = vpack.c.b16 %v3746_v5, %v3746_v5 }
 0x456   : > { %v3159_v42 = vmax.f32 %v3121_v7, 0.0  ;;  %v3763_v7 = vpack.c.b16 %v3747_v10, %v3747_v10 }
 0x457   : > { %v3779_v59 = vrot.slane %v3762_v49, 5 }
 0x458   : > { %v3191_v6 = vpack.c.bf16 %v3159_v42, %v3159_v42  ;;  %v3782_v48 = vrot.slane %v3763_v7, 5 }
 0x459   : > { %v12039_v9 = vld [vmem:[#allocation4 + $0xe4] sm:$0xff]   ;;  %v3780_v5 = vsel %vm1048_vm2, %v3778_v51, %v3779_v59 }
 0x45a   : > { %15636 = vst [vmem:[#allocation40_spill] sm:$0xff] %v12039_v9  ;;  %v3683_v42 = vshrl.u32 %v12039_v9, 16  ;;  %v3686_v44 = vshll.u32 %v12039_v9, 16  ;;  %3826 = vrot.lane.b32.xlu2 %v3778_v51, %s9851_s27  ;;  %3720 = vrot.lane.b32.xlu0 %v3665_v30, %s9850_s26  ;;  %v3783_v28 = vsel %vm1048_vm2, %v3781_v14, %v3782_v48  ;;  %v3284_v30 = vld [vmem:[#allocation4 + $0x4c] sm:$0x1]  ;;  %v12259_v26 = vld [vmem:[#allocation4 + $0xe4] sm:$0xff]  }
 0x45b   : > { %3226 = vst.msk [vmem:[#allocation4 + $0xf4] sm:$0xf] %vm3197_vm14, %v3191_v6 }
 0x45c   : > { %v3685_v55 = vrot.slane %v3683_v42, 4  ;;  %v3688_v6 = vrot.slane %v3686_v44, 5  ;;  %15667 = vst [vmem:[#allocation123_spill] sm:$0xff] %v12259_v26 }
 0x45d   : > { %v3123_v19 = vpop.f32.mrf.mxu2 }
 0x45e   : > { %v3160_v46 = vmax.f32 %v3123_v19, 0.0  ;;  %v3689_v10 = vor.u32 %v3688_v6, %v3685_v55  ;;  %v3787_v6 = vrot.slane %v11926_v54, 5  ;;  %v12228_v54 = vld [vmem:[#allocation4 + $0xd4] sm:$0xff]  }
 0x460   : > { %v3192_v57 = vpack.c.bf16 %v3160_v46, %v3160_v46 }
 0x462   : > { %3227 = vst.msk [vmem:[#allocation4 + $0xf8] sm:$0xf] %vm3197_vm14, %v3192_v57  ;;  %3832 = vrot.lane.b32.xlu2 %v3783_v28, %s9851_s27  ;;  %3726 = vrot.lane.b32.xlu0 %v3689_v10, %s9850_s26  ;;  %v12057_v44 = vld [vmem:[#allocation4 + $0xf0] sm:$0xf0]   ;;  %v3750_v57 = vunpack.c.l.b16 %v3284_v30  ;;  %v3790_v30 = vrot.slane %v11938_v53, 5 }
 0x463   : > { %15637 = vst [vmem:[#allocation42_spill] sm:$0xff] %v12057_v44  ;;  %v9810_v44 = vld [vmem:[#allocation4 + $0xb0] sm:$0xf0]  }
 0x464   : > { %v3766_v49 = vpack.c.b16 %v3750_v57, %v3750_v57  ;;  %v3784_v57 = vrot.slane %v11910_v34, 5 }
 0x465   : > { %v3126_v19 = vpop.f32.mrf.mxu2 }
 0x466   : > { %v3161_v13 = vmax.f32 %v3126_v19, 0.0  ;;  %v3283_v19 = vld [vmem:[#allocation4 + $0x3c] sm:$0x1]  ;;  %v3791_v59 = vrot.slane %v3766_v49, 5  ;;  %v3796_v49 = vrot.slane %v11971_v32, 5 }
 0x468   : > { %v3193_v46 = vpack.c.bf16 %v3161_v13, %v3161_v13  ;;  %v3792_v25 = vsel %vm1048_vm2, %v3790_v30, %v3791_v59 }
 0x469   : > { %v12055_v42 = vld [vmem:[#allocation4 + $0xf4] sm:$0xff]  }
 0x46a   : > { %3228 = vst.msk [vmem:[#allocation4 + $0x104] sm:$0xf] %vm3197_vm14, %v3193_v46  ;;  %v3691_v48 = vshrl.u32 %v12055_v42, 16  ;;  %v3694_v13 = vshll.u32 %v12055_v42, 16  ;;  %3838 = vrot.lane.b32.xlu2 %v3787_v6, %s9851_s27  ;;  %3828 = vrot.lane.b32.xlu0 %v3780_v5, %s9851_s27  ;;  %v3748_v5 = vunpack.c.l.b16 %v3282_v8  ;;  %v12242_v16 = vld [vmem:[#allocation4 + $0xf4] sm:$0xff]  }
 0x46b   : > { %15662 = vst [vmem:[#allocation71_spill] sm:$0xff] %v12242_v16 }
 0x46c   : > { %v3693_v46 = vrot.slane %v3691_v48, 4  ;;  %v3696_v33 = vrot.slane %v3694_v13, 5  ;;  %v3764_v13 = vpack.c.b16 %v3748_v5, %v3748_v5 }
 0x46d   : > { %v3128_v55 = vpop.f32.mrf.mxu2 }
 0x46e   : > { %v3162_v28 = vmax.f32 %v3128_v55, 0.0  ;;  %v3697_v51 = vor.u32 %v3696_v33, %v3693_v46  ;;  %v3749_v55 = vunpack.c.l.b16 %v3283_v19  ;;  %v3785_v46 = vrot.slane %v3764_v13, 5 }
 0x470   : > { %v3194_v10 = vpack.c.bf16 %v3162_v28, %v3162_v28  ;;  %3728 = vrot.lane.b32.xlu1 %v3697_v51, %s9850_s26  ;;  %v3765_v7 = vpack.c.b16 %v3749_v55, %v3749_v55  ;;  %v3287_v28 = vld [vmem:[#allocation4 + $0x7c] sm:$0x1]  ;;  %v3799_v51 = vrot.slane %v11995_v61, 5  ;;  %v3793_v55 = vrot.slane %v11950_v38, 5 }
 0x471   : > { %v3753_v33 = vunpack.c.l.b16 %v3287_v28  ;;  %v4126_v38 = vshll.u32 %v12143_v0, 16 }
 0x472   : > { %3229 = vst.msk [vmem:[#allocation4 + $0x108] sm:$0xf] %vm3197_vm14, %v3194_v10  ;;  %3844 = vrot.lane.b32.xlu2 %v3792_v25, %s9851_s27  ;;  %3834 = vrot.lane.b32.xlu0 %v3784_v57, %s9851_s27  ;;  %v3788_v48 = vrot.slane %v3765_v7, 5  ;;  %v3286_v25 = vld [vmem:[#allocation4 + $0x6c] sm:$0x1]  ;;  %v3786_v7 = vsel %vm1048_vm2, %v3784_v57, %v3785_v46  ;;  %v3805_v57 = vrot.slane %v11966_v56, 5 }
 0x473   : > { %v3769_v10 = vpack.c.b16 %v3753_v33, %v3753_v33  ;;  %v3752_v59 = vunpack.c.l.b16 %v3286_v25 }
 0x474   : > { %v3789_v19 = vsel %vm1048_vm2, %v3787_v6, %v3788_v48  ;;  %v3290_v48 = vld [vmem:[#allocation4 + $0xac] sm:$0x1] }
 0x475   : > { %v3800_v8 = vrot.slane %v3769_v10, 5  ;;  %v3768_v5 = vpack.c.b16 %v3752_v59, %v3752_v59  ;;  %v3756_v13 = vunpack.c.l.b16 %v3290_v48  ;;  %v12091_v59 = vpop.permute.xlu2 %3700 }
 0x476   : > { %15638 = vst [vmem:[#allocation77_spill] sm:$0xff] %v12091_v59 }
 0x477   : > { %v3801_v6 = vsel %vm1048_vm2, %v3799_v51, %v3800_v8  ;;  %v3797_v33 = vrot.slane %v3768_v5, 5  ;;  %v3772_v46 = vpack.c.b16 %v3756_v13, %v3756_v13  ;;  %v3289_v8 = vld [vmem:[#allocation4 + $0x9c] sm:$0x1] }
 0x478   : > { %3830 = vrot.lane.b32.xlu1 %v3781_v14, %s9851_s27  ;;  %v3285_v14 = vld [vmem:[#allocation4 + $0x5c] sm:$0x1] }
 0x479   : > { %v3751_v28 = vunpack.c.l.b16 %v3285_v14  ;;  %v3798_v10 = vsel %vm1048_vm2, %v3796_v49, %v3797_v33  ;;  %v3809_v14 = vrot.slane %v3772_v46, 5  ;;  %v3293_v13 = vld [vmem:[#allocation4 + $0xdc] sm:$0x1] }
 0x47a   : > { %3850 = vrot.lane.b32.xlu2 %v3796_v49, %s9851_s27  ;;  %3840 = vrot.lane.b32.xlu0 %v3789_v19, %s9851_s27  ;;  %v3802_v49 = vrot.slane %v12023_v40, 5  ;;  %v3759_v46 = vunpack.c.l.b16 %v3293_v13 }
 0x47b   : > { %v3767_v19 = vpack.c.b16 %v3751_v28, %v3751_v28 }
 0x47d   : > { %v3794_v25 = vrot.slane %v3767_v19, 5  ;;  %v12100_v19 = vpop.permute.xlu2 %3706 }
 0x47e   : > { %15639 = vst [vmem:[#allocation48_spill] sm:$0xff] %v12100_v19 }
 0x47f   : > { %v3795_v5 = vsel %vm1048_vm2, %v3793_v55, %v3794_v25 }
 0x480   : > { %3836 = vrot.lane.b32.xlu1 %v3786_v7, %s9851_s27  ;;  %v3808_v7 = vrot.slane %v11991_v3, 5 }
 0x482   : > { %3856 = vrot.lane.b32.xlu2 %v3801_v6, %s9851_s27  ;;  %3846 = vrot.lane.b32.xlu0 %v3793_v55, %s9851_s27  ;;  %v3755_v6 = vunpack.c.l.b16 %v3289_v8  ;;  %v3810_v28 = vsel %vm1048_vm2, %v3808_v7, %v3809_v14  ;;  %v3814_v55 = vrot.slane %v11985_v23, 5 }
 0x484   : > { %v3771_v48 = vpack.c.b16 %v3755_v6, %v3755_v6  ;;  %v3292_v6 = vld [vmem:[#allocation4 + $0xcc] sm:$0x1] }
 0x485   : > { %v3758_v13 = vunpack.c.l.b16 %v3292_v6 }
 0x488   : > { %3842 = vrot.lane.b32.xlu1 %v3790_v30, %s9851_s27  ;;  %v3288_v30 = vld [vmem:[#allocation4 + $0x8c] sm:$0x1] }
 0x489   : > { %v3754_v33 = vunpack.c.l.b16 %v3288_v30 }
 0x48a   : > { %3862 = vrot.lane.b32.xlu2 %v3805_v57, %s9851_s27  ;;  %3852 = vrot.lane.b32.xlu0 %v3798_v10, %s9851_s27  ;;  %v3806_v10 = vrot.slane %v3771_v48, 5 }
 0x48b   : > { %v3770_v8 = vpack.c.b16 %v3754_v33, %v3754_v33 }
 0x48c   : > { %v3807_v25 = vsel %vm1048_vm2, %v3805_v57, %v3806_v10  ;;  %v3811_v57 = vrot.slane %v12019_v24, 5  ;;  %v9670_v24 = vld [vmem:[#allocation4 + $0x100] sm:$0x8] }
 0x48d   : > { %v3803_v14 = vrot.slane %v3770_v8, 5 }
 0x48f   : > { %v3804_v33 = vsel %vm1048_vm2, %v3802_v49, %v3803_v14 }
 0x490   : > { %3848 = vrot.lane.b32.xlu1 %v3795_v5, %s9851_s27  ;;  %v3775_v5 = vpack.c.b16 %v3759_v46, %v3759_v46  ;;  %v3774_v46 = vpack.c.b16 %v3758_v13, %v3758_v13 }
 0x492   : > { %3868 = vrot.lane.b32.xlu2 %v3810_v28, %s9851_s27  ;;  %3858 = vrot.lane.b32.xlu0 %v3802_v49, %s9851_s27  ;;  %v3817_v28 = vrot.slane %v12013_v4, 5  ;;  %v3818_v48 = vrot.slane %v3775_v5, 5  ;;  %v3815_v50 = vrot.slane %v3774_v46, 5  ;;  %v3823_v49 = vrot.slane %v12055_v42, 5  ;;  %v12131_v46 = vld [vmem:[#allocation4 + $0x34] sm:$0xff]  }
 0x493   : > { %v4115_v3 = vshrl.u32 %v12131_v46, 16 }
 0x494   : > { %v3819_v10 = vsel %vm1048_vm2, %v3817_v28, %v3818_v48  ;;  %v3816_v14 = vsel %vm1048_vm2, %v3814_v55, %v3815_v50  ;;  %v3295_v48 = vld [vmem:[#allocation4 + $0xfc] sm:$0x1]  ;;  %v3820_v50 = vrot.slane %v12039_v9, 5  ;;  %v9658_v9 = vld [vmem:[#allocation4 + $0xf0] sm:$0x8] }
 0x498   : > { %3854 = vrot.lane.b32.xlu1 %v3799_v51, %s9851_s27  ;;  %v3291_v51 = vld [vmem:[#allocation4 + $0xbc] sm:$0x1] }
 0x499   : > { %v3757_v8 = vunpack.c.l.b16 %v3291_v51 }
 0x49a   : > { %3874 = vrot.lane.b32.xlu2 %v3814_v55, %s9851_s27  ;;  %3864 = vrot.lane.b32.xlu0 %v3807_v25, %s9851_s27  ;;  %v9622_v55 = vld [vmem:[#allocation4 + $0x30] sm:$0x8] }
 0x49b   : > { %v3773_v5 = vpack.c.b16 %v3757_v8, %v3757_v8  ;;  %v9801_v8 = vld [vmem:[#allocation4 + $0x30] sm:$0xf0]  }
 0x49c   : > { %v12107_v30 = vpop.permute.xlu2 %3712  ;;  %v9623_v2 = vor.u32 %v9801_v8, %v9622_v55 }
 0x49d   : > { %v3812_v6 = vrot.slane %v3773_v5, 5 }
 0x49f   : > { %v3813_v51 = vsel %vm1048_vm2, %v3811_v57, %v3812_v6  ;;  %v12137_v6 = vpop.permute.xlu0 %3702 }
 0x4a0   : > { %3860 = vrot.lane.b32.xlu1 %v3804_v33, %s9851_s27  ;;  %v3761_v33 = vunpack.c.l.b16 %v3295_v48 }
 0x4a2   : > { %3880 = vrot.lane.b32.xlu2 %v3819_v10, %s9851_s27  ;;  %3870 = vrot.lane.b32.xlu0 %v3811_v57, %s9851_s27  ;;  %v3294_v10 = vld [vmem:[#allocation4 + $0xec] sm:$0x1]  ;;  %v3777_v5 = vpack.c.b16 %v3761_v33, %v3761_v33  ;;  %v12135_v57 = vpop.permute.xlu1 %3698  ;;  %v9802_v33 = vld [vmem:[#allocation4 + $0x40] sm:$0xf0]  }
 0x4a3   : > { %15641 = vst [vmem:[#allocation107_spill] sm:$0xff] %v12135_v57 }
 0x4a4   : > { %v12116_v25 = vpop.permute.xlu2 %3718 }
 0x4a7   : > { %v12147_v27 = vpop.permute.xlu0 %3708 }
 0x4a8   : > { %3866 = vrot.lane.b32.xlu1 %v3808_v7, %s9851_s27  ;;  %v3987_v7 = vpack.c.b16 %v3940_v12, %v3940_v12  ;;  %15643 = vst [vmem:[#allocation85_spill] sm:$0xff] %v12147_v27 }
 0x4aa   : > { %3886 = vrot.lane.b32.xlu2 %v3823_v49, %s9851_s27  ;;  %3876 = vrot.lane.b32.xlu0 %v3816_v14, %s9851_s27  ;;  %v3760_v14 = vunpack.c.l.b16 %v3294_v10 }
 0x4ac   : > { %v12123_v13 = vpop.permute.xlu2 %3724  ;;  %v3776_v12 = vpack.c.b16 %v3760_v14, %v3760_v14  ;;  %v12152_v14 = vpop.permute.xlu1 %3704 }
 0x4ad   : > { %15640 = vst [vmem:[#allocation76_spill] sm:$0xff] %v12123_v13 }
 0x4ae   : > { %v3821_v10 = vrot.slane %v3776_v12, 5  ;;  %15645 = vst [vmem:[#allocation119_spill] sm:$0xff] %v12152_v14 }
 0x4b0   : > { %3872 = vrot.lane.b32.xlu1 %v3813_v51, %s9851_s27  ;;  %v3824_v51 = vrot.slane %v3777_v5, 5  ;;  %v3949_v5 = vunpack.c.h.b16 %v12143_v0 }
 0x4b2   : > { %4020 = vrot.lane.b32.xlu2 %v3987_v7, %s9852_s28  ;;  %3882 = vrot.lane.b32.xlu0 %v3820_v50, %s9851_s27  ;;  %v3825_v63 = vsel %vm1048_vm2, %v3823_v49, %v3824_v51  ;;  %v9203_v7 = vld [vmem:[#allocation4 + $0x20] sm:$0x8]  ;;  %v9207_v49 = vld [vmem:[#allocation4 + $0x10] sm:$0x8]  ;;  %v3993_v55 = vpack.c.b16 %v3949_v5, %v3949_v5  ;;  %v12157_v51 = vld [vmem:[#allocation4 + $0x64] sm:$0xff]  }
 0x4b3   : > { %v9204_v8 = vor.u32 %v11916_v36, %v9203_v7  ;;  %15646 = vst [vmem:[#allocation78_spill] sm:$0xff] %v12157_v51  ;;  %v9208_v5 = vor.u32 %v11898_v31, %v9207_v49  ;;  %v15650_v31 = vunpack.c.h.b16 %v11914_v17 }
 0x4b4   : > { %v12139_v48 = vpop.permute.xlu2 %3826 }
 0x4b5   : > { %15642 = vst [vmem:[#allocation47_spill] sm:$0xff] %v12139_v48  ;;  %v3989_v49 = vpack.c.b16 %v15650_v31, %v15650_v31  ;;  %v3955_v31 = vunpack.c.h.b16 %v12157_v51 }
 0x4b8   : > { %3878 = vrot.lane.b32.xlu1 %v3817_v28, %s9851_s27  ;;  %v3822_v28 = vsel %vm1048_vm2, %v3820_v50, %v3821_v10  ;;  %v3946_v50 = vunpack.c.h.b16 %v12131_v46  ;;  %v12166_v10 = vpop.permute.xlu1 %3710 }
 0x4ba   : > { %4026 = vrot.lane.b32.xlu2 %v9623_v2, %s9852_s28  ;;  %3888 = vrot.lane.b32.xlu0 %v3825_v63, %s9851_s27  ;;  %v9626_v2 = vld [vmem:[#allocation4 + $0x60] sm:$0x8]  ;;  %v9803_v63 = vld [vmem:[#allocation4 + $0x60] sm:$0xf0]   ;;  %v3991_v7 = vpack.c.b16 %v3946_v50, %v3946_v50 }
 0x4bb   : > { %v9627_v36 = vor.u32 %v9803_v63, %v9626_v2  ;;  %v9630_v2 = vld [vmem:[#allocation4 + $0x40] sm:$0x8] }
 0x4bc   : > { %v12149_v41 = vpop.permute.xlu2 %3832  ;;  %v9631_v43 = vor.u32 %v9802_v33, %v9630_v2 }
 0x4bd   : > { %15644 = vst [vmem:[#allocation94_spill] sm:$0xff] %v12149_v41  ;;  %v9806_v41 = vld [vmem:[#allocation4 + $0xa0] sm:$0xf0]  }
 0x4c0   : > { %3884 = vrot.lane.b32.xlu1 %v3822_v28, %s9851_s27  ;;  %v12170_v28 = vld [vmem:[#allocation4 + $0x74] sm:$0xff]   ;;  %v12182_v63 = vpop.permute.xlu1 %3716 }
 0x4c1   : > { %15648 = vst [vmem:[#allocation127_spill] sm:$0xff] %v12170_v28  ;;  %v3958_v52 = vunpack.c.h.b16 %v12170_v28 }
 0x4c2   : > { %4032 = vrot.lane.b32.xlu2 %v3993_v55, %s9852_s28  ;;  %4022 = vrot.lane.b32.xlu0 %v9204_v8, %s9852_s28  ;;  %v9211_v55 = vld [vmem:[#allocation4 + $0x50] sm:$0x8] }
 0x4c3   : > { %v3999_v50 = vpack.c.b16 %v3958_v52, %v3958_v52 }
 0x4c4   : > { %v12161_v12 = vpop.permute.xlu2 %3838  ;;  %v12163_v48 = vpop.permute.xlu0 %3714 }
 0x4c5   : > { %15647 = vst [vmem:[#allocation118_spill] sm:$0xff] %v12161_v12 }
 0x4c8   : > { %4018 = vrot.lane.b32.xlu1 %v9208_v5, %s9852_s28  ;;  %v9212_v5 = vor.u32 %v11958_v15, %v9211_v55  ;;  %v12196_v15 = vpop.permute.xlu1 %3722  ;;  %v12198_v55 = vld [vmem:[#allocation4 + $0xa4] sm:$0xff]  }
 0x4c9   : > { %15652 = vst [vmem:[#allocation59_spill] sm:$0xff] %v12198_v55 }
 0x4ca   : > { %4038 = vrot.lane.b32.xlu2 %v9627_v36, %s9852_s28  ;;  %4028 = vrot.lane.b32.xlu0 %v3991_v7, %s9852_s28  ;;  %v9634_v36 = vld [vmem:[#allocation4 + $0x90] sm:$0x8]  ;;  %v12186_v7 = vld [vmem:[#allocation4 + $0x94] sm:$0xff]  }
 0x4cc   : > { %v12174_v8 = vpop.permute.xlu2 %3844  ;;  %v12176_v57 = vpop.permute.xlu0 %3720 }
 0x4cd   : > { %15649 = vst [vmem:[#allocation120_spill] sm:$0xff] %v12174_v8  ;;  %v9805_v8 = vld [vmem:[#allocation4 + $0x90] sm:$0xf0]  }
 0x4ce   : > { %v9635_v52 = vor.u32 %v9805_v8, %v9634_v36  ;;  %v15655_v8 = vunpack.c.h.b16 %v11956_v35  ;;  %v9642_v36 = vld [vmem:[#allocation4 + $0x70] sm:$0x8] }
 0x4cf   : > { %v9643_v1 = vor.u32 %v9804_v37, %v9642_v36  ;;  %v3976_v36 = vunpack.c.h.b16 %v12228_v54 }
 0x4d0   : > { %4024 = vrot.lane.b32.xlu1 %v3989_v49, %s9852_s28  ;;  %v3997_v49 = vpack.c.b16 %v3955_v31, %v3955_v31  ;;  %v3995_v2 = vpack.c.b16 %v15655_v8, %v15655_v8  ;;  %v3964_v8 = vunpack.c.h.b16 %v12186_v7 }
 0x4d2   : > { %4044 = vrot.lane.b32.xlu2 %v3999_v50, %s9852_s28  ;;  %4034 = vrot.lane.b32.xlu0 %v9212_v5, %s9852_s28  ;;  %v12200_v50 = vld [vmem:[#allocation4 + $0x84] sm:$0xff]  }
 0x4d3   : > { %15653 = vst [vmem:[#allocation88_spill] sm:$0xff] %v12200_v50  ;;  %v9807_v5 = vld [vmem:[#allocation4 + $0x80] sm:$0xf0]  }
 0x4d4   : > { %v12190_v19 = vpop.permute.xlu2 %3850  ;;  %v12192_v53 = vpop.permute.xlu0 %3726  ;;  %v9639_v59 = vor.u32 %v9807_v5, %v9638_v21  ;;  %v4003_v5 = vpack.c.b16 %v3964_v8, %v3964_v8  ;;  %v4011_v8 = vpack.c.b16 %v3976_v36, %v3976_v36 }
 0x4d5   : > { %15651 = vst [vmem:[#allocation51_spill] sm:$0xff] %v12190_v19 }
 0x4d8   : > { %4030 = vrot.lane.b32.xlu1 %v9631_v43, %s9852_s28  ;;  %v3967_v43 = vunpack.c.h.b16 %v12198_v55 }
 0x4da   : > { %4050 = vrot.lane.b32.xlu2 %v9635_v52, %s9852_s28  ;;  %4040 = vrot.lane.b32.xlu0 %v3997_v49, %s9852_s28  ;;  %v4005_v31 = vpack.c.b16 %v3967_v43, %v3967_v43  ;;  %v9646_v52 = vld [vmem:[#allocation4 + $0xc0] sm:$0x8]  ;;  %v9808_v49 = vld [vmem:[#allocation4 + $0xc0] sm:$0xf0]  }
 0x4db   : > { %v9647_v21 = vor.u32 %v9808_v49, %v9646_v52  ;;  %v9654_v49 = vld [vmem:[#allocation4 + $0xa0] sm:$0x8] }
 0x4dc   : > { %v12204_v19 = vpop.permute.xlu2 %3856  ;;  %v12206_v33 = vpop.permute.xlu0 %3828  ;;  %v9655_v13 = vor.u32 %v9806_v41, %v9654_v49 }
 0x4dd   : > { %15654 = vst [vmem:[#allocation90_spill] sm:$0xff] %v12206_v33 }
 0x4e0   : > { %4036 = vrot.lane.b32.xlu1 %v3995_v2, %s9852_s28  ;;  %v3961_v2 = vunpack.c.h.b16 %v12200_v50 }
 0x4e2   : > { %v12213_v12 = vpop.permute.xlu1 %3728  ;;  %4056 = vrot.lane.b32.xlu2 %v4005_v31, %s9852_s28  ;;  %4046 = vrot.lane.b32.xlu0 %v9639_v59, %s9852_s28  ;;  %v9809_v31 = vld [vmem:[#allocation4 + $0xd0] sm:$0xf0]   ;;  %v4001_v52 = vpack.c.b16 %v3961_v2, %v3961_v2  ;;  %v3973_v2 = vunpack.c.h.b16 %v12215_v39 }
 0x4e3   : > { %v12230_v59 = vld [vmem:[#allocation4 + $0xb4] sm:$0xff]  }
 0x4e4   : > { %v12219_v33 = vpop.permute.xlu2 %3862  ;;  %v12221_v14 = vpop.permute.xlu0 %3834 }
 0x4e5   : > { %15657 = vst [vmem:[#allocation100_spill] sm:$0xff] %v12219_v33 }
 0x4e8   : > { %4042 = vrot.lane.b32.xlu1 %v9643_v1, %s9852_s28 }
 0x4ea   : > { %v12225_v43 = vpop.permute.xlu1 %3830  ;;  %4062 = vrot.lane.b32.xlu2 %v9647_v21, %s9852_s28  ;;  %4052 = vrot.lane.b32.xlu0 %v4003_v5, %s9852_s28  ;;  %v9811_v21 = vld [vmem:[#allocation4 + $0xf0] sm:$0xf0]  }
 0x4eb   : > { %15658 = vst [vmem:[#allocation130_spill] sm:$0xff] %v12225_v43  ;;  %v9651_v43 = vor.u32 %v9810_v44, %v9650_v11  ;;  %v9659_v11 = vor.u32 %v9811_v21, %v9658_v9  ;;  %v4009_v44 = vpack.c.b16 %v3973_v2, %v3973_v2  ;;  %v9666_v21 = vld [vmem:[#allocation4 + $0xd0] sm:$0x8] }
 0x4ec   : > { %v12234_v37 = vpop.permute.xlu2 %3868  ;;  %v12236_v1 = vpop.permute.xlu0 %3840 }
 0x4ed   : > { %15659 = vst [vmem:[#allocation132_spill] sm:$0xff] %v12234_v37  ;;  %v12255_v37 = vld [vmem:[#allocation4 + $0x104] sm:$0xff]  }
 0x4ee   : > { %15660 = vst [vmem:[#allocation50_spill] sm:$0xff] %v12236_v1 }
 0x4ef   : > { %15666 = vst [vmem:[#allocation113_spill] sm:$0xff] %v12255_v37 }
 0x4f0   : > { %4048 = vrot.lane.b32.xlu1 %v4001_v52, %s9852_s28  ;;  %v3970_v52 = vunpack.c.h.b16 %v12230_v59 }
 0x4f2   : > { %v12240_v4 = vpop.permute.xlu1 %3836  ;;  %4068 = vrot.lane.b32.xlu2 %v4011_v8, %s9852_s28  ;;  %4058 = vrot.lane.b32.xlu0 %v9651_v43, %s9852_s28  ;;  %v12257_v8 = vld [vmem:[#allocation4 + $0x100] sm:$0xf0]   ;;  %v9662_v43 = vld [vmem:[#allocation4 + $0xe0] sm:$0x8]  ;;  %v4007_v49 = vpack.c.b16 %v3970_v52, %v3970_v52  ;;  %v4117_v52 = vrot.slane %v4115_v3, 4  ;;  %v3979_v3 = vunpack.c.h.b16 %v12259_v26 }
 0x4f3   : > { %15661 = vst [vmem:[#allocation52_spill] sm:$0xff] %v12240_v4 }
 0x4f4   : > { %v12246_v5 = vpop.permute.xlu2 %3874  ;;  %v12248_v1 = vpop.permute.xlu0 %3846 }
 0x4f5   : > { %15663 = vst [vmem:[#allocation81_spill] sm:$0xff] %v12246_v5  ;;  %v9813_v5 = vld [vmem:[#allocation4 + $0xe0] sm:$0xf0]  }
 0x4f6   : > { %15664 = vst [vmem:[#allocation106_spill] sm:$0xff] %v12248_v1  ;;  %v4118_v1 = vshll.u32 %v12131_v46, 16 }
 0x4f8   : > { %4054 = vrot.lane.b32.xlu1 %v9655_v13, %s9852_s28  ;;  %v3985_v13 = vunpack.c.h.b16 %v12255_v37 }
 0x4fa   : > { %v12252_v36 = vpop.permute.xlu1 %3842  ;;  %4074 = vrot.lane.b32.xlu2 %v9659_v11, %s9852_s28  ;;  %4064 = vrot.lane.b32.xlu0 %v4009_v44, %s9852_s28  ;;  %v4017_v2 = vpack.c.b16 %v3985_v13, %v3985_v13  ;;  %v9667_v13 = vor.u32 %v9809_v31, %v9666_v21 }
 0x4fb   : > { %15665 = vst [vmem:[#allocation20_spill] sm:$0xff] %v12252_v36  ;;  %v9663_v36 = vor.u32 %v9813_v5, %v9662_v43  ;;  %v4099_v5 = vshrl.u32 %v11896_v18, 16  ;;  %v4102_v43 = vshll.u32 %v11896_v18, 16 }
 0x4fc   : > { %v12263_v41 = vpop.permute.xlu2 %3880  ;;  %v12265_v9 = vpop.permute.xlu0 %3852 }
 0x4fd   : > { %15668 = vst [vmem:[#allocation19_spill] sm:$0xff] %v12263_v41  ;;  %v4120_v41 = vrot.slane %v4118_v1, 5  ;;  %v4101_v31 = vrot.slane %v4099_v5, 4  ;;  %v4166_v5 = vshll.u32 %v12186_v7, 16 }
 0x4ff   : > { %v4168_v58 = vrot.slane %v4166_v5, 5 }
 0x500   : > { %4060 = vrot.lane.b32.xlu1 %v4007_v49, %s9852_s28  ;;  %v3982_v49 = vunpack.c.h.b16 %v12242_v16 }
 0x502   : > { %v12271_v27 = vpop.permute.xlu1 %3848  ;;  %4080 = vrot.lane.b32.xlu2 %v4017_v2, %s9852_s28  ;;  %4070 = vrot.lane.b32.xlu0 %v9663_v36, %s9852_s28  ;;  %v4015_v33 = vpack.c.b16 %v3982_v49, %v3982_v49  ;;  %v4139_v2 = vshrl.u32 %v12157_v51, 16  ;;  %v4142_v36 = vshll.u32 %v12157_v51, 16  ;;  %v4013_v49 = vpack.c.b16 %v3979_v3, %v3979_v3 }
 0x503   : > { %15669 = vst [vmem:[#allocation140_spill] sm:$0xff] %v12271_v27  ;;  %v4121_v27 = vor.u32 %v4120_v41, %v4117_v52  ;;  %v4104_v52 = vrot.slane %v4102_v43, 5  ;;  %v4123_v51 = vshrl.u32 %v12143_v0, 16 }
 0x504   : > { %v12275_v11 = vpop.permute.xlu2 %3886  ;;  %v12277_v44 = vpop.permute.xlu0 %3858  ;;  %v4144_v41 = vrot.slane %v4142_v36, 5 }
 0x505   : > { %15670 = vst [vmem:[#allocation8_spill] sm:$0xff] %v12275_v11  ;;  %v4125_v43 = vrot.slane %v4123_v51, 4  ;;  %v4190_v51 = vshll.u32 %v12215_v39, 16 }
 0x508   : > { %4066 = vrot.lane.b32.xlu1 %v9667_v13, %s9852_s28  ;;  %v4141_v13 = vrot.slane %v4139_v2, 4  ;;  %v4128_v2 = vrot.slane %v4126_v38, 5  ;;  %v4187_v38 = vshrl.u32 %v12215_v39, 16  ;;  %v4131_v39 = vshrl.u32 %v11956_v35, 16 }
 0x50a   : > { %v12285_v11 = vpop.permute.xlu1 %3854  ;;  %4230 = vrot.lane.b32.xlu2 %v4121_v27, %s9853_s29  ;;  %4076 = vrot.lane.b32.xlu0 %v4015_v33, %s9852_s28  ;;  %v4145_v29 = vor.u32 %v4144_v41, %v4141_v13  ;;  %v4105_v27 = vor.u32 %v4104_v52, %v4101_v31  ;;  %v4163_v33 = vshrl.u32 %v12186_v7, 16  ;;  %v9671_v31 = vor.u32 %v12257_v8, %v9670_v24 }
 0x50b   : > { %v4107_v13 = vshrl.u32 %v11914_v17, 16  ;;  %v4110_v41 = vshll.u32 %v11914_v17, 16  ;;  %v4129_v52 = vor.u32 %v4128_v2, %v4125_v43  ;;  %v4192_v2 = vrot.slane %v4190_v51, 5 }
 0x50c   : > { %v12290_v1 = vpop.permute.xlu2 %4020  ;;  %v12292_v21 = vpop.permute.xlu0 %3864 }
 0x50d   : > { %15671 = vst [vmem:[#allocation39_spill] sm:$0xff] %v12290_v1  ;;  %v4109_v5 = vrot.slane %v4107_v13, 4  ;;  %v4112_v24 = vrot.slane %v4110_v41, 5  ;;  %v4171_v13 = vshrl.u32 %v12198_v55, 16  ;;  %v4174_v41 = vshll.u32 %v12198_v55, 16 }
 0x50f   : > { %v4113_v4 = vor.u32 %v4112_v24, %v4109_v5 }
 0x510   : > { %4072 = vrot.lane.b32.xlu1 %v4013_v49, %s9852_s28  ;;  %v4165_v49 = vrot.slane %v4163_v33, 4 }
 0x512   : > { %v12299_v1 = vpop.permute.xlu1 %3860  ;;  %4236 = vrot.lane.b32.xlu2 %v4145_v29, %s9853_s29  ;;  %4226 = vrot.lane.b32.xlu0 %v4105_v27, %s9853_s29  ;;  %v4147_v29 = vshrl.u32 %v12170_v28, 16  ;;  %v4169_v27 = vor.u32 %v4168_v58, %v4165_v49  ;;  %v4189_v58 = vrot.slane %v4187_v38, 4  ;;  %v3344_v38 = vld [vmem:[#allocation4 + $0x1c] sm:$0x1] }
 0x513   : > { %v4274_v24 = vunpack.c.l.b16 %v3344_v38  ;;  %v4198_v38 = vshll.u32 %v12228_v54, 16 }
 0x514   : > { %v12303_v36 = vpop.permute.xlu2 %4026  ;;  %v12305_v3 = vpop.permute.xlu0 %3870  ;;  %v4149_v8 = vrot.slane %v4147_v29, 4 }
 0x515   : > { %15672 = vst [vmem:[#allocation7_spill] sm:$0xff] %v12303_v36  ;;  %v4150_v36 = vshll.u32 %v12170_v28, 16  ;;  %v4134_v28 = vshll.u32 %v11956_v35, 16 }
 0x517   : > { %v4152_v49 = vrot.slane %v4150_v36, 5  ;;  %v4133_v36 = vrot.slane %v4131_v39, 4  ;;  %v4136_v5 = vrot.slane %v4134_v28, 5  ;;  %v4290_v39 = vpack.c.b16 %v4274_v24, %v4274_v24  ;;  %v9215_v28 = vld [vmem:[#allocation4 + $0x80] sm:$0x8] }
 0x518   : > { %4078 = vrot.lane.b32.xlu1 %v9671_v31, %s9852_s28 }
 0x519   : > { %v4153_v29 = vor.u32 %v4152_v49, %v4149_v8  ;;  %v4137_v49 = vor.u32 %v4136_v5, %v4133_v36  ;;  %v4307_v24 = vrot.slane %v4290_v39, 5 }
 0x51a   : > { %v12315_v33 = vpop.permute.xlu1 %3866  ;;  %4242 = vrot.lane.b32.xlu2 %v4169_v27, %s9853_s29  ;;  %4232 = vrot.lane.b32.xlu0 %v4129_v52, %s9853_s29  ;;  %v4193_v52 = vor.u32 %v4192_v2, %v4189_v58  ;;  %v4211_v27 = vshrl.u32 %v12242_v16, 16  ;;  %v4176_v2 = vrot.slane %v4174_v41, 5 }
 0x51b   : > { %15673 = vst [vmem:[#allocation64_spill] sm:$0xff] %v12315_v33 }
 0x51c   : > { %v12319_v31 = vpop.permute.xlu2 %4032  ;;  %v12321_v43 = vpop.permute.xlu0 %3876  ;;  %v4213_v8 = vrot.slane %v4211_v27, 4 }
 0x51d   : > { %15674 = vst [vmem:[#allocation18_spill] sm:$0xff] %v12319_v31  ;;  %v4214_v31 = vshll.u32 %v12242_v16, 16  ;;  %v4155_v16 = vshrl.u32 %v12200_v50, 16 }
 0x51f   : > { %v4216_v58 = vrot.slane %v4214_v31, 5  ;;  %v4157_v27 = vrot.slane %v4155_v16, 4 }
 0x520   : > { %4228 = vrot.lane.b32.xlu1 %v4113_v4, %s9853_s29  ;;  %v4173_v4 = vrot.slane %v4171_v13, 4  ;;  %v4195_v13 = vshrl.u32 %v12228_v54, 16 }
 0x522   : > { %v12330_v51 = vpop.permute.xlu1 %3872  ;;  %4248 = vrot.lane.b32.xlu2 %v4193_v52, %s9853_s29  ;;  %4238 = vrot.lane.b32.xlu0 %v4153_v29, %s9853_s29  ;;  %v4217_v52 = vor.u32 %v4216_v58, %v4213_v8  ;;  %v4177_v29 = vor.u32 %v4176_v2, %v4173_v4  ;;  %v4306_v4 = vrot.slane %v11896_v18, 5  ;;  %v4200_v2 = vrot.slane %v4198_v38, 5  ;;  %v3418_v18 = vld [vmem:[#allocation4 + $0xac] sm:$0x1] }
 0x523   : > { %15675 = vst [vmem:[#allocation80_spill] sm:$0xff] %v12330_v51  ;;  %v4158_v51 = vshll.u32 %v12200_v50, 16  ;;  %v9216_v38 = vor.u32 %v12025_v45, %v9215_v28 }
 0x524   : > { %v12334_v33 = vpop.permute.xlu2 %4038  ;;  %v12336_v55 = vpop.permute.xlu0 %3882  ;;  %v4308_v39 = vsel %vm1048_vm2, %v4306_v4, %v4307_v24 }
 0x525   : > { %15676 = vst [vmem:[#allocation62_spill] sm:$0xff] %v12334_v33  ;;  %v15677_v33 = vunpack.c.h.b16 %v11971_v32  ;;  %v4160_v36 = vrot.slane %v4158_v51, 5 }
 0x527   : > { %v3535_v31 = vpack.c.b16 %v15677_v33, %v15677_v33  ;;  %v4197_v33 = vrot.slane %v4195_v13, 4  ;;  %v4161_v51 = vor.u32 %v4160_v36, %v4157_v27  ;;  %v4222_v13 = vshll.u32 %v12255_v37, 16 }
 0x528   : > { %4234 = vrot.lane.b32.xlu1 %v4137_v49, %s9853_s29  ;;  %v4179_v49 = vshrl.u32 %v12230_v59, 16 }
 0x529   : > { %v4980_v5 = vsel %vm2217_vm4, %v3535_v31, %v12166_v10  ;;  %v4224_v45 = vrot.slane %v4222_v13, 5 }
 0x52a   : > { %v12346_v41 = vpop.permute.xlu1 %3878  ;;  %4254 = vrot.lane.b32.xlu2 %v4217_v52, %s9853_s29  ;;  %4244 = vrot.lane.b32.xlu0 %v4177_v29, %s9853_s29  ;;  %v5053_v8 = vsel %vm2298_vm5, %v4980_v5, %v12265_v9  ;;  %v4182_v52 = vshll.u32 %v12230_v59, 16  ;;  %v4201_v9 = vor.u32 %v4200_v2, %v4197_v33  ;;  %v4219_v29 = vshrl.u32 %v12255_v37, 16  ;;  %v3347_v5 = vld [vmem:[#allocation4 + $0x4c] sm:$0x1] }
 0x52b   : > { %v4181_v27 = vrot.slane %v4179_v49, 4  ;;  %v4277_v28 = vunpack.c.l.b16 %v3347_v5  ;;  %v4318_v37 = vrot.slane %v11956_v35, 5 }
 0x52c   : > { %v4045_v32 = vpop.permute.xlu2 %4044  ;;  %v12355_v58 = vpop.permute.xlu0 %3888  ;;  %v4184_v36 = vrot.slane %v4182_v52, 5  ;;  %v4221_v2 = vrot.slane %v4219_v29, 4  ;;  %v4203_v52 = vshrl.u32 %v12259_v26, 16 }
 0x52d   : > { %v12358_v16 = vsel %vm2363_vm7, %v5053_v8, %v4045_v32  ;;  %v4988_v8 = vsel %vm2217_vm4, %v9216_v38, %v12163_v48 }
 0x52e   : > { %v5059_v24 = vsel %vm2298_vm5, %v4988_v8, %v12277_v44  ;;  %v4185_v49 = vor.u32 %v4184_v36, %v4181_v27  ;;  %v4225_v38 = vor.u32 %v4224_v45, %v4221_v2  ;;  %v4293_v44 = vpack.c.b16 %v4277_v28, %v4277_v28  ;;  %v9219_v27 = vld [vmem:[#allocation4 + $0xb0] sm:$0x8] }
 0x52f   : > { %v15679_v8 = vunpack.c.h.b16 %v11966_v56  ;;  %v4205_v5 = vrot.slane %v4203_v52, 4 }
 0x530   : > { %4240 = vrot.lane.b32.xlu1 %v4161_v51, %s9853_s29  ;;  %v4316_v45 = vrot.slane %v4293_v44, 5 }
 0x531   : > { %v3541_v29 = vpack.c.b16 %v15679_v8, %v15679_v8  ;;  %v3345_v8 = vld [vmem:[#allocation4 + $0x2c] sm:$0x1] }
 0x532   : > { %v12369_v31 = vpop.permute.xlu1 %3884  ;;  %4356 = vrot.lane.b32.xlu2 %v4308_v39, %s9854_s30  ;;  %4250 = vrot.lane.b32.xlu0 %v4201_v9, %s9853_s29  ;;  %v4206_v39 = vshll.u32 %v12259_v26, 16  ;;  %v4312_v9 = vrot.slane %v12131_v46, 5 }
 0x533   : > { %v4995_v36 = vsel %vm2217_vm4, %v3541_v29, %v12182_v63  ;;  %v9220_v29 = vor.u32 %v12021_v60, %v9219_v27 }
 0x534   : > { %v4051_v32 = vpop.permute.xlu2 %4050  ;;  %v12377_v33 = vpop.permute.xlu0 %4022  ;;  %v5065_v46 = vsel %vm2298_vm5, %v4995_v36, %v12292_v21 }
 0x535   : > { %v12380_v51 = vsel %vm2363_vm7, %v5059_v24, %v4051_v32  ;;  %v4208_v24 = vrot.slane %v4206_v39, 5  ;;  %v3346_v32 = vld [vmem:[#allocation4 + $0x3c] sm:$0x1]  ;;  %v15270_v39 = vrot.slane %v12143_v0, 5 }
 0x536   : > { %15678 = vst [vmem:[#allocation111_spill] sm:$0xff] %v12380_v51  ;;  %v4276_v28 = vunpack.c.l.b16 %v3346_v32  ;;  %v4275_v32 = vunpack.c.l.b16 %v3345_v8 }
 0x537   : > { %v4209_v52 = vor.u32 %v4208_v24, %v4205_v5  ;;  %v4317_v21 = vsel %vm1048_vm2, %v15270_v39, %v4316_v45  ;;  %v5003_v5 = vsel %vm2217_vm4, %v9220_v29, %v12176_v57  ;;  %v4330_v45 = vrot.slane %v12186_v7, 5  ;;  %v3352_v7 = vld [vmem:[#allocation4 + $0x9c] sm:$0x1] }
 0x538   : > { %4246 = vrot.lane.b32.xlu1 %v4185_v49, %s9853_s29  ;;  %v4292_v44 = vpack.c.b16 %v4276_v28, %v4276_v28  ;;  %v9223_v28 = vld [vmem:[#allocation4 + $0x70] sm:$0x8]  ;;  %v4282_v39 = vunpack.c.l.b16 %v3352_v7 }
 0x539   : > { %v9224_v26 = vor.u32 %v11997_v20, %v9223_v28 }
 0x53a   : > { %v12389_v13 = vpop.permute.xlu1 %4018  ;;  %4362 = vrot.lane.b32.xlu2 %v4312_v9, %s9854_s30  ;;  %4256 = vrot.lane.b32.xlu0 %v4225_v38, %s9853_s29  ;;  %v4309_v38 = vrot.slane %v11914_v17, 5  ;;  %v5071_v17 = vsel %vm2298_vm5, %v5003_v5, %v12305_v3  ;;  %v12432_v5 = vld [vmem:[#allocation4 + $0xa4] sm:$0xff]  }
 0x53b   : > { %15680 = vst [vmem:[#allocation32_spill] sm:$0xff] %v12389_v13 }
 0x53c   : > { %v4057_v2 = vpop.permute.xlu2 %4056  ;;  %v12397_v56 = vpop.permute.xlu0 %4028 }
 0x53d   : > { %v12400_v49 = vsel %vm2363_vm7, %v5065_v46, %v4057_v2  ;;  %v4313_v46 = vrot.slane %v4292_v44, 5  ;;  %v4291_v2 = vpack.c.b16 %v4275_v32, %v4275_v32  ;;  %v12434_v44 = vld [vmem:[#allocation4 + $0xa0] sm:$0xf0]   ;;  %v9227_v32 = vld [vmem:[#allocation4 + $0xe0] sm:$0x8] }
 0x53e   : > { %v9228_v13 = vor.u32 %v12041_v47, %v9227_v32 }
 0x53f   : > { %v4314_v29 = vsel %vm1048_vm2, %v4312_v9, %v4313_v46  ;;  %v12445_v46 = vld [vmem:[#allocation4 + $0x24] sm:$0xff]  }
 0x540   : > { %4252 = vrot.lane.b32.xlu1 %v4209_v52, %s9853_s29  ;;  %v15681_v52 = vunpack.c.h.b16 %v11985_v23 }
 0x542   : > { %v12409_v36 = vpop.permute.xlu1 %4024  ;;  %4368 = vrot.lane.b32.xlu2 %v4317_v21, %s9854_s30  ;;  %4358 = vrot.lane.b32.xlu0 %v4309_v38, %s9854_s30  ;;  %v3547_v8 = vpack.c.b16 %v15681_v52, %v15681_v52  ;;  %v4310_v21 = vrot.slane %v4291_v2, 5  ;;  %v12447_v2 = vld [vmem:[#allocation4 + $0x20] sm:$0xf0]  }
 0x544   : > { %v4063_v24 = vpop.permute.xlu2 %4062  ;;  %v12417_v60 = vpop.permute.xlu0 %4034  ;;  %v5010_v23 = vsel %vm2217_vm4, %v3547_v8, %v12196_v15  ;;  %v4311_v50 = vsel %vm1048_vm2, %v4309_v38, %v4310_v21  ;;  %v3348_v8 = vld [vmem:[#allocation4 + $0x5c] sm:$0x1]  ;;  %v5018_v21 = vsel %vm2217_vm4, %v9228_v13, %v12192_v53  ;;  %v9231_v13 = vld [vmem:[#allocation4 + $0x20] sm:$0x8] }
 0x545   : > { %v12420_v27 = vsel %vm2363_vm7, %v5071_v17, %v4063_v24  ;;  %v4492_v24 = vunpack.c.h.b16 %v12432_v5  ;;  %v4278_v38 = vunpack.c.l.b16 %v3348_v8  ;;  %v5083_v20 = vsel %vm2298_vm5, %v5018_v21, %v12336_v55 }
 0x546   : > { %v4627_v55 = vshrl.u32 %v12445_v46, 16  ;;  %v4691_v8 = vshrl.u32 %v12432_v5, 16 }
 0x548   : > { %4354 = vrot.lane.b32.xlu1 %v4306_v4, %s9854_s30  ;;  %v5077_v4 = vsel %vm2298_vm5, %v5010_v23, %v12321_v43  ;;  %v4468_v43 = vunpack.c.h.b16 %v12445_v46  ;;  %v4531_v23 = vpack.c.b16 %v4492_v24, %v4492_v24  ;;  %v4294_v24 = vpack.c.b16 %v4278_v38, %v4278_v38 }
 0x54a   : > { %v12429_v3 = vpop.permute.xlu1 %4030  ;;  %4386 = vrot.lane.b32.xlu2 %v4330_v45, %s9854_s30  ;;  %4364 = vrot.lane.b32.xlu0 %v4314_v29, %s9854_s30  ;;  %v4810_v29 = vunpack.c.l.b16 %v3418_v18 }
 0x54c   : > { %v4069_v17 = vpop.permute.xlu2 %4068  ;;  %v12442_v9 = vpop.permute.xlu0 %4040 }
 0x54d   : > { %v12450_v52 = vsel %vm2363_vm7, %v5077_v4, %v4069_v17  ;;  %v4826_v4 = vpack.c.b16 %v4810_v29, %v4810_v29  ;;  %v4298_v17 = vpack.c.b16 %v4282_v39, %v4282_v39  ;;  %v4858_v39 = vrot.slane %v12432_v5, 5 }
 0x54e   : > { %v4630_v29 = vshll.u32 %v12445_v46, 16 }
 0x54f   : > { %v4331_v7 = vrot.slane %v4298_v17, 5 }
 0x550   : > { %4360 = vrot.lane.b32.xlu1 %v4311_v50, %s9854_s30  ;;  %v4983_v50 = vsel %vm2217_vm4, %v9224_v26, %v12107_v30  ;;  %v4859_v26 = vrot.slane %v4826_v4, 5  ;;  %v15684_v4 = vunpack.c.h.b16 %v12055_v42 }
 0x551   : > { %v5055_v35 = vsel %vm2298_vm5, %v4983_v50, %v12285_v11  ;;  %v15682_v11 = vrot.slane %v12143_v0, 5  ;;  %v15683_v50 = vunpack.c.h.b16 %v12023_v40  ;;  %v4319_v40 = vrot.slane %v4294_v24, 5 }
 0x552   : > { %v12458_v51 = vpop.permute.xlu1 %4036  ;;  %4580 = vrot.lane.b32.xlu2 %v4531_v23, %s9855_s4  ;;  %4370 = vrot.lane.b32.xlu0 %v4318_v37, %s9854_s30  ;;  %v4694_v23 = vshll.u32 %v12432_v5, 16  ;;  %v3553_v17 = vpack.c.b16 %v15684_v4, %v15684_v4  ;;  %v4860_v0 = vsel %vm1048_vm2, %v4858_v39, %v4859_v26  ;;  %v4693_v4 = vrot.slane %v4691_v8, 4 }
 0x553   : > { %v3539_v21 = vpack.c.b16 %v15683_v50, %v15683_v50  ;;  %v15686_v8 = vunpack.c.h.b16 %v11910_v34 }
 0x554   : > { %v4075_v47 = vpop.permute.xlu2 %4074  ;;  %v4047_v28 = vpop.permute.xlu0 %4046  ;;  %v5025_v42 = vsel %vm2217_vm4, %v3553_v17, %v12213_v12  ;;  %v9232_v17 = vor.u32 %v11912_v22, %v9231_v13  ;;  %v9251_v22 = vld [vmem:[#allocation4 + $0x20] sm:$0x8] }
 0x555   : > { %v12472_v32 = vsel %vm2363_vm7, %v5083_v20, %v4075_v47  ;;  %v12475_v18 = vsel %vm2363_vm7, %v5055_v35, %v4047_v28  ;;  %v4332_v35 = vsel %vm1048_vm2, %v4330_v45, %v4331_v7  ;;  %v9235_v20 = vld [vmem:[#allocation4 + $0xa0] sm:$0x8]  ;;  %v4990_v47 = vsel %vm2217_vm4, %v3539_v21, %v12163_v48 }
 0x556   : > { %v4629_v28 = vrot.slane %v4627_v55, 4  ;;  %v5061_v26 = vsel %vm2298_vm5, %v4990_v47, %v12299_v1  ;;  %v5089_v45 = vsel %vm2298_vm5, %v5025_v42, %v12355_v58  ;;  %v15685_v21 = vunpack.c.h.b16 %v11995_v61  ;;  %v9239_v1 = vld [vmem:[#allocation4 + $0xa0] sm:$0x8]  ;;  %v9243_v58 = vld [vmem:[#allocation4 + $0x90] sm:$0x8] }
 0x557   : > { %v4958_v13 = vsel %vm2217_vm4, %v9232_v17, %v12137_v6  ;;  %v15690_v17 = vld [vmem:[#allocation22_spill] sm:$0xff] }
 0x558   : > { %4366 = vrot.lane.b32.xlu1 %v15682_v11, %s9854_s30  ;;  %v4632_v11 = vrot.slane %v4630_v29, 5  ;;  %v3537_v55 = vpack.c.b16 %v15685_v21, %v15685_v21  ;;  %v4320_v29 = vsel %vm1048_vm2, %v4318_v37, %v4319_v40 }
 0x55a   : > { %v12493_v38 = vpop.permute.xlu1 %4042  ;;  %4916 = vrot.lane.b32.xlu2 %v4860_v0, %s9857_s6  ;;  %4388 = vrot.lane.b32.xlu0 %v4332_v35, %s9854_s30  ;;  %v4696_v0 = vrot.slane %v4694_v23, 5  ;;  %v3527_v23 = vpack.c.b16 %v15686_v8, %v15686_v8  ;;  %v9247_v35 = vld [vmem:[#allocation4 + $0x50] sm:$0x8]  ;;  %v4985_v47 = vsel %vm2217_vm4, %v3537_v55, %v12107_v30  ;;  %v4633_v42 = vor.u32 %v4632_v11, %v4629_v28  ;;  %v15687_v30 = vld [vmem:[#allocation52_spill] sm:$0xff] }
 0x55b   : > { %v5057_v37 = vsel %vm2298_vm5, %v4985_v47, %v12204_v19  ;;  %v5035_v19 = vsel %vm2298_vm5, %v4958_v13, %v12221_v14  ;;  %v15688_v28 = vld [vmem:[#allocation7_spill] sm:$0xff]  ;;  %v9244_v8 = vor.u32 %v15690_v17, %v9243_v58  ;;  %v15691_v47 = vld [vmem:[#allocation10_spill] sm:$0xff]  ;;  %v15695_v58 = vld [vmem:[#allocation61_spill] sm:$0xff] }
 0x55c   : > { %v4081_v7 = vpop.permute.xlu2 %4080  ;;  %v4053_v50 = vpop.permute.xlu0 %4052  ;;  %v4697_v61 = vor.u32 %v4696_v0, %v4693_v4  ;;  %v4960_v34 = vsel %vm2217_vm4, %v3527_v23, %v12137_v6  ;;  %v5099_v11 = vsel %vm2363_vm7, %v5035_v19, %v15688_v28  ;;  %v15689_v6 = vld [vmem:[#allocation64_spill] sm:$0xff]  ;;  %v9255_v23 = vld [vmem:[#allocation4 + $0xd0] sm:$0x8] }
 0x55d   : > { %v12507_v24 = vsel %vm2363_vm7, %v5089_v45, %v4081_v7  ;;  %v12510_v48 = vsel %vm2363_vm7, %v5061_v26, %v4053_v50  ;;  %v9236_v26 = vor.u32 %v11993_v62, %v9235_v20  ;;  %v5037_v20 = vsel %vm2298_vm5, %v4960_v34, %v15687_v30  ;;  %v15694_v13 = vld [vmem:[#allocation59_spill] sm:$0xff]  ;;  %v15697_v30 = vld [vmem:[#allocation100_spill] sm:$0xff] }
 0x55e   : > { %v5101_v50 = vsel %vm2363_vm7, %v5037_v20, %v12397_v56  ;;  %v3353_v56 = vld [vmem:[#allocation4 + $0xac] sm:$0x1]  ;;  %v4333_v34 = vrot.slane %v15694_v13, 5 }
 0x55f   : > { %v4998_v62 = vsel %vm2217_vm4, %v9236_v26, %v12116_v25 }
 0x560   : > { %4372 = vrot.lane.b32.xlu1 %v4320_v29, %s9854_s30  ;;  %v5067_v7 = vsel %vm2298_vm5, %v4998_v62, %v15689_v6  ;;  %v9240_v29 = vor.u32 %v12434_v44, %v9239_v1  ;;  %v9252_v62 = vor.u32 %v12447_v2, %v9251_v22  ;;  %v12567_v44 = vld [vmem:[#allocation4 + $0xb4] sm:$0xff]   ;;  %v3419_v22 = vld [vmem:[#allocation4 + $0xbc] sm:$0x1] }
 0x561   : > { %v12569_v1 = vld [vmem:[#allocation4 + $0xb0] sm:$0xf0]  }
 0x562   : > { %v4049_v40 = vpop.permute.xlu1 %4048  ;;  %4754 = vrot.lane.b32.xlu2 %v4633_v42, %s9856_s5  ;;  %4770 = vrot.lane.b32.xlu0 %v4697_v61, %s9856_s5  ;;  %v9248_v42 = vor.u32 %v15691_v47, %v9247_v35  ;;  %v15692_v61 = vld [vmem:[#allocation9_spill] sm:$0xff]  ;;  %v15696_v35 = vunpack.c.h.b16 %v15695_v58 }
 0x563   : > { %v12532_v45 = vsel %vm2363_vm7, %v5057_v37, %v4049_v40  ;;  %v15693_v26 = vunpack.c.h.b16 %v15692_v61  ;;  %v4993_v40 = vsel %vm2217_vm4, %v9244_v8, %v12182_v63  ;;  %v15701_v8 = vld [vmem:[#allocation80_spill] sm:$0xff] }
 0x564   : > { %v4231_v4 = vpop.permute.xlu2 %4230  ;;  %v4059_v0 = vpop.permute.xlu0 %4058  ;;  %v3545_v19 = vpack.c.b16 %v15696_v35, %v15696_v35  ;;  %v5063_v20 = vsel %vm2298_vm5, %v4993_v40, %v15697_v30  ;;  %v4495_v40 = vunpack.c.h.b16 %v12567_v44  ;;  %v4811_v30 = vunpack.c.l.b16 %v3419_v22 }
 0x565   : > { %v12548_v21 = vsel %vm2428_vm6, %v5099_v11, %v4231_v4  ;;  %v12551_v55 = vsel %vm2428_vm6, %v5101_v50, %v4231_v4  ;;  %v12554_v14 = vsel %vm2363_vm7, %v5067_v7, %v4059_v0  ;;  %v3533_v37 = vpack.c.b16 %v15693_v26, %v15693_v26  ;;  %v15698_v11 = vld [vmem:[#allocation85_spill] sm:$0xff]  ;;  %v15699_v4 = vld [vmem:[#allocation106_spill] sm:$0xff] }
 0x566   : > { %v4973_v6 = vsel %vm2217_vm4, %v9248_v42, %v15698_v11  ;;  %v4283_v7 = vunpack.c.l.b16 %v3353_v56  ;;  %v5005_v50 = vsel %vm2217_vm4, %v3545_v19, %v12176_v57  ;;  %v15702_v42 = vld [vmem:[#allocation62_spill] sm:$0xff]  ;;  %v12600_v57 = vld [vmem:[#allocation4 + $0x34] sm:$0xff]   ;;  %v4834_v22 = vrot.slane %v12445_v46, 5 }
 0x567   : > { %v4975_v63 = vsel %vm2217_vm4, %v3533_v37, %v15698_v11  ;;  %v5047_v0 = vsel %vm2298_vm5, %v4973_v6, %v15699_v4  ;;  %v5073_v47 = vsel %vm2298_vm5, %v5005_v50, %v15701_v8  ;;  %v9259_v11 = vld [vmem:[#allocation4 + $0xc0] sm:$0x8]  ;;  %v3410_v6 = vld [vmem:[#allocation4 + $0x2c] sm:$0x1]  ;;  %v15705_v4 = vld [vmem:[#allocation36_spill] sm:$0xff]  ;;  %v4638_v46 = vshll.u32 %v12600_v57, 16 }
 0x568   : > { %4578 = vrot.lane.b32.xlu1 %v9240_v29, %s9855_s4  ;;  %v15700_v29 = vld [vmem:[#allocation140_spill] sm:$0xff]  ;;  %v5111_v61 = vsel %vm2363_vm7, %v5047_v0, %v15702_v42  ;;  %v9256_v0 = vor.u32 %v15705_v4, %v9255_v23  ;;  %v4827_v42 = vpack.c.b16 %v4811_v30, %v4811_v30  ;;  %v4861_v30 = vrot.slane %v12567_v44, 5 }
 0x569   : > { %v5049_v17 = vsel %vm2298_vm5, %v4975_v63, %v15700_v29  ;;  %v4471_v63 = vunpack.c.h.b16 %v12600_v57  ;;  %v4533_v29 = vpack.c.b16 %v4495_v40, %v4495_v40  ;;  %v4640_v13 = vrot.slane %v4638_v46, 5  ;;  %v9271_v46 = vld [vmem:[#allocation4 + $0x30] sm:$0x8] }
 0x56a   : > { %v4055_v28 = vpop.permute.xlu1 %4054  ;;  %4390 = vrot.lane.b32.xlu2 %v4333_v34, %s9854_s30  ;;  %4546 = vrot.lane.b32.xlu0 %v9252_v62, %s9855_s4  ;;  %v5113_v26 = vsel %vm2363_vm7, %v5049_v17, %v12442_v9  ;;  %v12602_v62 = vld [vmem:[#allocation4 + $0x30] sm:$0xf0]   ;;  %v15706_v17 = vld [vmem:[#allocation132_spill] sm:$0xff] }
 0x56b   : > { %v12584_v2 = vsel %vm2363_vm7, %v5063_v20, %v4055_v28  ;;  %v15703_v20 = vld [vmem:[#allocation21_spill] sm:$0xff] }
 0x56c   : > { %v4237_v37 = vpop.permute.xlu2 %4236  ;;  %v4065_v56 = vpop.permute.xlu0 %4064  ;;  %v15704_v28 = vunpack.c.h.b16 %v15703_v20  ;;  %v4862_v20 = vrot.slane %v4827_v42, 5 }
 0x56d   : > { %v12605_v58 = vsel %vm2428_vm6, %v5111_v61, %v4237_v37  ;;  %v12608_v35 = vsel %vm2428_vm6, %v5113_v26, %v4237_v37  ;;  %v5137_v19 = vsel %vm2363_vm7, %v5073_v47, %v4065_v56  ;;  %v4299_v61 = vpack.c.b16 %v4283_v7, %v4283_v7 }
 0x56e   : > { %v3543_v9 = vpack.c.b16 %v15704_v28, %v15704_v28  ;;  %v4515_v7 = vpack.c.b16 %v4468_v43, %v4468_v43  ;;  %v4699_v43 = vshrl.u32 %v12567_v44, 16  ;;  %v4863_v42 = vsel %vm1048_vm2, %v4861_v30, %v4862_v20 }
 0x56f   : > { %v4334_v28 = vrot.slane %v4299_v61, 5 }
 0x570   : > { %4914 = vrot.lane.b32.xlu1 %v4858_v39, %s9857_s6  ;;  %v5000_v50 = vsel %vm2217_vm4, %v3543_v9, %v12116_v25  ;;  %v4802_v39 = vunpack.c.l.b16 %v3410_v6  ;;  %v15707_v25 = vld [vmem:[#allocation76_spill] sm:$0xff]  ;;  %v15708_v9 = vld [vmem:[#allocation33_spill] sm:$0xff] }
 0x571   : > { %v5069_v8 = vsel %vm2298_vm5, %v5000_v50, %v15706_v17  ;;  %v5013_v23 = vsel %vm2217_vm4, %v9256_v0, %v15707_v25  ;;  %v9260_v6 = vor.u32 %v15708_v9, %v9259_v11  ;;  %v4702_v0 = vshll.u32 %v12567_v44, 16 }
 0x572   : > { %v4061_v47 = vpop.permute.xlu1 %4060  ;;  %4584 = vrot.lane.b32.xlu2 %v4533_v29, %s9855_s4  ;;  %4882 = vrot.lane.b32.xlu0 %v4834_v22, %s9857_s6  ;;  %v5079_v26 = vsel %vm2298_vm5, %v5013_v23, %v12346_v41  ;;  %v4818_v50 = vpack.c.b16 %v4802_v39, %v4802_v39  ;;  %v4635_v41 = vshrl.u32 %v12600_v57, 16  ;;  %v15709_v29 = vld [vmem:[#allocation40_spill] sm:$0xff] }
 0x573   : > { %v12626_v5 = vsel %vm2363_vm7, %v5069_v8, %v4061_v47  ;;  %v5008_v4 = vsel %vm2217_vm4, %v9260_v6, %v12196_v15  ;;  %v15710_v17 = vunpack.c.h.b16 %v15709_v29  ;;  %v15711_v47 = vld [vmem:[#allocation81_spill] sm:$0xff]  ;;  %v4335_v15 = vsel %vm1048_vm2, %v4333_v34, %v4334_v28  ;;  %v15712_v29 = vld [vmem:[#allocation6_spill] sm:$0xff] }
 0x574   : > { %v12633_v37 = vpop.permute.xlu2 %4242  ;;  %v4071_v56 = vpop.permute.xlu0 %4070  ;;  %v5075_v11 = vsel %vm2298_vm5, %v5008_v4, %v15711_v47  ;;  %v4835_v23 = vrot.slane %v4818_v50, 5  ;;  %v4701_v6 = vrot.slane %v4699_v43, 4  ;;  %v4704_v34 = vrot.slane %v4702_v0, 5 }
 0x575   : > { %v12639_v40 = vsel %vm2363_vm7, %v5079_v26, %v4071_v56  ;;  %v3551_v8 = vpack.c.b16 %v15710_v17, %v15710_v17  ;;  %v4637_v56 = vrot.slane %v4635_v41, 4  ;;  %v9263_v17 = vld [vmem:[#allocation4 + $0xb0] sm:$0x8] }
 0x576   : > { %v4705_v0 = vor.u32 %v4704_v34, %v4701_v6  ;;  %v9283_v6 = vld [vmem:[#allocation4 + $0x60] sm:$0x8]  ;;  %v15717_v34 = vld [vmem:[#allocation110_spill] sm:$0xff] }
 0x577   : > { %v5020_v26 = vsel %vm2217_vm4, %v3551_v8, %v12192_v53  ;;  %v15713_v53 = vunpack.c.h.b16 %v15712_v29  ;;  %v9267_v8 = vld [vmem:[#allocation4 + $0xf0] sm:$0x8]  ;;  %v4641_v43 = vor.u32 %v4640_v13, %v4637_v56  ;;  %v9264_v56 = vor.u32 %v12569_v1, %v9263_v17  ;;  %v15719_v1 = vld [vmem:[#allocation102_spill] sm:$0xff] }
 0x578   : > { %4548 = vrot.lane.b32.xlu1 %v4515_v7, %s9855_s4  ;;  %v5085_v7 = vsel %vm2298_vm5, %v5020_v26, %v12369_v31  ;;  %v4836_v31 = vsel %vm1048_vm2, %v4834_v22, %v4835_v23  ;;  %v15718_v29 = vunpack.c.h.b16 %v15717_v34 }
 0x579   : > { %v3549_v41 = vpack.c.b16 %v15713_v53, %v15713_v53 }
 0x57a   : > { %v4067_v61 = vpop.permute.xlu1 %4066  ;;  %4920 = vrot.lane.b32.xlu2 %v4863_v42, %s9857_s6  ;;  %4392 = vrot.lane.b32.xlu0 %v4335_v15, %s9854_s30  ;;  %v9275_v42 = vld [vmem:[#allocation4 + $0x30] sm:$0x8]  ;;  %v3529_v53 = vpack.c.b16 %v15718_v29, %v15718_v29  ;;  %v15726_v29 = vld [vmem:[#allocation18_spill] sm:$0xff] }
 0x57b   : > { %v12663_v39 = vsel %vm2363_vm7, %v5075_v11, %v4067_v61  ;;  %v9279_v61 = vld [vmem:[#allocation4 + $0x10] sm:$0x8] }
 0x57c   : > { %v4249_v20 = vpop.permute.xlu2 %4248  ;;  %v4077_v9 = vpop.permute.xlu0 %4076  ;;  %v9280_v17 = vor.u32 %v15719_v1, %v9279_v61 }
 0x57d   : > { %v12672_v28 = vsel %vm2428_vm6, %v12420_v27, %v4249_v20  ;;  %v12675_v4 = vsel %vm2428_vm6, %v5137_v19, %v4249_v20  ;;  %v5149_v50 = vsel %vm2363_vm7, %v5085_v7, %v4077_v9  ;;  %v5015_v27 = vsel %vm2217_vm4, %v3549_v41, %v15707_v25  ;;  %v15714_v19 = vld [vmem:[#allocation19_spill] sm:$0xff]  ;;  %v15715_v7 = vld [vmem:[#allocation42_spill] sm:$0xff]  ;;  %v15716_v9 = vld [vmem:[#allocation116_spill] sm:$0xff] }
 0x57e   : > { %v5081_v47 = vsel %vm2298_vm5, %v5015_v27, %v15714_v19  ;;  %v9268_v20 = vor.u32 %v15715_v7, %v9267_v8  ;;  %v9272_v13 = vor.u32 %v15716_v9, %v9271_v46  ;;  %v4336_v41 = vrot.slane %v12230_v59, 5  ;;  %v15720_v8 = vld [vmem:[#allocation8_spill] sm:$0xff]  ;;  %v15721_v19 = vld [vmem:[#allocation119_spill] sm:$0xff]  ;;  %v15724_v7 = vld [vmem:[#allocation118_spill] sm:$0xff] }
 0x57f   : > { %v15725_v9 = vld [vmem:[#allocation50_spill] sm:$0xff] }
 0x580   : > { %4884 = vrot.lane.b32.xlu1 %v4836_v31, %s9857_s6  ;;  %v3354_v31 = vld [vmem:[#allocation4 + $0xbc] sm:$0x1] }
 0x581   : > { %v4284_v34 = vunpack.c.l.b16 %v3354_v31 }
 0x582   : > { %v4073_v11 = vpop.permute.xlu1 %4072  ;;  %4756 = vrot.lane.b32.xlu2 %v4641_v43, %s9856_s5  ;;  %4772 = vrot.lane.b32.xlu0 %v4705_v0, %s9856_s5  ;;  %v12715_v43 = vld [vmem:[#allocation4 + $0xc4] sm:$0xff]  }
 0x583   : > { %v12689_v22 = vsel %vm2363_vm7, %v5081_v47, %v4073_v11  ;;  %v12717_v0 = vld [vmem:[#allocation4 + $0xc0] sm:$0xf0]   ;;  %v4963_v47 = vsel %vm2217_vm4, %v9272_v13, %v15721_v19  ;;  %v3420_v11 = vld [vmem:[#allocation4 + $0xcc] sm:$0x1] }
 0x584   : > { %v4255_v15 = vpop.permute.xlu2 %4254  ;;  %v12692_v23 = vpop.permute.xlu0 %4226 }
 0x585   : > { %v12696_v25 = vsel %vm2428_vm6, %v12472_v32, %v4255_v15  ;;  %v12699_v26 = vsel %vm2428_vm6, %v5149_v50, %v4255_v15  ;;  %v5023_v32 = vsel %vm2217_vm4, %v9268_v20, %v12213_v12  ;;  %v9276_v50 = vor.u32 %v12602_v62, %v9275_v42  ;;  %v15722_v42 = vld [vmem:[#allocation74_spill] sm:$0xff] }
 0x586   : > { %v5087_v46 = vsel %vm2298_vm5, %v5023_v32, %v15720_v8  ;;  %v4965_v12 = vsel %vm2217_vm4, %v3529_v53, %v15721_v19  ;;  %v15723_v61 = vunpack.c.h.b16 %v15722_v42  ;;  %v5039_v20 = vsel %vm2298_vm5, %v4963_v47, %v15724_v7 }
 0x587   : > { %v5041_v13 = vsel %vm2298_vm5, %v4965_v12, %v15725_v9  ;;  %v5103_v32 = vsel %vm2363_vm7, %v5039_v20, %v12429_v3  ;;  %v4498_v8 = vunpack.c.h.b16 %v12715_v43  ;;  %v4812_v47 = vunpack.c.l.b16 %v3420_v11  ;;  %v15727_v12 = vld [vmem:[#allocation77_spill] sm:$0xff] }
 0x588   : > { %4582 = vrot.lane.b32.xlu1 %v9264_v56, %s9855_s4  ;;  %v3525_v15 = vpack.c.b16 %v15723_v61, %v15723_v61  ;;  %v9287_v56 = vld [vmem:[#allocation4 + $0x40] sm:$0x8]  ;;  %v5105_v53 = vsel %vm2363_vm7, %v5041_v13, %v15726_v29  ;;  %v4953_v42 = vsel %vm2217_vm4, %v9280_v17, %v15727_v12  ;;  %v4837_v20 = vrot.slane %v12600_v57, 5  ;;  %v3411_v13 = vld [vmem:[#allocation4 + $0x3c] sm:$0x1] }
 0x589   : > { %v15728_v61 = vld [vmem:[#allocation5_spill] sm:$0xff]  ;;  %v4300_v9 = vpack.c.b16 %v4284_v34, %v4284_v34 }
 0x58a   : > { %v4079_v27 = vpop.permute.xlu1 %4078  ;;  %4394 = vrot.lane.b32.xlu2 %v4336_v41, %s9854_s30  ;;  %4550 = vrot.lane.b32.xlu0 %v9276_v50, %s9855_s4  ;;  %v4955_v3 = vsel %vm2217_vm4, %v3525_v15, %v15727_v12  ;;  %v9284_v7 = vor.u32 %v15728_v61, %v9283_v6  ;;  %v4828_v15 = vpack.c.b16 %v4812_v47, %v4812_v47  ;;  %v15732_v61 = vld [vmem:[#allocation11_spill] sm:$0xff] }
 0x58b   : > { %v12727_v62 = vsel %vm2363_vm7, %v5087_v46, %v4079_v27  ;;  %v12744_v46 = vld [vmem:[#allocation4 + $0x44] sm:$0xff]  }
 0x58c   : > { %v12741_v50 = vpop.permute.xlu2 %4356  ;;  %v4233_v1 = vpop.permute.xlu0 %4232  ;;  %v12746_v27 = vld [vmem:[#allocation4 + $0x40] sm:$0xf0]   ;;  %v4474_v29 = vunpack.c.h.b16 %v12744_v46  ;;  %v4978_v34 = vsel %vm2217_vm4, %v9284_v7, %v12166_v10 }
 0x58d   : > { %v12749_v19 = vsel %vm2428_vm6, %v5103_v32, %v4233_v1  ;;  %v12752_v31 = vsel %vm2428_vm6, %v5105_v53, %v4233_v1  ;;  %v15729_v53 = vld [vmem:[#allocation94_spill] sm:$0xff]  ;;  %v4535_v1 = vpack.c.b16 %v4498_v8, %v4498_v8  ;;  %v4803_v8 = vunpack.c.l.b16 %v3411_v13 }
 0x58e   : > { %v5033_v11 = vsel %vm2298_vm5, %v4955_v3, %v15729_v53  ;;  %v15730_v32 = vld [vmem:[#allocation130_spill] sm:$0xff]  ;;  %v15734_v53 = vld [vmem:[#allocation51_spill] sm:$0xff]  ;;  %v4864_v13 = vrot.slane %v12715_v43, 5 }
 0x58f   : > { %v5031_v17 = vsel %vm2298_vm5, %v4953_v42, %v15730_v32  ;;  %v5097_v44 = vsel %vm2363_vm7, %v5033_v11, %v12409_v36  ;;  %v15733_v36 = vunpack.c.h.b16 %v15732_v61  ;;  %v5051_v10 = vsel %vm2298_vm5, %v4978_v34, %v15734_v53  ;;  %v15735_v34 = vld [vmem:[#allocation48_spill] sm:$0xff] }
 0x590   : > { %4918 = vrot.lane.b32.xlu1 %v4861_v30, %s9857_s6  ;;  %v5095_v6 = vsel %vm2363_vm7, %v5031_v17, %v12377_v33  ;;  %v15731_v33 = vld [vmem:[#allocation12_spill] sm:$0xff]  ;;  %v5115_v7 = vsel %vm2363_vm7, %v5051_v10, %v12493_v38  ;;  %v4517_v17 = vpack.c.b16 %v4471_v63, %v4471_v63  ;;  %v4865_v38 = vrot.slane %v4828_v15, 5 }
 0x591   : > { %v9288_v42 = vor.u32 %v15731_v33, %v9287_v56  ;;  %v3531_v47 = vpack.c.b16 %v15733_v36, %v15733_v36  ;;  %v15736_v33 = vld [vmem:[#allocation120_spill] sm:$0xff]  ;;  %v4707_v15 = vshrl.u32 %v12715_v43, 16 }
 0x592   : > { %v4229_v30 = vpop.permute.xlu1 %4228  ;;  %4588 = vrot.lane.b32.xlu2 %v4535_v1, %s9855_s4  ;;  %4886 = vrot.lane.b32.xlu0 %v4837_v20, %s9857_s6  ;;  %v4337_v1 = vrot.slane %v4300_v9, 5  ;;  %v4646_v9 = vshll.u32 %v12744_v46, 16  ;;  %v15737_v36 = vld [vmem:[#allocation20_spill] sm:$0xff]  ;;  %v4866_v53 = vsel %vm1048_vm2, %v4864_v13, %v4865_v38 }
 0x593   : > { %v12776_v12 = vsel %vm2428_vm6, %v5095_v6, %v4229_v30  ;;  %v12779_v3 = vsel %vm2428_vm6, %v5097_v44, %v4229_v30  ;;  %v4819_v30 = vpack.c.b16 %v4803_v8, %v4803_v8  ;;  %v4968_v57 = vsel %vm2217_vm4, %v9288_v42, %v15735_v34 }
 0x594   : > { %v4363_v11 = vpop.permute.xlu2 %4362  ;;  %v4239_v32 = vpop.permute.xlu0 %4238  ;;  %v4970_v63 = vsel %vm2217_vm4, %v3531_v47, %v15735_v34  ;;  %v4710_v8 = vshll.u32 %v12715_v43, 16  ;;  %v4648_v38 = vrot.slane %v4646_v9, 5 }
 0x595   : > { %v12796_v56 = vsel %vm2477_vm9, %v12548_v21, %v4363_v11  ;;  %v12799_v6 = vsel %vm2428_vm6, %v5115_v7, %v4239_v32  ;;  %v12803_v44 = vsel %vm2428_vm6, %v12358_v16, %v4239_v32  ;;  %v4643_v21 = vshrl.u32 %v12744_v46, 16 }
 0x596   : > { %v5045_v61 = vsel %vm2298_vm5, %v4970_v63, %v15736_v33  ;;  %v5043_v16 = vsel %vm2298_vm5, %v4968_v57, %v15737_v36  ;;  %v4338_v7 = vsel %vm1048_vm2, %v4336_v41, %v4337_v1  ;;  %v4709_v57 = vrot.slane %v4707_v15, 4  ;;  %v9291_v33 = vld [vmem:[#allocation4 + $0xc0] sm:$0x8] }
 0x597   : > { %v5107_v42 = vsel %vm2363_vm7, %v5043_v16, %v12417_v60  ;;  %v5109_v47 = vsel %vm2363_vm7, %v5045_v61, %v12458_v51  ;;  %v4838_v51 = vrot.slane %v4819_v30, 5  ;;  %v4645_v34 = vrot.slane %v4643_v21, 4  ;;  %v9295_v36 = vld [vmem:[#allocation4 + $0x40] sm:$0x8] }
 0x598   : > { %4552 = vrot.lane.b32.xlu1 %v4517_v17, %s9855_s4  ;;  %v4712_v63 = vrot.slane %v4710_v8, 5  ;;  %v15740_v8 = vld [vmem:[#allocation31_spill] sm:$0xff] }
 0x599   : > { %v4839_v30 = vsel %vm1048_vm2, %v4837_v20, %v4838_v51  ;;  %v4649_v21 = vor.u32 %v4648_v38, %v4645_v34  ;;  %v12891_v34 = vld [vmem:[#allocation4 + $0x54] sm:$0xff]  }
 0x59a   : > { %v4235_v10 = vpop.permute.xlu1 %4234  ;;  %4924 = vrot.lane.b32.xlu2 %v4866_v53, %s9857_s6  ;;  %4396 = vrot.lane.b32.xlu0 %v4338_v7, %s9854_s30  ;;  %v4713_v9 = vor.u32 %v4712_v63, %v4709_v57  ;;  %v12874_v53 = vld [vmem:[#allocation4 + $0xd4] sm:$0xff]   ;;  %v3355_v7 = vld [vmem:[#allocation4 + $0xcc] sm:$0x1] }
 0x59b   : > { %v12830_v11 = vsel %vm2428_vm6, %v5107_v42, %v4235_v10  ;;  %v12833_v32 = vsel %vm2428_vm6, %v5109_v47, %v4235_v10  ;;  %v9296_v42 = vor.u32 %v12746_v27, %v9295_v36  ;;  %v12876_v10 = vld [vmem:[#allocation4 + $0xd0] sm:$0xf0]   ;;  %v3412_v63 = vld [vmem:[#allocation4 + $0x4c] sm:$0x1] }
 0x59c   : > { %v4369_v60 = vpop.permute.xlu2 %4368  ;;  %v4245_v17 = vpop.permute.xlu0 %4244  ;;  %v12893_v38 = vld [vmem:[#allocation4 + $0x50] sm:$0xf0]   ;;  %v4804_v43 = vunpack.c.l.b16 %v3412_v63 }
 0x59d   : > { %v12838_v59 = vsel %vm2477_vm9, %v12752_v31, %v4369_v60  ;;  %v12842_v41 = vsel %vm2428_vm6, %v12584_v2, %v4245_v17  ;;  %v12846_v1 = vsel %vm2428_vm6, %v12400_v49, %v4245_v17  ;;  %v4501_v60 = vunpack.c.h.b16 %v12874_v53 }
 0x59e   : > { %v4285_v17 = vunpack.c.l.b16 %v3355_v7  ;;  %v4651_v7 = vshrl.u32 %v12891_v34, 16 }
 0x5a0   : > { %4888 = vrot.lane.b32.xlu1 %v4839_v30, %s9857_s6  ;;  %v4477_v30 = vunpack.c.h.b16 %v12891_v34  ;;  %v4301_v36 = vpack.c.b16 %v4285_v17, %v4285_v17  ;;  %v8892_v17 = vld [vmem:[%s11221_s11 + $0x44] sm:$0xf] }
 0x5a1   : > { %v5699_v63 = vunpack.c.l.b16 %v8892_v17 }
 0x5a2   : > { %v4241_v61 = vpop.permute.xlu1 %4240  ;;  %4758 = vrot.lane.b32.xlu2 %v4649_v21, %s9856_s5  ;;  %4774 = vrot.lane.b32.xlu0 %v4713_v9, %s9856_s5  ;;  %v4840_v21 = vrot.slane %v12744_v46, 5  ;;  %v4718_v46 = vshll.u32 %v12874_v53, 16 }
 0x5a3   : > { %v12853_v31 = vsel %vm2428_vm6, %v12475_v18, %v4241_v61  ;;  %v12857_v2 = vsel %vm2428_vm6, %v12532_v45, %v4241_v61  ;;  %v9292_v18 = vor.u32 %v12717_v0, %v9291_v33  ;;  %v4339_v45 = vrot.slane %v15740_v8, 5  ;;  %v3421_v0 = vld [vmem:[#allocation4 + $0xdc] sm:$0x1] }
 0x5a4   : > { %15738 = vst [vmem:[#allocation92_spill] sm:$0xff] %v12853_v31  ;;  %v12860_v49 = vpop.permute.xlu2 %4386  ;;  %v4251_v20 = vpop.permute.xlu0 %4250  ;;  %v4813_v57 = vunpack.c.l.b16 %v3421_v0  ;;  %v4537_v33 = vpack.c.b16 %v4501_v60, %v4501_v60  ;;  %v4654_v0 = vshll.u32 %v12891_v34, 16 }
 0x5a5   : > { %15739 = vst [vmem:[#allocation122_spill] sm:$0xff] %v12857_v2  ;;  %v12864_v16 = vsel %vm2428_vm6, %v12663_v39, %v4251_v20  ;;  %v12868_v15 = vsel %vm2428_vm6, %v12450_v52, %v4251_v20 }
 0x5a6   : > { %v4829_v61 = vpack.c.b16 %v4813_v57, %v4813_v57 }
 0x5a8   : > { %4586 = vrot.lane.b32.xlu1 %v9292_v18, %s9855_s4  ;;  %v4519_v18 = vpack.c.b16 %v4474_v29, %v4474_v29 }
 0x5aa   : > { %v4247_v47 = vpop.permute.xlu1 %4246  ;;  %4398 = vrot.lane.b32.xlu2 %v4339_v45, %s9854_s30  ;;  %4554 = vrot.lane.b32.xlu0 %v9296_v42, %s9855_s4  ;;  %v4868_v42 = vrot.slane %v4829_v61, 5 }
 0x5ab   : > { %v12881_v52 = vsel %vm2428_vm6, %v12554_v14, %v4247_v47  ;;  %v12885_v39 = vsel %vm2428_vm6, %v12626_v5, %v4247_v47  ;;  %v4820_v47 = vpack.c.b16 %v4804_v43, %v4804_v43 }
 0x5ac   : > { %v12888_v27 = vpop.permute.xlu2 %4580  ;;  %v4257_v51 = vpop.permute.xlu0 %4256 }
 0x5ad   : > { %v12897_v14 = vsel %vm2428_vm6, %v12727_v62, %v4257_v51  ;;  %v12901_v5 = vsel %vm2428_vm6, %v12507_v24, %v4257_v51  ;;  %v4715_v51 = vshrl.u32 %v12874_v53, 16  ;;  %v4841_v57 = vrot.slane %v4820_v47, 5  ;;  %v9002_v47 = vld [vmem:[%s11221_s11 + $0x3c] sm:$0xff] }
 0x5af   : > { %v4717_v43 = vrot.slane %v4715_v51, 4  ;;  %v9303_v51 = vld [vmem:[#allocation4 + $0x50] sm:$0x8] }
 0x5b0   : > { %4922 = vrot.lane.b32.xlu1 %v4864_v13, %s9857_s6 }
 0x5b2   : > { %v4253_v9 = vpop.permute.xlu1 %4252  ;;  %4592 = vrot.lane.b32.xlu2 %v4537_v33, %s9855_s4  ;;  %4890 = vrot.lane.b32.xlu0 %v4840_v21, %s9857_s6  ;;  %v4653_v33 = vrot.slane %v4651_v7, 4 }
 0x5b3   : > { %v12911_v24 = vsel %vm2428_vm6, %v12639_v40, %v4253_v9  ;;  %v12915_v62 = vsel %vm2428_vm6, %v12689_v22, %v4253_v9  ;;  %v4867_v40 = vrot.slane %v12874_v53, 5  ;;  %v4340_v22 = vrot.slane %v4301_v36, 5 }
 0x5b4   : > { %v12918_v13 = vpop.permute.xlu2 %4916  ;;  %v4359_v20 = vpop.permute.xlu0 %4358  ;;  %v4656_v36 = vrot.slane %v4654_v0, 5 }
 0x5b5   : > { %v12925_v8 = vsel %vm2477_vm9, %v12776_v12, %v4359_v20  ;;  %v4869_v29 = vsel %vm1048_vm2, %v4867_v40, %v4868_v42  ;;  %v4341_v60 = vsel %vm1048_vm2, %v4339_v45, %v4340_v22  ;;  %v4720_v20 = vrot.slane %v4718_v46, 5  ;;  %v9299_v22 = vld [vmem:[#allocation4 + $0xd0] sm:$0x8] }
 0x5b6   : > { %v4842_v45 = vsel %vm1048_vm2, %v4840_v21, %v4841_v57  ;;  %v4657_v7 = vor.u32 %v4656_v36, %v4653_v33  ;;  %v9001_v21 = vld [vmem:[%s11221_s11 + $0x34] sm:$0xff]  ;;  %v4342_v33 = vrot.slane %v12228_v54, 5  ;;  %v8999_v54 = vld [vmem:[%s11221_s11 + $0x24] sm:$0xff] }
 0x5b8   : > { %4556 = vrot.lane.b32.xlu1 %v4519_v18, %s9855_s4  ;;  %v5704_v18 = vpack.c.b16 %v5699_v63, %v5699_v63  ;;  %v9300_v63 = vor.u32 %v12876_v10, %v9299_v22  ;;  %v3422_v10 = vld [vmem:[#allocation4 + $0xec] sm:$0x1] }
 0x5ba   : > { %v12936_v12 = vpop.permute.xlu1 %4354  ;;  %4928 = vrot.lane.b32.xlu2 %v4869_v29, %s9857_s6  ;;  %4400 = vrot.lane.b32.xlu0 %v4341_v60, %s9854_s30  ;;  %v5758_v29 = vsel %vm3038_vm3, %v5704_v18, 0  ;;  %v4721_v60 = vor.u32 %v4720_v20, %v4717_v43  ;;  %v12970_v43 = vld [vmem:[#allocation4 + $0xe4] sm:$0xff]   ;;  %v3356_v18 = vld [vmem:[#allocation4 + $0xdc] sm:$0x1] }
 0x5bb   : > { %9012 = vmatpush.bf16.msra.mxu3 %v5758_v29  ;;  %5763 = vmatpush.bf16.msra.mxu1 %v5758_v29  ;;  %v12972_v20 = vld [vmem:[#allocation4 + $0xe0] sm:$0xf0]   ;;  %v4504_v22 = vunpack.c.h.b16 %v12970_v43 }
 0x5bc   : > { %v12942_v9 = vpop.permute.xlu2 %4754  ;;  %v4365_v61 = vpop.permute.xlu0 %4364  ;;  %v12984_v29 = vld [vmem:[#allocation4 + $0x64] sm:$0xff]  }
 0x5bd   : > { %v12946_v42 = vsel %vm2477_vm9, %v12551_v55, %v4365_v61  ;;  %v9304_v61 = vor.u32 %v12893_v38, %v9303_v51  ;;  %v4539_v51 = vpack.c.b16 %v4504_v22, %v4504_v22  ;;  %v15276_v22 = vrot.slane %v12970_v43, 5 }
 0x5bf   : > { %9013 = vmatpush.bf16.msra.mxu3 %v9002_v47  ;;  %5764 = vmatpush.bf16.msra.mxu1 %v9002_v47  ;;  %v12986_v47 = vld [vmem:[#allocation4 + $0x60] sm:$0xf0]  }
 0x5c0   : > { %4892 = vrot.lane.b32.xlu1 %v4842_v45, %s9857_s6 }
 0x5c2   : > { %v4361_v0 = vpop.permute.xlu1 %4360  ;;  %4760 = vrot.lane.b32.xlu2 %v4657_v7, %s9856_s5  ;;  %4776 = vrot.lane.b32.xlu0 %v4721_v60, %s9856_s5  ;;  %v4814_v7 = vunpack.c.l.b16 %v3422_v10  ;;  %v4286_v60 = vunpack.c.l.b16 %v3356_v18  ;;  %v4521_v18 = vpack.c.b16 %v4477_v30, %v4477_v30  ;;  %v4726_v30 = vshll.u32 %v12970_v43, 16 }
 0x5c3   : > { %v12955_v55 = vsel %vm2477_vm9, %v12779_v3, %v4361_v0  ;;  %9014 = vmatpush.bf16.msra.mxu3 %v9001_v21  ;;  %v9000_v3 = vld [vmem:[%s11221_s11 + $0x2c] sm:$0xff]  ;;  %5765 = vmatpush.bf16.msra.mxu1 %v9001_v21  ;;  %v4843_v21 = vrot.slane %v12891_v34, 5  ;;  %v4723_v34 = vshrl.u32 %v12970_v43, 16 }
 0x5c4   : > { %v12959_v46 = vpop.permute.xlu2 %4390  ;;  %v4371_v17 = vpop.permute.xlu0 %4370  ;;  %v4728_v31 = vrot.slane %v4726_v30, 5 }
 0x5c5   : > { %v12963_v57 = vsel %vm2477_vm9, %v12830_v11, %v4371_v17 }
 0x5c7   : > { %9015 = vmatpush.bf16.msra.mxu3 %v9000_v3  ;;  %5766 = vmatpush.bf16.msra.mxu1 %v9000_v3 }
 0x5c8   : > { %4590 = vrot.lane.b32.xlu1 %v9300_v63, %s9855_s4  ;;  %v4830_v63 = vpack.c.b16 %v4814_v7, %v4814_v7 }
 0x5ca   : > { %v4367_v36 = vpop.permute.xlu1 %4366  ;;  %4402 = vrot.lane.b32.xlu2 %v4342_v33, %s9854_s30  ;;  %4558 = vrot.lane.b32.xlu0 %v9304_v61, %s9855_s4  ;;  %v4302_v61 = vpack.c.b16 %v4286_v60, %v4286_v60  ;;  %v9307_v60 = vld [vmem:[#allocation4] sm:$0x8] }
 0x5cb   : > { %v12977_v11 = vsel %vm2477_vm9, %v12749_v19, %v4367_v36  ;;  %v3413_v19 = vld [vmem:[#allocation4 + $0x5c] sm:$0x1]  ;;  %9016 = vmatpush.bf16.msra.mxu3 %v8999_v54  ;;  %5767 = vmatpush.bf16.msra.mxu1 %v8999_v54 }
 0x5cc   : > { %v12981_v45 = vpop.permute.xlu2 %4584  ;;  %v4389_v38 = vpop.permute.xlu0 %4388  ;;  %v4805_v53 = vunpack.c.l.b16 %v3413_v19  ;;  %v4343_v7 = vrot.slane %v4302_v61, 5  ;;  %v4659_v19 = vshrl.u32 %v12984_v29, 16 }
 0x5d0   : > { %4926 = vrot.lane.b32.xlu1 %v4867_v40, %s9857_s6  ;;  %v5180_v40 = vsel %vm2428_vm6, %v12510_v48, %v12633_v37  ;;  %v4662_v48 = vshll.u32 %v12984_v29, 16 }
 0x5d1   : > { %v5237_v54 = vsel %vm2477_vm9, %v5180_v40, %v4389_v38 }
 0x5d2   : > { %v4373_v17 = vpop.permute.xlu1 %4372  ;;  %4596 = vrot.lane.b32.xlu2 %v4539_v51, %s9855_s4  ;;  %4894 = vrot.lane.b32.xlu0 %v4843_v21, %s9857_s6  ;;  %v4821_v51 = vpack.c.b16 %v4805_v53, %v4805_v53  ;;  %v4344_v53 = vsel %vm1048_vm2, %v4342_v33, %v4343_v7  ;;  %v15742_v33 = vld [vmem:[#allocation68_spill] sm:$0xff] }
 0x5d3   : > { %v12996_v3 = vsel %vm2477_vm9, %v12833_v32, %v4373_v17  ;;  %v4871_v32 = vrot.slane %v4830_v63, 5  ;;  %v5301_v17 = vsel %vm2542_vm8, %v5237_v54, %v12888_v27  ;;  %v4664_v27 = vrot.slane %v4662_v48, 5  ;;  %v15741_v54 = vld [vmem:[#allocation111_spill] sm:$0xff]  ;;  %v9311_v48 = vld [vmem:[#allocation4 + $0xe0] sm:$0x8] }
 0x5d4   : > { %v13002_v36 = vpop.permute.xlu2 %4920  ;;  %v4771_v10 = vpop.permute.xlu0 %4770  ;;  %v4844_v40 = vrot.slane %v4821_v51, 5  ;;  %v5179_v0 = vsel %vm2428_vm6, %v15741_v54, %v12633_v37  ;;  %v9308_v7 = vor.u32 %v15742_v33, %v9307_v60  ;;  %v15743_v54 = vld [vmem:[#allocation107_spill] sm:$0xff]  ;;  %v9315_v33 = vld [vmem:[#allocation4 + $0x60] sm:$0x8] }
 0x5d5   : > { %v5356_v38 = vsel %vm2607_vm11, %v5301_v17, %v4771_v10  ;;  %v4872_v63 = vsel %vm1048_vm2, %v15276_v22, %v4871_v32  ;;  %v4725_v22 = vrot.slane %v4723_v34, 4 }
 0x5d6   : > { %v5413_v17 = vsel %vm2656_vm10, %v5356_v38, %v12918_v13  ;;  %v4948_v34 = vsel %vm2217_vm4, %v9308_v7, %v15743_v54 }
 0x5d7   : > { %v5572_v37 = vshll.u32 %v5413_v17, 16  ;;  %v4729_v38 = vor.u32 %v4728_v31, %v4725_v22  ;;  %v15746_v22 = vld [vmem:[#allocation47_spill] sm:$0xff] }
 0x5d8   : > { %4560 = vrot.lane.b32.xlu1 %v4521_v18, %s9855_s4  ;;  %v4661_v18 = vrot.slane %v4659_v19, 4  ;;  %v4845_v19 = vsel %vm1048_vm2, %v4843_v21, %v4844_v40 }
 0x5d9   : > { %v5574_v21 = vrot.slane %v5572_v37, 4 }
 0x5da   : > { %v4579_v61 = vpop.permute.xlu1 %4578  ;;  %4932 = vrot.lane.b32.xlu2 %v4872_v63, %s9857_s6  ;;  %4404 = vrot.lane.b32.xlu0 %v4344_v53, %s9854_s30  ;;  %v5235_v63 = vsel %vm2477_vm9, %v5179_v0, %v12860_v49  ;;  %v5569_v53 = vshrl.u32 %v5413_v17, 16  ;;  %v4665_v13 = vor.u32 %v4664_v27, %v4661_v18  ;;  %v15744_v17 = vld [vmem:[#allocation49_spill] sm:$0xff]  ;;  %v5027_v27 = vsel %vm2298_vm5, %v4948_v34, %v15746_v22  ;;  %v13063_v22 = vld [vmem:[#allocation4 + $0xf4] sm:$0xff]  }
 0x5db   : > { %v5299_v51 = vsel %vm2542_vm8, %v5235_v63, %v4579_v61  ;;  %v15745_v18 = vunpack.c.h.b16 %v15744_v17  ;;  %v15747_v63 = vld [vmem:[#allocation32_spill] sm:$0xff] }
 0x5dc   : > { %v13028_v2 = vpop.permute.xlu2 %4756  ;;  %v4547_v32 = vpop.permute.xlu0 %4546  ;;  %v5355_v60 = vsel %vm2607_vm11, %v5299_v51, %v4771_v10  ;;  %v5571_v0 = vrot.slane %v5569_v53, 3  ;;  %v5091_v51 = vsel %vm2363_vm7, %v5027_v27, %v15747_v63  ;;  %v9312_v53 = vor.u32 %v12972_v20, %v9311_v48  ;;  %v15749_v27 = vld [vmem:[#allocation90_spill] sm:$0xff] }
 0x5dd   : > { %v3523_v31 = vpack.c.b16 %v15745_v18, %v15745_v18  ;;  %v5155_v37 = vsel %vm2428_vm6, %v5091_v51, %v12692_v23  ;;  %v9316_v18 = vor.u32 %v12986_v47, %v9315_v33  ;;  %v3423_v47 = vld [vmem:[#allocation4 + $0xfc] sm:$0x1] }
 0x5de   : > { %v5575_v34 = vor.u32 %v5574_v21, %v5571_v0 }
 0x5df   : > { %v4950_v20 = vsel %vm2217_vm4, %v3523_v31, %v15743_v54 }
 0x5e0   : > { %4896 = vrot.lane.b32.xlu1 %v4845_v19, %s9857_s6  ;;  %v5029_v0 = vsel %vm2298_vm5, %v4950_v20, %v15749_v27 }
 0x5e2   : > { %v4915_v30 = vpop.permute.xlu1 %4914  ;;  %4762 = vrot.lane.b32.xlu2 %v4665_v13, %s9856_s5  ;;  %4778 = vrot.lane.b32.xlu0 %v4729_v38, %s9856_s5  ;;  %v5203_v38 = vsel %vm2477_vm9, %v5155_v37, %v12936_v12  ;;  %v13065_v12 = vld [vmem:[#allocation4 + $0xf0] sm:$0xf0]   ;;  %v4815_v37 = vunpack.c.l.b16 %v3423_v47 }
 0x5e3   : > { %v5411_v49 = vsel %vm2656_vm10, %v5355_v60, %v4915_v30  ;;  %v5267_v60 = vsel %vm2542_vm8, %v5203_v38, %v4547_v32  ;;  %v15750_v32 = vld [vmem:[#allocation39_spill] sm:$0xff] }
 0x5e4   : > { %v5562_v61 = vshrl.u32 %v5411_v49, 16  ;;  %v5565_v40 = vshll.u32 %v5411_v49, 16  ;;  %v13047_v7 = vpop.permute.xlu2 %4394  ;;  %v4883_v10 = vpop.permute.xlu0 %4882  ;;  %v15748_v49 = vld [vmem:[#allocation123_spill] sm:$0xff]  ;;  %v5093_v54 = vsel %vm2363_vm7, %v5029_v0, %v15750_v32  ;;  %v5331_v33 = vsel %vm2607_vm11, %v5267_v60, %v12942_v9 }
 0x5e5   : > { %v4345_v17 = vrot.slane %v15748_v49, 5  ;;  %v5156_v31 = vsel %vm2428_vm6, %v5093_v54, %v12692_v23  ;;  %v5379_v63 = vsel %vm2656_vm10, %v5331_v33, %v4883_v10  ;;  %v15751_v60 = vrot.slane %v12970_v43, 5  ;;  %v3414_v23 = vld [vmem:[#allocation4 + $0x6c] sm:$0x1] }
 0x5e6   : > { %v5564_v19 = vrot.slane %v5562_v61, 3  ;;  %v5567_v13 = vrot.slane %v5565_v40, 4  ;;  %v3357_v61 = vld [vmem:[#allocation4 + $0xec] sm:$0x1]  ;;  %v4846_v10 = vrot.slane %v12984_v29, 5  ;;  %v4831_v27 = vpack.c.b16 %v4815_v37, %v4815_v37 }
 0x5e7   : > { %v4287_v21 = vunpack.c.l.b16 %v3357_v61 }
 0x5e8   : > { %v5568_v30 = vor.u32 %v5567_v13, %v5564_v19  ;;  %4594 = vrot.lane.b32.xlu1 %v9312_v53, %s9855_s4  ;;  %v4507_v13 = vunpack.c.h.b16 %v13063_v22  ;;  %v5205_v53 = vsel %vm2477_vm9, %v5156_v31, %v12741_v50 }
 0x5e9   : > { %v4303_v61 = vpack.c.b16 %v4287_v21, %v4287_v21  ;;  %v15752_v21 = vunpack.c.h.b16 %v12984_v29  ;;  %v9685_v29 = vld [vmem:[#allocation4 + $0x70] sm:$0x8] }
 0x5ea   : > { %v4549_v48 = vpop.permute.xlu1 %4548  ;;  %v5576_v40 = vsel %vm2721_vm12, %v5568_v30, %v5575_v34  ;;  %4406 = vrot.lane.b32.xlu2 %v4345_v17, %s9854_s30  ;;  %4562 = vrot.lane.b32.xlu0 %v9316_v18, %s9855_s4  ;;  %v5442_v30 = vshrl.u32 %v5379_v63, 16  ;;  %v5445_v34 = vshll.u32 %v5379_v63, 16  ;;  %v4541_v18 = vpack.c.b16 %v4507_v13, %v4507_v13 }
 0x5eb   : > { %8949 = vmatmul.msk.bf16.vlgmr.msra.gmra.mxu3 %vm2989_vm13, %v5576_v40  ;;  %v5269_v38 = vsel %vm2542_vm8, %v5205_v53, %v4549_v48  ;;  %v4806_v48 = vunpack.c.l.b16 %v3414_v23  ;;  %v4523_v31 = vpack.c.b16 %v15752_v21, %v15752_v21  ;;  %v4346_v63 = vrot.slane %v4303_v61, 5 }
 0x5ec   : > { %v13081_v51 = vpop.permute.xlu2 %4588  ;;  %v4393_v19 = vpop.permute.xlu0 %4392  ;;  %v5332_v40 = vsel %vm2607_vm11, %v5269_v38, %v12942_v9  ;;  %v5444_v0 = vrot.slane %v5442_v30, 3  ;;  %v5447_v43 = vrot.slane %v5445_v34, 4  ;;  %v4873_v9 = vrot.slane %v13063_v22, 5 }
 0x5ed   : > { %v5241_v13 = vsel %vm2477_vm9, %v12846_v1, %v4393_v19  ;;  %v4874_v38 = vrot.slane %v4831_v27, 5  ;;  %v4822_v30 = vpack.c.b16 %v4806_v48, %v4806_v48 }
 0x5ee   : > { %v5448_v34 = vor.u32 %v5447_v43, %v5444_v0  ;;  %v5305_v23 = vsel %vm2542_vm8, %v5241_v13, %v12981_v45  ;;  %v9814_v45 = vld [vmem:[#allocation4 + $0x70] sm:$0xf0]  }
 0x5ef   : > { %v4875_v1 = vsel %vm1048_vm2, %v4873_v9, %v4874_v38  ;;  %v4847_v48 = vrot.slane %v4822_v30, 5 }
 0x5f0   : > { %4930 = vrot.lane.b32.xlu1 %v15751_v60, %s9857_s6 }
 0x5f2   : > { %v4885_v20 = vpop.permute.xlu1 %4884  ;;  %4600 = vrot.lane.b32.xlu2 %v4541_v18, %s9855_s4  ;;  %4898 = vrot.lane.b32.xlu0 %v4846_v10, %s9857_s6  ;;  %v4731_v18 = vshrl.u32 %v13063_v22, 16 }
 0x5f3   : > { %v5381_v50 = vsel %vm2656_vm10, %v5332_v40, %v4885_v20  ;;  %v4734_v20 = vshll.u32 %v13063_v22, 16  ;;  %v4347_v40 = vsel %vm1048_vm2, %v4345_v17, %v4346_v63  ;;  %v9319_v63 = vld [vmem:[#allocation4 + $0xf0] sm:$0x8] }
 0x5f4   : > { %v5449_v47 = vshrl.u32 %v5381_v50, 16  ;;  %v5452_v32 = vshll.u32 %v5381_v50, 16  ;;  %v13096_v54 = vpop.permute.xlu2 %4924  ;;  %v4773_v33 = vpop.permute.xlu0 %4772  ;;  %v13117_v50 = vld [vmem:[#allocation4 + $0x74] sm:$0xff]  }
 0x5f5   : > { %v5359_v61 = vsel %vm2607_vm11, %v5305_v23, %v4773_v33  ;;  %v4736_v17 = vrot.slane %v4734_v20, 5 }
 0x5f6   : > { %v5451_v53 = vrot.slane %v5449_v47, 3  ;;  %v5454_v37 = vrot.slane %v5452_v32, 4  ;;  %v5417_v0 = vsel %vm2656_vm10, %v5359_v61, %v13002_v36  ;;  %v4733_v47 = vrot.slane %v4731_v18, 4 }
 0x5f7   : > { %v5239_v32 = vsel %vm2477_vm9, %v12842_v41, %v12959_v46  ;;  %v5584_v13 = vshrl.u32 %v5417_v0, 16  ;;  %v4483_v36 = vunpack.c.h.b16 %v13117_v50  ;;  %v3358_v46 = vld [vmem:[#allocation4 + $0xfc] sm:$0x1] }
 0x5f8   : > { %v5455_v60 = vor.u32 %v5454_v37, %v5451_v53  ;;  %4564 = vrot.lane.b32.xlu1 %v4523_v31, %s9855_s4  ;;  %v4848_v31 = vsel %vm1048_vm2, %v4846_v10, %v4847_v48  ;;  %v5587_v53 = vshll.u32 %v5417_v0, 16  ;;  %v9686_v37 = vor.u32 %v9814_v45, %v9685_v29  ;;  %v15753_v48 = vld [vmem:[#allocation78_spill] sm:$0xff] }
 0x5f9   : > { %v4737_v38 = vor.u32 %v4736_v17, %v4733_v47  ;;  %v5586_v10 = vrot.slane %v5584_v13, 3  ;;  %v9320_v29 = vor.u32 %v13065_v12, %v9319_v63  ;;  %v4321_v0 = vrot.slane %v15753_v48, 5  ;;  %v3349_v17 = vld [vmem:[#allocation4 + $0x6c] sm:$0x1] }
 0x5fa   : > { %v4583_v19 = vpop.permute.xlu1 %4582  ;;  %v5456_v27 = vsel %vm2721_vm12, %v5448_v34, %v5455_v60  ;;  %4936 = vrot.lane.b32.xlu2 %v4875_v1, %s9857_s6  ;;  %4408 = vrot.lane.b32.xlu0 %v4347_v40, %s9854_s30  ;;  %v5589_v60 = vrot.slane %v5587_v53, 4  ;;  %v13138_v40 = vld [vmem:[#allocation4 + $0x104] sm:$0xff]   ;;  %v4279_v53 = vunpack.c.l.b16 %v3349_v17 }
 0x5fb   : > { %8941 = vmatmul.msk.bf16.vlgmr.msra.gmra.mxu1 %vm2989_vm13, %v5456_v27  ;;  %v5303_v21 = vsel %vm2542_vm8, %v5239_v32, %v4583_v19  ;;  %v4288_v19 = vunpack.c.l.b16 %v3358_v46  ;;  %v4510_v12 = vunpack.c.h.b16 %v13138_v40 }
 0x5fc   : > { %v13124_v43 = vpop.permute.xlu2 %4758  ;;  %v4551_v49 = vpop.permute.xlu0 %4550  ;;  %v5358_v34 = vsel %vm2607_vm11, %v5303_v21, %v4773_v33  ;;  %v13140_v33 = vld [vmem:[#allocation4 + $0x100] sm:$0xf0]   ;;  %v5590_v47 = vor.u32 %v5589_v60, %v5586_v10  ;;  %v4849_v21 = vrot.slane %v13117_v50, 5  ;;  %v4295_v60 = vpack.c.b16 %v4279_v53, %v4279_v53 }
 0x5fd   : > { %v5271_v32 = vsel %vm2542_vm8, %v12925_v8, %v4551_v49  ;;  %v4304_v13 = vpack.c.b16 %v4288_v19, %v4288_v19  ;;  %v4667_v53 = vshrl.u32 %v13117_v50, 16 }
 0x600   : > { %4900 = vrot.lane.b32.xlu1 %v4848_v31, %s9857_s6 }
 0x602   : > { %v4919_v30 = vpop.permute.xlu1 %4918  ;;  %4566 = vrot.lane.b32.xlu2 %v9686_v37, %s9855_s4  ;;  %4780 = vrot.lane.b32.xlu0 %v4737_v38, %s9856_s5  ;;  %v3415_v37 = vld [vmem:[#allocation4 + $0x7c] sm:$0x1]  ;;  %v5334_v38 = vsel %vm2607_vm11, %v5271_v32, %v13028_v2 }
 0x603   : > { %v5415_v41 = vsel %vm2656_vm10, %v5358_v34, %v4919_v30  ;;  %v15754_v30 = vld [vmem:[#allocation71_spill] sm:$0xff]  ;;  %v4807_v46 = vunpack.c.l.b16 %v3415_v37 }
 0x604   : > { %v5577_v23 = vshrl.u32 %v5415_v41, 16  ;;  %v5580_v18 = vshll.u32 %v5415_v41, 16  ;;  %v4887_v20 = vpop.permute.xlu0 %4886  ;;  %v13142_v27 = vpop.permute.xlu2 %4398  ;;  %v4348_v34 = vrot.slane %v15754_v30, 5  ;;  %v4349_v41 = vrot.slane %v4304_v13, 5 }
 0x605   : > { %v5383_v8 = vsel %vm2656_vm10, %v5334_v38, %v4887_v20  ;;  %v4739_v20 = vshrl.u32 %v13138_v40, 16  ;;  %v4823_v48 = vpack.c.b16 %v4807_v46, %v4807_v46 }
 0x606   : > { %v5579_v61 = vrot.slane %v5577_v23, 3  ;;  %v5582_v1 = vrot.slane %v5580_v18, 4  ;;  %v5457_v23 = vshrl.u32 %v5383_v8, 16  ;;  %v5460_v18 = vshll.u32 %v5383_v8, 16 }
 0x607   : > { %v4350_v19 = vsel %vm1048_vm2, %v4348_v34, %v4349_v41  ;;  %v4850_v41 = vrot.slane %v4823_v48, 5 }
 0x608   : > { %v5583_v45 = vor.u32 %v5582_v1, %v5579_v61  ;;  %4598 = vrot.lane.b32.xlu1 %v9320_v29, %s9855_s4  ;;  %v4525_v1 = vpack.c.b16 %v4483_v36, %v4483_v36  ;;  %v4742_v29 = vshll.u32 %v13138_v40, 16  ;;  %v5459_v36 = vrot.slane %v5457_v23, 3 }
 0x60a   : > { %v4553_v31 = vpop.permute.xlu1 %4552  ;;  %v5591_v63 = vsel %vm2721_vm12, %v5583_v45, %v5590_v47  ;;  %4902 = vrot.lane.b32.xlu2 %v4849_v21, %s9857_s6  ;;  %4374 = vrot.lane.b32.xlu0 %v4321_v0, %s9854_s30  ;;  %v5462_v47 = vrot.slane %v5460_v18, 4  ;;  %v4744_v13 = vrot.slane %v4742_v29, 5  ;;  %v4851_v29 = vsel %vm1048_vm2, %v4849_v21, %v4850_v41 }
 0x60b   : > { %8950 = vmatmul.msk.bf16.gmra.mxu3 %vm2989_vm13, %v5591_v63  ;;  %v5273_v10 = vsel %vm2542_vm8, %v12955_v55, %v4553_v31  ;;  %v4741_v63 = vrot.slane %v4739_v20, 4  ;;  %v5243_v21 = vsel %vm2477_vm9, %v12881_v52, %v13047_v7  ;;  %v3416_v7 = vld [vmem:[#allocation4 + $0x8c] sm:$0x1] }
 0x60c   : > { %v4397_v49 = vpop.permute.xlu0 %4396  ;;  %v13163_v61 = vpop.permute.xlu2 %4592  ;;  %v5335_v55 = vsel %vm2607_vm11, %v5273_v10, %v13028_v2  ;;  %v4670_v2 = vshll.u32 %v13117_v50, 16  ;;  %v5463_v10 = vor.u32 %v5462_v47, %v5459_v36  ;;  %v15755_v36 = vld [vmem:[#allocation127_spill] sm:$0xff] }
 0x60d   : > { %v5245_v37 = vsel %vm2477_vm9, %v12885_v39, %v4397_v49  ;;  %v4745_v18 = vor.u32 %v4744_v13, %v4741_v63  ;;  %v4324_v47 = vrot.slane %v15755_v36, 5  ;;  %v13203_v13 = vld [vmem:[#allocation4 + $0x80] sm:$0xf0]  }
 0x60e   : > { %v5309_v23 = vsel %vm2542_vm8, %v5245_v37, %v13081_v51  ;;  %v4672_v49 = vrot.slane %v4670_v2, 5 }
 0x610   : > { %4934 = vrot.lane.b32.xlu1 %v4873_v9, %s9857_s6  ;;  %v4322_v9 = vrot.slane %v4295_v60, 5 }
 0x612   : > { %v4889_v45 = vpop.permute.xlu1 %4888  ;;  %4412 = vrot.lane.b32.xlu2 %v4350_v19, %s9854_s30  ;;  %4568 = vrot.lane.b32.xlu0 %v4525_v1, %s9855_s4  ;;  %v4323_v46 = vsel %vm1048_vm2, %v4321_v0, %v4322_v9  ;;  %v4669_v1 = vrot.slane %v4667_v53, 4  ;;  %v9323_v19 = vld [vmem:[#allocation4 + $0x100] sm:$0x8]  ;;  %v3350_v53 = vld [vmem:[#allocation4 + $0x7c] sm:$0x1] }
 0x613   : > { %v5385_v22 = vsel %vm2656_vm10, %v5335_v55, %v4889_v45 }
 0x614   : > { %v5464_v17 = vshrl.u32 %v5385_v22, 16  ;;  %v5467_v32 = vshll.u32 %v5385_v22, 16  ;;  %v4775_v31 = vpop.permute.xlu0 %4774  ;;  %v13186_v55 = vpop.permute.xlu2 %4928  ;;  %v4673_v45 = vor.u32 %v4672_v49, %v4669_v1 }
 0x615   : > { %v5362_v20 = vsel %vm2607_vm11, %v5309_v23, %v4775_v31  ;;  %v4808_v23 = vunpack.c.l.b16 %v3416_v7  ;;  %v13233_v7 = vld [vmem:[#allocation4 + $0x114] sm:$0xff]  }
 0x616   : > { %v5466_v38 = vrot.slane %v5464_v17, 3  ;;  %v5469_v8 = vrot.slane %v5467_v32, 4  ;;  %v5421_v51 = vsel %vm2656_vm10, %v5362_v20, %v13096_v54  ;;  %v9324_v17 = vor.u32 %v13140_v33, %v9323_v19  ;;  %v13201_v54 = vld [vmem:[#allocation4 + $0x84] sm:$0xff]   ;;  %v3424_v20 = vld [vmem:[#allocation4 + $0x10c] sm:$0x1] }
 0x617   : > { %v5599_v22 = vshrl.u32 %v5421_v51, 16  ;;  %v5602_v9 = vshll.u32 %v5421_v51, 16  ;;  %v4824_v51 = vpack.c.b16 %v4808_v23, %v4808_v23 }
 0x618   : > { %v5470_v60 = vor.u32 %v5469_v8, %v5466_v38  ;;  %4376 = vrot.lane.b32.xlu1 %v4323_v46, %s9854_s30  ;;  %v4280_v46 = vunpack.c.l.b16 %v3350_v53 }
 0x619   : > { %v5601_v2 = vrot.slane %v5599_v22, 3  ;;  %v5604_v37 = vrot.slane %v5602_v9, 4  ;;  %v4853_v22 = vrot.slane %v4824_v51, 5  ;;  %v9327_v51 = vld [vmem:[#allocation4 + $0x80] sm:$0x8] }
 0x61a   : > { %v4587_v50 = vpop.permute.xlu1 %4586  ;;  %v5471_v39 = vsel %vm2721_vm12, %v5463_v10, %v5470_v60  ;;  %4782 = vrot.lane.b32.xlu2 %v4745_v18, %s9856_s5  ;;  %4904 = vrot.lane.b32.xlu0 %v4851_v29, %s9857_s6 }
 0x61b   : > { %8942 = vmatmul.msk.bf16.gmra.mxu1 %vm2989_vm13, %v5471_v39  ;;  %v5307_v48 = vsel %vm2542_vm8, %v5243_v21, %v4587_v50  ;;  %v5605_v1 = vor.u32 %v5604_v37, %v5601_v2  ;;  %v4876_v39 = vrot.slane %v13138_v40, 5  ;;  %v4296_v21 = vpack.c.b16 %v4280_v46, %v4280_v46  ;;  %v9815_v40 = vld [vmem:[#allocation4 + $0x110] sm:$0xf0]  }
 0x61c   : > { %v4555_v0 = vpop.permute.xlu0 %4554  ;;  %v5361_v63 = vsel %vm2607_vm11, %v5307_v48, %v4775_v31  ;;  %v13208_v33 = vpop.permute.xlu2 %4760  ;;  %v4486_v31 = vunpack.c.h.b16 %v13201_v54  ;;  %v4852_v48 = vrot.slane %v13201_v54, 5  ;;  %v4678_v2 = vshll.u32 %v13201_v54, 16 }
 0x61d   : > { %v5275_v50 = vsel %vm2542_vm8, %v12796_v56, %v4555_v0  ;;  %v4543_v0 = vpack.c.b16 %v4510_v12, %v4510_v12  ;;  %v4325_v9 = vrot.slane %v4296_v21, 5  ;;  %v4675_v12 = vshrl.u32 %v13201_v54, 16 }
 0x61e   : > { %v4527_v29 = vpack.c.b16 %v4486_v31, %v4486_v31  ;;  %v5337_v30 = vsel %vm2607_vm11, %v5275_v50, %v13124_v43  ;;  %v4854_v37 = vsel %vm1048_vm2, %v4852_v48, %v4853_v22 }
 0x620   : > { %4764 = vrot.lane.b32.xlu1 %v4673_v45, %s9856_s5  ;;  %v4816_v45 = vunpack.c.l.b16 %v3424_v20  ;;  %v4680_v20 = vrot.slane %v4678_v2, 5 }
 0x622   : > { %v4923_v32 = vpop.permute.xlu1 %4922  ;;  %4378 = vrot.lane.b32.xlu2 %v4324_v47, %s9854_s30  ;;  %4602 = vrot.lane.b32.xlu0 %v9324_v17, %s9855_s4 }
 0x623   : > { %v5419_v52 = vsel %vm2656_vm10, %v5361_v63, %v4923_v32  ;;  %v4832_v32 = vpack.c.b16 %v4816_v45, %v4816_v45 }
 0x624   : > { %v5592_v38 = vshrl.u32 %v5419_v52, 16  ;;  %v5595_v8 = vshll.u32 %v5419_v52, 16  ;;  %v4891_v41 = vpop.permute.xlu0 %4890  ;;  %v13228_v36 = vpop.permute.xlu2 %4402  ;;  %v9691_v52 = vld [vmem:[#allocation4 + $0x110] sm:$0x8] }
 0x625   : > { %v5387_v56 = vsel %vm2656_vm10, %v5337_v30, %v4891_v41  ;;  %v4877_v31 = vrot.slane %v4832_v32, 5  ;;  %v9328_v32 = vor.u32 %v13203_v13, %v9327_v51 }
 0x626   : > { %v5594_v10 = vrot.slane %v5592_v38, 3  ;;  %v5597_v60 = vrot.slane %v5595_v8, 4  ;;  %v5472_v63 = vshrl.u32 %v5387_v56, 16  ;;  %v5475_v53 = vshll.u32 %v5387_v56, 16 }
 0x627   : > { %v4326_v8 = vsel %vm1048_vm2, %v4324_v47, %v4325_v9  ;;  %v4878_v47 = vsel %vm1048_vm2, %v4876_v39, %v4877_v31 }
 0x628   : > { %v5598_v18 = vor.u32 %v5597_v60, %v5594_v10  ;;  %4410 = vrot.lane.b32.xlu1 %v4348_v34, %s9854_s30  ;;  %v5474_v46 = vrot.slane %v5472_v63, 3  ;;  %v5477_v10 = vrot.slane %v5475_v53, 4  ;;  %v13266_v53 = vld [vmem:[#allocation4 + $0x94] sm:$0xff]  }
 0x62a   : > { %v4557_v49 = vpop.permute.xlu1 %4556  ;;  %v5606_v19 = vsel %vm2721_vm12, %v5598_v18, %v5605_v1  ;;  %4572 = vrot.lane.b32.xlu2 %v4527_v29, %s9855_s4  ;;  %4938 = vrot.lane.b32.xlu0 %v4876_v39, %s9857_s6  ;;  %v4677_v1 = vrot.slane %v4675_v12, 4  ;;  %v5478_v21 = vor.u32 %v5477_v10, %v5474_v46  ;;  %v3351_v39 = vld [vmem:[#allocation4 + $0x8c] sm:$0x1]  ;;  %v4879_v12 = vrot.slane %v13233_v7, 5 }
 0x62b   : > { %8951 = vmatmul.msk.bf16.gmra.mxu3 %vm2989_vm13, %v5606_v19  ;;  %v5277_v17 = vsel %vm2542_vm8, %v12946_v42, %v4557_v49  ;;  %v4513_v49 = vunpack.c.h.b16 %v13233_v7  ;;  %v9692_v19 = vor.u32 %v9815_v40, %v9691_v52  ;;  %v4281_v63 = vunpack.c.l.b16 %v3351_v39  ;;  %v13268_v52 = vld [vmem:[#allocation4 + $0x90] sm:$0xf0]  }
 0x62c   : > { %v4401_v34 = vpop.permute.xlu0 %4400  ;;  %v5338_v42 = vsel %vm2607_vm11, %v5277_v17, %v13124_v43  ;;  %v13251_v30 = vpop.permute.xlu2 %4596  ;;  %v4686_v39 = vshll.u32 %v13266_v53, 16 }
 0x62d   : > { %v5249_v50 = vsel %vm2477_vm9, %v12675_v4, %v4401_v34 }
 0x62e   : > { %v5313_v56 = vsel %vm2542_vm8, %v5249_v50, %v13163_v61  ;;  %v5247_v61 = vsel %vm2477_vm9, %v12672_v28, %v13142_v27  ;;  %v4489_v28 = vunpack.c.h.b16 %v13266_v53 }
 0x630   : > { %4604 = vrot.lane.b32.xlu1 %v4543_v0, %s9855_s4  ;;  %v4681_v0 = vor.u32 %v4680_v20, %v4677_v1 }
 0x632   : > { %v4893_v38 = vpop.permute.xlu1 %4892  ;;  %4908 = vrot.lane.b32.xlu2 %v4854_v37, %s9857_s6  ;;  %4380 = vrot.lane.b32.xlu0 %v4326_v8, %s9854_s30 }
 0x633   : > { %v5389_v41 = vsel %vm2656_vm10, %v5338_v42, %v4893_v38  ;;  %v3425_v38 = vld [vmem:[#allocation4 + $0x11c] sm:$0x1]  ;;  %v15756_v42 = vld [vmem:[#allocation113_spill] sm:$0xff] }
 0x634   : > { %v5479_v60 = vshrl.u32 %v5389_v41, 16  ;;  %v5482_v23 = vshll.u32 %v5389_v41, 16  ;;  %v4777_v18 = vpop.permute.xlu0 %4776  ;;  %v4351_v8 = vrot.slane %v15756_v42, 5  ;;  %v4297_v41 = vpack.c.b16 %v4281_v63, %v4281_v63  ;;  %v13276_v31 = vpop.permute.xlu2 %4932 }
 0x635   : > { %v5365_v4 = vsel %vm2607_vm11, %v5313_v56, %v4777_v18 }
 0x636   : > { %v5481_v43 = vrot.slane %v5479_v60, 3  ;;  %v5484_v29 = vrot.slane %v5482_v23, 4  ;;  %v5425_v9 = vsel %vm2656_vm10, %v5365_v4, %v13186_v55  ;;  %v3359_v55 = vld [vmem:[#allocation4 + $0x10c] sm:$0x1]  ;;  %v4817_v60 = vunpack.c.l.b16 %v3425_v38 }
 0x637   : > { %v5614_v2 = vshrl.u32 %v5425_v9, 16  ;;  %v5617_v37 = vshll.u32 %v5425_v9, 16  ;;  %v4289_v10 = vunpack.c.l.b16 %v3359_v55  ;;  %v4328_v51 = vrot.slane %v4297_v41, 5 }
 0x638   : > { %v5485_v45 = vor.u32 %v5484_v29, %v5481_v43  ;;  %4940 = vrot.lane.b32.xlu1 %v4878_v47, %s9857_s6  ;;  %v4833_v4 = vpack.c.b16 %v4817_v60, %v4817_v60  ;;  %v4688_v55 = vrot.slane %v4686_v39, 5 }
 0x639   : > { %v5616_v23 = vrot.slane %v5614_v2, 3  ;;  %v5619_v1 = vrot.slane %v5617_v37, 4 }
 0x63a   : > { %v4591_v34 = vpop.permute.xlu1 %4590  ;;  %v5486_v22 = vsel %vm2721_vm12, %v5478_v21, %v5485_v45  ;;  %4606 = vrot.lane.b32.xlu2 %v9692_v19, %s9855_s4  ;;  %4766 = vrot.lane.b32.xlu0 %v4681_v0, %s9856_s5  ;;  %v15757_v19 = vld [vmem:[#allocation88_spill] sm:$0xff]  ;;  %v4545_v21 = vpack.c.b16 %v4513_v49, %v4513_v49  ;;  %v4305_v45 = vpack.c.b16 %v4289_v10, %v4289_v10 }
 0x63b   : > { %8943 = vmatmul.msk.bf16.gmra.mxu1 %vm2989_vm13, %v5486_v22  ;;  %v5311_v40 = vsel %vm2542_vm8, %v5247_v61, %v4591_v34  ;;  %v5620_v0 = vor.u32 %v5619_v1, %v5616_v23  ;;  %v4683_v22 = vshrl.u32 %v13266_v53, 16  ;;  %v9331_v1 = vld [vmem:[#allocation4 + $0x90] sm:$0x8] }
 0x63c   : > { %v4559_v17 = vpop.permute.xlu0 %4558  ;;  %v5364_v13 = vsel %vm2607_vm11, %v5311_v40, %v4777_v18  ;;  %v4327_v18 = vrot.slane %v15757_v19, 5  ;;  %v4352_v54 = vrot.slane %v4305_v45, 5  ;;  %v13300_v63 = vpop.permute.xlu2 %4762 }
 0x63d   : > { %v5279_v34 = vsel %vm2542_vm8, %v12977_v11, %v4559_v17  ;;  %v4750_v11 = vshll.u32 %v13233_v7, 16  ;;  %v4685_v37 = vrot.slane %v4683_v22, 4 }
 0x63e   : > { %v4329_v9 = vsel %vm1048_vm2, %v4327_v18, %v4328_v51  ;;  %v5340_v17 = vsel %vm2607_vm11, %v5279_v34, %v13208_v33  ;;  %v4353_v42 = vsel %vm1048_vm2, %v4351_v8, %v4352_v54  ;;  %v3417_v54 = vld [vmem:[#allocation4 + $0x9c] sm:$0x1] }
 0x63f   : > { %v4689_v10 = vor.u32 %v4688_v55, %v4685_v37 }
 0x640   : > { %4570 = vrot.lane.b32.xlu1 %v9328_v32, %s9855_s4  ;;  %v4880_v32 = vrot.slane %v4833_v4, 5  ;;  %v9332_v4 = vor.u32 %v13268_v52, %v9331_v1 }
 0x642   : > { %v4927_v27 = vpop.permute.xlu1 %4926  ;;  %4942 = vrot.lane.b32.xlu2 %v4879_v12, %s9857_s6  ;;  %4414 = vrot.lane.b32.xlu0 %v4351_v8, %s9854_s30 }
 0x643   : > { %v5423_v46 = vsel %vm2656_vm10, %v5364_v13, %v4927_v27 }
 0x644   : > { %v5607_v20 = vshrl.u32 %v5423_v46, 16  ;;  %v5610_v50 = vshll.u32 %v5423_v46, 16  ;;  %v4895_v43 = vpop.permute.xlu0 %4894  ;;  %v4881_v46 = vsel %vm1048_vm2, %v4879_v12, %v4880_v32  ;;  %v13315_v45 = vpop.permute.xlu2 %4406 }
 0x645   : > { %v5391_v40 = vsel %vm2656_vm10, %v5340_v17, %v4895_v43 }
 0x646   : > { %v5609_v29 = vrot.slane %v5607_v20, 3  ;;  %v5612_v47 = vrot.slane %v5610_v50, 4  ;;  %v5487_v13 = vshrl.u32 %v5391_v40, 16  ;;  %v5490_v41 = vshll.u32 %v5391_v40, 16 }
 0x648   : > { %v5613_v56 = vor.u32 %v5612_v47, %v5609_v29  ;;  %4906 = vrot.lane.b32.xlu1 %v4852_v48, %s9857_s6  ;;  %v4747_v48 = vshrl.u32 %v13233_v7, 16  ;;  %v4752_v7 = vrot.slane %v4750_v11, 5  ;;  %v5489_v20 = vrot.slane %v5487_v13, 3 }
 0x649   : > { %v5492_v50 = vrot.slane %v5490_v41, 4  ;;  %v4855_v11 = vrot.slane %v13266_v53, 5 }
 0x64a   : > { %v4561_v49 = vpop.permute.xlu1 %4560  ;;  %v5621_v61 = vsel %vm2721_vm12, %v5613_v56, %v5620_v0  ;;  %4384 = vrot.lane.b32.xlu2 %v4329_v9, %s9854_s30  ;;  %4608 = vrot.lane.b32.xlu0 %v4545_v21, %s9855_s4  ;;  %v4749_v27 = vrot.slane %v4747_v48, 4 }
 0x64b   : > { %8952 = vmatmul.msk.bf16.gmra.mxu3 %vm2989_vm13, %v5621_v61  ;;  %v5281_v38 = vsel %vm2542_vm8, %v12838_v59, %v4561_v49  ;;  %v5251_v49 = vsel %vm2477_vm9, %v12864_v16, %v13228_v36  ;;  %v4809_v16 = vunpack.c.l.b16 %v3417_v54 }
 0x64c   : > { %v4405_v2 = vpop.permute.xlu0 %4404  ;;  %v5341_v23 = vsel %vm2607_vm11, %v5281_v38, %v13208_v33  ;;  %v4753_v8 = vor.u32 %v4752_v7, %v4749_v27  ;;  %v5493_v33 = vor.u32 %v5492_v50, %v5489_v20  ;;  %v4601_v48 = vpop.permute.xlu2 %4600 }
 0x64d   : > { %v5253_v12 = vsel %vm2477_vm9, %v12868_v15, %v4405_v2 }
 0x64e   : > { %v5317_v0 = vsel %vm2542_vm8, %v5253_v12, %v13251_v30 }
 0x650   : > { %4416 = vrot.lane.b32.xlu1 %v4353_v42, %s9854_s30  ;;  %v4825_v42 = vpack.c.b16 %v4809_v16, %v4809_v16 }
 0x652   : > { %v4897_v60 = vpop.permute.xlu1 %4896  ;;  %4768 = vrot.lane.b32.xlu2 %v4689_v10, %s9856_s5  ;;  %4944 = vrot.lane.b32.xlu0 %v4881_v46, %s9857_s6 }
 0x653   : > { %v5393_v59 = vsel %vm2656_vm10, %v5341_v23, %v4897_v60  ;;  %v4856_v60 = vrot.slane %v4825_v42, 5 }
 0x654   : > { %v5494_v43 = vshrl.u32 %v5393_v59, 16  ;;  %v5497_v29 = vshll.u32 %v5393_v59, 16  ;;  %v4779_v47 = vpop.permute.xlu0 %4778  ;;  %v4937_v10 = vpop.permute.xlu2 %4936 }
 0x655   : > { %v5368_v34 = vsel %vm2607_vm11, %v5317_v0, %v4779_v47 }
 0x656   : > { %v5496_v51 = vrot.slane %v5494_v43, 3  ;;  %v5499_v21 = vrot.slane %v5497_v29, 4  ;;  %v5429_v15 = vsel %vm2656_vm10, %v5368_v34, %v13276_v31 }
 0x657   : > { %v5629_v52 = vshrl.u32 %v5429_v15, 16  ;;  %v5632_v61 = vshll.u32 %v5429_v15, 16 }
 0x658   : > { %v5500_v56 = vor.u32 %v5499_v21, %v5496_v51  ;;  %4784 = vrot.lane.b32.xlu1 %v4753_v8, %s9856_s5  ;;  %v5899_v8 = vld [vmem:[#allocation2 + $0x80] sm:$0xff] }
 0x659   : > { %v5631_v36 = vrot.slane %v5629_v52, 3  ;;  %v5634_v40 = vrot.slane %v5632_v61, 4 }
 0x65a   : > { %v4595_v22 = vpop.permute.xlu1 %4594  ;;  %v5501_v39 = vsel %vm2721_vm12, %v5493_v33, %v5500_v56  ;;  %4574 = vrot.lane.b32.xlu0 %v9332_v4, %s9855_s4 }
 0x65b   : > { %8944 = vmatmul.msk.bf16.gmra.mxu1 %vm2989_vm13, %v5501_v39  ;;  %v5315_v30 = vsel %vm2542_vm8, %v5251_v49, %v4595_v22  ;;  %v5635_v7 = vor.u32 %v5634_v40, %v5631_v36 }
 0x65c   : > { %v4563_v9 = vpop.permute.xlu0 %4562  ;;  %v5367_v31 = vsel %vm2607_vm11, %v5315_v30, %v4779_v47  ;;  %v13357_v56 = vpop.permute.xlu2 %4566 }
 0x65d   : > { %v5283_v13 = vsel %vm2542_vm8, %v12963_v57, %v4563_v9  ;;  %v4857_v57 = vsel %vm1048_vm2, %v4855_v11, %v4856_v60  ;;  %v5900_v9 = vld [vmem:[#allocation2 + $0x88] sm:$0xff] }
 0x65e   : > { %v5343_v53 = vsel %vm2607_vm11, %v5283_v13, %v13300_v63 }
 0x660   : > { %4382 = vrot.lane.b32.xlu1 %v4327_v18, %s9854_s30  ;;  %v4529_v18 = vpack.c.b16 %v4489_v28, %v4489_v28 }
 0x662   : > { %v4931_v17 = vpop.permute.xlu1 %4930  ;;  %4910 = vrot.lane.b32.xlu0 %v4855_v11, %s9857_s6 }
 0x663   : > { %v5427_v32 = vsel %vm2656_vm10, %v5367_v31, %v4931_v17  ;;  %v5883_v17 = vld [vmem:[#allocation2] sm:$0xff] }
 0x664   : > { %v5622_v2 = vshrl.u32 %v5427_v32, 16  ;;  %v5625_v37 = vshll.u32 %v5427_v32, 16  ;;  %v4899_v55 = vpop.permute.xlu0 %4898 }
 0x665   : > { %v5395_v28 = vsel %vm2656_vm10, %v5343_v53, %v4899_v55 }
 0x666   : > { %v5624_v38 = vrot.slane %v5622_v2, 3  ;;  %v5627_v19 = vrot.slane %v5625_v37, 4  ;;  %v5502_v50 = vshrl.u32 %v5395_v28, 16  ;;  %v5505_v43 = vshll.u32 %v5395_v28, 16 }
 0x667   : > { %v5255_v37 = vsel %vm2477_vm9, %v12911_v24, %v13315_v45 }
 0x668   : > { %v5628_v27 = vor.u32 %v5627_v19, %v5624_v38  ;;  %4576 = vrot.lane.b32.xlu1 %v4529_v18, %s9855_s4  ;;  %v5504_v0 = vrot.slane %v5502_v50, 3  ;;  %v5507_v4 = vrot.slane %v5505_v43, 4  ;;  %v4903_v38 = vpop.permute.xlu2 %4902 }
 0x66a   : > { %v4565_v41 = vpop.permute.xlu1 %4564  ;;  %v5636_v46 = vsel %vm2721_vm12, %v5628_v27, %v5635_v7  ;;  %v5508_v61 = vor.u32 %v5507_v4, %v5504_v0  ;;  %v5884_v7 = vld [vmem:[#allocation2 + $0x8] sm:$0xff] }
 0x66b   : > { %8953 = vmatmul.msk.bf16.gmra.mxu3 %vm2989_vm13, %v5636_v46  ;;  %v5285_v1 = vsel %vm2542_vm8, %v12996_v3, %v4565_v41 }
 0x66c   : > { %v4409_v23 = vpop.permute.xlu0 %4408  ;;  %v5344_v47 = vsel %vm2607_vm11, %v5285_v1, %v13300_v63 }
 0x66d   : > { %v5257_v34 = vsel %vm2477_vm9, %v12915_v62, %v4409_v23 }
 0x66e   : > { %v5809_v59 = vpop.f32.mrf.mxu3  ;;  %v5321_v30 = vsel %vm2542_vm8, %v5257_v34, %v4601_v48 }
 0x66f   : > { %v5865_v20 = vmul.f32 0.1, %v5809_v59 }
 0x670   : > { %4912 = vrot.lane.b32.xlu1 %v4857_v57, %s9857_s6  ;;  %v13379_v50 = vpop.permute.xlu2 %4412 }
 0x671   : > { %v5931_v29 = vadd.f32 %v5899_v8, %v5865_v20 }
 0x672   : > { %v4901_v12 = vpop.permute.xlu1 %4900 }
 0x673   : > { %v5397_v51 = vsel %vm2656_vm10, %v5344_v47, %v4901_v12  ;;  %5963 = vst.msk [vmem:[#allocation2 + $0x80] sm:$0xff] %vm2217_vm4, %v5931_v29  ;;  %v5995_v21 = vpack.c.bf16 %v5931_v29, %v5931_v29 }
 0x674   : > { %v5509_v3 = vshrl.u32 %v5397_v51, 16  ;;  %v5512_v33 = vshll.u32 %v5397_v51, 16  ;;  %v4781_v22 = vpop.permute.xlu0 %4780 }
 0x675   : > { %6027 = vst.msk [vmem:[#allocation3 + $0x94] sm:$0xf] %vm3197_vm14, %v5995_v21  ;;  %v5371_v54 = vsel %vm2607_vm11, %v5321_v30, %v4781_v22 }
 0x676   : > { %v5511_v39 = vrot.slane %v5509_v3, 3  ;;  %v5514_v63 = vrot.slane %v5512_v33, 4  ;;  %v5811_v15 = vpop.f32.mrf.mxu3  ;;  %v5433_v36 = vsel %vm2656_vm10, %v5371_v54, %v4937_v10  ;;  %v5901_v3 = vld [vmem:[#allocation2 + $0x90] sm:$0xff] }
 0x677   : > { %v5866_v52 = vmul.f32 0.1, %v5811_v15  ;;  %v5644_v19 = vshrl.u32 %v5433_v36, 16  ;;  %v5647_v42 = vshll.u32 %v5433_v36, 16 }
 0x678   : > { %v5515_v49 = vor.u32 %v5514_v63, %v5511_v39  ;;  %v5769_v11 = vpop.f32.mrf.mxu1  ;;  %v4783_v39 = vpop.permute.xlu2 %4782 }
 0x679   : > { %v5932_v31 = vadd.f32 %v5900_v9, %v5866_v52  ;;  %v5849_v32 = vmul.f32 0.1, %v5769_v11  ;;  %v5646_v10 = vrot.slane %v5644_v19, 3  ;;  %v5649_v45 = vrot.slane %v5647_v42, 4 }
 0x67a   : > { %v4599_v16 = vpop.permute.xlu1 %4598  ;;  %v5516_v62 = vsel %vm2721_vm12, %v5508_v61, %v5515_v49 }
 0x67b   : > { %5964 = vst.msk [vmem:[#allocation2 + $0x88] sm:$0xff] %vm2217_vm4, %v5932_v31  ;;  %v5996_v40 = vpack.c.bf16 %v5932_v31, %v5932_v31  ;;  %v5915_v2 = vadd.f32 %v5883_v17, %v5849_v32  ;;  %8945 = vmatmul.msk.bf16.gmra.mxu1 %vm2989_vm13, %v5516_v62  ;;  %v5319_v18 = vsel %vm2542_vm8, %v5255_v37, %v4599_v16  ;;  %v5902_v16 = vld [vmem:[#allocation2 + $0x98] sm:$0xff] }
 0x67c   : > { %v4375_v48 = vpop.permute.xlu0 %4374  ;;  %v5370_v46 = vsel %vm2607_vm11, %v5319_v18, %v4781_v22  ;;  %v5650_v20 = vor.u32 %v5649_v45, %v5646_v10 }
 0x67d   : > { %6028 = vst.msk [vmem:[#allocation3 + $0x98] sm:$0xf] %vm3197_vm14, %v5996_v40  ;;  %v5979_v55 = vpack.c.bf16 %v5915_v2, %v5915_v2  ;;  %v5223_v12 = vsel %vm2477_vm9, %v12605_v58, %v4375_v48  ;;  %v5885_v40 = vld [vmem:[#allocation2 + $0x10] sm:$0xff] }
 0x67e   : > { %5947 = vst.msk [vmem:[#allocation2] sm:$0xff] %vm2217_vm4, %v5915_v2  ;;  %v5287_v34 = vsel %vm2542_vm8, %v5223_v12, %v13357_v56 }
 0x67f   : > { %6011 = vst.msk [vmem:[#allocation3 + $0x14] sm:$0xf] %vm3197_vm14, %v5979_v55 }
 0x680   : > { %v5771_v27 = vpop.f32.mrf.mxu1 }
 0x681   : > { %v5850_v13 = vmul.f32 0.1, %v5771_v27 }
 0x682   : > { %v4935_v41 = vpop.permute.xlu1 %4934 }
 0x683   : > { %v5431_v24 = vsel %vm2656_vm10, %v5370_v46, %v4935_v41  ;;  %v5916_v60 = vadd.f32 %v5884_v7, %v5850_v13  ;;  %v4379_v7 = vpop.permute.xlu2 %4378 }
 0x684   : > { %v5637_v53 = vshrl.u32 %v5431_v24, 16  ;;  %v5640_v23 = vshll.u32 %v5431_v24, 16  ;;  %v4569_v28 = vpop.permute.xlu0 %4568  ;;  %v5886_v24 = vld [vmem:[#allocation2 + $0x18] sm:$0xff] }
 0x685   : > { %5948 = vst.msk [vmem:[#allocation2 + $0x8] sm:$0xff] %vm2217_vm4, %v5916_v60  ;;  %v5980_v1 = vpack.c.bf16 %v5916_v60, %v5916_v60 }
 0x686   : > { %v5639_v59 = vrot.slane %v5637_v53, 3  ;;  %v5642_v8 = vrot.slane %v5640_v23, 4 }
 0x687   : > { %6012 = vst.msk [vmem:[#allocation3 + $0x18] sm:$0xf] %vm3197_vm14, %v5980_v1  ;;  %v5261_v1 = vsel %vm2477_vm9, %v12699_v26, %v13379_v50 }
 0x688   : > { %v5643_v57 = vor.u32 %v5642_v8, %v5639_v59 }
 0x68a   : > { %v4377_v43 = vpop.permute.xlu1 %4376  ;;  %v5651_v29 = vsel %vm2721_vm12, %v5643_v57, %v5650_v20 }
 0x68b   : > { %8954 = vmatmul.msk.bf16.gmra.mxu3 %vm2989_vm13, %v5651_v29  ;;  %v5225_v51 = vsel %vm2477_vm9, %v12608_v35, %v4377_v43  ;;  %v4573_v8 = vpop.permute.xlu2 %4572 }
 0x68c   : > { %v4905_v47 = vpop.permute.xlu0 %4904  ;;  %v5289_v22 = vsel %vm2542_vm8, %v5225_v51, %v4569_v28 }
 0x68e   : > { %v5814_v21 = vpop.f32.mrf.mxu3 }
 0x68f   : > { %v5867_v33 = vmul.f32 0.1, %v5814_v21 }
 0x691   : > { %v5933_v0 = vadd.f32 %v5901_v3, %v5867_v33 }
 0x692   : > { %v4765_v4 = vpop.permute.xlu1 %4764 }
 0x693   : > { %v5346_v63 = vsel %vm2607_vm11, %v5287_v34, %v4765_v4  ;;  %v5347_v15 = vsel %vm2607_vm11, %v5289_v22, %v4765_v4  ;;  %5965 = vst.msk [vmem:[#allocation2 + $0x90] sm:$0xff] %vm2217_vm4, %v5933_v0  ;;  %v5997_v58 = vpack.c.bf16 %v5933_v0, %v5933_v0  ;;  %v5903_v22 = vld [vmem:[#allocation2 + $0xa0] sm:$0xff] }
 0x694   : > { %v5399_v35 = vsel %vm2656_vm10, %v5346_v63, %v4903_v38  ;;  %v5401_v9 = vsel %vm2656_vm10, %v5347_v15, %v4905_v47  ;;  %v4603_v54 = vpop.permute.xlu0 %4602 }
 0x695   : > { %v5517_v49 = vshrl.u32 %v5399_v35, 16  ;;  %v5520_v30 = vshll.u32 %v5399_v35, 16  ;;  %v5524_v52 = vshrl.u32 %v5401_v9, 16  ;;  %v5527_v61 = vshll.u32 %v5401_v9, 16  ;;  %6029 = vst.msk [vmem:[#allocation3 + $0xa4] sm:$0xf] %vm3197_vm14, %v5997_v58 }
 0x696   : > { %v5816_v32 = vpop.f32.mrf.mxu3 }
 0x697   : > { %v5519_v56 = vrot.slane %v5517_v49, 3  ;;  %v5522_v11 = vrot.slane %v5520_v30, 4  ;;  %v5526_v17 = vrot.slane %v5524_v52, 3  ;;  %v5529_v31 = vrot.slane %v5527_v61, 4 }
 0x698   : > { %v5868_v62 = vmul.f32 0.1, %v5816_v32  ;;  %v5774_v36 = vpop.f32.mrf.mxu1 }
 0x699   : > { %v5523_v2 = vor.u32 %v5522_v11, %v5519_v56  ;;  %v5530_v48 = vor.u32 %v5529_v31, %v5526_v17  ;;  %v5851_v55 = vmul.f32 0.1, %v5774_v36  ;;  %v5227_v56 = vsel %vm2477_vm9, %v12799_v6, %v4379_v7 }
 0x69a   : > { %v5934_v37 = vadd.f32 %v5902_v16, %v5868_v62  ;;  %v4411_v38 = vpop.permute.xlu1 %4410  ;;  %v5904_v16 = vld [vmem:[#allocation2 + $0xa8] sm:$0xff] }
 0x69b   : > { %v5531_v19 = vsel %vm2721_vm12, %v5523_v2, %v5530_v48  ;;  %v5917_v42 = vadd.f32 %v5885_v40, %v5851_v55  ;;  %v5259_v27 = vsel %vm2477_vm9, %v12696_v25, %v4411_v38  ;;  %v5887_v40 = vld [vmem:[#allocation2 + $0x20] sm:$0xff] }
 0x69c   : > { %5966 = vst.msk [vmem:[#allocation2 + $0x98] sm:$0xff] %vm2217_vm4, %v5934_v37  ;;  %v5998_v18 = vpack.c.bf16 %v5934_v37, %v5934_v37  ;;  %8946 = vmatmul.msk.bf16.gmra.mxu1 %vm2989_vm13, %v5531_v19  ;;  %v4939_v13 = vpop.permute.xlu0 %4938  ;;  %v5323_v46 = vsel %vm2542_vm8, %v5259_v27, %v4603_v54 }
 0x69d   : > { %v5981_v41 = vpack.c.bf16 %v5917_v42, %v5917_v42  ;;  %5949 = vst.msk [vmem:[#allocation2 + $0x10] sm:$0xff] %vm2217_vm4, %v5917_v42  ;;  %v5373_v45 = vsel %vm2607_vm11, %v5323_v46, %v4783_v39 }
 0x69e   : > { %6030 = vst.msk [vmem:[#allocation3 + $0xa8] sm:$0xf] %vm3197_vm14, %v5998_v18  ;;  %v5435_v23 = vsel %vm2656_vm10, %v5373_v45, %v4939_v13 }
 0x69f   : > { %6013 = vst.msk [vmem:[#allocation3 + $0x24] sm:$0xf] %vm3197_vm14, %v5981_v41  ;;  %v5652_v20 = vshrl.u32 %v5435_v23, 16  ;;  %v5655_v43 = vshll.u32 %v5435_v23, 16 }
 0x6a0   : > { %v5776_v10 = vpop.f32.mrf.mxu1 }
 0x6a1   : > { %v5852_v60 = vmul.f32 0.1, %v5776_v10  ;;  %v5654_v51 = vrot.slane %v5652_v20, 3  ;;  %v5657_v21 = vrot.slane %v5655_v43, 4 }
 0x6a2   : > { %v4605_v53 = vpop.permute.xlu1 %4604 }
 0x6a3   : > { %v5918_v25 = vadd.f32 %v5886_v24, %v5852_v60  ;;  %v5325_v57 = vsel %vm2542_vm8, %v5261_v1, %v4605_v53  ;;  %v5658_v63 = vor.u32 %v5657_v21, %v5654_v51 }
 0x6a4   : > { %v4381_v28 = vpop.permute.xlu0 %4380  ;;  %v5374_v47 = vsel %vm2607_vm11, %v5325_v57, %v4783_v39  ;;  %v4909_v39 = vpop.permute.xlu2 %4908 }
 0x6a5   : > { %5950 = vst.msk [vmem:[#allocation2 + $0x18] sm:$0xff] %vm2217_vm4, %v5918_v25  ;;  %v5982_v59 = vpack.c.bf16 %v5918_v25, %v5918_v25  ;;  %v5229_v26 = vsel %vm2477_vm9, %v12803_v44, %v4381_v28  ;;  %v5888_v25 = vld [vmem:[#allocation2 + $0x28] sm:$0xff] }
 0x6a6   : > { %v5293_v58 = vsel %vm2542_vm8, %v5229_v26, %v4573_v8 }
 0x6a7   : > { %6014 = vst.msk [vmem:[#allocation3 + $0x28] sm:$0xf] %vm3197_vm14, %v5982_v59 }
 0x6aa   : > { %v4941_v29 = vpop.permute.xlu1 %4940 }
 0x6ab   : > { %v5437_v12 = vsel %vm2656_vm10, %v5374_v47, %v4941_v29 }
 0x6ac   : > { %v5659_v3 = vshrl.u32 %v5437_v12, 16  ;;  %v5662_v33 = vshll.u32 %v5437_v12, 16  ;;  %v4767_v50 = vpop.permute.xlu0 %4766  ;;  %v4607_v38 = vpop.permute.xlu2 %4606 }
 0x6ad   : > { %v5350_v9 = vsel %vm2607_vm11, %v5293_v58, %v4767_v50 }
 0x6ae   : > { %v5661_v0 = vrot.slane %v5659_v3, 3  ;;  %v5664_v4 = vrot.slane %v5662_v33, 4  ;;  %v5819_v34 = vpop.f32.mrf.mxu3  ;;  %v5405_v44 = vsel %vm2656_vm10, %v5350_v9, %v4909_v39 }
 0x6af   : > { %v5869_v35 = vmul.f32 0.1, %v5819_v34  ;;  %v5539_v11 = vshrl.u32 %v5405_v44, 16  ;;  %v5542_v17 = vshll.u32 %v5405_v44, 16 }
 0x6b0   : > { %v5665_v15 = vor.u32 %v5664_v4, %v5661_v0 }
 0x6b1   : > { %v5935_v49 = vadd.f32 %v5903_v22, %v5869_v35  ;;  %v5541_v19 = vrot.slane %v5539_v11, 3  ;;  %v5544_v18 = vrot.slane %v5542_v17, 4  ;;  %v5905_v35 = vld [vmem:[#allocation2 + $0xb0] sm:$0xff] }
 0x6b2   : > { %v4571_v30 = vpop.permute.xlu1 %4570  ;;  %v5666_v52 = vsel %vm2721_vm12, %v5658_v63, %v5665_v15 }
 0x6b3   : > { %8955 = vmatmul.msk.bf16.gmra.mxu3 %vm2989_vm13, %v5666_v52  ;;  %5967 = vst.msk [vmem:[#allocation2 + $0xa0] sm:$0xff] %vm2217_vm4, %v5935_v49  ;;  %v5999_v61 = vpack.c.bf16 %v5935_v49, %v5935_v49  ;;  %v5291_v31 = vsel %vm2542_vm8, %v5227_v56, %v4571_v30  ;;  %v5545_v60 = vor.u32 %v5544_v18, %v5541_v19  ;;  %v15758_v56 = vld [vmem:[#allocation92_spill] sm:$0xff] }
 0x6b4   : > { %v4415_v54 = vpop.permute.xlu0 %4414  ;;  %v5349_v55 = vsel %vm2607_vm11, %v5291_v31, %v4767_v50  ;;  %v4943_v8 = vpop.permute.xlu2 %4942 }
 0x6b5   : > { %6031 = vst.msk [vmem:[#allocation3 + $0xb4] sm:$0xf] %vm3197_vm14, %v5999_v61  ;;  %v5263_v43 = vsel %vm2477_vm9, %v12897_v14, %v4415_v54 }
 0x6b6   : > { %v5821_v32 = vpop.f32.mrf.mxu3  ;;  %v5327_v12 = vsel %vm2542_vm8, %v5263_v43, %v4607_v38 }
 0x6b7   : > { %v5870_v62 = vmul.f32 0.1, %v5821_v32  ;;  %v5906_v32 = vld [vmem:[#allocation2 + $0xb8] sm:$0xff] }
 0x6b8   : > { %v5779_v36 = vpop.f32.mrf.mxu1 }
 0x6b9   : > { %v5936_v2 = vadd.f32 %v5904_v16, %v5870_v62  ;;  %v5853_v48 = vmul.f32 0.1, %v5779_v36  ;;  %v5889_v36 = vld [vmem:[#allocation2 + $0x30] sm:$0xff] }
 0x6ba   : > { %v4907_v37 = vpop.permute.xlu1 %4906 }
 0x6bb   : > { %v5403_v6 = vsel %vm2656_vm10, %v5349_v55, %v4907_v37  ;;  %5968 = vst.msk [vmem:[#allocation2 + $0xa8] sm:$0xff] %vm2217_vm4, %v5936_v2  ;;  %v6000_v42 = vpack.c.bf16 %v5936_v2, %v5936_v2  ;;  %v5919_v27 = vadd.f32 %v5887_v40, %v5853_v48 }
 0x6bc   : > { %v5532_v7 = vshrl.u32 %v5403_v6, 16  ;;  %v5535_v13 = vshll.u32 %v5403_v6, 16  ;;  %v4609_v41 = vpop.permute.xlu0 %4608 }
 0x6bd   : > { %6032 = vst.msk [vmem:[#allocation3 + $0xb8] sm:$0xf] %vm3197_vm14, %v6000_v42  ;;  %v5983_v46 = vpack.c.bf16 %v5919_v27, %v5919_v27 }
 0x6be   : > { %v5534_v10 = vrot.slane %v5532_v7, 3  ;;  %v5537_v24 = vrot.slane %v5535_v13, 4  ;;  %5951 = vst.msk [vmem:[#allocation2 + $0x20] sm:$0xff] %vm2217_vm4, %v5919_v27  ;;  %v15759_v27 = vld [vmem:[#allocation122_spill] sm:$0xff] }
 0x6bf   : > { %6015 = vst.msk [vmem:[#allocation3 + $0x34] sm:$0xf] %vm3197_vm14, %v5983_v46 }
 0x6c0   : > { %v5538_v45 = vor.u32 %v5537_v24, %v5534_v10  ;;  %v5781_v53 = vpop.f32.mrf.mxu1  ;;  %v5890_v24 = vld [vmem:[#allocation2 + $0x38] sm:$0xff] }
 0x6c1   : > { %v5854_v23 = vmul.f32 0.1, %v5781_v53 }
 0x6c2   : > { %v4417_v28 = vpop.permute.xlu1 %4416  ;;  %v5546_v1 = vsel %vm2721_vm12, %v5538_v45, %v5545_v60 }
 0x6c3   : > { %8947 = vmatmul.msk.bf16.gmra.mxu1 %vm2989_vm13, %v5546_v1  ;;  %v5920_v59 = vadd.f32 %v5888_v25, %v5854_v23  ;;  %v5265_v29 = vsel %vm2477_vm9, %v12901_v5, %v4417_v28  ;;  %v4385_v5 = vpop.permute.xlu2 %4384 }
 0x6c4   : > { %v4945_v20 = vpop.permute.xlu0 %4944  ;;  %v5329_v51 = vsel %vm2542_vm8, %v5265_v29, %v4609_v41  ;;  %v5233_v7 = vsel %vm2477_vm9, %v15759_v27, %v4385_v5 }
 0x6c5   : > { %5952 = vst.msk [vmem:[#allocation2 + $0x28] sm:$0xff] %vm2217_vm4, %v5920_v59  ;;  %v5984_v57 = vpack.c.bf16 %v5920_v59, %v5920_v59 }
 0x6c7   : > { %6016 = vst.msk [vmem:[#allocation3 + $0x38] sm:$0xf] %vm3197_vm14, %v5984_v57 }
 0x6ca   : > { %v4785_v47 = vpop.permute.xlu1 %4784 }
 0x6cb   : > { %v5376_v21 = vsel %vm2607_vm11, %v5327_v12, %v4785_v47  ;;  %v5377_v3 = vsel %vm2607_vm11, %v5329_v51, %v4785_v47  ;;  %v4769_v40 = vpop.permute.xlu2 %4768 }
 0x6cc   : > { %v5439_v33 = vsel %vm2656_vm10, %v5376_v21, %v4943_v8  ;;  %v5441_v26 = vsel %vm2656_vm10, %v5377_v3, %v4945_v20  ;;  %v4575_v39 = vpop.permute.xlu0 %4574  ;;  %v5907_v21 = vld [vmem:[#allocation2 + $0xc0] sm:$0xff] }
 0x6cd   : > { %v5667_v50 = vshrl.u32 %v5439_v33, 16  ;;  %v5670_v14 = vshll.u32 %v5439_v33, 16  ;;  %v5674_v0 = vshrl.u32 %v5441_v26, 16  ;;  %v5677_v4 = vshll.u32 %v5441_v26, 16 }
 0x6ce   : > { %v5824_v58 = vpop.f32.mrf.mxu3 }
 0x6cf   : > { %v5669_v34 = vrot.slane %v5667_v50, 3  ;;  %v5672_v22 = vrot.slane %v5670_v14, 4  ;;  %v5676_v63 = vrot.slane %v5674_v0, 3  ;;  %v5679_v15 = vrot.slane %v5677_v4, 4  ;;  %v5908_v14 = vld [vmem:[#allocation2 + $0xc8] sm:$0xff] }
 0x6d0   : > { %v5871_v9 = vmul.f32 0.1, %v5824_v58 }
 0x6d1   : > { %v5673_v49 = vor.u32 %v5672_v22, %v5669_v34  ;;  %v5680_v30 = vor.u32 %v5679_v15, %v5676_v63  ;;  %v5891_v34 = vld [vmem:[#allocation2 + $0x40] sm:$0xff] }
 0x6d2   : > { %v5937_v52 = vadd.f32 %v5905_v35, %v5871_v9  ;;  %v4383_v44 = vpop.permute.xlu1 %4382 }
 0x6d3   : > { %v5681_v61 = vsel %vm2721_vm12, %v5673_v49, %v5680_v30  ;;  %v5231_v11 = vsel %vm2477_vm9, %v15758_v56, %v4383_v44  ;;  %v5909_v44 = vld [vmem:[#allocation2 + $0xd0] sm:$0xff] }
 0x6d4   : > { %5969 = vst.msk [vmem:[#allocation2 + $0xb0] sm:$0xff] %vm2217_vm4, %v5937_v52  ;;  %v6001_v54 = vpack.c.bf16 %v5937_v52, %v5937_v52  ;;  %8956 = vmatmul.msk.bf16.gmra.mxu3 %vm2989_vm13, %v5681_v61  ;;  %v5295_v17 = vsel %vm2542_vm8, %v5231_v11, %v4575_v39  ;;  %v4911_v37 = vpop.permute.xlu0 %4910  ;;  %v5892_v39 = vld [vmem:[#allocation2 + $0x48] sm:$0xff] }
 0x6d5   : > { %v5352_v48 = vsel %vm2607_vm11, %v5295_v17, %v4769_v40  ;;  %v5910_v17 = vld [vmem:[#allocation2 + $0xd8] sm:$0xff] }
 0x6d6   : > { %6033 = vst.msk [vmem:[#allocation3 + $0xc4] sm:$0xf] %vm3197_vm14, %v6001_v54  ;;  %v5826_v31 = vpop.f32.mrf.mxu3  ;;  %v5407_v6 = vsel %vm2656_vm10, %v5352_v48, %v4911_v37 }
 0x6d7   : > { %v5872_v16 = vmul.f32 0.1, %v5826_v31  ;;  %v5547_v41 = vshrl.u32 %v5407_v6, 16  ;;  %v5550_v46 = vshll.u32 %v5407_v6, 16 }
 0x6d8   : > { %v5784_v62 = vpop.f32.mrf.mxu1 }
 0x6d9   : > { %v5855_v2 = vmul.f32 0.1, %v5784_v62  ;;  %v5938_v55 = vadd.f32 %v5906_v32, %v5872_v16  ;;  %v5549_v28 = vrot.slane %v5547_v41, 3  ;;  %v5552_v1 = vrot.slane %v5550_v46, 4  ;;  %v5893_v62 = vld [vmem:[#allocation2 + $0x50] sm:$0xff]  ;;  %v5912_v46 = vld [vmem:[#allocation2 + $0xe8] sm:$0xff] }
 0x6da   : > { %v4577_v38 = vpop.permute.xlu1 %4576 }
 0x6db   : > { %v5921_v19 = vadd.f32 %v5889_v36, %v5855_v2  ;;  %5970 = vst.msk [vmem:[#allocation2 + $0xb8] sm:$0xff] %vm2217_vm4, %v5938_v55  ;;  %v6002_v18 = vpack.c.bf16 %v5938_v55, %v5938_v55  ;;  %v5297_v13 = vsel %vm2542_vm8, %v5233_v7, %v4577_v38  ;;  %v5553_v29 = vor.u32 %v5552_v1, %v5549_v28  ;;  %v5894_v55 = vld [vmem:[#allocation2 + $0x58] sm:$0xff] }
 0x6dc   : > { %v5353_v60 = vsel %vm2607_vm11, %v5297_v13, %v4769_v40 }
 0x6dd   : > { %5953 = vst.msk [vmem:[#allocation2 + $0x30] sm:$0xff] %vm2217_vm4, %v5921_v19  ;;  %v5985_v42 = vpack.c.bf16 %v5921_v19, %v5921_v19 }
 0x6de   : > { %6034 = vst.msk [vmem:[#allocation3 + $0xc8] sm:$0xf] %vm3197_vm14, %v6002_v18 }
 0x6df   : > { %6017 = vst.msk [vmem:[#allocation3 + $0x44] sm:$0xf] %vm3197_vm14, %v5985_v42  ;;  %v5911_v42 = vld [vmem:[#allocation2 + $0xe0] sm:$0xff] }
 0x6e0   : > { %v5786_v10 = vpop.f32.mrf.mxu1 }
 0x6e1   : > { %v5856_v45 = vmul.f32 0.1, %v5786_v10 }
 0x6e2   : > { %v4913_v53 = vpop.permute.xlu1 %4912 }
 0x6e3   : > { %v5922_v25 = vadd.f32 %v5890_v24, %v5856_v45  ;;  %v5409_v23 = vsel %vm2656_vm10, %v5353_v60, %v4913_v53  ;;  %v5895_v45 = vld [vmem:[#allocation2 + $0x60] sm:$0xff] }
 0x6e4   : > { %v5554_v59 = vshrl.u32 %v5409_v23, 16  ;;  %v5557_v8 = vshll.u32 %v5409_v23, 16 }
 0x6e5   : > { %5954 = vst.msk [vmem:[#allocation2 + $0x38] sm:$0xff] %vm2217_vm4, %v5922_v25  ;;  %v5986_v57 = vpack.c.bf16 %v5922_v25, %v5922_v25 }
 0x6e6   : > { %v5556_v20 = vrot.slane %v5554_v59, 3  ;;  %v5559_v43 = vrot.slane %v5557_v8, 4  ;;  %v5896_v59 = vld [vmem:[#allocation2 + $0x68] sm:$0xff] }
 0x6e7   : > { %6018 = vst.msk [vmem:[#allocation3 + $0x48] sm:$0xf] %vm3197_vm14, %v5986_v57 }
 0x6e8   : > { %v5560_v47 = vor.u32 %v5559_v43, %v5556_v20 }
 0x6ea   : > { %v5561_v12 = vsel %vm2721_vm12, %v5553_v29, %v5560_v47  ;;  %v5913_v29 = vld [vmem:[#allocation2 + $0xf0] sm:$0xff] }
 0x6eb   : > { %8948 = vmatmul.msk.bf16.gmra.mxu1 %vm2989_vm13, %v5561_v12 }
 0x6ee   : > { %v5829_v51 = vpop.f32.mrf.mxu3 }
 0x6ef   : > { %v5873_v3 = vmul.f32 0.1, %v5829_v51 }
 0x6f1   : > { %v5939_v33 = vadd.f32 %v5907_v21, %v5873_v3  ;;  %v5914_v3 = vld [vmem:[#allocation2 + $0xf8] sm:$0xff] }
 0x6f3   : > { %5971 = vst.msk [vmem:[#allocation2 + $0xc0] sm:$0xff] %vm2217_vm4, %v5939_v33  ;;  %v6003_v26 = vpack.c.bf16 %v5939_v33, %v5939_v33 }
 0x6f5   : > { %6035 = vst.msk [vmem:[#allocation3 + $0xd4] sm:$0xf] %vm3197_vm14, %v6003_v26 }
 0x6f6   : > { %v5831_v50 = vpop.f32.mrf.mxu3 }
 0x6f7   : > { %v5874_v0 = vmul.f32 0.1, %v5831_v50 }
 0x6f8   : > { %v5789_v5 = vpop.f32.mrf.mxu1 }
 0x6f9   : > { %v5940_v4 = vadd.f32 %v5908_v14, %v5874_v0  ;;  %v5857_v22 = vmul.f32 0.1, %v5789_v5  ;;  %v5897_v0 = vld [vmem:[#allocation2 + $0x70] sm:$0xff] }
 0x6fb   : > { %5972 = vst.msk [vmem:[#allocation2 + $0xc8] sm:$0xff] %vm2217_vm4, %v5940_v4  ;;  %v6004_v63 = vpack.c.bf16 %v5940_v4, %v5940_v4  ;;  %v5923_v15 = vadd.f32 %v5891_v34, %v5857_v22 }
 0x6fd   : > { %6036 = vst.msk [vmem:[#allocation3 + $0xd8] sm:$0xf] %vm3197_vm14, %v6004_v63  ;;  %v5987_v58 = vpack.c.bf16 %v5923_v15, %v5923_v15  ;;  %v5898_v63 = vld [vmem:[#allocation2 + $0x78] sm:$0xff] }
 0x6fe   : > { %5955 = vst.msk [vmem:[#allocation2 + $0x40] sm:$0xff] %vm2217_vm4, %v5923_v15 }
 0x6ff   : > { %6019 = vst.msk [vmem:[#allocation3 + $0x54] sm:$0xf] %vm3197_vm14, %v5987_v58 }
 0x700   : > { %v5791_v35 = vpop.f32.mrf.mxu1 }
 0x701   : > { %v5858_v9 = vmul.f32 0.1, %v5791_v35 }
 0x703   : > { %v5924_v49 = vadd.f32 %v5892_v39, %v5858_v9 }
 0x705   : > { %5956 = vst.msk [vmem:[#allocation2 + $0x48] sm:$0xff] %vm2217_vm4, %v5924_v49  ;;  %v5988_v30 = vpack.c.bf16 %v5924_v49, %v5924_v49 }
 0x707   : > { %6020 = vst.msk [vmem:[#allocation3 + $0x58] sm:$0xf] %vm3197_vm14, %v5988_v30 }
 0x70e   : > { %v5834_v52 = vpop.f32.mrf.mxu3 }
 0x70f   : > { %v5875_v61 = vmul.f32 0.1, %v5834_v52 }
 0x711   : > { %v5941_v54 = vadd.f32 %v5909_v44, %v5875_v61 }
 0x713   : > { %5973 = vst.msk [vmem:[#allocation2 + $0xd0] sm:$0xff] %vm2217_vm4, %v5941_v54  ;;  %v6005_v56 = vpack.c.bf16 %v5941_v54, %v5941_v54 }
 0x715   : > { %6037 = vst.msk [vmem:[#allocation3 + $0xe4] sm:$0xf] %vm3197_vm14, %v6005_v56 }
 0x716   : > { %v5836_v11 = vpop.f32.mrf.mxu3 }
 0x717   : > { %v5876_v31 = vmul.f32 0.1, %v5836_v11 }
 0x719   : > { %v5942_v32 = vadd.f32 %v5910_v17, %v5876_v31  ;;  %v5794_v16 = vpop.f32.mrf.mxu1 }
 0x71a   : > { %v5859_v36 = vmul.f32 0.1, %v5794_v16 }
 0x71b   : > { %5974 = vst.msk [vmem:[#allocation2 + $0xd8] sm:$0xff] %vm2217_vm4, %v5942_v32  ;;  %v6006_v40 = vpack.c.bf16 %v5942_v32, %v5942_v32 }
 0x71c   : > { %v5925_v2 = vadd.f32 %v5893_v62, %v5859_v36 }
 0x71d   : > { %6038 = vst.msk [vmem:[#allocation3 + $0xe8] sm:$0xf] %vm3197_vm14, %v6006_v40 }
 0x71e   : > { %5957 = vst.msk [vmem:[#allocation2 + $0x50] sm:$0xff] %vm2217_vm4, %v5925_v2  ;;  %v5989_v48 = vpack.c.bf16 %v5925_v2, %v5925_v2 }
 0x720   : > { %6021 = vst.msk [vmem:[#allocation3 + $0x64] sm:$0xf] %vm3197_vm14, %v5989_v48 }
 0x721   : > { %v5796_v37 = vpop.f32.mrf.mxu1 }
 0x722   : > { %v5860_v38 = vmul.f32 0.1, %v5796_v37 }
 0x724   : > { %v5926_v19 = vadd.f32 %v5894_v55, %v5860_v38 }
 0x726   : > { %5958 = vst.msk [vmem:[#allocation2 + $0x58] sm:$0xff] %vm2217_vm4, %v5926_v19  ;;  %v5990_v18 = vpack.c.bf16 %v5926_v19, %v5926_v19 }
 0x728   : > { %6022 = vst.msk [vmem:[#allocation3 + $0x68] sm:$0xf] %vm3197_vm14, %v5990_v18 }
 0x736   : > { %v5839_v6 = vpop.f32.mrf.mxu3 }
 0x737   : > { %v5877_v27 = vmul.f32 0.1, %v5839_v6 }
 0x739   : > { %v5943_v7 = vadd.f32 %v5911_v42, %v5877_v27 }
 0x73b   : > { %5975 = vst.msk [vmem:[#allocation2 + $0xe0] sm:$0xff] %vm2217_vm4, %v5943_v7  ;;  %v6007_v13 = vpack.c.bf16 %v5943_v7, %v5943_v7 }
 0x73d   : > { %6039 = vst.msk [vmem:[#allocation3 + $0xf4] sm:$0xf] %vm3197_vm14, %v6007_v13 }
 0x73e   : > { %v5841_v41 = vpop.f32.mrf.mxu3 }
 0x73f   : > { %v5878_v10 = vmul.f32 0.1, %v5841_v41 }
 0x740   : > { %v5799_v24 = vpop.f32.mrf.mxu1 }
 0x741   : > { %v5944_v60 = vadd.f32 %v5912_v46, %v5878_v10  ;;  %v5861_v53 = vmul.f32 0.1, %v5799_v24 }
 0x743   : > { %5976 = vst.msk [vmem:[#allocation2 + $0xe8] sm:$0xff] %vm2217_vm4, %v5944_v60  ;;  %v6008_v25 = vpack.c.bf16 %v5944_v60, %v5944_v60  ;;  %v5927_v23 = vadd.f32 %v5895_v45, %v5861_v53 }
 0x745   : > { %6040 = vst.msk [vmem:[#allocation3 + $0xf8] sm:$0xf] %vm3197_vm14, %v6008_v25  ;;  %v5991_v28 = vpack.c.bf16 %v5927_v23, %v5927_v23 }
 0x746   : > { %5959 = vst.msk [vmem:[#allocation2 + $0x60] sm:$0xff] %vm2217_vm4, %v5927_v23 }
 0x747   : > { %6023 = vst.msk [vmem:[#allocation3 + $0x74] sm:$0xf] %vm3197_vm14, %v5991_v28 }
 0x748   : > { %v5801_v1 = vpop.f32.mrf.mxu1 }
 0x749   : > { %v5862_v8 = vmul.f32 0.1, %v5801_v1 }
 0x74b   : > { %v5928_v57 = vadd.f32 %v5896_v59, %v5862_v8 }
 0x74d   : > { %5960 = vst.msk [vmem:[#allocation2 + $0x68] sm:$0xff] %vm2217_vm4, %v5928_v57  ;;  %v5992_v20 = vpack.c.bf16 %v5928_v57, %v5928_v57 }
 0x74f   : > { %6024 = vst.msk [vmem:[#allocation3 + $0x78] sm:$0xf] %vm3197_vm14, %v5992_v20 }
 0x757   : > { %v5844_v43 = vpop.f32.mrf.mxu3 }
 0x758   : > { %v5879_v47 = vmul.f32 0.1, %v5844_v43 }
 0x75a   : > { %v5945_v12 = vadd.f32 %v5913_v29, %v5879_v47 }
 0x75c   : > { %5977 = vst.msk [vmem:[#allocation2 + $0xf0] sm:$0xff] %vm2217_vm4, %v5945_v12  ;;  %v6009_v51 = vpack.c.bf16 %v5945_v12, %v5945_v12 }
 0x75e   : > { %6041 = vst.msk [vmem:[#allocation3 + $0x104] sm:$0xf] %vm3197_vm14, %v6009_v51 }
 0x75f   : > { %v5846_v21 = vpop.f32.mrf.mxu3 }
 0x760   : > { %v5880_v33 = vmul.f32 0.1, %v5846_v21 }
 0x762   : > { %v5946_v26 = vadd.f32 %v5914_v3, %v5880_v33 }
 0x764   : > { %5978 = vst.msk [vmem:[#allocation2 + $0xf8] sm:$0xff] %vm2217_vm4, %v5946_v26  ;;  %v6010_v50 = vpack.c.bf16 %v5946_v26, %v5946_v26 }
 0x766   : > { %6042 = vst.msk [vmem:[#allocation3 + $0x108] sm:$0xf] %vm3197_vm14, %v6010_v50 }
 0x768   : > { %v5804_v14 = vpop.f32.mrf.mxu1 }
 0x769   : > { %v5863_v4 = vmul.f32 0.1, %v5804_v14 }
 0x76b   : > { %v5929_v5 = vadd.f32 %v5897_v0, %v5863_v4 }
 0x76d   : > { %5961 = vst.msk [vmem:[#allocation2 + $0x70] sm:$0xff] %vm2217_vm4, %v5929_v5  ;;  %v5993_v34 = vpack.c.bf16 %v5929_v5, %v5929_v5 }
 0x76f   : > { %6025 = vst.msk [vmem:[#allocation3 + $0x84] sm:$0xf] %vm3197_vm14, %v5993_v34 }
 0x770   : > { %v5806_v22 = vpop.f32.mrf.mxu1 }
 0x771   : > { %v5864_v15 = vmul.f32 0.1, %v5806_v22 }
 0x773   : > { %v5930_v58 = vadd.f32 %v5898_v63, %v5864_v15 }
 0x775   : > { %5962 = vst.msk [vmem:[#allocation2 + $0x78] sm:$0xff] %vm2217_vm4, %v5930_v58  ;;  %v5994_v35 = vpack.c.bf16 %v5930_v58, %v5930_v58 }
 0x777   : > { %6026 = vst.msk [vmem:[#allocation3 + $0x88] sm:$0xf] %vm3197_vm14, %v5994_v35 }
 0x778 PF: > { %p8957_p9 = scmp.ne.s32.totalorder %s9831_s12, 3 }
 0x77a   : > { %6046 = sbr.rel (%p8957_p9) target bundleno = 2743 (0xab7), region = 44 }
 0x77f   : > { %v13502_v39 = vld [vmem:[#allocation3 + $0x44] sm:$0xff]   ;;  %v13516_v56 = vld [vmem:[#allocation3 + $0x54] sm:$0xff]   ;;  %s9858_s12 = smov 8   ;;  %vm6611_vm15 = vcmask 1042432   ;;  %s9859_s13 = smov 16   ;;  %vm7780_vm0 = vcmask 64512  }
 0x780   : > { %15760 = vst [vmem:[#allocation156_spill] sm:$0xff] %v13502_v39  ;;  %v13504_v9 = vld [vmem:[#allocation3 + $0x40] sm:$0xf0]   ;;  %v13518_v11 = vld [vmem:[#allocation3 + $0x50] sm:$0xf0]   ;;  %v6436_v48 = vshrl.u32 %v13502_v39, 16 }
 0x781   : > { %v13506_v49 = vld [vmem:[#allocation3 + $0x24] sm:$0xff]   ;;  %15762 = vst [vmem:[#allocation158_spill] sm:$0xff] %v13518_v11  ;;  %v13520_v17 = vld [vmem:[#allocation3 + $0x34] sm:$0xff]   ;;  %v6439_v37 = vshll.u32 %v13502_v39, 16  ;;  %v6444_v6 = vshrl.u32 %v13516_v56, 16  ;;  %v6447_v42 = vshll.u32 %v13516_v56, 16 }
 0x782   : > { %v13508_v30 = vld [vmem:[#allocation3 + $0x20] sm:$0xf0]   ;;  %15763 = vst [vmem:[#allocation159_spill] sm:$0xff] %v13520_v17  ;;  %v13522_v31 = vld [vmem:[#allocation3 + $0x30] sm:$0xf0]   ;;  %v6420_v55 = vshrl.u32 %v13506_v49, 16 }
 0x783   : > { %15761 = vst [vmem:[#allocation157_spill] sm:$0xff] %v13508_v30  ;;  %v13510_v52 = vld [vmem:[#allocation3 + $0x4] sm:$0xff]   ;;  %v13524_v32 = vld [vmem:[#allocation3 + $0x14] sm:$0xff]   ;;  %v6423_v38 = vshll.u32 %v13506_v49, 16  ;;  %v6438_v27 = vrot.slane %v6436_v48, 4  ;;  %v6441_v7 = vrot.slane %v6439_v37, 5 }
 0x784   : > { %v13512_v44 = vld [vmem:[#allocation3] sm:$0xf0]   ;;  %15764 = vst [vmem:[#allocation160_spill] sm:$0xff] %v13522_v31  ;;  %v13526_v16 = vld [vmem:[#allocation3 + $0x10] sm:$0xf0]   ;;  %v6404_v19 = vshrl.u32 %v13510_v52, 16 }
 0x785   : > { %15765 = vst [vmem:[#allocation161_spill] sm:$0xff] %v13524_v32  ;;  %v6407_v18 = vshll.u32 %v13510_v52, 16  ;;  %v6422_v13 = vrot.slane %v6420_v55, 4  ;;  %v6425_v41 = vrot.slane %v6423_v38, 5  ;;  %v13540_v46 = vld [vmem:[#allocation3 + $0x84] sm:$0xff]   ;;  %v6446_v60 = vrot.slane %v6444_v6, 4 }
 0x786   : > { %15766 = vst [vmem:[#allocation162_spill] sm:$0xff] %v13526_v16  ;;  %v13542_v10 = vld [vmem:[#allocation3 + $0x80] sm:$0xf0]   ;;  %v6406_v24 = vrot.slane %v6404_v19, 4  ;;  %v6442_v53 = vor.u32 %v6441_v7, %v6438_v27  ;;  %v13544_v23 = vld [vmem:[#allocation3 + $0x74] sm:$0xff]   ;;  %v6449_v57 = vrot.slane %v6447_v42, 5 }
 0x787   : > { %v6409_v45 = vrot.slane %v6407_v18, 5  ;;  %v6426_v25 = vor.u32 %v6425_v41, %v6422_v13  ;;  %15767 = vst [vmem:[#allocation163_spill] sm:$0xff] %v13544_v23  ;;  %v13546_v28 = vld [vmem:[#allocation3 + $0x70] sm:$0xf0]   ;;  %v13548_v1 = vld [vmem:[#allocation3 + $0x64] sm:$0xff]   ;;  %v6428_v43 = vshrl.u32 %v13520_v17, 16 }
 0x788   : > { %15768 = vst [vmem:[#allocation164_spill] sm:$0xff] %v13546_v28  ;;  %v13550_v59 = vld [vmem:[#allocation3 + $0x60] sm:$0xf0]   ;;  %6539 = vrot.lane.b32.xlu2 %v6442_v53, %s9858_s12  ;;  %v6431_v29 = vshll.u32 %v13520_v17, 16  ;;  %v6412_v47 = vshrl.u32 %v13524_v32, 16  ;;  %v6415_v12 = vshll.u32 %v13524_v32, 16  ;;  %v6450_v63 = vor.u32 %v6449_v57, %v6446_v60 }
 0x789   : > { %15769 = vst [vmem:[#allocation165_spill] sm:$0xff] %v13550_v59  ;;  %v6410_v8 = vor.u32 %v6409_v45, %v6406_v24  ;;  %6535 = vrot.lane.b32.xlu1 %v6426_v25, %s9858_s12  ;;  %v13561_v21 = vld [vmem:[#allocation3 + $0xb4] sm:$0xff]   ;;  %v6430_v33 = vrot.slane %v6428_v43, 4  ;;  %v6468_v0 = vshrl.u32 %v13540_v46, 16  ;;  %v6471_v4 = vshll.u32 %v13540_v46, 16  ;;  %v13568_v34 = vld [vmem:[#allocation3 + $0xa4] sm:$0xff]  }
 0x78a   : > { %v13563_v3 = vld [vmem:[#allocation3 + $0xb0] sm:$0xf0]   ;;  %v6433_v26 = vrot.slane %v6431_v29, 5  ;;  %v6414_v50 = vrot.slane %v6412_v47, 4  ;;  %v6417_v14 = vrot.slane %v6415_v12, 5  ;;  %15770 = vst [vmem:[#allocation166_spill] sm:$0xff] %v13568_v34 }
 0x78b   : > { %6531 = vrot.lane.b32.xlu0 %v6410_v8, %s9858_s12  ;;  %v13570_v22 = vld [vmem:[#allocation3 + $0xa0] sm:$0xf0]   ;;  %v13573_v35 = vld [vmem:[#allocation3 + $0x94] sm:$0xff]   ;;  %v6460_v55 = vshrl.u32 %v13544_v23, 16  ;;  %v6463_v38 = vshll.u32 %v13544_v23, 16  ;;  %v6470_v18 = vrot.slane %v6468_v0, 4 }
 0x78c   : > { %15771 = vst [vmem:[#allocation167_spill] sm:$0xff] %v13570_v22  ;;  %v6434_v15 = vor.u32 %v6433_v26, %v6430_v33  ;;  %v13575_v48 = vld [vmem:[#allocation3 + $0x90] sm:$0xf0]   ;;  %v6418_v37 = vor.u32 %v6417_v14, %v6414_v50  ;;  %v6473_v6 = vrot.slane %v6471_v4, 5  ;;  %v13580_v42 = vld [vmem:[#allocation3 + $0xe4] sm:$0xff]   ;;  %v6452_v41 = vshrl.u32 %v13548_v1, 16 }
 0x78d   : > { %v13582_v27 = vld [vmem:[#allocation3 + $0xe0] sm:$0xf0]   ;;  %v6462_v7 = vrot.slane %v6460_v55, 4  ;;  %v6465_v13 = vrot.slane %v6463_v38, 5  ;;  %v6455_v24 = vshll.u32 %v13548_v1, 16  ;;  %v6492_v45 = vshrl.u32 %v13561_v21, 16 }
 0x78e   : > { %15772 = vst [vmem:[#allocation168_spill] sm:$0xff] %v13582_v27  ;;  %v13591_v53 = vld [vmem:[#allocation3 + $0xd4] sm:$0xff]   ;;  %v6454_v8 = vrot.slane %v6452_v41, 4  ;;  %v6495_v43 = vshll.u32 %v13561_v21, 16  ;;  %v6484_v29 = vshrl.u32 %v13568_v34, 16  ;;  %v6487_v47 = vshll.u32 %v13568_v34, 16 }
 0x78f   : > { %15773 = vst [vmem:[#allocation169_spill] sm:$0xff] %v13591_v53  ;;  %v13593_v25 = vld [vmem:[#allocation3 + $0xd0] sm:$0xf0]   ;;  %v6457_v57 = vrot.slane %v6455_v24, 5  ;;  %v13599_v33 = vld [vmem:[#allocation3 + $0xc4] sm:$0xff]   ;;  %v6474_v50 = vor.u32 %v6473_v6, %v6470_v18  ;;  %v6466_v14 = vor.u32 %v6465_v13, %v6462_v7  ;;  %s9860_s19 = smov 24  }
 0x790   : > { %6541 = vrot.lane.b32.xlu2 %v6450_v63, %s9858_s12  ;;  %15774 = vst [vmem:[#allocation170_spill] sm:$0xff] %v13593_v25  ;;  %v13601_v26 = vld [vmem:[#allocation3 + $0xc0] sm:$0xf0]   ;;  %v6476_v63 = vshrl.u32 %v13573_v35, 16  ;;  %v6497_v38 = vrot.slane %v6495_v43, 5  ;;  %v6486_v41 = vrot.slane %v6484_v29, 4 }
 0x791   : > { %6537 = vrot.lane.b32.xlu1 %v6434_v15, %s9858_s12  ;;  %v6458_v4 = vor.u32 %v6457_v57, %v6454_v8  ;;  %v6479_v15 = vshll.u32 %v13573_v35, 16  ;;  %v6489_v24 = vrot.slane %v6487_v47, 5  ;;  %v13610_v6 = vld [vmem:[#allocation3 + $0xf4] sm:$0xff]   ;;  %v6519_v43 = vshll.u32 %v13580_v42, 16  ;;  %v9335_v60 = vld [vmem:[#allocation3 + $0x20] sm:$0x8] }
 0x792   : > { %v6478_v61 = vrot.slane %v6476_v63, 4  ;;  %v13612_v7 = vld [vmem:[#allocation3 + $0xf0] sm:$0xf0]   ;;  %v6508_v29 = vshrl.u32 %v13591_v53, 16  ;;  %v6511_v47 = vshll.u32 %v13591_v53, 16  ;;  %v6524_v51 = vshrl.u32 %v13610_v6, 16 }
 0x793   : > { %6533 = vrot.lane.b32.xlu0 %v6418_v37, %s9858_s12  ;;  %v6494_v37 = vrot.slane %v6492_v45, 4  ;;  %v6481_v18 = vrot.slane %v6479_v15, 5  ;;  %v6490_v8 = vor.u32 %v6489_v24, %v6486_v41  ;;  %v6516_v45 = vshrl.u32 %v13580_v42, 16  ;;  %v6107_v63 = vld [vmem:[#allocation3 + $0xc] sm:$0x1]  ;;  %v13777_v30 = vld [vmem:[#allocation3 + $0x94] sm:$0xff]  }
 0x794   : > { %v9339_v5 = vld [vmem:[#allocation3 + $0x10] sm:$0x8]  ;;  %v9738_v25 = vld [vmem:[#allocation3 + $0xc0] sm:$0x8]  ;;  %s9861_s20 = smov 32   ;;  %s9862_s21 = smov 40  }
 0x795   : > { %v6498_v13 = vor.u32 %v6497_v38, %v6494_v37  ;;  %v6482_v57 = vor.u32 %v6481_v18, %v6478_v61  ;;  %v6518_v15 = vrot.slane %v6516_v45, 4  ;;  %v6521_v37 = vrot.slane %v6519_v43, 5  ;;  %v9343_v31 = vld [vmem:[#allocation3 + $0x30] sm:$0x8]  ;;  %s9863_s23 = smov 48   ;;  %s9864_s24 = smov 56  }
 0x796   : > { %v6510_v61 = vrot.slane %v6508_v29, 4  ;;  %v6513_v38 = vrot.slane %v6511_v47, 5  ;;  %v6579_v18 = vunpack.c.l.b16 %v6107_v63  ;;  %v6110_v63 = vld [vmem:[#allocation3 + $0x3c] sm:$0x1]  ;;  %vm7861_vm1 = vcmask 130048   ;;  %s9865_s26 = smov 64  }
 0x797   : > { %v6522_v40 = vor.u32 %v6521_v37, %v6518_v15  ;;  %v6109_v15 = vld [vmem:[#allocation3 + $0x2c] sm:$0x1]  ;;  %vm7926_vm2 = vcmask 195584   ;;  %vm7991_vm3 = vcmask 261120   ;;  %vm8040_vm4 = vcmask 326656  }
 0x798   : > { %6547 = vrot.lane.b32.xlu2 %v6474_v50, %s9858_s12  ;;  %v6500_v50 = vshrl.u32 %v13599_v33, 16  ;;  %v6514_v2 = vor.u32 %v6513_v38, %v6510_v61  ;;  %v6595_v19 = vpack.c.b16 %v6579_v18, %v6579_v18  ;;  %v6111_v38 = vld [vmem:[#allocation3 + $0x4c] sm:$0x1]  ;;  %vm8601_vm5 = vcmask 1043456  }
 0x799   : > { %6545 = vrot.lane.b32.xlu1 %v6466_v14, %s9858_s12  ;;  %v6503_v14 = vshll.u32 %v13599_v33, 16  ;;  %v6583_v18 = vunpack.c.l.b16 %v6111_v38  ;;  %vm8170_vm6 = vcmask 457728   ;;  %vm8105_vm7 = vcmask 392192  }
 0x79a   : > { %v6502_v41 = vrot.slane %v6500_v50, 4  ;;  %v6613_v45 = vrot.slane %v6595_v19, 5  ;;  %v6581_v19 = vunpack.c.l.b16 %v6109_v15  ;;  %v6627_v15 = vrot.slane %v13516_v56, 5 }
 0x79b   : > { %6543 = vrot.lane.b32.xlu0 %v6458_v4, %s9858_s12  ;;  %v6505_v24 = vrot.slane %v6503_v14, 5  ;;  %v6527_v4 = vshll.u32 %v13610_v6, 16  ;;  %vm8219_vm8 = vcmask 523264   ;;  %vm8284_vm9 = vsmask.f32 4352 }
 0x79c   : > { %v6597_v61 = vpack.c.b16 %v6581_v19, %v6581_v19  ;;  %v6114_v19 = vld [vmem:[#allocation3 + $0x7c] sm:$0x1]  ;;  %vm8552_vm10 = vcmask 588800  }
 0x79d   : > { %v6506_v0 = vor.u32 %v6505_v24, %v6502_v41  ;;  %v6529_v43 = vrot.slane %v6527_v4, 5  ;;  %v6621_v41 = vrot.slane %v13520_v17, 5 }
 0x7a0   : > { %6553 = vrot.lane.b32.xlu2 %v6498_v13, %s9858_s12  ;;  %v6108_v13 = vld [vmem:[#allocation3 + $0x1c] sm:$0x1] }
 0x7a1   : > { %6551 = vrot.lane.b32.xlu1 %v6490_v8, %s9858_s12  ;;  %v6612_v8 = vrot.slane %v13510_v52, 5  ;;  %v6580_v29 = vunpack.c.l.b16 %v6108_v13  ;;  %v6619_v13 = vrot.slane %v6597_v61, 5 }
 0x7a3   : > { %6549 = vrot.lane.b32.xlu0 %v6482_v57, %s9858_s12  ;;  %v6526_v57 = vrot.slane %v6524_v51, 4  ;;  %v6614_v47 = vsel %vm6611_vm15, %v6612_v8, %v6613_v45  ;;  %v6596_v14 = vpack.c.b16 %v6580_v29, %v6580_v29  ;;  %v6582_v51 = vunpack.c.l.b16 %v6110_v63  ;;  %v6112_v29 = vld [vmem:[#allocation3 + $0x5c] sm:$0x1] }
 0x7a4   : > { %v6599_v45 = vpack.c.b16 %v6583_v18, %v6583_v18  ;;  %v6584_v63 = vunpack.c.l.b16 %v6112_v29  ;;  %v6116_v18 = vld [vmem:[#allocation3 + $0x9c] sm:$0x1]  ;;  %v6636_v29 = vrot.slane %v13540_v46, 5 }
 0x7a5   : > { %v6530_v50 = vor.u32 %v6529_v43, %v6526_v57  ;;  %v6598_v37 = vpack.c.b16 %v6582_v51, %v6582_v51  ;;  %v6113_v43 = vld [vmem:[#allocation3 + $0x6c] sm:$0x1] }
 0x7a6   : > { %v6600_v51 = vpack.c.b16 %v6584_v63, %v6584_v63  ;;  %v6117_v63 = vld [vmem:[#allocation3 + $0xac] sm:$0x1] }
 0x7a7   : > { %v6622_v24 = vrot.slane %v6598_v37, 5  ;;  %v6586_v37 = vunpack.c.l.b16 %v6114_v19 }
 0x7a8   : > { %6559 = vrot.lane.b32.xlu2 %v6522_v40, %s9858_s12  ;;  %v6615_v40 = vrot.slane %v13524_v32, 5  ;;  %v6628_v61 = vrot.slane %v6600_v51, 5 }
 0x7a9   : > { %6557 = vrot.lane.b32.xlu1 %v6514_v2, %s9858_s12  ;;  %v6616_v2 = vrot.slane %v6596_v14, 5  ;;  %v6585_v14 = vunpack.c.l.b16 %v6113_v43 }
 0x7ab   : > { %6555 = vrot.lane.b32.xlu0 %v6506_v0, %s9858_s12  ;;  %v6618_v0 = vrot.slane %v13506_v49, 5  ;;  %v6617_v4 = vsel %vm6611_vm15, %v6615_v40, %v6616_v2  ;;  %v6601_v2 = vpack.c.b16 %v6585_v14, %v6585_v14 }
 0x7ad   : > { %v6620_v57 = vsel %vm6611_vm15, %v6618_v0, %v6619_v13  ;;  %v6115_v13 = vld [vmem:[#allocation3 + $0x8c] sm:$0x1] }
 0x7ae   : > { %v6587_v43 = vunpack.c.l.b16 %v6115_v13 }
 0x7b0   : > { %6662 = vrot.lane.b32.xlu2 %v6614_v47, %s9859_s13  ;;  %v6624_v47 = vrot.slane %v13502_v39, 5  ;;  %v6603_v14 = vpack.c.b16 %v6587_v43, %v6587_v43 }
 0x7b1   : > { %6660 = vrot.lane.b32.xlu1 %v6612_v8, %s9859_s13  ;;  %v6623_v8 = vsel %vm6611_vm15, %v6621_v41, %v6622_v24  ;;  %v6629_v24 = vsel %vm6611_vm15, %v6627_v15, %v6628_v61  ;;  %v6118_v61 = vld [vmem:[#allocation3 + $0xbc] sm:$0x1] }
 0x7b2   : > { %v6637_v51 = vrot.slane %v6603_v14, 5 }
 0x7b3   : > { %6561 = vrot.lane.b32.xlu0 %v6530_v50, %s9858_s12  ;;  %v6625_v50 = vrot.slane %v6599_v45, 5 }
 0x7b8   : > { %6668 = vrot.lane.b32.xlu2 %v6618_v0, %s9859_s13  ;;  %v6630_v0 = vrot.slane %v13548_v1, 5 }
 0x7b9   : > { %6666 = vrot.lane.b32.xlu1 %v6617_v4, %s9859_s13  ;;  %v6631_v4 = vrot.slane %v6601_v2, 5  ;;  %v6589_v2 = vunpack.c.l.b16 %v6117_v63  ;;  %v6648_v63 = vrot.slane %v13599_v33, 5 }
 0x7bb   : > { %6664 = vrot.lane.b32.xlu0 %v6615_v40, %s9859_s13  ;;  %v6626_v40 = vsel %vm6611_vm15, %v6624_v47, %v6625_v50  ;;  %v6632_v38 = vsel %vm6611_vm15, %v6630_v0, %v6631_v4  ;;  %v6638_v4 = vsel %vm6611_vm15, %v6636_v29, %v6637_v51 }
 0x7c0   : > { %6674 = vrot.lane.b32.xlu2 %v6623_v8, %s9859_s13  ;;  %v6633_v8 = vrot.slane %v13544_v23, 5 }
 0x7c1   : > { %6672 = vrot.lane.b32.xlu1 %v6621_v41, %s9859_s13  ;;  %v6602_v41 = vpack.c.b16 %v6586_v37, %v6586_v37  ;;  %v6119_v37 = vld [vmem:[#allocation3 + $0xcc] sm:$0x1] }
 0x7c3   : > { %6670 = vrot.lane.b32.xlu0 %v6620_v57, %s9859_s13  ;;  %v6634_v45 = vrot.slane %v6602_v41, 5  ;;  %v6588_v57 = vunpack.c.l.b16 %v6116_v18  ;;  %v6590_v18 = vunpack.c.l.b16 %v6118_v61 }
 0x7c5   : > { %v6604_v50 = vpack.c.b16 %v6588_v57, %v6588_v57  ;;  %v13676_v57 = vld [vmem:[#allocation3 + $0x10] sm:$0xf0]  }
 0x7c8   : > { %6680 = vrot.lane.b32.xlu2 %v6627_v15, %s9859_s13  ;;  %v6639_v15 = vrot.slane %v13573_v35, 5 }
 0x7c9   : > { %6678 = vrot.lane.b32.xlu1 %v6626_v40, %s9859_s13  ;;  %v6640_v40 = vrot.slane %v6604_v50, 5  ;;  %v6120_v50 = vld [vmem:[#allocation3 + $0xdc] sm:$0x1] }
 0x7cb   : > { %6676 = vrot.lane.b32.xlu0 %v6624_v47, %s9859_s13  ;;  %v6635_v47 = vsel %vm6611_vm15, %v6633_v8, %v6634_v45  ;;  %v6641_v19 = vsel %vm6611_vm15, %v6639_v15, %v6640_v40  ;;  %v13674_v45 = vld [vmem:[#allocation3 + $0x14] sm:$0xff]  }
 0x7cc   : > { %v6774_v14 = vunpack.c.h.b16 %v13674_v45 }
 0x7d0   : > { %6686 = vrot.lane.b32.xlu2 %v6632_v38, %s9859_s13  ;;  %v6642_v38 = vrot.slane %v13568_v34, 5 }
 0x7d1   : > { %6684 = vrot.lane.b32.xlu1 %v6630_v0, %s9859_s13  ;;  %v6605_v0 = vpack.c.b16 %v6589_v2, %v6589_v2  ;;  %v6592_v2 = vunpack.c.l.b16 %v6120_v50 }
 0x7d3   : > { %6682 = vrot.lane.b32.xlu0 %v6629_v24, %s9859_s13  ;;  %v6643_v41 = vrot.slane %v6605_v0, 5  ;;  %v6591_v24 = vunpack.c.l.b16 %v6119_v37  ;;  %v9711_v0 = vld [vmem:[#allocation3 + $0x20] sm:$0xf0]   ;;  %v13690_v37 = vld [vmem:[#allocation3 + $0x30] sm:$0xf0]  }
 0x7d5   : > { %v6644_v43 = vsel %vm6611_vm15, %v6642_v38, %v6643_v41 }
 0x7d8   : > { %6692 = vrot.lane.b32.xlu2 %v6636_v29, %s9859_s13  ;;  %v6607_v29 = vpack.c.b16 %v6591_v24, %v6591_v24  ;;  %v6608_v24 = vpack.c.b16 %v6592_v2, %v6592_v2  ;;  %v9713_v2 = vld [vmem:[#allocation3 + $0x40] sm:$0xf0]  }
 0x7d9   : > { %6690 = vrot.lane.b32.xlu1 %v6635_v47, %s9859_s13  ;;  %v6606_v47 = vpack.c.b16 %v6590_v18, %v6590_v18  ;;  %v6121_v18 = vld [vmem:[#allocation3 + $0xec] sm:$0x1] }
 0x7da   : > { %v6652_v50 = vrot.slane %v6608_v24, 5 }
 0x7db   : > { %6688 = vrot.lane.b32.xlu0 %v6633_v8, %s9859_s13  ;;  %v6645_v8 = vrot.slane %v13561_v21, 5  ;;  %v6646_v40 = vrot.slane %v6606_v47, 5  ;;  %v6651_v47 = vrot.slane %v13591_v53, 5 }
 0x7dd   : > { %v6647_v41 = vsel %vm6611_vm15, %v6645_v8, %v6646_v40  ;;  %v13703_v40 = vld [vmem:[#allocation3 + $0x44] sm:$0xff]   ;;  %v6653_v62 = vsel %vm6611_vm15, %v6651_v47, %v6652_v50  ;;  %v9714_v50 = vld [vmem:[#allocation3 + $0x50] sm:$0xf0]  }
 0x7e0   : > { %6698 = vrot.lane.b32.xlu2 %v6641_v19, %s9859_s13  ;;  %v13686_v19 = vld [vmem:[#allocation3 + $0x24] sm:$0xff]  }
 0x7e1   : > { %6696 = vrot.lane.b32.xlu1 %v6639_v15, %s9859_s13  ;;  %v6649_v15 = vrot.slane %v6607_v29, 5  ;;  %v6777_v29 = vunpack.c.h.b16 %v13686_v19 }
 0x7e2   : > { %v13671_v13 = vpop.permute.xlu2 %6539 }
 0x7e3   : > { %6694 = vrot.lane.b32.xlu0 %v6638_v4, %s9859_s13  ;;  %15775 = vst [vmem:[#allocation171_spill] sm:$0xff] %v13671_v13  ;;  %v13688_v4 = vld [vmem:[#allocation3 + $0x34] sm:$0xff]   ;;  %v6650_v61 = vsel %vm6611_vm15, %v6648_v63, %v6649_v15  ;;  %v6593_v15 = vunpack.c.l.b16 %v6121_v18 }
 0x7e4   : > { %v6952_v22 = vshll.u32 %v13688_v4, 16 }
 0x7e8   : > { %6704 = vrot.lane.b32.xlu2 %v6645_v8, %s9859_s13  ;;  %v6654_v8 = vrot.slane %v13580_v42, 5 }
 0x7e9   : > { %6702 = vrot.lane.b32.xlu1 %v6644_v43, %s9859_s13  ;;  %v6780_v43 = vunpack.c.h.b16 %v13688_v4 }
 0x7ea   : > { %v13684_v51 = vpop.permute.xlu2 %6541 }
 0x7eb   : > { %6700 = vrot.lane.b32.xlu0 %v6642_v38, %s9859_s13  ;;  %15776 = vst [vmem:[#allocation172_spill] sm:$0xff] %v13684_v51  ;;  %v6122_v38 = vld [vmem:[#allocation3 + $0xfc] sm:$0x1]  ;;  %v9734_v51 = vld [vmem:[#allocation3 + $0xa0] sm:$0x8] }
 0x7ec   : > { %v6594_v12 = vunpack.c.l.b16 %v6122_v38 }
 0x7ee   : > { %v6610_v58 = vpack.c.b16 %v6594_v12, %v6594_v12  ;;  %v13717_v12 = vld [vmem:[#allocation3 + $0x54] sm:$0xff]  }
 0x7f0   : > { %6710 = vrot.lane.b32.xlu2 %v6650_v61, %s9859_s13  ;;  %v6783_v61 = vunpack.c.h.b16 %v13703_v40  ;;  %v6658_v24 = vrot.slane %v6610_v58, 5 }
 0x7f1   : > { %6708 = vrot.lane.b32.xlu1 %v6648_v63, %s9859_s13  ;;  %v6609_v63 = vpack.c.b16 %v6593_v15, %v6593_v15  ;;  %v13719_v15 = vld [vmem:[#allocation3 + $0x64] sm:$0xff]  }
 0x7f2   : > { %v13700_v54 = vpop.permute.xlu2 %6547  ;;  %v6789_v58 = vunpack.c.h.b16 %v13719_v15  ;;  %v6973_v34 = vshrl.u32 %v13719_v15, 16 }
 0x7f3   : > { %6706 = vrot.lane.b32.xlu0 %v6647_v41, %s9859_s13  ;;  %15777 = vst [vmem:[#allocation173_spill] sm:$0xff] %v13700_v54  ;;  %v6657_v41 = vrot.slane %v13610_v6, 5  ;;  %v6655_v38 = vrot.slane %v6609_v63, 5  ;;  %v6786_v63 = vunpack.c.h.b16 %v13717_v12 }
 0x7f5   : > { %v6659_v36 = vsel %vm6611_vm15, %v6657_v41, %v6658_v24  ;;  %v6821_v24 = vpack.c.b16 %v6774_v14, %v6774_v14  ;;  %v6825_v14 = vpack.c.b16 %v6780_v43, %v6780_v43 }
 0x7f8   : > { %6716 = vrot.lane.b32.xlu2 %v6654_v8, %s9859_s13 }
 0x7f9   : > { %6714 = vrot.lane.b32.xlu1 %v6653_v62, %s9859_s13  ;;  %v9715_v62 = vld [vmem:[#allocation3 + $0x60] sm:$0xf0]  }
 0x7fa   : > { %v13711_v18 = vpop.permute.xlu2 %6553 }
 0x7fb   : > { %6712 = vrot.lane.b32.xlu0 %v6651_v47, %s9859_s13  ;;  %15778 = vst [vmem:[#allocation174_spill] sm:$0xff] %v13711_v18  ;;  %v13713_v20 = vpop.permute.xlu1 %6535  ;;  %v6656_v47 = vsel %vm6611_vm15, %v6654_v8, %v6655_v38  ;;  %v9336_v8 = vor.u32 %v9711_v0, %v9335_v60  ;;  %v9340_v38 = vor.u32 %v13676_v57, %v9339_v5  ;;  %v9347_v0 = vld [vmem:[#allocation3 + $0x50] sm:$0x8]  ;;  %v9351_v5 = vld [vmem:[#allocation3 + $0x40] sm:$0x8] }
 0x7fc   : > { %15779 = vst [vmem:[#allocation175_spill] sm:$0xff] %v13713_v20  ;;  %v6823_v60 = vpack.c.b16 %v6777_v29, %v6777_v29  ;;  %v9348_v17 = vor.u32 %v9714_v50, %v9347_v0  ;;  %v9352_v32 = vor.u32 %v9713_v2, %v9351_v5  ;;  %v9718_v2 = vld [vmem:[#allocation3 + $0x80] sm:$0x8]  ;;  %v13765_v50 = vld [vmem:[#allocation3 + $0x84] sm:$0xff]   ;;  %v9722_v5 = vld [vmem:[#allocation3 + $0x70] sm:$0x8] }
 0x7fd   : > { %v13715_v55 = vpop.permute.xlu0 %6531  ;;  %v9817_v0 = vld [vmem:[#allocation3 + $0x80] sm:$0xf0]  }
 0x7fe   : > { %15780 = vst [vmem:[#allocation176_spill] sm:$0xff] %v13715_v55  ;;  %v9820_v55 = vld [vmem:[#allocation3 + $0xb0] sm:$0xf0]   ;;  %v9823_v20 = vld [vmem:[#allocation3 + $0xe0] sm:$0xf0]  }
 0x800   : > { %6722 = vrot.lane.b32.xlu2 %v6659_v36, %s9859_s13 }
 0x801   : > { %6720 = vrot.lane.b32.xlu1 %v6657_v41, %s9859_s13 }
 0x802   : > { %v13728_v59 = vpop.permute.xlu2 %6559 }
 0x803   : > { %6718 = vrot.lane.b32.xlu0 %v6656_v47, %s9859_s13  ;;  %15781 = vst [vmem:[#allocation177_spill] sm:$0xff] %v13728_v59  ;;  %v13730_v11 = vpop.permute.xlu1 %6537  ;;  %v9821_v59 = vld [vmem:[#allocation3 + $0xc0] sm:$0xf0]  }
 0x804   : > { %15782 = vst [vmem:[#allocation178_spill] sm:$0xff] %v13730_v11  ;;  %v9344_v11 = vor.u32 %v13690_v37, %v9343_v31  ;;  %v9355_v31 = vld [vmem:[#allocation3 + $0x60] sm:$0x8] }
 0x805   : > { %v13732_v39 = vpop.permute.xlu0 %6533  ;;  %v9356_v29 = vor.u32 %v9715_v62, %v9355_v31 }
 0x806   : > { %15783 = vst [vmem:[#allocation179_spill] sm:$0xff] %v13732_v39  ;;  %v9824_v39 = vld [vmem:[#allocation3 + $0xf0] sm:$0xf0]  }
 0x808   : > { %6856 = vrot.lane.b32.xlu2 %v9336_v8, %s9860_s19 }
 0x809   : > { %6854 = vrot.lane.b32.xlu1 %v6821_v24, %s9860_s19 }
 0x80a   : > { %v13740_v41 = vpop.permute.xlu2 %6662 }
 0x80b   : > { %6852 = vrot.lane.b32.xlu0 %v9340_v38, %s9860_s19  ;;  %v13738_v36 = vpop.permute.xlu1 %6545  ;;  %15785 = vst [vmem:[#allocation181_spill] sm:$0xff] %v13740_v41  ;;  %v6827_v38 = vpack.c.b16 %v6783_v61, %v6783_v61  ;;  %v9816_v61 = vld [vmem:[#allocation3 + $0x70] sm:$0xf0]  }
 0x80c   : > { %15784 = vst [vmem:[#allocation180_spill] sm:$0xff] %v13738_v36  ;;  %v9723_v31 = vor.u32 %v9816_v61, %v9722_v5  ;;  %v9818_v41 = vld [vmem:[#allocation3 + $0x90] sm:$0xf0]  }
 0x80d   : > { %v13742_v47 = vpop.permute.xlu0 %6543  ;;  %v13831_v36 = vld [vmem:[#allocation3 + $0xf4] sm:$0xff]  }
 0x80e   : > { %15786 = vst [vmem:[#allocation182_spill] sm:$0xff] %v13742_v47 }
 0x810   : > { %6862 = vrot.lane.b32.xlu2 %v6825_v14, %s9860_s19  ;;  %v6831_v14 = vpack.c.b16 %v6789_v58, %v6789_v58 }
 0x811   : > { %6860 = vrot.lane.b32.xlu1 %v9344_v11, %s9860_s19 }
 0x812   : > { %v13750_v24 = vpop.permute.xlu2 %6668 }
 0x813   : > { %6858 = vrot.lane.b32.xlu0 %v6823_v60, %s9860_s19  ;;  %v13748_v57 = vpop.permute.xlu1 %6551  ;;  %15788 = vst [vmem:[#allocation184_spill] sm:$0xff] %v13750_v24  ;;  %v6829_v60 = vpack.c.b16 %v6786_v63, %v6786_v63  ;;  %v13763_v24 = vld [vmem:[#allocation3 + $0x74] sm:$0xff]  }
 0x814   : > { %15787 = vst [vmem:[#allocation183_spill] sm:$0xff] %v13748_v57  ;;  %v13804_v57 = vld [vmem:[#allocation3 + $0xc4] sm:$0xff]  }
 0x815   : > { %v13752_v8 = vpop.permute.xlu0 %6549 }
 0x818   : > { %6868 = vrot.lane.b32.xlu2 %v9348_v17, %s9860_s19  ;;  %v6792_v17 = vunpack.c.h.b16 %v13763_v24 }
 0x819   : > { %6866 = vrot.lane.b32.xlu1 %v6827_v38, %s9860_s19  ;;  %v9719_v38 = vor.u32 %v9817_v0, %v9718_v2 }
 0x81a   : > { %v13759_v37 = vpop.permute.xlu2 %6674  ;;  %v6833_v63 = vpack.c.b16 %v6792_v17, %v6792_v17  ;;  %v13790_v17 = vld [vmem:[#allocation3 + $0xa4] sm:$0xff]  }
 0x81b   : > { %6864 = vrot.lane.b32.xlu0 %v9352_v32, %s9860_s19  ;;  %v13757_v11 = vpop.permute.xlu1 %6557  ;;  %15790 = vst [vmem:[#allocation186_spill] sm:$0xff] %v13759_v37  ;;  %v9726_v37 = vld [vmem:[#allocation3 + $0x90] sm:$0x8] }
 0x81c   : > { %15789 = vst [vmem:[#allocation185_spill] sm:$0xff] %v13757_v11  ;;  %v9727_v61 = vor.u32 %v9818_v41, %v9726_v37 }
 0x81d   : > { %v13761_v43 = vpop.permute.xlu0 %6555 }
 0x820   : > { %6874 = vrot.lane.b32.xlu2 %v6831_v14, %s9860_s19  ;;  %v6795_v14 = vunpack.c.h.b16 %v13765_v50 }
 0x821   : > { %6872 = vrot.lane.b32.xlu1 %v9356_v29, %s9860_s19  ;;  %v6798_v29 = vunpack.c.h.b16 %v13777_v30 }
 0x822   : > { %v13773_v62 = vpop.permute.xlu2 %6680  ;;  %v6835_v5 = vpack.c.b16 %v6795_v14, %v6795_v14 }
 0x823   : > { %6870 = vrot.lane.b32.xlu0 %v6829_v60, %s9860_s19  ;;  %v13771_v32 = vpop.permute.xlu1 %6660  ;;  %15792 = vst [vmem:[#allocation188_spill] sm:$0xff] %v13773_v62  ;;  %v6837_v0 = vpack.c.b16 %v6798_v29, %v6798_v29 }
 0x824   : > { %15791 = vst [vmem:[#allocation187_spill] sm:$0xff] %v13771_v32  ;;  %v9730_v32 = vld [vmem:[#allocation3 + $0xb0] sm:$0x8] }
 0x825   : > { %v13775_v58 = vpop.permute.xlu0 %6561  ;;  %v9731_v14 = vor.u32 %v9820_v55, %v9730_v32 }
 0x826   : > { %15793 = vst [vmem:[#allocation189_spill] sm:$0xff] %v13775_v58 }
 0x828   : > { %6880 = vrot.lane.b32.xlu2 %v9719_v38, %s9860_s19  ;;  %v13792_v38 = vld [vmem:[#allocation3 + $0xb4] sm:$0xff]  }
 0x829   : > { %6878 = vrot.lane.b32.xlu1 %v6833_v63, %s9860_s19  ;;  %v9819_v63 = vld [vmem:[#allocation3 + $0xa0] sm:$0xf0]  }
 0x82a   : > { %v13786_v62 = vpop.permute.xlu2 %6686  ;;  %v9735_v11 = vor.u32 %v9819_v63, %v9734_v51  ;;  %v9739_v51 = vor.u32 %v9821_v59, %v9738_v25 }
 0x82b   : > { %6876 = vrot.lane.b32.xlu0 %v9723_v31, %s9860_s19  ;;  %v13784_v60 = vpop.permute.xlu1 %6666  ;;  %v6801_v31 = vunpack.c.h.b16 %v13790_v17 }
 0x82c   : > { %15794 = vst [vmem:[#allocation190_spill] sm:$0xff] %v13784_v60 }
 0x82d   : > { %v13788_v2 = vpop.permute.xlu0 %6664  ;;  %v6839_v29 = vpack.c.b16 %v6801_v31, %v6801_v31  ;;  %v13817_v31 = vld [vmem:[#allocation3 + $0xd4] sm:$0xff]  }
 0x82e   : > { %15795 = vst [vmem:[#allocation191_spill] sm:$0xff] %v13788_v2  ;;  %v9750_v2 = vld [vmem:[#allocation3 + $0xf0] sm:$0x8] }
 0x830   : > { %6886 = vrot.lane.b32.xlu2 %v6837_v0, %s9860_s19  ;;  %v6804_v0 = vunpack.c.h.b16 %v13792_v38 }
 0x831   : > { %6884 = vrot.lane.b32.xlu1 %v9727_v61, %s9860_s19  ;;  %v6807_v61 = vunpack.c.h.b16 %v13804_v57 }
 0x832   : > { %v13800_v41 = vpop.permute.xlu2 %6692  ;;  %v6841_v63 = vpack.c.b16 %v6804_v0, %v6804_v0 }
 0x833   : > { %6882 = vrot.lane.b32.xlu0 %v6835_v5, %s9860_s19  ;;  %v13798_v60 = vpop.permute.xlu1 %6672  ;;  %15797 = vst [vmem:[#allocation193_spill] sm:$0xff] %v13800_v41  ;;  %v6843_v32 = vpack.c.b16 %v6807_v61, %v6807_v61  ;;  %v9746_v41 = vld [vmem:[#allocation3 + $0xd0] sm:$0x8] }
 0x834   : > { %15796 = vst [vmem:[#allocation192_spill] sm:$0xff] %v13798_v60 }
 0x835   : > { %v13802_v37 = vpop.permute.xlu0 %6670 }
 0x836   : > { %15798 = vst [vmem:[#allocation194_spill] sm:$0xff] %v13802_v37  ;;  %v9742_v37 = vld [vmem:[#allocation3 + $0xe0] sm:$0x8] }
 0x837   : > { %v9743_v0 = vor.u32 %v9823_v20, %v9742_v37  ;;  %v6936_v37 = vshll.u32 %v13674_v45, 16 }
 0x838   : > { %6892 = vrot.lane.b32.xlu2 %v9731_v14, %s9860_s19  ;;  %v13819_v14 = vld [vmem:[#allocation3 + $0xe4] sm:$0xff]  }
 0x839   : > { %6890 = vrot.lane.b32.xlu1 %v6839_v29, %s9860_s19  ;;  %v9822_v29 = vld [vmem:[#allocation3 + $0xd0] sm:$0xf0]   ;;  %v6938_v53 = vrot.slane %v6936_v37, 5  ;;  %v6960_v37 = vshll.u32 %v13703_v40, 16 }
 0x83a   : > { %v13813_v60 = vpop.permute.xlu2 %6698 }
 0x83b   : > { %6888 = vrot.lane.b32.xlu0 %v9735_v11, %s9860_s19  ;;  %v13811_v5 = vpop.permute.xlu1 %6678  ;;  %v6810_v11 = vunpack.c.h.b16 %v13817_v31 }
 0x83c   : > { %15799 = vst [vmem:[#allocation195_spill] sm:$0xff] %v13811_v5 }
 0x83d   : > { %v13815_v55 = vpop.permute.xlu0 %6676  ;;  %v6845_v61 = vpack.c.b16 %v6810_v11, %v6810_v11 }
 0x83e   : > { %15800 = vst [vmem:[#allocation196_spill] sm:$0xff] %v13815_v55  ;;  %v9747_v55 = vor.u32 %v9822_v29, %v9746_v41  ;;  %v6933_v41 = vshrl.u32 %v13674_v45, 16  ;;  %v9751_v29 = vor.u32 %v9824_v39, %v9750_v2 }
 0x840   : > { %6898 = vrot.lane.b32.xlu2 %v6843_v32, %s9860_s19  ;;  %v6813_v32 = vunpack.c.h.b16 %v13819_v14  ;;  %v6935_v18 = vrot.slane %v6933_v41, 4  ;;  %v6957_v41 = vshrl.u32 %v13703_v40, 16 }
 0x841   : > { %6896 = vrot.lane.b32.xlu1 %v9739_v51, %s9860_s19  ;;  %v6816_v51 = vunpack.c.h.b16 %v13831_v36 }
 0x842   : > { %v13827_v59 = vpop.permute.xlu2 %6704 }
 0x843   : > { %6894 = vrot.lane.b32.xlu0 %v6841_v63, %s9860_s19  ;;  %v13825_v5 = vpop.permute.xlu1 %6684  ;;  %15802 = vst [vmem:[#allocation198_spill] sm:$0xff] %v13827_v59  ;;  %v6849_v11 = vpack.c.b16 %v6816_v51, %v6816_v51  ;;  %v9754_v59 = vld [vmem:[#allocation3 + $0x100] sm:$0x8]  ;;  %v6939_v51 = vor.u32 %v6938_v53, %v6935_v18  ;;  %v6954_v53 = vrot.slane %v6952_v22, 5  ;;  %v6959_v18 = vrot.slane %v6957_v41, 4 }
 0x844   : > { %15801 = vst [vmem:[#allocation197_spill] sm:$0xff] %v13825_v5  ;;  %v6984_v22 = vshll.u32 %v13763_v24, 16 }
 0x845   : > { %v13829_v25 = vpop.permute.xlu0 %6682 }
 0x846   : > { %15803 = vst [vmem:[#allocation199_spill] sm:$0xff] %v13829_v25  ;;  %v6847_v25 = vpack.c.b16 %v6813_v32, %v6813_v32  ;;  %v6949_v32 = vshrl.u32 %v13688_v4, 16  ;;  %v6986_v28 = vrot.slane %v6984_v22, 5  ;;  %v6989_v22 = vshrl.u32 %v13765_v50, 16 }
 0x848   : > { %6904 = vrot.lane.b32.xlu2 %v9743_v0, %s9860_s19  ;;  %v9825_v0 = vld [vmem:[#allocation3 + $0x100] sm:$0xf0]  }
 0x849   : > { %6902 = vrot.lane.b32.xlu1 %v6845_v61, %s9860_s19  ;;  %v13846_v61 = vld [vmem:[#allocation3 + $0x104] sm:$0xff]  }
 0x84a   : > { %v13840_v5 = vpop.permute.xlu2 %6710 }
 0x84b   : > { %6900 = vrot.lane.b32.xlu0 %v9747_v55, %s9860_s19  ;;  %v13838_v63 = vpop.permute.xlu1 %6690  ;;  %v6819_v55 = vunpack.c.h.b16 %v13846_v61 }
 0x84c   : > { %15804 = vst [vmem:[#allocation200_spill] sm:$0xff] %v13838_v63 }
 0x84d   : > { %v13842_v20 = vpop.permute.xlu0 %6688  ;;  %v6851_v2 = vpack.c.b16 %v6819_v55, %v6819_v55  ;;  %v6951_v55 = vrot.slane %v6949_v32, 4 }
 0x84e   : > { %15805 = vst [vmem:[#allocation201_spill] sm:$0xff] %v13842_v20 }
 0x84f   : > { %v6955_v32 = vor.u32 %v6954_v53, %v6951_v55  ;;  %v7000_v53 = vshll.u32 %v13777_v30, 16 }
 0x850   : > { %6910 = vrot.lane.b32.xlu2 %v6849_v11, %s9860_s19  ;;  %v6941_v11 = vshrl.u32 %v13686_v19, 16 }
 0x851   : > { %6908 = vrot.lane.b32.xlu1 %v9751_v29, %s9860_s19  ;;  %v9755_v29 = vor.u32 %v9825_v0, %v9754_v59 }
 0x852   : > { %v13854_v63 = vpop.permute.xlu2 %6716 }
 0x853   : > { %6906 = vrot.lane.b32.xlu0 %v6847_v25, %s9860_s19  ;;  %v13852_v20 = vpop.permute.xlu1 %6696  ;;  %15806 = vst [vmem:[#allocation202_spill] sm:$0xff] %v13854_v63  ;;  %v6944_v25 = vshll.u32 %v13686_v19, 16  ;;  %v6962_v63 = vrot.slane %v6960_v37, 5 }
 0x855   : > { %v13856_v39 = vpop.permute.xlu0 %6694  ;;  %v6946_v54 = vrot.slane %v6944_v25, 5  ;;  %v6963_v41 = vor.u32 %v6962_v63, %v6959_v18  ;;  %v6975_v25 = vrot.slane %v6973_v34, 4  ;;  %v6997_v34 = vshrl.u32 %v13777_v30, 16 }
 0x856   : > { %15807 = vst [vmem:[#allocation203_spill] sm:$0xff] %v13856_v39  ;;  %v6943_v39 = vrot.slane %v6941_v11, 4  ;;  %v6968_v11 = vshll.u32 %v13717_v12, 16  ;;  %v7005_v18 = vshrl.u32 %v13790_v17, 16 }
 0x858   : > { %7060 = vrot.lane.b32.xlu2 %v6939_v51, %s9861_s20  ;;  %v6981_v51 = vshrl.u32 %v13763_v24, 16  ;;  %v6947_v37 = vor.u32 %v6946_v54, %v6943_v39  ;;  %v6970_v23 = vrot.slane %v6968_v11, 5 }
 0x859   : > { %6914 = vrot.lane.b32.xlu1 %v6851_v2, %s9860_s19  ;;  %v6976_v2 = vshll.u32 %v13719_v15, 16 }
 0x85a   : > { %v13869_v59 = vpop.permute.xlu2 %6722 }
 0x85b   : > { %6912 = vrot.lane.b32.xlu0 %v9755_v29, %s9860_s19  ;;  %v13867_v58 = vpop.permute.xlu1 %6702  ;;  %15809 = vst [vmem:[#allocation205_spill] sm:$0xff] %v13869_v59  ;;  %v6965_v29 = vshrl.u32 %v13717_v12, 16  ;;  %v6983_v59 = vrot.slane %v6981_v51, 4 }
 0x85c   : > { %15808 = vst [vmem:[#allocation204_spill] sm:$0xff] %v13867_v58  ;;  %v6978_v58 = vrot.slane %v6976_v2, 5  ;;  %v7008_v2 = vshll.u32 %v13790_v17, 16 }
 0x85d   : > { %v13871_v0 = vpop.permute.xlu0 %6700  ;;  %v6987_v55 = vor.u32 %v6986_v28, %v6983_v59  ;;  %v7007_v28 = vrot.slane %v7005_v18, 4 }
 0x85e   : > { %15810 = vst [vmem:[#allocation206_spill] sm:$0xff] %v13871_v0  ;;  %v6967_v0 = vrot.slane %v6965_v29, 4  ;;  %v6979_v39 = vor.u32 %v6978_v58, %v6975_v25  ;;  %v7002_v58 = vrot.slane %v7000_v53, 5  ;;  %v7010_v59 = vrot.slane %v7008_v2, 5 }
 0x860   : > { %7066 = vrot.lane.b32.xlu2 %v6963_v41, %s9861_s20  ;;  %v6971_v51 = vor.u32 %v6970_v23, %v6967_v0  ;;  %v6999_v41 = vrot.slane %v6997_v34, 4  ;;  %v7021_v0 = vshrl.u32 %v13804_v57, 16  ;;  %v7032_v34 = vshll.u32 %v13817_v31, 16 }
 0x861   : > { %7064 = vrot.lane.b32.xlu1 %v6955_v32, %s9861_s20  ;;  %v6992_v32 = vshll.u32 %v13765_v50, 16  ;;  %v7011_v18 = vor.u32 %v7010_v59, %v7007_v28 }
 0x862   : > { %v13884_v63 = vpop.permute.xlu2 %6856  ;;  %v7003_v53 = vor.u32 %v7002_v58, %v6999_v41 }
 0x863   : > { %7062 = vrot.lane.b32.xlu0 %v6947_v37, %s9861_s20  ;;  %v13882_v16 = vpop.permute.xlu1 %6708  ;;  %15811 = vst [vmem:[#allocation207_spill] sm:$0xff] %v13884_v63  ;;  %v6991_v37 = vrot.slane %v6989_v22, 4  ;;  %v6994_v29 = vrot.slane %v6992_v32, 5  ;;  %v7016_v22 = vshll.u32 %v13792_v38, 16  ;;  %v7023_v32 = vrot.slane %v7021_v0, 4 }
 0x864   : > { %v7053_v0 = vshrl.u32 %v13846_v61, 16 }
 0x865   : > { %v13886_v54 = vpop.permute.xlu0 %6706  ;;  %v6995_v2 = vor.u32 %v6994_v29, %v6991_v37  ;;  %v7018_v63 = vrot.slane %v7016_v22, 5  ;;  %v7045_v37 = vshrl.u32 %v13831_v36, 16  ;;  %v7048_v29 = vshll.u32 %v13831_v36, 16 }
 0x866   : > { %15812 = vst [vmem:[#allocation208_spill] sm:$0xff] %v13886_v54  ;;  %v7034_v54 = vrot.slane %v7032_v34, 5  ;;  %v7037_v34 = vshrl.u32 %v13819_v14, 16 }
 0x868   : > { %7072 = vrot.lane.b32.xlu2 %v6987_v55, %s9861_s20  ;;  %v7029_v55 = vshrl.u32 %v13817_v31, 16 }
 0x869   : > { %7070 = vrot.lane.b32.xlu1 %v6979_v39, %s9861_s20  ;;  %v7024_v39 = vshll.u32 %v13804_v57, 16 }
 0x86a   : > { %v13899_v25 = vpop.permute.xlu2 %6862 }
 0x86b   : > { %7068 = vrot.lane.b32.xlu0 %v6971_v51, %s9861_s20  ;;  %v13897_v11 = vpop.permute.xlu1 %6714  ;;  %15814 = vst [vmem:[#allocation210_spill] sm:$0xff] %v13899_v25  ;;  %v7013_v51 = vshrl.u32 %v13792_v38, 16  ;;  %v7031_v25 = vrot.slane %v7029_v55, 4 }
 0x86c   : > { %15813 = vst [vmem:[#allocation209_spill] sm:$0xff] %v13897_v11  ;;  %v7026_v11 = vrot.slane %v7024_v39, 5  ;;  %v7056_v39 = vshll.u32 %v13846_v61, 16 }
 0x86d   : > { %v13901_v23 = vpop.permute.xlu0 %6712  ;;  %v7035_v59 = vor.u32 %v7034_v54, %v7031_v25  ;;  %v7050_v54 = vrot.slane %v7048_v29, 5  ;;  %v7055_v25 = vrot.slane %v7053_v0, 4  ;;  %v7140_v29 = vrot.slane %v13674_v45, 5 }
 0x86e   : > { %15815 = vst [vmem:[#allocation211_spill] sm:$0xff] %v13901_v23  ;;  %v7015_v23 = vrot.slane %v7013_v51, 4  ;;  %v7027_v28 = vor.u32 %v7026_v11, %v7023_v32  ;;  %v7047_v11 = vrot.slane %v7045_v37, 4  ;;  %v7039_v51 = vrot.slane %v7037_v34, 4  ;;  %v6176_v37 = vld [vmem:[#allocation3 + $0x2c] sm:$0x1] }
 0x870   : > { %7078 = vrot.lane.b32.xlu2 %v7011_v18, %s9861_s20  ;;  %v7019_v55 = vor.u32 %v7018_v63, %v7015_v23  ;;  %v6175_v18 = vld [vmem:[#allocation3 + $0x1c] sm:$0x1] }
 0x871   : > { %7076 = vrot.lane.b32.xlu1 %v7003_v53, %s9861_s20  ;;  %v7040_v53 = vshll.u32 %v13819_v14, 16  ;;  %v7108_v32 = vunpack.c.l.b16 %v6175_v18 }
 0x872   : > { %v13914_v41 = vpop.permute.xlu2 %6868 }
 0x873   : > { %7074 = vrot.lane.b32.xlu0 %v6995_v2, %s9861_s20  ;;  %v13912_v27 = vpop.permute.xlu1 %6720  ;;  %15817 = vst [vmem:[#allocation213_spill] sm:$0xff] %v13914_v41  ;;  %v7058_v2 = vrot.slane %v7056_v39, 5  ;;  %v7042_v22 = vrot.slane %v7040_v53, 5  ;;  %v7051_v41 = vor.u32 %v7050_v54, %v7047_v11  ;;  %v7124_v13 = vpack.c.b16 %v7108_v32, %v7108_v32 }
 0x874   : > { %15816 = vst [vmem:[#allocation212_spill] sm:$0xff] %v13912_v27  ;;  %v7109_v53 = vunpack.c.l.b16 %v6176_v37  ;;  %v7143_v11 = vrot.slane %v13686_v19, 5 }
 0x875   : > { %v13916_v58 = vpop.permute.xlu0 %6718  ;;  %v7059_v27 = vor.u32 %v7058_v2, %v7055_v25  ;;  %v7141_v0 = vrot.slane %v7124_v13, 5  ;;  %v7146_v13 = vrot.slane %v13688_v4, 5  ;;  %v7149_v4 = vrot.slane %v13703_v40, 5 }
 0x876   : > { %15818 = vst [vmem:[#allocation214_spill] sm:$0xff] %v13916_v58  ;;  %v7125_v25 = vpack.c.b16 %v7109_v53, %v7109_v53  ;;  %v7155_v40 = vrot.slane %v13719_v15, 5  ;;  %v7158_v15 = vrot.slane %v13763_v24, 5  ;;  %v7164_v24 = vrot.slane %v13777_v30, 5 }
 0x877   : > { %v7142_v54 = vsel %vm6611_vm15, %v7140_v29, %v7141_v0  ;;  %v6180_v0 = vld [vmem:[#allocation3 + $0x6c] sm:$0x1]  ;;  %v7167_v30 = vrot.slane %v13790_v17, 5  ;;  %v7173_v17 = vrot.slane %v13804_v57, 5 }
 0x878   : > { %7084 = vrot.lane.b32.xlu2 %v7035_v59, %s9861_s20  ;;  %v6177_v59 = vld [vmem:[#allocation3 + $0x3c] sm:$0x1]  ;;  %v7144_v19 = vrot.slane %v7125_v25, 5  ;;  %v7113_v53 = vunpack.c.l.b16 %v6180_v0 }
 0x879   : > { %7082 = vrot.lane.b32.xlu1 %v7027_v28, %s9861_s20  ;;  %v7043_v28 = vor.u32 %v7042_v22, %v7039_v51  ;;  %v7110_v39 = vunpack.c.l.b16 %v6177_v59 }
 0x87a   : > { %v13929_v63 = vpop.permute.xlu2 %6874  ;;  %v7145_v37 = vsel %vm6611_vm15, %v7143_v11, %v7144_v19  ;;  %v6181_v19 = vld [vmem:[#allocation3 + $0x7c] sm:$0x1] }
 0x87b   : > { %7080 = vrot.lane.b32.xlu0 %v7019_v55, %s9861_s20  ;;  %v13927_v58 = vpop.permute.xlu1 %6854 }
 0x87d   : > { %v13931_v23 = vpop.permute.xlu0 %6852 }
 0x880   : > { %7090 = vrot.lane.b32.xlu2 %v7059_v27, %s9861_s20  ;;  %v6178_v27 = vld [vmem:[#allocation3 + $0x4c] sm:$0x1] }
 0x881   : > { %7088 = vrot.lane.b32.xlu1 %v7051_v41, %s9861_s20  ;;  %v7126_v41 = vpack.c.b16 %v7110_v39, %v7110_v39  ;;  %v7111_v2 = vunpack.c.l.b16 %v6178_v27  ;;  %v6179_v39 = vld [vmem:[#allocation3 + $0x5c] sm:$0x1] }
 0x882   : > { %v13939_v34 = vpop.permute.xlu2 %6880  ;;  %v7112_v25 = vunpack.c.l.b16 %v6179_v39 }
 0x883   : > { %7086 = vrot.lane.b32.xlu0 %v7043_v28, %s9861_s20  ;;  %v13937_v55 = vpop.permute.xlu1 %6860  ;;  %v7147_v45 = vrot.slane %v7126_v41, 5  ;;  %v7127_v59 = vpack.c.b16 %v7111_v2, %v7111_v2 }
 0x884   : > { %15819 = vst [vmem:[#allocation215_spill] sm:$0xff] %v13937_v55  ;;  %v7128_v2 = vpack.c.b16 %v7112_v25, %v7112_v25 }
 0x885   : > { %v13941_v18 = vpop.permute.xlu0 %6858  ;;  %v7148_v28 = vsel %vm6611_vm15, %v7146_v13, %v7147_v45 }
 0x886   : > { %15820 = vst [vmem:[#allocation216_spill] sm:$0xff] %v13941_v18 }
 0x888   : > { %7192 = vrot.lane.b32.xlu2 %v7143_v11, %s9862_s21  ;;  %v7152_v11 = vrot.slane %v13717_v12, 5  ;;  %v7153_v12 = vrot.slane %v7128_v2, 5 }
 0x889   : > { %7190 = vrot.lane.b32.xlu1 %v7142_v54, %s9862_s21 }
 0x88a   : > { %v13951_v22 = vpop.permute.xlu2 %6886  ;;  %v7154_v25 = vsel %vm6611_vm15, %v7152_v11, %v7153_v12 }
 0x88b   : > { %7188 = vrot.lane.b32.xlu0 %v7140_v29, %s9862_s21  ;;  %v13949_v51 = vpop.permute.xlu1 %6866  ;;  %v7150_v29 = vrot.slane %v7127_v59, 5  ;;  %v7114_v59 = vunpack.c.l.b16 %v6181_v19 }
 0x88c   : > { %15821 = vst [vmem:[#allocation217_spill] sm:$0xff] %v13949_v51 }
 0x88d   : > { %v13953_v32 = vpop.permute.xlu0 %6864  ;;  %v7151_v45 = vsel %vm6611_vm15, %v7149_v4, %v7150_v29 }
 0x88e   : > { %15822 = vst [vmem:[#allocation218_spill] sm:$0xff] %v13953_v32  ;;  %v6185_v32 = vld [vmem:[#allocation3 + $0xbc] sm:$0x1] }
 0x890   : > { %7198 = vrot.lane.b32.xlu2 %v7148_v28, %s9862_s21 }
 0x891   : > { %7196 = vrot.lane.b32.xlu1 %v7146_v13, %s9862_s21  ;;  %v7129_v13 = vpack.c.b16 %v7113_v53, %v7113_v53  ;;  %v7130_v53 = vpack.c.b16 %v7114_v59, %v7114_v59 }
 0x892   : > { %v13963_v41 = vpop.permute.xlu2 %6892 }
 0x893   : > { %7194 = vrot.lane.b32.xlu0 %v7145_v37, %s9862_s21  ;;  %v13961_v54 = vpop.permute.xlu1 %6872  ;;  %v7156_v28 = vrot.slane %v7129_v13, 5 }
 0x894   : > { %15823 = vst [vmem:[#allocation219_spill] sm:$0xff] %v13961_v54 }
 0x895   : > { %v13965_v27 = vpop.permute.xlu0 %6870  ;;  %v7157_v29 = vsel %vm6611_vm15, %v7155_v40, %v7156_v28 }
 0x896   : > { %15824 = vst [vmem:[#allocation220_spill] sm:$0xff] %v13965_v27  ;;  %v6182_v27 = vld [vmem:[#allocation3 + $0x8c] sm:$0x1] }
 0x897   : > { %v7115_v28 = vunpack.c.l.b16 %v6182_v27 }
 0x898   : > { %7204 = vrot.lane.b32.xlu2 %v7152_v11, %s9862_s21  ;;  %v7161_v11 = vrot.slane %v13765_v50, 5 }
 0x899   : > { %7202 = vrot.lane.b32.xlu1 %v7151_v45, %s9862_s21  ;;  %v6183_v45 = vld [vmem:[#allocation3 + $0x9c] sm:$0x1] }
 0x89a   : > { %v13975_v0 = vpop.permute.xlu2 %6898  ;;  %v7116_v13 = vunpack.c.l.b16 %v6183_v45 }
 0x89b   : > { %7200 = vrot.lane.b32.xlu0 %v7149_v4, %s9862_s21  ;;  %v13973_v37 = vpop.permute.xlu1 %6878  ;;  %v7159_v4 = vrot.slane %v7130_v53, 5 }
 0x89d   : > { %v13977_v39 = vpop.permute.xlu0 %6876  ;;  %v7160_v12 = vsel %vm6611_vm15, %v7158_v15, %v7159_v4 }
 0x89e   : > { %15825 = vst [vmem:[#allocation221_spill] sm:$0xff] %v13977_v39  ;;  %v7131_v39 = vpack.c.b16 %v7115_v28, %v7115_v28 }
 0x8a0   : > { %7210 = vrot.lane.b32.xlu2 %v7157_v29, %s9862_s21  ;;  %v6184_v29 = vld [vmem:[#allocation3 + $0xac] sm:$0x1]  ;;  %v7162_v50 = vrot.slane %v7131_v39, 5 }
 0x8a1   : > { %7208 = vrot.lane.b32.xlu1 %v7155_v40, %s9862_s21  ;;  %v7132_v40 = vpack.c.b16 %v7116_v13, %v7116_v13 }
 0x8a2   : > { %v13987_v19 = vpop.permute.xlu2 %6904  ;;  %v7163_v28 = vsel %vm6611_vm15, %v7161_v11, %v7162_v50 }
 0x8a3   : > { %7206 = vrot.lane.b32.xlu0 %v7154_v25, %s9862_s21  ;;  %v13985_v2 = vpop.permute.xlu1 %6884  ;;  %v7165_v53 = vrot.slane %v7132_v40, 5  ;;  %v7117_v25 = vunpack.c.l.b16 %v6184_v29 }
 0x8a5   : > { %v13989_v59 = vpop.permute.xlu0 %6882  ;;  %v7166_v4 = vsel %vm6611_vm15, %v7164_v24, %v7165_v53  ;;  %v7133_v13 = vpack.c.b16 %v7117_v25, %v7117_v25  ;;  %v7118_v53 = vunpack.c.l.b16 %v6185_v32 }
 0x8a7   : > { %v7134_v51 = vpack.c.b16 %v7118_v53, %v7118_v53 }
 0x8a8   : > { %7216 = vrot.lane.b32.xlu2 %v7161_v11, %s9862_s21  ;;  %v7170_v11 = vrot.slane %v13792_v38, 5 }
 0x8a9   : > { %7214 = vrot.lane.b32.xlu1 %v7160_v12, %s9862_s21  ;;  %v6186_v12 = vld [vmem:[#allocation3 + $0xcc] sm:$0x1]  ;;  %v7171_v38 = vrot.slane %v7134_v51, 5  ;;  %v7176_v51 = vrot.slane %v13817_v31, 5 }
 0x8aa   : > { %v13999_v45 = vpop.permute.xlu2 %6910  ;;  %v7119_v40 = vunpack.c.l.b16 %v6186_v12 }
 0x8ab   : > { %7212 = vrot.lane.b32.xlu0 %v7158_v15, %s9862_s21  ;;  %v13997_v27 = vpop.permute.xlu1 %6890  ;;  %v7168_v15 = vrot.slane %v7133_v13, 5  ;;  %v7172_v57 = vsel %vm6611_vm15, %v7170_v11, %v7171_v38 }
 0x8ad   : > { %v14001_v54 = vpop.permute.xlu0 %6888  ;;  %v7169_v50 = vsel %vm6611_vm15, %v7167_v30, %v7168_v15  ;;  %v15827_v15 = vunpack.c.h.b16 %v13548_v1 }
 0x8b0   : > { %7222 = vrot.lane.b32.xlu2 %v7166_v4, %s9862_s21  ;;  %v6187_v4 = vld [vmem:[#allocation3 + $0xdc] sm:$0x1] }
 0x8b1   : > { %7220 = vrot.lane.b32.xlu1 %v7164_v24, %s9862_s21  ;;  %v7135_v24 = vpack.c.b16 %v7119_v40, %v7119_v40  ;;  %v6368_v40 = vpack.c.b16 %v15827_v15, %v15827_v15 }
 0x8b2   : > { %v14011_v29 = vpop.permute.xlu2 %7060 }
 0x8b3   : > { %7218 = vrot.lane.b32.xlu0 %v7163_v28, %s9862_s21  ;;  %v14009_v39 = vpop.permute.xlu1 %6896  ;;  %v7174_v13 = vrot.slane %v7135_v24, 5  ;;  %v7120_v28 = vunpack.c.l.b16 %v6187_v4  ;;  %v7815_v24 = vsel %vm7780_vm0, %v6368_v40, %v13742_v47  ;;  %v6188_v4 = vld [vmem:[#allocation3 + $0xec] sm:$0x1] }
 0x8b4   : > { %v7889_v1 = vsel %vm7861_vm1, %v7815_v24, %v13786_v62  ;;  %v7121_v62 = vunpack.c.l.b16 %v6188_v4  ;;  %v9367_v24 = vld [vmem:[#allocation3 + $0xc0] sm:$0x8] }
 0x8b5   : > { %v14013_v25 = vpop.permute.xlu0 %6894  ;;  %v7175_v18 = vsel %vm6611_vm15, %v7173_v17, %v7174_v13  ;;  %v7136_v55 = vpack.c.b16 %v7120_v28, %v7120_v28  ;;  %v7954_v28 = vsel %vm7926_vm2, %v7889_v1, %v13973_v37 }
 0x8b6   : > { %v7137_v1 = vpack.c.b16 %v7121_v62, %v7121_v62 }
 0x8b7   : > { %v7177_v13 = vrot.slane %v7136_v55, 5  ;;  %v14055_v55 = vld [vmem:[#allocation3 + $0x40] sm:$0x8] }
 0x8b8   : > { %7228 = vrot.lane.b32.xlu2 %v7170_v11, %s9862_s21 }
 0x8b9   : > { %7226 = vrot.lane.b32.xlu1 %v7169_v50, %s9862_s21  ;;  %v9359_v50 = vld [vmem:[#allocation3 + $0x90] sm:$0x8]  ;;  %v7178_v4 = vsel %vm6611_vm15, %v7176_v51, %v7177_v13 }
 0x8ba   : > { %v14023_v12 = vpop.permute.xlu2 %7066  ;;  %v9360_v37 = vor.u32 %v13575_v48, %v9359_v50  ;;  %v7182_v50 = vrot.slane %v13831_v36, 5 }
 0x8bb   : > { %7224 = vrot.lane.b32.xlu0 %v7167_v30, %s9862_s21  ;;  %v14021_v32 = vpop.permute.xlu1 %6902  ;;  %15826 = vst [vmem:[#allocation222_spill] sm:$0xff] %v14023_v12  ;;  %v6189_v30 = vld [vmem:[#allocation3 + $0xfc] sm:$0x1] }
 0x8bc   : > { %v7122_v11 = vunpack.c.l.b16 %v6189_v30  ;;  %v14059_v30 = vld [vmem:[#allocation3 + $0x80] sm:$0x8] }
 0x8bd   : > { %v14028_v53 = vpop.permute.xlu0 %6900 }
 0x8c0   : > { %7234 = vrot.lane.b32.xlu2 %v7175_v18, %s9862_s21 }
 0x8c1   : > { %7232 = vrot.lane.b32.xlu1 %v7173_v17, %s9862_s21  ;;  %v15829_v17 = vunpack.c.h.b16 %v13573_v35  ;;  %v7138_v35 = vpack.c.b16 %v7122_v11, %v7122_v11 }
 0x8c2   : > { %v14044_v15 = vpop.permute.xlu2 %7072 }
 0x8c3   : > { %7230 = vrot.lane.b32.xlu0 %v7172_v57, %s9862_s21  ;;  %v14042_v38 = vpop.permute.xlu1 %6908  ;;  %15828 = vst [vmem:[#allocation223_spill] sm:$0xff] %v14044_v15  ;;  %v6374_v18 = vpack.c.b16 %v15829_v17, %v15829_v17  ;;  %v14051_v40 = vsel %vm7991_vm3, %v7954_v28, %v14044_v15  ;;  %v7179_v57 = vrot.slane %v13819_v14, 5  ;;  %v6190_v17 = vld [vmem:[#allocation3 + $0x10c] sm:$0x1]  ;;  %v7828_v15 = vsel %vm7780_vm0, %v9360_v37, %v13752_v8 }
 0x8c4   : > { %15830 = vst [vmem:[#allocation224_spill] sm:$0xff] %v14051_v40  ;;  %v14064_v40 = vld [vmem:[#allocation3] sm:$0x8]  ;;  %v7899_v14 = vsel %vm7861_vm1, %v7828_v15, %v13852_v20  ;;  %v7183_v13 = vrot.slane %v7138_v35, 5  ;;  %v7123_v11 = vunpack.c.l.b16 %v6190_v17  ;;  %v7180_v37 = vrot.slane %v7137_v1, 5 }
 0x8c5   : > { %v14053_v31 = vpop.permute.xlu0 %6906  ;;  %v7830_v28 = vsel %vm7780_vm0, %v6374_v18, %v13752_v8  ;;  %v7964_v8 = vsel %vm7926_vm2, %v7899_v14, %v14001_v54  ;;  %v15833_v15 = vunpack.c.h.b16 %v13516_v56  ;;  %v14099_v35 = vld [vmem:[#allocation3 + $0xe0] sm:$0x8]  ;;  %v14101_v1 = vld [vmem:[#allocation3 + $0x10] sm:$0x8]  ;;  %v9368_v17 = vor.u32 %v13601_v26, %v9367_v24 }
 0x8c6   : > { %v7901_v48 = vsel %vm7861_vm1, %v7830_v28, %v13813_v60  ;;  %v15834_v28 = vunpack.c.h.b16 %v13599_v33  ;;  %v9383_v14 = vld [vmem:[#allocation3 + $0xf0] sm:$0x8]  ;;  %v15836_v26 = vunpack.c.h.b16 %v13561_v21  ;;  %v15837_v24 = vunpack.c.h.b16 %v13510_v52 }
 0x8c7   : > { %v7966_v62 = vsel %vm7926_vm2, %v7901_v48, %v13997_v27  ;;  %v9364_v27 = vor.u32 %v13504_v9, %v14055_v55  ;;  %v14097_v54 = vpack.c.b16 %v15833_v15, %v15833_v15  ;;  %v15835_v9 = vunpack.c.h.b16 %v13540_v46  ;;  %v14113_v15 = vld [vmem:[#allocation3 + $0x24] sm:$0xff]  }
 0x8c8   : > { %7240 = vrot.lane.b32.xlu2 %v7179_v57, %s9862_s21  ;;  %v6380_v48 = vpack.c.b16 %v15834_v28, %v15834_v28  ;;  %v7184_v55 = vsel %vm6611_vm15, %v7182_v50, %v7183_v13  ;;  %v14118_v33 = vpack.c.b16 %v15836_v26, %v15836_v26  ;;  %v7181_v46 = vsel %vm6611_vm15, %v7179_v57, %v7180_v37  ;;  %v14128_v13 = vld [vmem:[#allocation3 + $0x70] sm:$0x8] }
 0x8c9   : > { %7238 = vrot.lane.b32.xlu1 %v7178_v4, %s9862_s21  ;;  %v14082_v4 = vld [vmem:[#allocation3 + $0xb0] sm:$0x8]  ;;  %v6372_v56 = vpack.c.b16 %v15835_v9, %v15835_v9  ;;  %v7185_v37 = vrot.slane %v13846_v61, 5  ;;  %v9384_v61 = vor.u32 %v13612_v7, %v9383_v14  ;;  %v15841_v26 = vunpack.c.h.b16 %v13580_v42 }
 0x8ca   : > { %v7079_v18 = vpop.permute.xlu2 %7078  ;;  %v7845_v21 = vsel %vm7780_vm0, %v6380_v48, %v13761_v43  ;;  %v15842_v7 = vunpack.c.h.b16 %v13610_v6  ;;  %v15845_v42 = vld [vmem:[#allocation162_spill] sm:$0xff] }
 0x8cb   : > { %7236 = vrot.lane.b32.xlu0 %v7176_v51, %s9862_s21  ;;  %v14080_v60 = vpop.permute.xlu1 %6914  ;;  %v14085_v20 = vsel %vm7991_vm3, %v7964_v8, %v7079_v18  ;;  %v14088_v51 = vsel %vm7991_vm3, %v7966_v62, %v7079_v18  ;;  %v9372_v62 = vor.u32 %v13542_v10, %v14059_v30  ;;  %v7139_v8 = vpack.c.b16 %v7123_v11, %v7123_v11  ;;  %v9760_v18 = vld [vmem:[#allocation3 + $0x20] sm:$0x8] }
 0x8cc   : > { %15831 = vst [vmem:[#allocation225_spill] sm:$0xff] %v14085_v20  ;;  %v9826_v20 = vld [vmem:[#allocation3 + $0x20] sm:$0xf0]   ;;  %v14123_v10 = vpack.c.b16 %v15837_v24, %v15837_v24  ;;  %v7843_v11 = vsel %vm7780_vm0, %v9368_v17, %v13761_v43  ;;  %v7913_v52 = vsel %vm7861_vm1, %v7845_v21, %v13840_v5  ;;  %v9380_v17 = vor.u32 %v13563_v3, %v14082_v4  ;;  %v9407_v30 = vld [vmem:[#allocation3 + $0xa0] sm:$0x8] }
 0x8cd   : > { %15832 = vst [vmem:[#allocation226_spill] sm:$0xff] %v14088_v51  ;;  %v14090_v36 = vpop.permute.xlu0 %6912  ;;  %v7911_v57 = vsel %vm7861_vm1, %v7843_v11, %v13882_v16  ;;  %v7186_v28 = vrot.slane %v7139_v8, 5  ;;  %v15838_v43 = vunpack.c.h.b16 %v13506_v49  ;;  %v7978_v48 = vsel %vm7926_vm2, %v7913_v52, %v14021_v32  ;;  %v14164_v4 = vld [vmem:[#allocation3 + $0xa4] sm:$0xff]   ;;  %v9399_v11 = vld [vmem:[#allocation3 + $0xe0] sm:$0x8]  ;;  %v15843_v52 = vld [vmem:[#allocation171_spill] sm:$0xff] }
 0x8ce   : > { %v7976_v5 = vsel %vm7926_vm2, %v7911_v57, %v14028_v53  ;;  %v14166_v8 = vld [vmem:[#allocation3 + $0xa0] sm:$0xf0]   ;;  %v14173_v24 = vpack.c.b16 %v15841_v26, %v15841_v26  ;;  %v6386_v14 = vpack.c.b16 %v15842_v7, %v15842_v7  ;;  %v14181_v57 = vsel %vm7780_vm0, %v9364_v27, %v15843_v52  ;;  %v15846_v26 = vld [vmem:[#allocation163_spill] sm:$0xff] }
 0x8cf   : > { %v14168_v32 = vld [vmem:[#allocation3 + $0xe4] sm:$0xff]   ;;  %v15847_v6 = vunpack.c.h.b16 %v15846_v26 }
 0x8d0   : > { %7246 = vrot.lane.b32.xlu2 %v7184_v55, %s9862_s21  ;;  %v9757_v53 = vld [vmem:[#allocation3 + $0xe0] sm:$0xf0]   ;;  %v15852_v26 = vld [vmem:[#allocation205_spill] sm:$0xff] }
 0x8d1   : > { %7244 = vrot.lane.b32.xlu1 %v7182_v50, %s9862_s21  ;;  %v14147_v50 = vpack.c.b16 %v15838_v43, %v15838_v43  ;;  %v15844_v43 = vld [vmem:[#allocation168_spill] sm:$0xff]  ;;  %v6370_v7 = vpack.c.b16 %v15847_v6, %v15847_v6 }
 0x8d2   : > { %v7085_v9 = vpop.permute.xlu2 %7084  ;;  %v15848_v27 = vld [vmem:[#allocation164_spill] sm:$0xff] }
 0x8d3   : > { %7242 = vrot.lane.b32.xlu0 %v7181_v46, %s9862_s21  ;;  %v14153_v16 = vpop.permute.xlu1 %7064  ;;  %v14157_v55 = vsel %vm7991_vm3, %v7976_v5, %v7085_v9  ;;  %v14160_v3 = vsel %vm7991_vm3, %v7978_v48, %v7085_v9  ;;  %v9761_v46 = vor.u32 %v9826_v20, %v9760_v18  ;;  %v9392_v5 = vor.u32 %v15845_v42, %v14101_v1  ;;  %v14191_v20 = vld [vmem:[#allocation3 + $0xa0] sm:$0x8]  ;;  %v15851_v1 = vld [vmem:[#allocation189_spill] sm:$0xff] }
 0x8d4   : > { %15839 = vst [vmem:[#allocation227_spill] sm:$0xff] %v14157_v55  ;;  %v7187_v9 = vsel %vm6611_vm15, %v7185_v37, %v7186_v28  ;;  %v7326_v18 = vunpack.c.h.b16 %v14164_v4  ;;  %v9396_v21 = vor.u32 %v15848_v27, %v14128_v13  ;;  %v7858_v28 = vsel %vm7780_vm0, %v9384_v61, %v15851_v1  ;;  %v15853_v13 = vld [vmem:[#allocation212_spill] sm:$0xff] }
 0x8d5   : > { %15840 = vst [vmem:[#allocation228_spill] sm:$0xff] %v14160_v3  ;;  %v14162_v49 = vpop.permute.xlu0 %7062  ;;  %v15849_v3 = vld [vmem:[#allocation166_spill] sm:$0xff]  ;;  %v7860_v42 = vsel %vm7780_vm0, %v6386_v14, %v15851_v1  ;;  %v15863_v51 = vld [vmem:[#allocation180_spill] sm:$0xff] }
 0x8d6   : > { %v15850_v55 = vunpack.c.h.b16 %v15849_v3  ;;  %v7925_v6 = vsel %vm7861_vm1, %v7860_v42, %v15852_v26  ;;  %v7923_v3 = vsel %vm7861_vm1, %v7858_v28, %v15853_v13  ;;  %v14216_v14 = vld [vmem:[#allocation3 + $0xd0] sm:$0x8]  ;;  %v9400_v26 = vor.u32 %v9757_v53, %v9399_v11  ;;  %v15862_v11 = vld [vmem:[#allocation179_spill] sm:$0xff] }
 0x8d7   : > { %v7525_v13 = vshrl.u32 %v14164_v4, 16  ;;  %v7818_v47 = vsel %vm7780_vm0, %v9396_v21, %v15863_v51  ;;  %v7820_v52 = vsel %vm7780_vm0, %v6370_v7, %v15863_v51  ;;  %v15867_v51 = vld [vmem:[#allocation201_spill] sm:$0xff] }
 0x8d8   : > { %v14199_v48 = vpack.c.b16 %v15850_v55, %v15850_v55  ;;  %7380 = vrot.lane.b32.xlu2 %v9761_v46, %s9863_s23  ;;  %v15854_v55 = vld [vmem:[#allocation173_spill] sm:$0xff]  ;;  %v7988_v46 = vsel %vm7926_vm2, %v7923_v3, %v14090_v36  ;;  %v7560_v36 = vshll.u32 %v14168_v32, 16  ;;  %v15858_v3 = vld [vmem:[#allocation167_spill] sm:$0xff]  ;;  %v7891_v7 = vsel %vm7861_vm1, %v7818_v47, %v15867_v51 }
 0x8d9   : > { %7250 = vrot.lane.b32.xlu1 %v7187_v9, %s9862_s21  ;;  %v7823_v27 = vsel %vm7780_vm0, %v9372_v62, %v15854_v55  ;;  %v7825_v61 = vsel %vm7780_vm0, %v6372_v56, %v15854_v55  ;;  %v7990_v9 = vsel %vm7926_vm2, %v7925_v6, %v14080_v60  ;;  %v7365_v56 = vpack.c.b16 %v7326_v18, %v7326_v18  ;;  %v15861_v18 = vld [vmem:[#allocation174_spill] sm:$0xff] }
 0x8da   : > { %v7091_v42 = vpop.permute.xlu2 %7090  ;;  %v7528_v60 = vshll.u32 %v14164_v4, 16  ;;  %v7557_v6 = vshrl.u32 %v14168_v32, 16  ;;  %v9404_v55 = vor.u32 %v15858_v3, %v14191_v20  ;;  %v7838_v53 = vsel %vm7780_vm0, %v9380_v17, %v15861_v18  ;;  %v6251_v20 = vld [vmem:[#allocation3 + $0xac] sm:$0x1]  ;;  %v15864_v3 = vld [vmem:[#allocation191_spill] sm:$0xff] }
 0x8db   : > { %7248 = vrot.lane.b32.xlu0 %v7185_v37, %s9862_s21  ;;  %v14222_v1 = vpop.permute.xlu1 %7070  ;;  %v14225_v28 = vsel %vm7991_vm3, %v7988_v46, %v7091_v42  ;;  %v14228_v37 = vsel %vm7991_vm3, %v7990_v9, %v7091_v42  ;;  %v15859_v46 = vld [vmem:[#allocation169_spill] sm:$0xff]  ;;  %v9408_v42 = vor.u32 %v14166_v8, %v9407_v30  ;;  %v15866_v30 = vld [vmem:[#allocation200_spill] sm:$0xff]  ;;  %v7527_v17 = vrot.slane %v7525_v13, 4 }
 0x8dc   : > { %15855 = vst [vmem:[#allocation168_spill] sm:$0xff] %v14222_v1  ;;  %v7893_v8 = vsel %vm7861_vm1, %v7820_v52, %v15866_v30  ;;  %v7530_v21 = vrot.slane %v7528_v60, 5  ;;  %v15868_v1 = vld [vmem:[#allocation203_spill] sm:$0xff]  ;;  %v7644_v52 = vunpack.c.l.b16 %v6251_v20  ;;  %v15871_v30 = vunpack.c.h.b16 %v14168_v32 }
 0x8dd   : > { %15856 = vst [vmem:[#allocation162_spill] sm:$0xff] %v14225_v28  ;;  %v14230_v62 = vpop.permute.xlu0 %7068  ;;  %v15860_v28 = vunpack.c.h.b16 %v15859_v46 }
 0x8de   : > { %15857 = vst [vmem:[#allocation163_spill] sm:$0xff] %v14228_v37  ;;  %v7788_v37 = vsel %vm7780_vm0, %v9392_v5, %v15862_v11  ;;  %v7559_v5 = vrot.slane %v7557_v6, 4  ;;  %v7562_v11 = vrot.slane %v7560_v36, 5  ;;  %v7660_v51 = vpack.c.b16 %v7644_v52, %v7644_v52  ;;  %v15878_v52 = vld [vmem:[#allocation204_spill] sm:$0xff] }
 0x8df   : > { %v14241_v9 = vpack.c.b16 %v15860_v28, %v15860_v28  ;;  %v7867_v46 = vsel %vm7861_vm1, %v7788_v37, %v15864_v3  ;;  %v15865_v28 = vld [vmem:[#allocation193_spill] sm:$0xff]  ;;  %v7897_v37 = vsel %vm7861_vm1, %v7825_v61, %v15868_v1  ;;  %v15869_v3 = vld [vmem:[#allocation207_spill] sm:$0xff]  ;;  %v7958_v1 = vsel %vm7926_vm2, %v7893_v8, %v13989_v59 }
 0x8e0   : > { %v7895_v12 = vsel %vm7861_vm1, %v7823_v27, %v15865_v28  ;;  %7428 = vrot.lane.b32.xlu2 %v9400_v26, %s9863_s23  ;;  %v7932_v27 = vsel %vm7926_vm2, %v7867_v46, %v15869_v3  ;;  %v7962_v26 = vsel %vm7926_vm2, %v7897_v37, %v13951_v22  ;;  %v7563_v20 = vor.u32 %v7562_v11, %v7559_v5  ;;  %v15870_v46 = vld [vmem:[#allocation175_spill] sm:$0xff]  ;;  %v15876_v3 = vld [vmem:[#allocation194_spill] sm:$0xff] }
 0x8e1   : > { %7414 = vrot.lane.b32.xlu1 %v7365_v56, %s9863_s23  ;;  %v7956_v56 = vsel %vm7926_vm2, %v7891_v7, %v13939_v34  ;;  %v7960_v13 = vsel %vm7926_vm2, %v7895_v12, %v13985_v2  ;;  %v7996_v47 = vsel %vm7991_vm3, %v7932_v27, %v14162_v49  ;;  %v7840_v59 = vsel %vm7780_vm0, %v14118_v33, %v15861_v18  ;;  %v15872_v7 = vld [vmem:[#allocation177_spill] sm:$0xff]  ;;  %v15874_v33 = vld [vmem:[#allocation183_spill] sm:$0xff] }
 0x8e2   : > { %v7193_v61 = vpop.permute.xlu2 %7192  ;;  %v7795_v28 = vsel %vm7780_vm0, %v14147_v50, %v15870_v46  ;;  %v7373_v8 = vpack.c.b16 %v15871_v30, %v15871_v30  ;;  %v15873_v37 = vor.u32 %v15844_v43, %v14099_v35  ;;  %v7855_v11 = vsel %vm7780_vm0, %v14173_v24, %v15872_v7  ;;  %v15875_v50 = vld [vmem:[#allocation170_spill] sm:$0xff]  ;;  %v6255_v24 = vld [vmem:[#allocation3 + $0xec] sm:$0x1] }
 0x8e3   : > { %7412 = vrot.lane.b32.xlu0 %v9408_v42, %s9863_s23  ;;  %v7077_v60 = vpop.permute.xlu1 %7076  ;;  %v14284_v34 = vsel %vm8040_vm4, %v7996_v47, %v7193_v61  ;;  %v7531_v42 = vor.u32 %v7530_v21, %v7527_v17  ;;  %v7835_v18 = vsel %vm7780_vm0, %v14199_v48, %v15874_v33  ;;  %v9412_v21 = vor.u32 %v15875_v50, %v14216_v14  ;;  %v15877_v35 = vld [vmem:[#allocation198_spill] sm:$0xff]  ;;  %v15880_v48 = vld [vmem:[#allocation208_spill] sm:$0xff] }
 0x8e4   : > { %v14278_v6 = vsel %vm7991_vm3, %v7960_v13, %v7077_v60  ;;  %v14281_v36 = vsel %vm7991_vm3, %v7962_v26, %v7077_v60  ;;  %v7853_v17 = vsel %vm7780_vm0, %v15873_v37, %v15872_v7  ;;  %v7833_v5 = vsel %vm7780_vm0, %v9404_v55, %v15874_v33  ;;  %v15879_v26 = vld [vmem:[#allocation206_spill] sm:$0xff]  ;;  %v9762_v7 = vld [vmem:[#allocation3 + $0x60] sm:$0xf0]  }
 0x8e5   : > { %v7075_v22 = vpop.permute.xlu0 %7074  ;;  %v7873_v27 = vsel %vm7861_vm1, %v7795_v28, %v15876_v3  ;;  %v7907_v43 = vsel %vm7861_vm1, %v7838_v53, %v15877_v35  ;;  %v7903_v13 = vsel %vm7861_vm1, %v7833_v5, %v15879_v26  ;;  %v7909_v47 = vsel %vm7861_vm1, %v7840_v59, %v15880_v48  ;;  %v15881_v14 = vld [vmem:[#allocation210_spill] sm:$0xff]  ;;  %v15882_v5 = vld [vmem:[#allocation185_spill] sm:$0xff]  ;;  %v15886_v48 = vld [vmem:[#allocation211_spill] sm:$0xff] }
 0x8e6   : > { %v14287_v2 = vsel %vm7991_vm3, %v7956_v56, %v7075_v22  ;;  %v14290_v12 = vsel %vm7991_vm3, %v7958_v1, %v7075_v22  ;;  %v7905_v56 = vsel %vm7861_vm1, %v7835_v18, %v15878_v52  ;;  %v7938_v60 = vsel %vm7926_vm2, %v7873_v27, %v15881_v14  ;;  %v15883_v27 = vld [vmem:[#allocation196_spill] sm:$0xff]  ;;  %v15885_v26 = vld [vmem:[#allocation209_spill] sm:$0xff] }
 0x8e7   : > { %v7968_v55 = vsel %vm7926_vm2, %v7903_v13, %v13963_v41  ;;  %v7974_v53 = vsel %vm7926_vm2, %v7909_v47, %v13975_v0  ;;  %v7692_v61 = vrot.slane %v14164_v4, 5  ;;  %v7693_v1 = vrot.slane %v7660_v51, 5  ;;  %v9415_v51 = vld [vmem:[#allocation3 + $0x60] sm:$0x8]  ;;  %v15887_v47 = vld [vmem:[#allocation213_spill] sm:$0xff] }
 0x8e8   : > { %7612 = vrot.lane.b32.xlu2 %v7563_v20, %s9864_s24  ;;  %v7972_v22 = vsel %vm7926_vm2, %v7907_v43, %v14009_v39  ;;  %v7970_v59 = vsel %vm7926_vm2, %v7905_v56, %v14013_v25  ;;  %v7648_v41 = vunpack.c.l.b16 %v6255_v24  ;;  %v7704_v39 = vrot.slane %v14168_v32, 5  ;;  %v14352_v25 = vld [vmem:[#allocation3 + $0x64] sm:$0xff]   ;;  %v15884_v56 = vld [vmem:[#allocation202_spill] sm:$0xff] }
 0x8e9   : > { %7604 = vrot.lane.b32.xlu1 %v7531_v42, %s9864_s24  ;;  %v8000_v42 = vsel %vm7991_vm3, %v7938_v60, %v14153_v16  ;;  %v7302_v18 = vunpack.c.h.b16 %v14113_v15  ;;  %v7314_v50 = vunpack.c.h.b16 %v14352_v25  ;;  %v7848_v3 = vsel %vm7780_vm0, %v9412_v21, %v15882_v5 }
 0x8ea   : > { %v7199_v28 = vpop.permute.xlu2 %7198  ;;  %v7850_v32 = vsel %vm7780_vm0, %v14241_v9, %v15882_v5  ;;  %v7879_v35 = vsel %vm7861_vm1, %v14181_v57, %v15883_v27  ;;  %v7694_v43 = vsel %vm6611_vm15, %v7692_v61, %v7693_v1  ;;  %v7664_v52 = vpack.c.b16 %v7648_v41, %v7648_v41  ;;  %v15888_v9 = vld [vmem:[#allocation214_spill] sm:$0xff]  ;;  %v9419_v41 = vld [vmem:[#allocation3 + $0x20] sm:$0x8] }
 0x8eb   : > { %7430 = vrot.lane.b32.xlu0 %v7373_v8, %s9863_s23  ;;  %v7083_v20 = vpop.permute.xlu1 %7082  ;;  %v14349_v4 = vsel %vm8040_vm4, %v8000_v42, %v7199_v28  ;;  %v7919_v24 = vsel %vm7861_vm1, %v7853_v17, %v15884_v56  ;;  %v7917_v13 = vsel %vm7861_vm1, %v7850_v32, %v15885_v26  ;;  %v7915_v21 = vsel %vm7861_vm1, %v7848_v3, %v15886_v48  ;;  %v15889_v5 = vld [vmem:[#allocation172_spill] sm:$0xff] }
 0x8ec   : > { %v14343_v30 = vsel %vm7991_vm3, %v7972_v22, %v7083_v20  ;;  %v14346_v0 = vsel %vm7991_vm3, %v7974_v53, %v7083_v20  ;;  %v7944_v14 = vsel %vm7926_vm2, %v7879_v35, %v15887_v47  ;;  %v7921_v60 = vsel %vm7861_vm1, %v7855_v11, %v15888_v9  ;;  %v15890_v32 = vld [vmem:[#allocation176_spill] sm:$0xff]  ;;  %v15894_v47 = vld [vmem:[#allocation187_spill] sm:$0xff] }
 0x8ed   : > { %v7081_v8 = vpop.permute.xlu0 %7080  ;;  %v7980_v57 = vsel %vm7926_vm2, %v7915_v21, %v13987_v19  ;;  %v7986_v17 = vsel %vm7926_vm2, %v7921_v60, %v13999_v45  ;;  %v7982_v53 = vsel %vm7926_vm2, %v7917_v13, %v14053_v31  ;;  %v7349_v11 = vpack.c.b16 %v7302_v18, %v7302_v18  ;;  %v15893_v13 = vld [vmem:[#allocation199_spill] sm:$0xff] }
 0x8ee   : > { %v14355_v37 = vsel %vm7991_vm3, %v7968_v55, %v7081_v8  ;;  %v14358_v33 = vsel %vm7991_vm3, %v7970_v59, %v7081_v8  ;;  %v7984_v55 = vsel %vm7926_vm2, %v7919_v24, %v14042_v38  ;;  %v8005_v19 = vsel %vm7991_vm3, %v7944_v14, %v14230_v62  ;;  %v15892_v24 = vld [vmem:[#allocation181_spill] sm:$0xff] }
 0x8ef   : > { %v9416_v59 = vor.u32 %v9762_v7, %v9415_v51  ;;  %v7705_v42 = vrot.slane %v7664_v52, 5  ;;  %v7461_v20 = vshrl.u32 %v14113_v15, 16  ;;  %v7464_v28 = vshll.u32 %v14113_v15, 16 }
 0x8f0   : > { %7764 = vrot.lane.b32.xlu2 %v7704_v39, %s9865_s26  ;;  %v7493_v7 = vshrl.u32 %v14352_v25, 16  ;;  %v7496_v18 = vshll.u32 %v14352_v25, 16  ;;  %v7810_v3 = vsel %vm7780_vm0, %v14097_v54, %v15889_v5  ;;  %v7785_v27 = vsel %vm7780_vm0, %v14123_v10, %v15890_v32 }
 0x8f1   : > { %7750 = vrot.lane.b32.xlu1 %v7694_v43, %s9865_s26  ;;  %v7706_v35 = vsel %vm6611_vm15, %v7704_v39, %v7705_v42  ;;  %v6243_v43 = vld [vmem:[#allocation3 + $0x2c] sm:$0x1]  ;;  %v15891_v52 = vor.u32 %v13512_v44, %v14064_v40  ;;  %v7865_v26 = vsel %vm7861_vm1, %v7785_v27, %v15892_v24  ;;  %v7885_v48 = vsel %vm7861_vm1, %v7810_v3, %v15893_v13  ;;  %v15899_v27 = vld [vmem:[#allocation179_spill] sm:$0xff] }
 0x8f2   : > { %v7205_v22 = vpop.permute.xlu2 %7204  ;;  %v7463_v54 = vrot.slane %v7461_v20, 4  ;;  %v7466_v10 = vrot.slane %v7464_v28, 5  ;;  %v7495_v39 = vrot.slane %v7493_v7, 4  ;;  %v7498_v21 = vrot.slane %v7496_v18, 5 }
 0x8f3   : > { %7748 = vrot.lane.b32.xlu0 %v7692_v61, %s9865_s26  ;;  %v7089_v1 = vpop.permute.xlu1 %7088  ;;  %v14402_v31 = vsel %vm8040_vm4, %v8005_v19, %v7205_v22  ;;  %v7783_v56 = vsel %vm7780_vm0, %v15891_v52, %v15890_v32  ;;  %v7930_v44 = vsel %vm7926_vm2, %v7865_v26, %v13927_v58  ;;  %v7950_v40 = vsel %vm7926_vm2, %v7885_v48, %v13929_v63  ;;  %v15896_v19 = vld [vmem:[#allocation157_spill] sm:$0xff]  ;;  %v15902_v26 = vld [vmem:[#allocation215_spill] sm:$0xff]  ;;  %v15903_v48 = vld [vmem:[#allocation216_spill] sm:$0xff] }
 0x8f4   : > { %v14396_v45 = vsel %vm7991_vm3, %v7984_v55, %v7089_v1  ;;  %v14399_v38 = vsel %vm7991_vm3, %v7986_v17, %v7089_v1  ;;  %v7863_v14 = vsel %vm7861_vm1, %v7783_v56, %v15894_v47  ;;  %v7636_v9 = vunpack.c.l.b16 %v6243_v43  ;;  %v15895_v17 = vld [vmem:[#allocation168_spill] sm:$0xff]  ;;  %v6247_v32 = vld [vmem:[#allocation3 + $0x6c] sm:$0x1]  ;;  %v15901_v56 = vld [vmem:[#allocation190_spill] sm:$0xff] }
 0x8f5   : > { %v7087_v61 = vpop.permute.xlu0 %7086  ;;  %v7928_v60 = vsel %vm7926_vm2, %v7863_v14, %v13931_v23  ;;  %v8009_v55 = vsel %vm7991_vm3, %v7950_v40, %v15895_v17  ;;  %v9420_v1 = vor.u32 %v15896_v19, %v9419_v41  ;;  %v7467_v28 = vor.u32 %v7466_v10, %v7463_v54  ;;  %v9423_v41 = vld [vmem:[#allocation3 + $0x30] sm:$0x8]  ;;  %v15900_v43 = vld [vmem:[#allocation184_spill] sm:$0xff] }
 0x8f6   : > { %v14406_v8 = vsel %vm7991_vm3, %v7980_v57, %v7087_v61  ;;  %v14409_v51 = vsel %vm7991_vm3, %v7982_v53, %v7087_v61  ;;  %v7994_v57 = vsel %vm7991_vm3, %v7930_v44, %v14011_v29  ;;  %v7993_v58 = vsel %vm7991_vm3, %v7928_v60, %v14011_v29  ;;  %v9427_v14 = vld [vmem:[#allocation3 + $0x50] sm:$0x8]  ;;  %v15904_v44 = vld [vmem:[#allocation159_spill] sm:$0xff] }
 0x8f7   : > { %v7499_v7 = vor.u32 %v7498_v21, %v7495_v39  ;;  %v7357_v29 = vpack.c.b16 %v7314_v50, %v7314_v50  ;;  %v7652_v18 = vpack.c.b16 %v7636_v9, %v7636_v9  ;;  %v7793_v3 = vsel %vm7780_vm0, %v9420_v1, %v15870_v46 }
 0x8f8   : > { %7396 = vrot.lane.b32.xlu2 %v9416_v59, %s9863_s23  ;;  %v15897_v59 = vld [vmem:[#allocation161_spill] sm:$0xff]  ;;  %v7871_v52 = vsel %vm7861_vm1, %v7793_v3, %v15900_v43  ;;  %v7668_v46 = vrot.slane %v14113_v15, 5  ;;  %v7640_v47 = vunpack.c.l.b16 %v6247_v32  ;;  %v15905_v40 = vunpack.c.h.b16 %v15904_v44  ;;  %v15911_v3 = vld [vmem:[#allocation192_spill] sm:$0xff]  ;;  %v15913_v43 = vld [vmem:[#allocation158_spill] sm:$0xff] }
 0x8f9   : > { %7382 = vrot.lane.b32.xlu1 %v7349_v11, %s9863_s23  ;;  %v15898_v42 = vunpack.c.h.b16 %v15897_v59  ;;  %v7936_v50 = vsel %vm7926_vm2, %v7871_v52, %v15902_v26  ;;  %v7669_v13 = vrot.slane %v7652_v18, 5  ;;  %v9428_v52 = vor.u32 %v15913_v43, %v9427_v14  ;;  %v15915_v26 = vld [vmem:[#allocation222_spill] sm:$0xff]  ;;  %v9435_v14 = vld [vmem:[#allocation3 + $0x60] sm:$0x8]  ;;  %v15921_v43 = vld [vmem:[#allocation165_spill] sm:$0xff] }
 0x8fa   : > { %v7211_v11 = vpop.permute.xlu2 %7210  ;;  %v7999_v10 = vsel %vm7991_vm3, %v7936_v50, %v14153_v16  ;;  %v6362_v9 = vpack.c.b16 %v15905_v40, %v15905_v40  ;;  %v14492_v16 = vld [vmem:[#allocation3 + $0xb4] sm:$0xff]  }
 0x8fb   : > { %7766 = vrot.lane.b32.xlu0 %v7706_v35, %s9865_s26  ;;  %v7191_v53 = vpop.permute.xlu1 %7190  ;;  %v14451_v22 = vsel %vm8040_vm4, %v8009_v55, %v7211_v11  ;;  %v6358_v20 = vpack.c.b16 %v15898_v42, %v15898_v42  ;;  %v15906_v11 = vld [vmem:[#allocation160_spill] sm:$0xff]  ;;  %v7329_v59 = vunpack.c.h.b16 %v14492_v16  ;;  %v7656_v42 = vpack.c.b16 %v7640_v47, %v7640_v47 }
 0x8fc   : > { %v14448_v63 = vsel %vm8040_vm4, %v7994_v57, %v7191_v53  ;;  %v9763_v53 = vld [vmem:[#allocation3 + $0xb0] sm:$0xf0]   ;;  %v9424_v19 = vor.u32 %v15906_v11, %v9423_v41  ;;  %v7536_v11 = vshll.u32 %v14492_v16, 16 }
 0x8fd   : > { %v7189_v23 = vpop.permute.xlu0 %7188  ;;  %v7790_v35 = vsel %vm7780_vm0, %v6358_v20, %v15899_v27  ;;  %v15907_v20 = vld [vmem:[#allocation178_spill] sm:$0xff]  ;;  %v15912_v27 = vld [vmem:[#allocation217_spill] sm:$0xff]  ;;  %v7367_v40 = vpack.c.b16 %v7329_v59, %v7329_v59  ;;  %v15917_v59 = vld [vmem:[#allocation188_spill] sm:$0xff] }
 0x8fe   : > { %v14457_v61 = vsel %vm8040_vm4, %v7993_v58, %v7189_v23  ;;  %v7869_v24 = vsel %vm7861_vm1, %v7790_v35, %v15901_v56  ;;  %v7680_v58 = vrot.slane %v14352_v25, 5  ;;  %v9431_v23 = vld [vmem:[#allocation3 + $0xb0] sm:$0x8]  ;;  %v15909_v25 = vld [vmem:[#allocation156_spill] sm:$0xff] }
 0x8ff   : > { %v7934_v54 = vsel %vm7926_vm2, %v7869_v24, %v15903_v48  ;;  %v15914_v56 = vld [vmem:[#allocation218_spill] sm:$0xff]  ;;  %v9432_v47 = vor.u32 %v9763_v53, %v9431_v23  ;;  %v7808_v53 = vsel %vm7780_vm0, %v9428_v52, %v15889_v5  ;;  %v9436_v52 = vor.u32 %v15921_v43, %v9435_v14 }
 0x900   : > { %7596 = vrot.lane.b32.xlu2 %v7499_v7, %s9864_s24  ;;  %v7997_v60 = vsel %vm7991_vm3, %v7934_v54, %v14162_v49  ;;  %v7670_v49 = vsel %vm6611_vm15, %v7668_v46, %v7669_v13  ;;  %v15908_v7 = vld [vmem:[#allocation186_spill] sm:$0xff]  ;;  %v7681_v54 = vrot.slane %v7656_v42, 5 }
 0x901   : > { %7588 = vrot.lane.b32.xlu1 %v7467_v28, %s9864_s24  ;;  %v7798_v28 = vsel %vm7780_vm0, %v9424_v19, %v15907_v20  ;;  %v15916_v19 = vld [vmem:[#allocation171_spill] sm:$0xff]  ;;  %v9439_v42 = vld [vmem:[#allocation3 + $0xf0] sm:$0x8] }
 0x902   : > { %v7217_v21 = vpop.permute.xlu2 %7216  ;;  %v7875_v32 = vsel %vm7861_vm1, %v7798_v28, %v15911_v3  ;;  %v15918_v28 = vld [vmem:[#allocation195_spill] sm:$0xff]  ;;  %v15922_v14 = vld [vmem:[#allocation182_spill] sm:$0xff] }
 0x903   : > { %7398 = vrot.lane.b32.xlu0 %v7357_v29, %s9863_s23  ;;  %v7197_v39 = vpop.permute.xlu1 %7196  ;;  %v14490_v57 = vsel %vm8040_vm4, %v14287_v2, %v7217_v21  ;;  %v7800_v2 = vsel %vm7780_vm0, %v6362_v9, %v15907_v20  ;;  %v15910_v29 = vunpack.c.h.b16 %v15909_v25  ;;  %v7940_v24 = vsel %vm7926_vm2, %v7875_v32, %v15914_v56  ;;  %v14534_v9 = vld [vmem:[#allocation3 + $0xf4] sm:$0xff]   ;;  %v6252_v20 = vld [vmem:[#allocation3 + $0xbc] sm:$0x1] }
 0x904   : > { %v14486_v15 = vsel %vm8040_vm4, %v7999_v10, %v7197_v39  ;;  %v7877_v41 = vsel %vm7861_vm1, %v7800_v2, %v15908_v7  ;;  %v8002_v10 = vsel %vm7991_vm3, %v7940_v24, %v15915_v26  ;;  %v7341_v23 = vunpack.c.h.b16 %v14534_v9 }
 0x905   : > { %v7195_v55 = vpop.permute.xlu0 %7194  ;;  %v6364_v18 = vpack.c.b16 %v15910_v29, %v15910_v29  ;;  %v7942_v35 = vsel %vm7926_vm2, %v7877_v41, %v15912_v27  ;;  %v7883_v2 = vsel %vm7861_vm1, %v7808_v53, %v15917_v59  ;;  %v7538_v25 = vrot.slane %v7536_v11, 5  ;;  %v15925_v59 = vld [vmem:[#allocation223_spill] sm:$0xff] }
 0x906   : > { %v14496_v1 = vsel %vm8040_vm4, %v7997_v60, %v7195_v55  ;;  %v8003_v50 = vsel %vm7991_vm3, %v7942_v35, %v15915_v26  ;;  %v9764_v60 = vld [vmem:[#allocation3 + $0xf0] sm:$0xf0]   ;;  %v7533_v55 = vshrl.u32 %v14492_v16, 16  ;;  %v7645_v5 = vunpack.c.l.b16 %v6252_v20 }
 0x907   : > { %v7695_v11 = vrot.slane %v14492_v16, 5 }
 0x908   : > { %7732 = vrot.lane.b32.xlu2 %v7680_v58, %s9865_s26  ;;  %v7535_v41 = vrot.slane %v7533_v55, 4  ;;  %v15923_v55 = vld [vmem:[#allocation197_spill] sm:$0xff] }
 0x909   : > { %7718 = vrot.lane.b32.xlu1 %v7670_v49, %s9865_s26  ;;  %v7805_v49 = vsel %vm7780_vm0, %v6364_v18, %v15916_v19  ;;  %v15920_v18 = vld [vmem:[#allocation220_spill] sm:$0xff] }
 0x90a   : > { %v7223_v48 = vpop.permute.xlu2 %7222  ;;  %v7881_v7 = vsel %vm7861_vm1, %v7805_v49, %v15918_v28  ;;  %v15926_v28 = vld [vmem:[#allocation224_spill] sm:$0xff] }
 0x90b   : > { %7716 = vrot.lane.b32.xlu0 %v7668_v46, %s9865_s26  ;;  %v7203_v13 = vpop.permute.xlu1 %7202  ;;  %v14529_v46 = vsel %vm8040_vm4, %v14281_v36, %v7223_v48  ;;  %v7682_v36 = vsel %vm6611_vm15, %v7680_v58, %v7681_v54  ;;  %v15919_v58 = vld [vmem:[#allocation219_spill] sm:$0xff]  ;;  %v7946_v3 = vsel %vm7926_vm2, %v7881_v7, %v15920_v18  ;;  %v7375_v48 = vpack.c.b16 %v7341_v23, %v7341_v23  ;;  %v9768_v18 = vld [vmem:[#allocation3 + $0x30] sm:$0x8] }
 0x90c   : > { %v14525_v39 = vsel %vm8040_vm4, %v8003_v50, %v7203_v13  ;;  %v7948_v29 = vsel %vm7926_vm2, %v7883_v2, %v15919_v58  ;;  %v8006_v56 = vsel %vm7991_vm3, %v7946_v3, %v14230_v62  ;;  %v9440_v54 = vor.u32 %v9764_v60, %v9439_v42  ;;  %v6256_v62 = vld [vmem:[#allocation3 + $0xfc] sm:$0x1]  ;;  %v15924_v42 = vld [vmem:[#allocation221_spill] sm:$0xff]  ;;  %v14596_v3 = vld [vmem:[#allocation3 + $0x34] sm:$0xff]  }
 0x90d   : > { %v7201_v21 = vpop.permute.xlu0 %7200  ;;  %v8008_v32 = vsel %vm7991_vm3, %v7948_v29, %v15895_v17  ;;  %v7539_v17 = vor.u32 %v7538_v25, %v7535_v41 }
 0x90e   : > { %v14532_v44 = vsel %vm8040_vm4, %v8002_v10, %v7201_v21  ;;  %v7661_v10 = vpack.c.b16 %v7645_v5, %v7645_v5  ;;  %v7565_v21 = vshrl.u32 %v14534_v9, 16 }
 0x910   : > { %7418 = vrot.lane.b32.xlu2 %v7367_v40, %s9863_s23  ;;  %v7813_v40 = vsel %vm7780_vm0, %v9436_v52, %v15922_v14  ;;  %v7696_v60 = vrot.slane %v7661_v10, 5  ;;  %v7567_v19 = vrot.slane %v7565_v21, 4  ;;  %v9443_v10 = vld [vmem:[#allocation3 + $0x70] sm:$0x8] }
 0x911   : > { %7416 = vrot.lane.b32.xlu1 %v9432_v47, %s9863_s23  ;;  %v7568_v47 = vshll.u32 %v14534_v9, 16  ;;  %v15928_v14 = vld [vmem:[#allocation226_spill] sm:$0xff] }
 0x912   : > { %v7229_v35 = vpop.permute.xlu2 %7228  ;;  %v7697_v58 = vsel %vm6611_vm15, %v7695_v11, %v7696_v60 }
 0x913   : > { %7734 = vrot.lane.b32.xlu0 %v7682_v36, %s9865_s26  ;;  %v7209_v27 = vpop.permute.xlu1 %7208  ;;  %v14565_v26 = vsel %vm8040_vm4, %v14355_v37, %v7229_v35  ;;  %v7887_v37 = vsel %vm7861_vm1, %v7813_v40, %v15923_v55  ;;  %v7570_v49 = vrot.slane %v7568_v47, 5  ;;  %v7649_v36 = vunpack.c.l.b16 %v6256_v62 }
 0x914   : > { %v14561_v24 = vsel %vm8040_vm4, %v8008_v32, %v7209_v27  ;;  %v7952_v20 = vsel %vm7926_vm2, %v7887_v37, %v15924_v42  ;;  %v9827_v32 = vld [vmem:[#allocation3 + $0x30] sm:$0xf0]  }
 0x915   : > { %v7207_v50 = vpop.permute.xlu0 %7206  ;;  %v8011_v2 = vsel %vm7991_vm3, %v7952_v20, %v15925_v59  ;;  %v7571_v29 = vor.u32 %v7570_v49, %v7567_v19  ;;  %v7665_v5 = vpack.c.b16 %v7649_v36, %v7649_v36  ;;  %v7469_v20 = vshrl.u32 %v14596_v3, 16  ;;  %v6244_v59 = vld [vmem:[#allocation3 + $0x3c] sm:$0x1] }
 0x916   : > { %v14568_v13 = vsel %vm8040_vm4, %v8006_v56, %v7207_v50 }
 0x917   : > { %v7708_v27 = vrot.slane %v7665_v5, 5 }
 0x918   : > { %7606 = vrot.lane.b32.xlu2 %v7539_v17, %s9864_s24  ;;  %v9765_v17 = vld [vmem:[#allocation3 + $0x70] sm:$0xf0]  }
 0x919   : > { %7434 = vrot.lane.b32.xlu1 %v7375_v48, %s9863_s23  ;;  %v14610_v48 = vld [vmem:[#allocation3 + $0x74] sm:$0xff]   ;;  %v9444_v37 = vor.u32 %v9765_v17, %v9443_v10 }
 0x91a   : > { %v7235_v23 = vpop.permute.xlu2 %7234  ;;  %v7317_v47 = vunpack.c.h.b16 %v14610_v48  ;;  %v7501_v49 = vshrl.u32 %v14610_v48, 16  ;;  %v7504_v36 = vshll.u32 %v14610_v48, 16 }
 0x91b   : > { %7432 = vrot.lane.b32.xlu0 %v9440_v54, %s9863_s23  ;;  %v7215_v53 = vpop.permute.xlu1 %7214  ;;  %v14590_v16 = vsel %vm8040_vm4, %v14346_v0, %v7235_v23  ;;  %v7707_v0 = vrot.slane %v14534_v9, 5  ;;  %v9769_v9 = vor.u32 %v9827_v32, %v9768_v18  ;;  %v6248_v23 = vld [vmem:[#allocation3 + $0x7c] sm:$0x1]  ;;  %v7637_v18 = vunpack.c.l.b16 %v6244_v59  ;;  %v9005_v59 = vld [vmem:[%s15203_s2 + $0x10] sm:$0xff] }
 0x91c   : > { %v14586_v7 = vsel %vm8040_vm4, %v15926_v28, %v7215_v53  ;;  %v7359_v19 = vpack.c.b16 %v7317_v47, %v7317_v47  ;;  %v7472_v53 = vshll.u32 %v14596_v3, 16  ;;  %v7471_v28 = vrot.slane %v7469_v20, 4 }
 0x91d   : > { %v7213_v41 = vpop.permute.xlu0 %7212  ;;  %v7709_v21 = vsel %vm6611_vm15, %v7707_v0, %v7708_v27  ;;  %v6055_v27 = vld [vmem:[%s15203_s2 + $0x20] sm:$0xf] }
 0x91e   : > { %v14593_v25 = vsel %vm8040_vm4, %v8011_v2, %v7213_v41  ;;  %v7506_v2 = vrot.slane %v7504_v36, 5  ;;  %v7474_v41 = vrot.slane %v7472_v53, 5  ;;  %v8542_v17 = vunpack.c.l.b16 %v6055_v27 }
 0x920   : > { %7754 = vrot.lane.b32.xlu2 %v7697_v58, %s9865_s26  ;;  %v7641_v58 = vunpack.c.l.b16 %v6248_v23  ;;  %v8547_v47 = vpack.c.b16 %v8542_v17, %v8542_v17  ;;  %v9451_v23 = vld [vmem:[#allocation3 + $0xc0] sm:$0x8] }
 0x921   : > { %7752 = vrot.lane.b32.xlu1 %v7695_v11, %s9865_s26  ;;  %v15929_v11 = vld [vmem:[#allocation225_spill] sm:$0xff] }
 0x922   : > { %v7241_v43 = vpop.permute.xlu2 %7240  ;;  %v7657_v10 = vpack.c.b16 %v7641_v58, %v7641_v58 }
 0x923   : > { %7614 = vrot.lane.b32.xlu0 %v7571_v29, %s9864_s24  ;;  %v7221_v35 = vpop.permute.xlu1 %7220  ;;  %v14608_v56 = vsel %vm8040_vm4, %v14406_v8, %v7241_v43 }
 0x924   : > { %v14604_v52 = vsel %vm8040_vm4, %v14278_v6, %v7221_v35  ;;  %v7305_v6 = vunpack.c.h.b16 %v14596_v3 }
 0x925   : > { %v7219_v50 = vpop.permute.xlu0 %7218 }
 0x926   : > { %v14614_v54 = vsel %vm8040_vm4, %v14290_v12, %v7219_v50  ;;  %v7351_v42 = vpack.c.b16 %v7305_v6, %v7305_v6  ;;  %v7671_v50 = vrot.slane %v14596_v3, 5  ;;  %v7683_v6 = vrot.slane %v14610_v48, 5  ;;  %v9006_v48 = vld [vmem:[%s15203_s2 + $0x18] sm:$0xff] }
 0x927   : > { %15927 = vst [vmem:[#allocation164_spill] sm:$0xff] %v14614_v54 }
 0x928   : > { %7384 = vrot.lane.b32.xlu2 %v9769_v9, %s9863_s23  ;;  %v7475_v9 = vor.u32 %v7474_v41, %v7471_v28 }
 0x929   : > { %7770 = vrot.lane.b32.xlu1 %v7709_v21, %s9865_s26  ;;  %v7653_v21 = vpack.c.b16 %v7637_v18, %v7637_v18 }
 0x92a   : > { %v7247_v62 = vpop.permute.xlu2 %7246 }
 0x92b   : > { %7768 = vrot.lane.b32.xlu0 %v7707_v0, %s9865_s26  ;;  %v7227_v8 = vpop.permute.xlu1 %7226  ;;  %v14628_v40 = vsel %vm8040_vm4, %v14399_v38, %v7247_v62  ;;  %v7503_v38 = vrot.slane %v7501_v49, 4  ;;  %v7672_v62 = vrot.slane %v7653_v21, 5  ;;  %v9447_v49 = vld [vmem:[#allocation3 + $0x100] sm:$0x8] }
 0x92c   : > { %v14624_v12 = vsel %vm8040_vm4, %v15928_v14, %v7227_v8  ;;  %v14663_v14 = vld [vmem:[#allocation3 + $0xc4] sm:$0xff]  }
 0x92d   : > { %v7225_v55 = vpop.permute.xlu0 %7224  ;;  %v7507_v43 = vor.u32 %v7506_v2, %v7503_v38  ;;  %v7332_v20 = vunpack.c.h.b16 %v14663_v14  ;;  %v7673_v53 = vsel %vm6611_vm15, %v7671_v50, %v7672_v62  ;;  %v7541_v18 = vshrl.u32 %v14663_v14, 16 }
 0x92e   : > { %v14632_v60 = vsel %vm8040_vm4, %v15929_v11, %v7225_v55  ;;  %v9770_v55 = vld [vmem:[#allocation3 + $0xc0] sm:$0xf0]   ;;  %v7544_v27 = vshll.u32 %v14663_v14, 16 }
 0x92f   : > { %v14667_v11 = vld [vmem:[#allocation3 + $0x104] sm:$0xff]   ;;  %v7369_v58 = vpack.c.b16 %v7332_v20, %v7332_v20  ;;  %v9452_v17 = vor.u32 %v9770_v55, %v9451_v23  ;;  %v15930_v55 = vld [vmem:[#allocation163_spill] sm:$0xff] }
 0x930   : > { %7402 = vrot.lane.b32.xlu2 %v7359_v19, %s9863_s23  ;;  %v9771_v19 = vld [vmem:[#allocation3 + $0x100] sm:$0xf0]   ;;  %v7344_v36 = vunpack.c.h.b16 %v14667_v11 }
 0x931   : > { %7400 = vrot.lane.b32.xlu1 %v9444_v37, %s9863_s23 }
 0x932   : > { %v14641_v5 = vpop.permute.xlu2 %7380  ;;  %v7377_v23 = vpack.c.b16 %v7344_v36, %v7344_v36 }
 0x933   : > { %7386 = vrot.lane.b32.xlu0 %v7351_v42, %s9863_s23  ;;  %v7233_v29 = vpop.permute.xlu1 %7232 }
 0x934   : > { %v14645_v32 = vsel %vm8040_vm4, %v14343_v30, %v7233_v29  ;;  %v8603_v30 = vsel %vm8601_vm5, %v8547_v47, 0  ;;  %v9448_v29 = vor.u32 %v9771_v19, %v9447_v49  ;;  %v15931_v49 = vld [vmem:[#allocation162_spill] sm:$0xff] }
 0x935   : > { %v7231_v0 = vpop.permute.xlu0 %7230  ;;  %9018 = vmatpush.bf16.msra.mxu2 %v8603_v30  ;;  %9019 = vmatpush.bf16.msra.mxu3 %v8603_v30 }
 0x936   : > { %v14652_v35 = vsel %vm8040_vm4, %v14358_v33, %v7231_v0  ;;  %v7684_v33 = vrot.slane %v7657_v10, 5  ;;  %8608 = vmatpush.bf16.msra.mxu0 %v8603_v30  ;;  %9017 = vmatpush.bf16.msra.mxu1 %v8603_v30  ;;  %v7546_v10 = vrot.slane %v7544_v27, 5 }
 0x938   : > { %7720 = vrot.lane.b32.xlu2 %v7671_v50, %s9865_s26  ;;  %v7685_v42 = vsel %vm6611_vm15, %v7683_v6, %v7684_v33  ;;  %v7576_v50 = vshll.u32 %v14667_v11, 16 }
 0x939   : > { %7598 = vrot.lane.b32.xlu1 %v7507_v43, %s9864_s24  ;;  %9021 = vmatpush.bf16.msra.mxu2 %v9006_v48  ;;  %v7573_v43 = vshrl.u32 %v14667_v11, 16 }
 0x93a   : > { %v14661_v3 = vpop.permute.xlu2 %7428  ;;  %9022 = vmatpush.bf16.msra.mxu3 %v9006_v48  ;;  %8609 = vmatpush.bf16.msra.mxu0 %v9006_v48  ;;  %v7578_v47 = vrot.slane %v7576_v50, 5 }
 0x93b   : > { %7590 = vrot.lane.b32.xlu0 %v7475_v9, %s9864_s24  ;;  %v14659_v8 = vpop.permute.xlu1 %7238  ;;  %9020 = vmatpush.bf16.msra.mxu1 %v9006_v48  ;;  %v6253_v9 = vld [vmem:[#allocation3 + $0xcc] sm:$0x1]  ;;  %v7575_v21 = vrot.slane %v7573_v43, 4 }
 0x93c   : > { %v7646_v30 = vunpack.c.l.b16 %v6253_v9 }
 0x93d   : > { %v14665_v37 = vpop.permute.xlu0 %7236  ;;  %9024 = vmatpush.bf16.msra.mxu2 %v9005_v59 }
 0x93e   : > { %9025 = vmatpush.bf16.msra.mxu3 %v9005_v59  ;;  %8610 = vmatpush.bf16.msra.mxu0 %v9005_v59 }
 0x93f   : > { %9023 = vmatpush.bf16.msra.mxu1 %v9005_v59  ;;  %v7662_v59 = vpack.c.b16 %v7646_v30, %v7646_v30  ;;  %v14729_v30 = vld [vmem:[#allocation3 + $0x84] sm:$0xff]  }
 0x940   : > { %7738 = vrot.lane.b32.xlu2 %v7685_v42, %s9865_s26 }
 0x941   : > { %7736 = vrot.lane.b32.xlu1 %v7683_v6, %s9865_s26  ;;  %v9003_v6 = vld [vmem:[%s15203_s2] sm:$0xff] }
 0x942   : > { %v14682_v2 = vpop.permute.xlu2 %7612 }
 0x943   : > { %7722 = vrot.lane.b32.xlu0 %v7673_v53, %s9865_s26  ;;  %v7245_v38 = vpop.permute.xlu1 %7244  ;;  %v7579_v53 = vor.u32 %v7578_v47, %v7575_v21 }
 0x944   : > { %v14686_v28 = vsel %vm8040_vm4, %v14396_v45, %v7245_v38  ;;  %v9004_v45 = vld [vmem:[%s15203_s2 + $0x8] sm:$0xff] }
 0x945   : > { %v7243_v41 = vpop.permute.xlu0 %7242  ;;  %9027 = vmatpush.bf16.msra.mxu2 %v9004_v45  ;;  %9028 = vmatpush.bf16.msra.mxu3 %v9004_v45  ;;  %v6257_v38 = vld [vmem:[#allocation3 + $0x10c] sm:$0x1] }
 0x946   : > { %v14691_v0 = vsel %vm8040_vm4, %v14409_v51, %v7243_v41  ;;  %v7543_v51 = vrot.slane %v7541_v18, 4  ;;  %8611 = vmatpush.bf16.msra.mxu0 %v9004_v45  ;;  %9026 = vmatpush.bf16.msra.mxu1 %v9004_v45  ;;  %v7698_v41 = vrot.slane %v14663_v14, 5  ;;  %v9772_v18 = vld [vmem:[#allocation3 + $0x40] sm:$0xf0]   ;;  %v7650_v36 = vunpack.c.l.b16 %v6257_v38 }
 0x948   : > { %7436 = vrot.lane.b32.xlu2 %v9448_v29, %s9863_s23  ;;  %v7547_v20 = vor.u32 %v7546_v10, %v7543_v51  ;;  %v14717_v29 = vld [vmem:[#allocation3 + $0x44] sm:$0xff]   ;;  %v9455_v51 = vld [vmem:[#allocation3 + $0x40] sm:$0x8]  ;;  %v7666_v10 = vpack.c.b16 %v7650_v36, %v7650_v36 }
 0x949   : > { %7422 = vrot.lane.b32.xlu1 %v7369_v58, %s9863_s23  ;;  %9030 = vmatpush.bf16.msra.mxu2 %v9003_v6  ;;  %v7699_v58 = vrot.slane %v7662_v59, 5  ;;  %v7308_v45 = vunpack.c.h.b16 %v14717_v29  ;;  %v6245_v59 = vld [vmem:[#allocation3 + $0x4c] sm:$0x1]  ;;  %v9459_v36 = vld [vmem:[#allocation3 + $0x80] sm:$0x8] }
 0x94a   : > { %v7765_v62 = vpop.permute.xlu2 %7764  ;;  %9031 = vmatpush.bf16.msra.mxu3 %v9003_v6  ;;  %8612 = vmatpush.bf16.msra.mxu0 %v9003_v6  ;;  %v7711_v47 = vrot.slane %v7666_v10, 5 }
 0x94b   : > { %7420 = vrot.lane.b32.xlu0 %v9452_v17, %s9863_s23  ;;  %v7251_v33 = vpop.permute.xlu1 %7250  ;;  %9029 = vmatpush.bf16.msra.mxu1 %v9003_v6  ;;  %v7710_v17 = vrot.slane %v14667_v11, 5  ;;  %v7700_v9 = vsel %vm6611_vm15, %v7698_v41, %v7699_v58  ;;  %v9773_v6 = vld [vmem:[#allocation3 + $0x80] sm:$0xf0]   ;;  %v7477_v11 = vshrl.u32 %v14717_v29, 16 }
 0x94c   : > { %v14707_v19 = vsel %vm8040_vm4, %v15930_v55, %v7251_v33  ;;  %v7480_v33 = vshll.u32 %v14717_v29, 16 }
 0x94d   : > { %v7249_v48 = vpop.permute.xlu0 %7248  ;;  %v7712_v38 = vsel %vm6611_vm15, %v7710_v17, %v7711_v47 }
 0x94e   : > { %v14711_v42 = vsel %vm8040_vm4, %v15931_v49, %v7249_v48  ;;  %v9456_v48 = vor.u32 %v9772_v18, %v9455_v51  ;;  %v7353_v49 = vpack.c.b16 %v7308_v45, %v7308_v45  ;;  %v7482_v58 = vrot.slane %v7480_v33, 5 }
 0x94f   : > { %v7638_v18 = vunpack.c.l.b16 %v6245_v59 }
 0x950   : > { %7616 = vrot.lane.b32.xlu2 %v7579_v53, %s9864_s24 }
 0x951   : > { %7608 = vrot.lane.b32.xlu1 %v7547_v20, %s9864_s24  ;;  %v15932_v20 = vld [vmem:[#allocation227_spill] sm:$0xff]  ;;  %v7654_v59 = vpack.c.b16 %v7638_v18, %v7638_v18 }
 0x952   : > { %v14719_v43 = vpop.permute.xlu2 %7396  ;;  %v8090_v53 = vsel %vm8040_vm4, %v15932_v20, %v14665_v37  ;;  %v7509_v20 = vshrl.u32 %v14729_v30, 16 }
 0x953   : > { %7438 = vrot.lane.b32.xlu0 %v7377_v23, %s9863_s23  ;;  %v7415_v27 = vpop.permute.xlu1 %7414  ;;  %v7320_v23 = vunpack.c.h.b16 %v14729_v30 }
 0x954   : > { %v8141_v45 = vsel %vm8105_vm7, %v14529_v46, %v7415_v27  ;;  %v7512_v46 = vshll.u32 %v14729_v30, 16  ;;  %v7511_v54 = vrot.slane %v7509_v20, 4 }
 0x955   : > { %v7413_v50 = vpop.permute.xlu0 %7412 }
 0x956   : > { %v8139_v33 = vsel %vm8105_vm7, %v14604_v52, %v7413_v50  ;;  %v7514_v18 = vrot.slane %v7512_v46, 5 }
 0x958   : > { %7772 = vrot.lane.b32.xlu2 %v7710_v17, %s9865_s26 }
 0x959   : > { %7758 = vrot.lane.b32.xlu1 %v7700_v9, %s9865_s26  ;;  %v8155_v9 = vsel %vm8105_vm7, %v8090_v53, %v14661_v3  ;;  %v7361_v3 = vpack.c.b16 %v7320_v23, %v7320_v23  ;;  %v15933_v23 = vld [vmem:[#allocation228_spill] sm:$0xff] }
 0x95a   : > { %v14727_v21 = vpop.permute.xlu2 %7596  ;;  %v8208_v37 = vsel %vm8170_vm6, %v8155_v9, %v14682_v2  ;;  %v9460_v9 = vor.u32 %v9773_v6, %v9459_v36  ;;  %v7674_v6 = vrot.slane %v14717_v29, 5  ;;  %v7675_v36 = vrot.slane %v7654_v59, 5 }
 0x95b   : > { %7756 = vrot.lane.b32.xlu0 %v7698_v41, %s9865_s26  ;;  %v7605_v14 = vpop.permute.xlu1 %7604  ;;  %v7479_v41 = vrot.slane %v7477_v11, 4  ;;  %v8269_v17 = vsel %vm8219_vm8, %v8208_v37, %v7765_v62  ;;  %v6249_v37 = vld [vmem:[#allocation3 + $0x8c] sm:$0x1] }
 0x95c   : > { %v8197_v51 = vsel %vm8170_vm6, %v8141_v45, %v7605_v14  ;;  %v8196_v27 = vsel %vm8170_vm6, %v8139_v33, %v7605_v14  ;;  %v8465_v52 = vshrl.u32 %v8269_v17, 16  ;;  %v8468_v45 = vshll.u32 %v8269_v17, 16 }
 0x95d   : > { %v7431_v55 = vpop.permute.xlu0 %7430  ;;  %v7483_v11 = vor.u32 %v7482_v58, %v7479_v41  ;;  %v8092_v41 = vsel %vm8040_vm4, %v15933_v23, %v14659_v8 }
 0x95e   : > { %v8157_v14 = vsel %vm8105_vm7, %v8092_v41, %v7431_v55  ;;  %v8467_v20 = vrot.slane %v8465_v52, 3  ;;  %v8470_v29 = vrot.slane %v8468_v45, 4  ;;  %v9777_v41 = vld [vmem:[#allocation3 + $0xd0] sm:$0x8]  ;;  %v9828_v52 = vld [vmem:[#allocation3 + $0xd0] sm:$0xf0]  }
 0x960   : > { %7390 = vrot.lane.b32.xlu2 %v7353_v49, %s9863_s23 }
 0x961   : > { %7388 = vrot.lane.b32.xlu1 %v9456_v48, %s9863_s23 }
 0x962   : > { %v14749_v47 = vpop.permute.xlu2 %7732 }
 0x963   : > { %7774 = vrot.lane.b32.xlu0 %v7712_v38, %s9865_s26  ;;  %v7751_v10 = vpop.permute.xlu1 %7750 }
 0x964   : > { %v8255_v48 = vsel %vm8219_vm8, %v8197_v51, %v7751_v10 }
 0x965   : > { %v7749_v49 = vpop.permute.xlu0 %7748  ;;  %v8412_v62 = vshrl.u32 %v8255_v48, 16  ;;  %v8415_v53 = vshll.u32 %v8255_v48, 16 }
 0x966   : > { %v8253_v38 = vsel %vm8219_vm8, %v8196_v27, %v7749_v49  ;;  %v7642_v49 = vunpack.c.l.b16 %v6249_v37  ;;  %v8471_v37 = vor.u32 %v8470_v29, %v8467_v20 }
 0x967   : > { %v8414_v50 = vrot.slane %v8412_v62, 3  ;;  %v8417_v58 = vrot.slane %v8415_v53, 4  ;;  %v8405_v51 = vshrl.u32 %v8253_v38, 16  ;;  %v8408_v10 = vshll.u32 %v8253_v38, 16 }
 0x968   : > { %7592 = vrot.lane.b32.xlu2 %v7483_v11, %s9864_s24  ;;  %v7676_v62 = vsel %vm6611_vm15, %v7674_v6, %v7675_v36  ;;  %v7515_v53 = vor.u32 %v7514_v18, %v7511_v54  ;;  %v7658_v23 = vpack.c.b16 %v7642_v49, %v7642_v49  ;;  %v7686_v54 = vrot.slane %v14729_v30, 5  ;;  %v14782_v36 = vld [vmem:[#allocation3 + $0x114] sm:$0xff]  }
 0x969   : > { %7406 = vrot.lane.b32.xlu1 %v7361_v3, %s9863_s23  ;;  %v8418_v33 = vor.u32 %v8417_v58, %v8414_v50  ;;  %v8407_v8 = vrot.slane %v8405_v51, 3  ;;  %v8410_v48 = vrot.slane %v8408_v10, 4  ;;  %v8209_v3 = vsel %vm8170_vm6, %v8157_v14, %v14682_v2  ;;  %v14773_v50 = vld [vmem:[#allocation3 + $0xd4] sm:$0xff]  }
 0x96a   : > { %v14766_v27 = vpop.permute.xlu2 %7418  ;;  %v7687_v51 = vrot.slane %v7658_v23, 5  ;;  %v9774_v18 = vld [vmem:[#allocation3 + $0x110] sm:$0xf0]   ;;  %v7347_v20 = vunpack.c.h.b16 %v14782_v36  ;;  %v7335_v30 = vunpack.c.h.b16 %v14773_v50 }
 0x96b   : > { %7404 = vrot.lane.b32.xlu0 %v9460_v9, %s9863_s23  ;;  %v7383_v17 = vpop.permute.xlu1 %7382  ;;  %v8411_v55 = vor.u32 %v8410_v48, %v8407_v8  ;;  %v9463_v48 = vld [vmem:[#allocation3 + $0x110] sm:$0x8] }
 0x96c   : > { %v7688_v49 = vsel %vm6611_vm15, %v7686_v54, %v7687_v51  ;;  %v8109_v29 = vsel %vm8105_vm7, %v14448_v63, %v7383_v17  ;;  %v7549_v63 = vshrl.u32 %v14773_v50, 16 }
 0x96d   : > { %v7767_v11 = vpop.permute.xlu0 %7766  ;;  %v8419_v9 = vsel %vm8284_vm9, %v8411_v55, %v8418_v33  ;;  %v8123_v55 = vsel %vm8105_vm7, %v14402_v31, %v14719_v43 }
 0x96e   : > { %v8271_v46 = vsel %vm8219_vm8, %v8209_v3, %v7767_v11  ;;  %8982 = vmatmul.msk.bf16.vlgmr.msra.gmra.mxu2 %vm8552_vm10, %v8419_v9  ;;  %v8107_v3 = vsel %vm8105_vm7, %v14457_v61, %v14641_v5  ;;  %v8184_v11 = vsel %vm8170_vm6, %v8123_v55, %v14727_v21  ;;  %v7584_v9 = vshll.u32 %v14782_v36, 16 }
 0x96f   : > { %v8472_v59 = vshrl.u32 %v8271_v46, 16  ;;  %v8475_v38 = vshll.u32 %v8271_v46, 16  ;;  %v8237_v46 = vsel %vm8219_vm8, %v8184_v11, %v14749_v47 }
 0x970   : > { %7726 = vrot.lane.b32.xlu2 %v7676_v62, %s9865_s26  ;;  %v8348_v51 = vshll.u32 %v8237_v46, 16 }
 0x971   : > { %v8474_v2 = vrot.slane %v8472_v59, 3  ;;  %v8477_v58 = vrot.slane %v8475_v38, 4  ;;  %7724 = vrot.lane.b32.xlu1 %v7674_v6, %s9865_s26  ;;  %v9778_v6 = vor.u32 %v9828_v52, %v9777_v41  ;;  %v7379_v59 = vpack.c.b16 %v7347_v20, %v7347_v20 }
 0x972   : > { %v14780_v14 = vpop.permute.xlu2 %7606  ;;  %v7581_v38 = vshrl.u32 %v14782_v36, 16  ;;  %v7552_v41 = vshll.u32 %v14773_v50, 16  ;;  %v7551_v20 = vrot.slane %v7549_v63, 4 }
 0x973   : > { %v8478_v45 = vor.u32 %v8477_v58, %v8474_v2  ;;  %7600 = vrot.lane.b32.xlu0 %v7515_v53, %s9864_s24  ;;  %v7589_v10 = vpop.permute.xlu1 %7588  ;;  %v9464_v53 = vor.u32 %v9774_v18, %v9463_v48  ;;  %v7371_v2 = vpack.c.b16 %v7335_v30, %v7335_v30  ;;  %v8345_v58 = vshrl.u32 %v8237_v46, 16 }
 0x974   : > { %v8173_v31 = vsel %vm8170_vm6, %v8109_v29, %v7589_v10  ;;  %v8172_v17 = vsel %vm8170_vm6, %v8107_v3, %v7589_v10  ;;  %v7583_v48 = vrot.slane %v7581_v38, 4  ;;  %v7586_v10 = vrot.slane %v7584_v9, 5 }
 0x975   : > { %v7399_v33 = vpop.permute.xlu0 %7398  ;;  %v8479_v8 = vsel %vm8284_vm9, %v8471_v37, %v8478_v45  ;;  %v7554_v55 = vrot.slane %v7552_v41, 5  ;;  %v7701_v9 = vrot.slane %v14773_v50, 5  ;;  %v7713_v50 = vrot.slane %v14782_v36, 5 }
 0x976   : > { %8986 = vmatmul.msk.bf16.vlgmr.msra.gmra.mxu3 %vm8552_vm10, %v8479_v8  ;;  %v7587_v38 = vor.u32 %v7586_v10, %v7583_v48  ;;  %v9780_v10 = vld [vmem:[#allocation3 + $0x90] sm:$0xf0]  }
 0x977   : > { %v7555_v63 = vor.u32 %v7554_v55, %v7551_v20 }
 0x978   : > { %7424 = vrot.lane.b32.xlu2 %v9778_v6, %s9863_s23  ;;  %v6254_v6 = vld [vmem:[#allocation3 + $0xdc] sm:$0x1] }
 0x979   : > { %7742 = vrot.lane.b32.xlu1 %v7688_v49, %s9865_s26  ;;  %v8125_v49 = vsel %vm8105_vm7, %v14568_v13, %v7399_v33 }
 0x97a   : > { %v14805_v62 = vpop.permute.xlu2 %7754  ;;  %v8185_v33 = vsel %vm8170_vm6, %v8125_v49, %v14727_v21  ;;  %v14838_v49 = vld [vmem:[#allocation3 + $0x94] sm:$0xff]  }
 0x97b   : > { %7740 = vrot.lane.b32.xlu0 %v7686_v54, %s9865_s26  ;;  %v7719_v43 = vpop.permute.xlu1 %7718  ;;  %v6258_v54 = vld [vmem:[#allocation3 + $0x11c] sm:$0x1] }
 0x97c   : > { %v8223_v61 = vsel %vm8219_vm8, %v8173_v31, %v7719_v43  ;;  %v7651_v29 = vunpack.c.l.b16 %v6258_v54  ;;  %v7647_v43 = vunpack.c.l.b16 %v6254_v6  ;;  %v14831_v54 = vld [vmem:[#allocation3 + $0x54] sm:$0xff]  }
 0x97d   : > { %v7717_v5 = vpop.permute.xlu0 %7716  ;;  %v8292_v23 = vshrl.u32 %v8223_v61, 16  ;;  %v8295_v47 = vshll.u32 %v8223_v61, 16  ;;  %v8347_v61 = vrot.slane %v8345_v58, 3 }
 0x97e   : > { %v8221_v52 = vsel %vm8219_vm8, %v8172_v17, %v7717_v5  ;;  %v8350_v5 = vrot.slane %v8348_v51, 4  ;;  %v7667_v41 = vpack.c.b16 %v7651_v29, %v7651_v29  ;;  %v9779_v51 = vld [vmem:[#allocation3 + $0x50] sm:$0xf0]  }
 0x97f   : > { %v8294_v37 = vrot.slane %v8292_v23, 3  ;;  %v8297_v45 = vrot.slane %v8295_v47, 4  ;;  %v8285_v18 = vshrl.u32 %v8221_v52, 16  ;;  %v8288_v8 = vshll.u32 %v8221_v52, 16 }
 0x980   : > { %7442 = vrot.lane.b32.xlu2 %v7379_v59, %s9863_s23  ;;  %v7663_v52 = vpack.c.b16 %v7647_v43, %v7647_v43  ;;  %v8351_v21 = vor.u32 %v8350_v5, %v8347_v61  ;;  %v9471_v43 = vld [vmem:[#allocation3 + $0x50] sm:$0x8] }
 0x981   : > { %7440 = vrot.lane.b32.xlu1 %v9464_v53, %s9863_s23  ;;  %v8298_v30 = vor.u32 %v8297_v45, %v8294_v37  ;;  %v8287_v3 = vrot.slane %v8285_v18, 3  ;;  %v8290_v11 = vrot.slane %v8288_v8, 4  ;;  %v7714_v45 = vrot.slane %v7667_v41, 5 }
 0x982   : > { %v14819_v31 = vpop.permute.xlu2 %7384  ;;  %v8145_v18 = vsel %vm8105_vm7, %v14624_v12, %v14766_v27  ;;  %v7702_v6 = vrot.slane %v7663_v52, 5  ;;  %v7311_v12 = vunpack.c.h.b16 %v14831_v54 }
 0x983   : > { %7426 = vrot.lane.b32.xlu0 %v7371_v2, %s9863_s23  ;;  %v7417_v46 = vpop.permute.xlu1 %7416  ;;  %v8291_v13 = vor.u32 %v8290_v11, %v8287_v3  ;;  %v8200_v20 = vsel %vm8170_vm6, %v8145_v18, %v14780_v14  ;;  %v7323_v3 = vunpack.c.h.b16 %v14838_v49  ;;  %v7715_v27 = vsel %vm6611_vm15, %v7713_v50, %v7714_v45 }
 0x984   : > { %v8259_v11 = vsel %vm8219_vm8, %v8200_v20, %v14805_v62  ;;  %v7703_v29 = vsel %vm6611_vm15, %v7701_v9, %v7702_v6  ;;  %v8143_v5 = vsel %vm8105_vm7, %v14632_v60, %v7417_v46 }
 0x985   : > { %v7735_v53 = vpop.permute.xlu0 %7734  ;;  %v8299_v47 = vsel %vm8284_vm9, %v8291_v13, %v8298_v30  ;;  %v9467_v30 = vld [vmem:[#allocation3 + $0x90] sm:$0x8]  ;;  %v8427_v61 = vshrl.u32 %v8259_v11, 16  ;;  %v8430_v13 = vshll.u32 %v8259_v11, 16 }
 0x986   : > { %v8239_v59 = vsel %vm8219_vm8, %v8185_v33, %v7735_v53  ;;  %8974 = vmatmul.msk.bf16.vlgmr.msra.gmra.mxu0 %vm8552_vm10, %v8299_v47  ;;  %v8199_v33 = vsel %vm8170_vm6, %v8143_v5, %v14780_v14  ;;  %v9472_v14 = vor.u32 %v9779_v51, %v9471_v43 }
 0x987   : > { %v8352_v17 = vshrl.u32 %v8239_v59, 16  ;;  %v8355_v23 = vshll.u32 %v8239_v59, 16  ;;  %v7355_v59 = vpack.c.b16 %v7311_v12, %v7311_v12  ;;  %v8432_v47 = vrot.slane %v8430_v13, 4 }
 0x988   : > { %7760 = vrot.lane.b32.xlu2 %v7701_v9, %s9865_s26  ;;  %v7485_v9 = vshrl.u32 %v14831_v54, 16 }
 0x989   : > { %v8354_v2 = vrot.slane %v8352_v17, 3  ;;  %v8357_v58 = vrot.slane %v8355_v23, 4  ;;  %7618 = vrot.lane.b32.xlu1 %v7587_v38, %s9864_s24  ;;  %v9468_v38 = vor.u32 %v9780_v10, %v9467_v30  ;;  %v7488_v17 = vshll.u32 %v14831_v54, 16 }
 0x98a   : > { %v14836_v48 = vpop.permute.xlu2 %7402  ;;  %v7517_v23 = vshrl.u32 %v14838_v49, 16 }
 0x98b   : > { %v8358_v37 = vor.u32 %v8357_v58, %v8354_v2  ;;  %7610 = vrot.lane.b32.xlu0 %v7555_v63, %s9864_s24  ;;  %v7435_v8 = vpop.permute.xlu1 %7434  ;;  %v8429_v63 = vrot.slane %v8427_v61, 3  ;;  %v7520_v2 = vshll.u32 %v14838_v49, 16  ;;  %v7490_v45 = vrot.slane %v7488_v17, 5 }
 0x98c   : > { %v7519_v10 = vrot.slane %v7517_v23, 4 }
 0x98d   : > { %v7433_v55 = vpop.permute.xlu0 %7432  ;;  %v8359_v36 = vsel %vm8284_vm9, %v8351_v21, %v8358_v37  ;;  %v6246_v37 = vld [vmem:[#allocation3 + $0x5c] sm:$0x1]  ;;  %v8433_v18 = vor.u32 %v8432_v47, %v8429_v63  ;;  %v7522_v20 = vrot.slane %v7520_v2, 5 }
 0x98e   : > { %8978 = vmatmul.msk.bf16.vlgmr.msra.gmra.mxu1 %vm8552_vm10, %v8359_v36  ;;  %v8161_v36 = vsel %vm8105_vm7, %v14691_v0, %v7435_v8  ;;  %v7639_v30 = vunpack.c.l.b16 %v6246_v37  ;;  %v8159_v51 = vsel %vm8105_vm7, %v14608_v56, %v7433_v55  ;;  %v7689_v37 = vrot.slane %v14838_v49, 5 }
 0x990   : > { %7778 = vrot.lane.b32.xlu2 %v7715_v27, %s9865_s26 }
 0x991   : > { %7776 = vrot.lane.b32.xlu1 %v7713_v50, %s9865_s26  ;;  %v7487_v50 = vrot.slane %v7485_v9, 4 }
 0x992   : > { %v14857_v53 = vpop.permute.xlu2 %7720 }
 0x993   : > { %7762 = vrot.lane.b32.xlu0 %v7703_v29, %s9865_s26  ;;  %v7753_v62 = vpop.permute.xlu1 %7752  ;;  %v7491_v0 = vor.u32 %v7490_v45, %v7487_v50 }
 0x994   : > { %v8257_v60 = vsel %vm8219_vm8, %v8199_v33, %v7753_v62  ;;  %v7523_v33 = vor.u32 %v7522_v20, %v7519_v10 }
 0x995   : > { %v7615_v46 = vpop.permute.xlu0 %7614  ;;  %v8420_v41 = vshrl.u32 %v8257_v60, 16  ;;  %v8423_v52 = vshll.u32 %v8257_v60, 16 }
 0x996   : > { %v8212_v11 = vsel %vm8170_vm6, %v8161_v36, %v7615_v46  ;;  %v8211_v43 = vsel %vm8170_vm6, %v8159_v51, %v7615_v46  ;;  %v6250_v46 = vld [vmem:[#allocation3 + $0x9c] sm:$0x1]  ;;  %v8111_v36 = vsel %vm8105_vm7, %v14284_v34, %v14819_v31 }
 0x997   : > { %v8422_v58 = vrot.slane %v8420_v41, 3  ;;  %v8425_v21 = vrot.slane %v8423_v52, 4  ;;  %v7677_v41 = vrot.slane %v14831_v54, 5  ;;  %v8129_v54 = vsel %vm8105_vm7, %v14451_v22, %v14836_v48 }
 0x998   : > { %7408 = vrot.lane.b32.xlu2 %v9468_v38, %s9863_s23  ;;  %v7655_v38 = vpack.c.b16 %v7639_v30, %v7639_v30 }
 0x999   : > { %v8426_v6 = vor.u32 %v8425_v21, %v8422_v58  ;;  %7394 = vrot.lane.b32.xlu1 %v7355_v59, %s9863_s23  ;;  %v7363_v59 = vpack.c.b16 %v7323_v3, %v7323_v3  ;;  %v7643_v3 = vunpack.c.l.b16 %v6250_v46 }
 0x99a   : > { %v7739_v27 = vpop.permute.xlu2 %7738  ;;  %v7678_v52 = vrot.slane %v7655_v38, 5 }
 0x99b   : > { %7392 = vrot.lane.b32.xlu0 %v9472_v14, %s9863_s23  ;;  %v7771_v12 = vpop.permute.xlu1 %7770  ;;  %v8434_v29 = vsel %vm8284_vm9, %v8426_v6, %v8433_v18  ;;  %v7659_v45 = vpack.c.b16 %v7643_v3, %v7643_v3 }
 0x99c   : > { %v8275_v61 = vsel %vm8219_vm8, %v8212_v11, %v7771_v12  ;;  %8983 = vmatmul.msk.bf16.gmra.mxu2 %vm8552_vm10, %v8434_v29  ;;  %v7679_v50 = vsel %vm6611_vm15, %v7677_v41, %v7678_v52 }
 0x99d   : > { %v7769_v5 = vpop.permute.xlu0 %7768  ;;  %v8487_v8 = vshrl.u32 %v8275_v61, 16  ;;  %v8490_v13 = vshll.u32 %v8275_v61, 16  ;;  %v7690_v6 = vrot.slane %v7659_v45, 5 }
 0x99e   : > { %v8273_v62 = vsel %vm8219_vm8, %v8211_v43, %v7769_v5 }
 0x99f   : > { %v8480_v56 = vshrl.u32 %v8273_v62, 16  ;;  %v8483_v55 = vshll.u32 %v8273_v62, 16  ;;  %v8489_v9 = vrot.slane %v8487_v8, 3  ;;  %v8492_v63 = vrot.slane %v8490_v13, 4 }
 0x9a0   : > { %7602 = vrot.lane.b32.xlu2 %v7523_v33, %s9864_s24  ;;  %v7691_v11 = vsel %vm6611_vm15, %v7689_v37, %v7690_v6 }
 0x9a1   : > { %v8482_v60 = vrot.slane %v8480_v56, 3  ;;  %v8485_v17 = vrot.slane %v8483_v55, 4  ;;  %v8493_v23 = vor.u32 %v8492_v63, %v8489_v9  ;;  %7594 = vrot.lane.b32.xlu1 %v7491_v0, %s9864_s24 }
 0x9a2   : > { %v14881_v14 = vpop.permute.xlu2 %7436 }
 0x9a3   : > { %v8486_v47 = vor.u32 %v8485_v17, %v8482_v60  ;;  %7410 = vrot.lane.b32.xlu0 %v7363_v59, %s9863_s23  ;;  %v7401_v2 = vpop.permute.xlu1 %7400 }
 0x9a4   : > { %v8127_v48 = vsel %vm8105_vm7, %v14561_v24, %v7401_v2 }
 0x9a5   : > { %v7387_v58 = vpop.permute.xlu0 %7386  ;;  %v8494_v21 = vsel %vm8284_vm9, %v8486_v47, %v8493_v23 }
 0x9a6   : > { %8987 = vmatmul.msk.bf16.gmra.mxu3 %vm8552_vm10, %v8494_v21  ;;  %v8113_v43 = vsel %vm8105_vm7, %v14496_v1, %v7387_v58 }
 0x9a8   : > { %7744 = vrot.lane.b32.xlu2 %v7689_v37, %s9865_s26 }
 0x9a9   : > { %7730 = vrot.lane.b32.xlu1 %v7679_v50, %s9865_s26 }
 0x9aa   : > { %v14894_v20 = vpop.permute.xlu2 %7616 }
 0x9ab   : > { %7728 = vrot.lane.b32.xlu0 %v7677_v41, %s9865_s26  ;;  %v7599_v18 = vpop.permute.xlu1 %7598 }
 0x9ac   : > { %v8188_v10 = vsel %vm8170_vm6, %v8129_v54, %v7599_v18  ;;  %v8187_v34 = vsel %vm8170_vm6, %v8127_v48, %v7599_v18 }
 0x9ad   : > { %v7591_v49 = vpop.permute.xlu0 %7590  ;;  %v8243_v30 = vsel %vm8219_vm8, %v8188_v10, %v7739_v27  ;;  %v8163_v10 = vsel %vm8105_vm7, %v14686_v28, %v14881_v14 }
 0x9ae   : > { %v8175_v51 = vsel %vm8170_vm6, %v8111_v36, %v7591_v49  ;;  %v8367_v12 = vshrl.u32 %v8243_v30, 16  ;;  %v8370_v29 = vshll.u32 %v8243_v30, 16  ;;  %v8176_v27 = vsel %vm8170_vm6, %v8113_v43, %v7591_v49 }
 0x9af   : > { %v8225_v22 = vsel %vm8219_vm8, %v8175_v51, %v14857_v53  ;;  %v8214_v51 = vsel %vm8170_vm6, %v8163_v10, %v14894_v20 }
 0x9b0   : > { %v8300_v61 = vshrl.u32 %v8225_v22, 16  ;;  %v8303_v5 = vshll.u32 %v8225_v22, 16  ;;  %v8369_v13 = vrot.slane %v8367_v12, 3  ;;  %v8372_v53 = vrot.slane %v8370_v29, 4 }
 0x9b2   : > { %v7773_v24 = vpop.permute.xlu2 %7772  ;;  %v8302_v1 = vrot.slane %v8300_v61, 3  ;;  %v8305_v38 = vrot.slane %v8303_v5, 4  ;;  %v8373_v17 = vor.u32 %v8372_v53, %v8369_v13 }
 0x9b3   : > { %7746 = vrot.lane.b32.xlu0 %v7691_v11, %s9865_s26  ;;  %v7737_v31 = vpop.permute.xlu1 %7736  ;;  %v8277_v29 = vsel %vm8219_vm8, %v8214_v51, %v7773_v24 }
 0x9b4   : > { %v8241_v0 = vsel %vm8219_vm8, %v8187_v34, %v7737_v31  ;;  %v8306_v3 = vor.u32 %v8305_v38, %v8302_v1  ;;  %v8495_v34 = vshrl.u32 %v8277_v29, 16  ;;  %v8498_v31 = vshll.u32 %v8277_v29, 16 }
 0x9b5   : > { %v7723_v8 = vpop.permute.xlu0 %7722  ;;  %v8360_v62 = vshrl.u32 %v8241_v0, 16  ;;  %v8363_v33 = vshll.u32 %v8241_v0, 16 }
 0x9b6   : > { %v8227_v56 = vsel %vm8219_vm8, %v8176_v27, %v7723_v8 }
 0x9b7   : > { %v8362_v55 = vrot.slane %v8360_v62, 3  ;;  %v8365_v59 = vrot.slane %v8363_v33, 4  ;;  %v8307_v9 = vshrl.u32 %v8227_v56, 16  ;;  %v8310_v63 = vshll.u32 %v8227_v56, 16 }
 0x9b8   : > { %v8497_v33 = vrot.slane %v8495_v34, 3  ;;  %v8500_v56 = vrot.slane %v8498_v31, 4  ;;  %v8712_v31 = vld [vmem:[%s9921_s22 + $0x80] sm:$0xff] }
 0x9b9   : > { %v8366_v60 = vor.u32 %v8365_v59, %v8362_v55  ;;  %v8309_v46 = vrot.slane %v8307_v9, 3  ;;  %v8312_v23 = vrot.slane %v8310_v63, 4 }
 0x9ba   : > { %v7391_v21 = vpop.permute.xlu2 %7390  ;;  %v8501_v9 = vor.u32 %v8500_v56, %v8497_v33  ;;  %v14976_v33 = vld [vmem:[%s9921_s22 + $0x48] sm:$0xff]  ;;  %v14982_v56 = vld [vmem:[%s9921_s22 + $0x98] sm:$0xff] }
 0x9bb   : > { %v7423_v47 = vpop.permute.xlu1 %7422  ;;  %v8374_v41 = vsel %vm8284_vm9, %v8366_v60, %v8373_v17  ;;  %v8313_v52 = vor.u32 %v8312_v23, %v8309_v46  ;;  %v8117_v17 = vsel %vm8105_vm7, %v14349_v4, %v7391_v21 }
 0x9bc   : > { %8979 = vmatmul.msk.bf16.gmra.mxu1 %vm8552_vm10, %v8374_v41  ;;  %v8149_v45 = vsel %vm8105_vm7, %v14652_v35, %v7423_v47 }
 0x9bd   : > { %v7421_v2 = vpop.permute.xlu0 %7420  ;;  %v8314_v58 = vsel %vm8284_vm9, %v8306_v3, %v8313_v52 }
 0x9be   : > { %8975 = vmatmul.msk.bf16.gmra.mxu0 %vm8552_vm10, %v8314_v58  ;;  %v8147_v49 = vsel %vm8105_vm7, %v14565_v26, %v7421_v2 }
 0x9c2   : > { %v7593_v54 = vpop.permute.xlu2 %7592 }
 0x9c3   : > { %v7609_v37 = vpop.permute.xlu1 %7608  ;;  %v8179_v23 = vsel %vm8170_vm6, %v8117_v17, %v7593_v54  ;;  %v15009_v17 = vld [vmem:[%s9921_s22 + $0xe0] sm:$0xff] }
 0x9c4   : > { %v8203_v18 = vsel %vm8170_vm6, %v8149_v45, %v7609_v37  ;;  %v8202_v11 = vsel %vm8170_vm6, %v8147_v49, %v7609_v37 }
 0x9c5   : > { %v7439_v50 = vpop.permute.xlu0 %7438 }
 0x9c6   : > { %v8165_v26 = vsel %vm8105_vm7, %v14628_v40, %v7439_v50 }
 0x9c7   : > { %v8215_v53 = vsel %vm8170_vm6, %v8165_v26, %v14894_v20 }
 0x9ca   : > { %v7727_v8 = vpop.permute.xlu2 %7726 }
 0x9cb   : > { %v7759_v6 = vpop.permute.xlu1 %7758  ;;  %v8231_v47 = vsel %vm8219_vm8, %v8179_v23, %v7727_v8  ;;  %v8721_v8 = vld [vmem:[%s9921_s22 + $0xc8] sm:$0xff] }
 0x9cc   : > { %v8263_v36 = vsel %vm8219_vm8, %v8203_v18, %v7759_v6  ;;  %v8322_v2 = vshrl.u32 %v8231_v47, 16  ;;  %v8325_v3 = vshll.u32 %v8231_v47, 16  ;;  %v15018_v23 = vld [vmem:[%s9921_s22 + $0x28] sm:$0xff]  ;;  %v15021_v47 = vld [vmem:[%s9921_s22 + $0x60] sm:$0xff] }
 0x9cd   : > { %v7757_v30 = vpop.permute.xlu0 %7756  ;;  %v8442_v35 = vshrl.u32 %v8263_v36, 16  ;;  %v8445_v12 = vshll.u32 %v8263_v36, 16 }
 0x9ce   : > { %v8261_v22 = vsel %vm8219_vm8, %v8202_v11, %v7757_v30  ;;  %v8324_v50 = vrot.slane %v8322_v2, 3  ;;  %v8327_v45 = vrot.slane %v8325_v3, 4  ;;  %v15027_v2 = vld [vmem:[%s9921_s22 + $0xb0] sm:$0xff] }
 0x9cf   : > { %v8444_v48 = vrot.slane %v8442_v35, 3  ;;  %v8447_v43 = vrot.slane %v8445_v12, 4  ;;  %v8435_v28 = vshrl.u32 %v8261_v22, 16  ;;  %v8438_v14 = vshll.u32 %v8261_v22, 16  ;;  %v15030_v3 = vld [vmem:[%s9921_s22 + $0xf0] sm:$0xff] }
 0x9d0   : > { %v8328_v30 = vor.u32 %v8327_v45, %v8324_v50 }
 0x9d1   : > { %v8448_v27 = vor.u32 %v8447_v43, %v8444_v48  ;;  %v8437_v61 = vrot.slane %v8435_v28, 3  ;;  %v8440_v5 = vrot.slane %v8438_v14, 4 }
 0x9d2   : > { %v14944_v41 = vpop.permute.xlu2 %7424 }
 0x9d3   : > { %v7389_v0 = vpop.permute.xlu1 %7388  ;;  %v8441_v13 = vor.u32 %v8440_v5, %v8437_v61  ;;  %v8713_v5 = vld [vmem:[%s9921_s22 + $0x88] sm:$0xff] }
 0x9d4   : > { %v8115_v52 = vsel %vm8105_vm7, %v14486_v15, %v7389_v0  ;;  %v8720_v0 = vld [vmem:[%s9921_s22 + $0xc0] sm:$0xff] }
 0x9d5   : > { %v7775_v62 = vpop.permute.xlu0 %7774  ;;  %v8449_v1 = vsel %vm8284_vm9, %v8441_v13, %v8448_v27  ;;  %v8178_v37 = vsel %vm8170_vm6, %v8115_v52, %v7593_v54  ;;  %v14967_v13 = vld [vmem:[%s9921_s22] sm:$0xff]  ;;  %v15024_v52 = vld [vmem:[%s9921_s22 + $0x68] sm:$0xff] }
 0x9d6   : > { %v8279_v24 = vsel %vm8219_vm8, %v8215_v53, %v7775_v62  ;;  %8984 = vmatmul.msk.bf16.gmra.mxu2 %vm8552_vm10, %v8449_v1  ;;  %v14970_v53 = vld [vmem:[%s9921_s22 + $0x8] sm:$0xff]  ;;  %v14973_v62 = vld [vmem:[%s9921_s22 + $0x40] sm:$0xff]  ;;  %v14991_v1 = vld [vmem:[%s9921_s22 + $0x10] sm:$0xff] }
 0x9d7   : > { %v8502_v55 = vshrl.u32 %v8279_v24, 16  ;;  %v8505_v59 = vshll.u32 %v8279_v24, 16  ;;  %v14979_v24 = vld [vmem:[%s9921_s22 + $0x90] sm:$0xff] }
 0x9d9   : > { %v8504_v40 = vrot.slane %v8502_v55, 3  ;;  %v8507_v38 = vrot.slane %v8505_v59, 4  ;;  %v14985_v55 = vld [vmem:[%s9921_s22 + $0xd0] sm:$0xff]  ;;  %v14988_v59 = vld [vmem:[%s9921_s22 + $0xd8] sm:$0xff] }
 0x9da   : > { %v14950_v36 = vpop.permute.xlu2 %7442 }
 0x9db   : > { %v8508_v63 = vor.u32 %v8507_v38, %v8504_v40  ;;  %v7407_v60 = vpop.permute.xlu1 %7406  ;;  %v14994_v40 = vld [vmem:[%s9921_s22 + $0x50] sm:$0xff]  ;;  %v14997_v38 = vld [vmem:[%s9921_s22 + $0x18] sm:$0xff] }
 0x9dc   : > { %v8133_v15 = vsel %vm8105_vm7, %v14586_v7, %v7407_v60  ;;  %v15006_v60 = vld [vmem:[%s9921_s22 + $0xa8] sm:$0xff] }
 0x9dd   : > { %v7405_v20 = vpop.permute.xlu0 %7404  ;;  %v8509_v46 = vsel %vm8284_vm9, %v8501_v9, %v8508_v63  ;;  %v15000_v9 = vld [vmem:[%s9921_s22 + $0x58] sm:$0xff]  ;;  %v15003_v63 = vld [vmem:[%s9921_s22 + $0xa0] sm:$0xff] }
 0x9de   : > { %8988 = vmatmul.msk.bf16.gmra.mxu3 %vm8552_vm10, %v8509_v46  ;;  %v8131_v54 = vsel %vm8105_vm7, %v14593_v25, %v7405_v20  ;;  %v15012_v20 = vld [vmem:[%s9921_s22 + $0xe8] sm:$0xff]  ;;  %v15015_v46 = vld [vmem:[%s9921_s22 + $0x20] sm:$0xff] }
 0x9e2   : > { %v7761_v50 = vpop.permute.xlu2 %7760 }
 0x9e3   : > { %v7725_v58 = vpop.permute.xlu1 %7724 }
 0x9e4   : > { %v8229_v4 = vsel %vm8219_vm8, %v8178_v37, %v7725_v58  ;;  %v15033_v37 = vld [vmem:[%s9921_s22 + $0xb8] sm:$0xff] }
 0x9e5   : > { %v7601_v21 = vpop.permute.xlu0 %7600  ;;  %v8315_v18 = vshrl.u32 %v8229_v4, 16  ;;  %v8318_v6 = vshll.u32 %v8229_v4, 16  ;;  %v15036_v4 = vld [vmem:[%s9921_s22 + $0xf8] sm:$0xff] }
 0x9e6   : > { %v8191_v11 = vsel %vm8170_vm6, %v8133_v15, %v7601_v21  ;;  %v8190_v29 = vsel %vm8170_vm6, %v8131_v54, %v7601_v21  ;;  %v15039_v21 = vld [vmem:[%s9921_s22 + $0x30] sm:$0xff] }
 0x9e7   : > { %v8317_v10 = vrot.slane %v8315_v18, 3  ;;  %v8320_v49 = vrot.slane %v8318_v6, 4  ;;  %v15042_v6 = vld [vmem:[%s9921_s22 + $0x38] sm:$0xff] }
 0x9e9   : > { %v8321_v51 = vor.u32 %v8320_v49, %v8317_v10  ;;  %v15045_v10 = vld [vmem:[%s9921_s22 + $0x70] sm:$0xff]  ;;  %v15048_v49 = vld [vmem:[%s9921_s22 + $0x78] sm:$0xff] }
 0x9eb   : > { %v7743_v35 = vpop.permute.xlu1 %7742  ;;  %v8329_v12 = vsel %vm8284_vm9, %v8321_v51, %v8328_v30 }
 0x9ec   : > { %v8247_v22 = vsel %vm8219_vm8, %v8191_v11, %v7743_v35  ;;  %8976 = vmatmul.msk.bf16.gmra.mxu0 %vm8552_vm10, %v8329_v12 }
 0x9ed   : > { %v7741_v48 = vpop.permute.xlu0 %7740  ;;  %v8382_v7 = vshrl.u32 %v8247_v22, 16  ;;  %v8385_v25 = vshll.u32 %v8247_v22, 16 }
 0x9ee   : > { %v8245_v43 = vsel %vm8219_vm8, %v8190_v29, %v7741_v48  ;;  %v8169_v29 = vsel %vm8105_vm7, %v14707_v19, %v14950_v36 }
 0x9ef   : > { %v8375_v28 = vshrl.u32 %v8245_v43, 16  ;;  %v8378_v14 = vshll.u32 %v8245_v43, 16  ;;  %v8384_v34 = vrot.slane %v8382_v7, 3  ;;  %v8387_v26 = vrot.slane %v8385_v25, 4  ;;  %v7779_v7 = vpop.permute.xlu2 %7778 }
 0x9f1   : > { %v8377_v27 = vrot.slane %v8375_v28, 3  ;;  %v8380_v61 = vrot.slane %v8378_v14, 4  ;;  %v8388_v58 = vor.u32 %v8387_v26, %v8384_v34  ;;  %v8654_v18 = vpop.f32.mrf.mxu2  ;;  %v8151_v28 = vsel %vm8105_vm7, %v14645_v32, %v14944_v41 }
 0x9f2   : > { %v8744_v30 = vadd.f32 %v8712_v31, %v8654_v18 }
 0x9f3   : > { %v8381_v45 = vor.u32 %v8380_v61, %v8377_v27  ;;  %v7441_v51 = vpop.permute.xlu1 %7440 }
 0x9f4   : > { %8777 = vst.msk [vmem:[%s9926_s25 + $0x80] sm:$0xff] %vm7780_vm0, %v8744_v30  ;;  %v8167_v61 = vsel %vm8105_vm7, %v14711_v42, %v7441_v51 }
 0x9f5   : > { %v7427_v15 = vpop.permute.xlu0 %7426  ;;  %v8389_v54 = vsel %vm8284_vm9, %v8381_v45, %v8388_v58 }
 0x9f6   : > { %8980 = vmatmul.msk.bf16.gmra.mxu1 %vm8552_vm10, %v8389_v54 }
 0x9f9   : > { %v8674_v11 = vpop.f32.mrf.mxu3  ;;  %v8656_v12 = vpop.f32.mrf.mxu2 }
 0x9fa   : > { %v8752_v35 = vadd.f32 %v8720_v0, %v8674_v11  ;;  %v8745_v22 = vadd.f32 %v8713_v5, %v8656_v12  ;;  %v8153_v5 = vsel %vm8105_vm7, %v14590_v16, %v7427_v15 }
 0x9fb   : > { %v7619_v48 = vpop.permute.xlu1 %7618 }
 0x9fc   : > { %8785 = vst.msk [vmem:[%s9926_s25 + $0xc0] sm:$0xff] %vm7780_vm0, %v8752_v35  ;;  %v8218_v25 = vsel %vm8170_vm6, %v8169_v29, %v7619_v48  ;;  %v8217_v32 = vsel %vm8170_vm6, %v8167_v61, %v7619_v48  ;;  %v7409_v29 = vpop.permute.xlu2 %7408 }
 0x9fd   : > { %v7611_v43 = vpop.permute.xlu0 %7610  ;;  %v8283_v14 = vsel %vm8219_vm8, %v8218_v25, %v7779_v7  ;;  %8778 = vst.msk [vmem:[%s9926_s25 + $0x88] sm:$0xff] %vm7780_vm0, %v8745_v22 }
 0x9fe   : > { %v8205_v34 = vsel %vm8170_vm6, %v8151_v28, %v7611_v43  ;;  %v8517_v19 = vshrl.u32 %v8283_v14, 16  ;;  %v8520_v26 = vshll.u32 %v8283_v14, 16  ;;  %v8206_v41 = vsel %vm8170_vm6, %v8153_v5, %v7611_v43 }
 0x9ff   : > { %v8265_v31 = vsel %vm8219_vm8, %v8205_v34, %v7761_v50 }
 0xa00   : > { %v8519_v58 = vrot.slane %v8517_v19, 3  ;;  %v8450_v45 = vshrl.u32 %v8265_v31, 16  ;;  %v8453_v18 = vshll.u32 %v8265_v31, 16  ;;  %v8522_v54 = vrot.slane %v8520_v26, 4 }
 0xa01   : > { %v8676_v36 = vpop.f32.mrf.mxu3 }
 0xa02   : > { %v8753_v27 = vadd.f32 %v8721_v8, %v8676_v36  ;;  %v8452_v22 = vrot.slane %v8450_v45, 3  ;;  %v8455_v48 = vrot.slane %v8453_v18, 4  ;;  %v8523_v28 = vor.u32 %v8522_v54, %v8519_v58 }
 0xa03   : > { %v7777_v0 = vpop.permute.xlu1 %7776  ;;  %v8614_v30 = vpop.f32.mrf.mxu0 }
 0xa04   : > { %8786 = vst.msk [vmem:[%s9926_s25 + $0xc8] sm:$0xff] %vm7780_vm0, %v8753_v27  ;;  %v8281_v8 = vsel %vm8219_vm8, %v8217_v32, %v7777_v0  ;;  %v8728_v42 = vadd.f32 %v14967_v13, %v8614_v30  ;;  %v8456_v61 = vor.u32 %v8455_v48, %v8452_v22 }
 0xa05   : > { %v7763_v50 = vpop.permute.xlu0 %7762  ;;  %v8510_v51 = vshrl.u32 %v8281_v8, 16  ;;  %v8513_v16 = vshll.u32 %v8281_v8, 16 }
 0xa06   : > { %v8267_v15 = vsel %vm8219_vm8, %v8206_v41, %v7763_v50  ;;  %8761 = vst.msk [vmem:[%s9926_s25] sm:$0xff] %vm7780_vm0, %v8728_v42 }
 0xa07   : > { %v8512_v11 = vrot.slane %v8510_v51, 3  ;;  %v8515_v35 = vrot.slane %v8513_v16, 4  ;;  %v8457_v12 = vshrl.u32 %v8267_v15, 16  ;;  %v8460_v7 = vshll.u32 %v8267_v15, 16 }
 0xa09   : > { %v8516_v25 = vor.u32 %v8515_v35, %v8512_v11  ;;  %v8459_v43 = vrot.slane %v8457_v12, 3  ;;  %v8462_v14 = vrot.slane %v8460_v7, 4 }
 0xa0b   : > { %v8634_v13 = vpop.f32.mrf.mxu1  ;;  %v7395_v19 = vpop.permute.xlu1 %7394  ;;  %v8524_v36 = vsel %vm8284_vm9, %v8516_v25, %v8523_v28  ;;  %v8463_v26 = vor.u32 %v8462_v14, %v8459_v43  ;;  %v15934_v14 = vld [vmem:[#allocation164_spill] sm:$0xff] }
 0xa0c   : > { %v8736_v34 = vadd.f32 %v14973_v62, %v8634_v13  ;;  %v8616_v31 = vpop.f32.mrf.mxu0  ;;  %8989 = vmatmul.msk.bf16.gmra.mxu3 %vm8552_vm10, %v8524_v36  ;;  %v7603_v62 = vpop.permute.xlu2 %7602  ;;  %v8121_v18 = vsel %vm8105_vm7, %v14525_v39, %v7395_v19 }
 0xa0d   : > { %v7393_v27 = vpop.permute.xlu0 %7392  ;;  %v8729_v5 = vadd.f32 %v14970_v53, %v8616_v31  ;;  %v8464_v32 = vsel %vm8284_vm9, %v8456_v61, %v8463_v26 }
 0xa0e   : > { %8769 = vst.msk [vmem:[%s9926_s25 + $0x40] sm:$0xff] %vm7780_vm0, %v8736_v34  ;;  %8985 = vmatmul.msk.bf16.gmra.mxu2 %vm8552_vm10, %v8464_v32  ;;  %v8119_v53 = vsel %vm8105_vm7, %v14532_v44, %v7393_v27 }
 0xa0f   : > { %8762 = vst.msk [vmem:[%s9926_s25 + $0x8] sm:$0xff] %vm7780_vm0, %v8729_v5 }
 0xa13   : > { %v8636_v41 = vpop.f32.mrf.mxu1  ;;  %v7595_v58 = vpop.permute.xlu1 %7594 }
 0xa14   : > { %v8737_v0 = vadd.f32 %v14976_v33, %v8636_v41  ;;  %v8182_v30 = vsel %vm8170_vm6, %v8121_v18, %v7595_v58  ;;  %v7745_v50 = vpop.permute.xlu2 %7744  ;;  %v8181_v54 = vsel %vm8170_vm6, %v8119_v53, %v7595_v58  ;;  %v8135_v33 = vsel %vm8105_vm7, %v14490_v57, %v7409_v29 }
 0xa15   : > { %v7411_v45 = vpop.permute.xlu0 %7410  ;;  %v8193_v39 = vsel %vm8170_vm6, %v8135_v33, %v7603_v62 }
 0xa16   : > { %8770 = vst.msk [vmem:[%s9926_s25 + $0x48] sm:$0xff] %vm7780_vm0, %v8737_v0  ;;  %v8249_v12 = vsel %vm8219_vm8, %v8193_v39, %v7745_v50  ;;  %v8137_v57 = vsel %vm8105_vm7, %v15934_v14, %v7411_v45 }
 0xa17   : > { %v8390_v13 = vshrl.u32 %v8249_v12, 16  ;;  %v8393_v34 = vshll.u32 %v8249_v12, 16  ;;  %v8194_v36 = vsel %vm8170_vm6, %v8137_v57, %v7603_v62 }
 0xa19   : > { %v8395_v61 = vrot.slane %v8393_v34, 4 }
 0xa1b   : > { %v7731_v8 = vpop.permute.xlu1 %7730 }
 0xa1c   : > { %v8235_v42 = vsel %vm8219_vm8, %v8182_v30, %v7731_v8 }
 0xa1d   : > { %v7729_v51 = vpop.permute.xlu0 %7728  ;;  %v8337_v16 = vshrl.u32 %v8235_v42, 16  ;;  %v8340_v15 = vshll.u32 %v8235_v42, 16 }
 0xa1e   : > { %v8233_v11 = vsel %vm8219_vm8, %v8181_v54, %v7729_v51 }
 0xa1f   : > { %v8330_v44 = vshrl.u32 %v8233_v11, 16  ;;  %v8333_v35 = vshll.u32 %v8233_v11, 16  ;;  %v8339_v22 = vrot.slane %v8337_v16, 3  ;;  %v8342_v48 = vrot.slane %v8340_v15, 4  ;;  %v8659_v7 = vpop.f32.mrf.mxu2 }
 0xa20   : > { %v8746_v28 = vadd.f32 %v14979_v24, %v8659_v7  ;;  %v8392_v24 = vrot.slane %v8390_v13, 3 }
 0xa21   : > { %v8332_v25 = vrot.slane %v8330_v44, 3  ;;  %v8335_v43 = vrot.slane %v8333_v35, 4  ;;  %v8343_v29 = vor.u32 %v8342_v48, %v8339_v22 }
 0xa22   : > { %8779 = vst.msk [vmem:[%s9926_s25 + $0x90] sm:$0xff] %vm7780_vm0, %v8746_v28  ;;  %v8396_v53 = vor.u32 %v8395_v61, %v8392_v24 }
 0xa23   : > { %v8336_v19 = vor.u32 %v8335_v43, %v8332_v25 }
 0xa25   : > { %v7747_v26 = vpop.permute.xlu0 %7746  ;;  %v8344_v31 = vsel %vm8284_vm9, %v8336_v19, %v8343_v29 }
 0xa26   : > { %v8251_v27 = vsel %vm8219_vm8, %v8194_v36, %v7747_v26  ;;  %8977 = vmatmul.msk.bf16.gmra.mxu0 %vm8552_vm10, %v8344_v31 }
 0xa27   : > { %v8397_v5 = vshrl.u32 %v8251_v27, 16  ;;  %v8400_v32 = vshll.u32 %v8251_v27, 16  ;;  %v8661_v41 = vpop.f32.mrf.mxu2 }
 0xa28   : > { %v8747_v62 = vadd.f32 %v14982_v56, %v8661_v41 }
 0xa29   : > { %v8399_v0 = vrot.slane %v8397_v5, 3  ;;  %v8402_v58 = vrot.slane %v8400_v32, 4  ;;  %v8679_v45 = vpop.f32.mrf.mxu3 }
 0xa2a   : > { %v8754_v18 = vadd.f32 %v14985_v55, %v8679_v45  ;;  %8780 = vst.msk [vmem:[%s9926_s25 + $0x98] sm:$0xff] %vm7780_vm0, %v8747_v62 }
 0xa2b   : > { %v8403_v30 = vor.u32 %v8402_v58, %v8399_v0 }
 0xa2c   : > { %8787 = vst.msk [vmem:[%s9926_s25 + $0xd0] sm:$0xff] %vm7780_vm0, %v8754_v18 }
 0xa2d   : > { %v8404_v8 = vsel %vm8284_vm9, %v8396_v53, %v8403_v30 }
 0xa2e   : > { %8981 = vmatmul.msk.bf16.gmra.mxu1 %vm8552_vm10, %v8404_v8 }
 0xa31   : > { %v8681_v50 = vpop.f32.mrf.mxu3 }
 0xa32   : > { %v8755_v54 = vadd.f32 %v14988_v59, %v8681_v50 }
 0xa34   : > { %8788 = vst.msk [vmem:[%s9926_s25 + $0xd8] sm:$0xff] %vm7780_vm0, %v8755_v54 }
 0xa39   : > { %v8639_v56 = vpop.f32.mrf.mxu1 }
 0xa3a   : > { %v8738_v55 = vadd.f32 %v14994_v40, %v8639_v56 }
 0xa3b   : > { %v8619_v42 = vpop.f32.mrf.mxu0 }
 0xa3c   : > { %8771 = vst.msk [vmem:[%s9926_s25 + $0x50] sm:$0xff] %vm7780_vm0, %v8738_v55  ;;  %v8730_v51 = vadd.f32 %v14991_v1, %v8619_v42 }
 0xa3e   : > { %8763 = vst.msk [vmem:[%s9926_s25 + $0x10] sm:$0xff] %vm7780_vm0, %v8730_v51 }
 0xa41   : > { %v8641_v33 = vpop.f32.mrf.mxu1 }
 0xa42   : > { %v8739_v16 = vadd.f32 %v15000_v9, %v8641_v33 }
 0xa43   : > { %v8621_v15 = vpop.f32.mrf.mxu0 }
 0xa44   : > { %8772 = vst.msk [vmem:[%s9926_s25 + $0x58] sm:$0xff] %vm7780_vm0, %v8739_v16  ;;  %v8731_v59 = vadd.f32 %v14997_v38, %v8621_v15 }
 0xa46   : > { %8764 = vst.msk [vmem:[%s9926_s25 + $0x18] sm:$0xff] %vm7780_vm0, %v8731_v59 }
 0xa59   : > { %v8664_v40 = vpop.f32.mrf.mxu2 }
 0xa5a   : > { %v8748_v11 = vadd.f32 %v15003_v63, %v8664_v40 }
 0xa5c   : > { %8781 = vst.msk [vmem:[%s9926_s25 + $0xa0] sm:$0xff] %vm7780_vm0, %v8748_v11 }
 0xa61   : > { %v8684_v1 = vpop.f32.mrf.mxu3  ;;  %v8666_v9 = vpop.f32.mrf.mxu2 }
 0xa62   : > { %v8756_v39 = vadd.f32 %v15009_v17, %v8684_v1  ;;  %v8749_v44 = vadd.f32 %v15006_v60, %v8666_v9 }
 0xa64   : > { %8789 = vst.msk [vmem:[%s9926_s25 + $0xe0] sm:$0xff] %vm7780_vm0, %v8756_v39 }
 0xa65   : > { %8782 = vst.msk [vmem:[%s9926_s25 + $0xa8] sm:$0xff] %vm7780_vm0, %v8749_v44 }
 0xa69   : > { %v8686_v38 = vpop.f32.mrf.mxu3  ;;  %v8624_v12 = vpop.f32.mrf.mxu0 }
 0xa6a   : > { %v8757_v35 = vadd.f32 %v15012_v20, %v8686_v38  ;;  %v8732_v63 = vadd.f32 %v15015_v46, %v8624_v12 }
 0xa6c   : > { %8790 = vst.msk [vmem:[%s9926_s25 + $0xe8] sm:$0xff] %vm7780_vm0, %v8757_v35 }
 0xa6d   : > { %8765 = vst.msk [vmem:[%s9926_s25 + $0x20] sm:$0xff] %vm7780_vm0, %v8732_v63 }
 0xa71   : > { %v8626_v17 = vpop.f32.mrf.mxu0 }
 0xa72   : > { %v8733_v60 = vadd.f32 %v15018_v23, %v8626_v17 }
 0xa73   : > { %v8644_v22 = vpop.f32.mrf.mxu1 }
 0xa74   : > { %v8740_v48 = vadd.f32 %v15021_v47, %v8644_v22  ;;  %8766 = vst.msk [vmem:[%s9926_s25 + $0x28] sm:$0xff] %vm7780_vm0, %v8733_v60 }
 0xa76   : > { %8773 = vst.msk [vmem:[%s9926_s25 + $0x60] sm:$0xff] %vm7780_vm0, %v8740_v48 }
 0xa7b   : > { %v8646_v20 = vpop.f32.mrf.mxu1 }
 0xa7c   : > { %v8741_v46 = vadd.f32 %v15024_v52, %v8646_v20 }
 0xa7e   : > { %8774 = vst.msk [vmem:[%s9926_s25 + $0x68] sm:$0xff] %vm7780_vm0, %v8741_v46 }
 0xa8f   : > { %v8689_v7 = vpop.f32.mrf.mxu3 }
 0xa90   : > { %v8758_v25 = vadd.f32 %v15030_v3, %v8689_v7 }
 0xa91   : > { %v8669_v43 = vpop.f32.mrf.mxu2 }
 0xa92   : > { %8791 = vst.msk [vmem:[%s9926_s25 + $0xf0] sm:$0xff] %vm7780_vm0, %v8758_v25  ;;  %v8750_v23 = vadd.f32 %v15027_v2, %v8669_v43 }
 0xa94   : > { %8783 = vst.msk [vmem:[%s9926_s25 + $0xb0] sm:$0xff] %vm7780_vm0, %v8750_v23 }
 0xa97   : > { %v8691_v47 = vpop.f32.mrf.mxu3 }
 0xa98   : > { %v8759_v28 = vadd.f32 %v15036_v4, %v8691_v47 }
 0xa99   : > { %v8671_v52 = vpop.f32.mrf.mxu2 }
 0xa9a   : > { %8792 = vst.msk [vmem:[%s9926_s25 + $0xf8] sm:$0xff] %vm7780_vm0, %v8759_v28  ;;  %v8751_v14 = vadd.f32 %v15033_v37, %v8671_v52 }
 0xa9c   : > { %8784 = vst.msk [vmem:[%s9926_s25 + $0xb8] sm:$0xff] %vm7780_vm0, %v8751_v14 }
 0xaa3   : > { %v8629_v3 = vpop.f32.mrf.mxu0 }
 0xaa4   : > { %v8734_v57 = vadd.f32 %v15039_v21, %v8629_v3 }
 0xaa6   : > { %8767 = vst.msk [vmem:[%s9926_s25 + $0x30] sm:$0xff] %vm7780_vm0, %v8734_v57 }
 0xaab   : > { %v8631_v2 = vpop.f32.mrf.mxu0  ;;  %v8649_v29 = vpop.f32.mrf.mxu1 }
 0xaac   : > { %v8735_v13 = vadd.f32 %v15042_v6, %v8631_v2  ;;  %v8742_v34 = vadd.f32 %v15045_v10, %v8649_v29 }
 0xaae   : > { %8768 = vst.msk [vmem:[%s9926_s25 + $0x38] sm:$0xff] %vm7780_vm0, %v8735_v13 }
 0xaaf   : > { %8775 = vst.msk [vmem:[%s9926_s25 + $0x70] sm:$0xff] %vm7780_vm0, %v8742_v34 }
 0xab3   : > { %v8651_v4 = vpop.f32.mrf.mxu1 }
 0xab4   : > { %v8743_v37 = vadd.f32 %v15048_v49, %v8651_v4 }
 0xab6   : > { %8776 = vst.msk [vmem:[%s9926_s25 + $0x78] sm:$0xff] %vm7780_vm0, %v8743_v37 }
 0xab7 PF: > { %s13_s16 = sadd.s32 1, %s9847_s16   ;;  %s15935_s12 = smov %s9839_s14 }
 0xab8   : > { %p10_p10 = scmp.ge.s32.totalorder %s13_s16, 10   ;;  %s15936_s13 = smov %s9843_s15 }
 0xab9   : > { %s15937_s14 = smov %s15940_s17  ;;  %s15938_s15 = smov %s15944_s18 }
 0xaba   :  { %12 = sbr.rel (!%p10_p10) target bundleno = 3 (0x3), region = 89 }

</bundles_post_ra>
